<compile_context>
chip_gen: v7x
topology: tpu7x:2x2x1
jax: 0.10.0
libtpu: 0.0.40
codegen_flags: <defaults>
</compile_context>

<pallas_src>
import functools

import jax
import jax.numpy as jnp
from jax.experimental import pallas as pl
from jax.experimental.pallas import tpu as pltpu

# ---------------- config (small, lane-dense, shapes consistent w/ module) ---
IMG = 128
PATCH = 16
IN_CHANS = 3
EMBED_DIM = 128
DEPTH = 2
NUM_HEADS = 4
MLP_RATIO = 4
OUT_CHANS = 128
LN_EPS = 1e-6  # SAM uses nn.LayerNorm(eps=1e-6) and LayerNorm2d(eps=1e-6)


def _default_vmem_limit():
    """Per-generation scoped-VMEM budget (v7x has half the VMEM of v5e/v6e)."""
    try:
        cap = pltpu.get_tpu_info().vmem_capacity_bytes
        return int(min(96 * 1024 * 1024, (cap * 3) // 4))
    except Exception:
        return 32 * 1024 * 1024  # conservative fallback


_VMEM_LIMIT = _default_vmem_limit()


# ---------------- helpers ----------------------------------------------------
def _ln_f32(x, g, b, eps):
    mu = jnp.mean(x, axis=-1, keepdims=True)
    xc = x - mu
    var = jnp.mean(xc * xc, axis=-1, keepdims=True)
    return xc * jax.lax.rsqrt(var + eps) * g + b


def _pick_tile(dim, cap):
    """Largest tile <= cap that divides dim and is a multiple of 128."""
    if dim <= cap:
        return dim
    for t in range(min(dim, cap), 0, -1):
        if dim % t == 0 and t % 128 == 0:
            return t
    return dim


# ---------------- fused matmul kernels ---------------------------------------
def _mm_epilogue(out, b_ref, outg_ref, outb_ref, res_ref, activation,
                 has_out_ln, eps):
    if b_ref is not None:
        out = out + b_ref[...]
    if activation == "gelu":
        out = jax.nn.gelu(out, approximate=True)
    if has_out_ln:  # fused post-LayerNorm / LayerNorm2d over channels
        out = _ln_f32(out, outg_ref[...], outb_ref[...], eps)
    if res_ref is not None:
        out = out + res_ref[...].astype(jnp.float32)
    return out


def _fused_matmul_nk1_kernel(x_ref, w_ref, *rest, has_bias, has_in_ln,
                             has_out_ln, has_residual, activation, eps,
                             cache_ln):
    """K fits one tile: no accumulator, straight dot + epilogue -> o_ref."""
    idx = 0
    b_ref = None
    if has_bias:
        b_ref = rest[idx]; idx += 1
    ing_ref = inb_ref = None
    if has_in_ln:
        ing_ref = rest[idx]; inb_ref = rest[idx + 1]; idx += 2
    outg_ref = outb_ref = None
    if has_out_ln:
        outg_ref = rest[idx]; outb_ref = rest[idx + 1]; idx += 2
    res_ref = None
    if has_residual:
        res_ref = rest[idx]; idx += 1
    o_ref = rest[idx]; idx += 1
    xln_ref = rest[idx] if cache_ln else None

    if has_in_ln:
        if cache_ln:
            # Compute LN(x) once per M-tile (j == 0), reuse across all N tiles.
            @pl.when(pl.program_id(1) == 0)
            def _ln():
                x = x_ref[...].astype(jnp.float32)
                xln_ref[...] = _ln_f32(x, ing_ref[...], inb_ref[...],
                                       eps).astype(jnp.bfloat16)

            xb = xln_ref[...]
        else:
            x = x_ref[...].astype(jnp.float32)
            xb = _ln_f32(x, ing_ref[...], inb_ref[...], eps).astype(jnp.bfloat16)
    else:
        xb = x_ref[...].astype(jnp.bfloat16)

    out = jnp.dot(xb, w_ref[...], preferred_element_type=jnp.float32)
    out = _mm_epilogue(out, b_ref, outg_ref, outb_ref, res_ref, activation,
                       has_out_ln, eps)
    o_ref[...] = out.astype(o_ref.dtype)


def _fused_matmul_acc_kernel(x_ref, w_ref, *rest, has_bias, has_out_ln,
                             has_residual, activation, eps):
    """General K-tiled path (f32 VMEM accumulator). Not used when in_ln fuses
    (pre-LN forces tk == K, hence nk == 1)."""
    idx = 0
    b_ref = None
    if has_bias:
        b_ref = rest[idx]; idx += 1
    outg_ref = outb_ref = None
    if has_out_ln:
        outg_ref = rest[idx]; outb_ref = rest[idx + 1]; idx += 2
    res_ref = None
    if has_residual:
        res_ref = rest[idx]; idx += 1
    o_ref = rest[idx]
    acc_ref = rest[idx + 1]

    k = pl.program_id(2)

    @pl.when(k == 0)
    def _init():
        acc_ref[...] = jnp.zeros_like(acc_ref)

    acc_ref[...] += jnp.dot(x_ref[...].astype(jnp.bfloat16), w_ref[...],
                            preferred_element_type=jnp.float32)

    @pl.when(k == pl.num_programs(2) - 1)
    def _store():
        out = _mm_epilogue(acc_ref[...], b_ref, outg_ref, outb_ref, res_ref,
                           activation, has_out_ln, eps)
        o_ref[...] = out.astype(o_ref.dtype)


def fused_matmul(x, w, b=None, *, in_ln=None, out_ln=None, residual=None,
                 activation=None, eps=LN_EPS, tm=256, tn=256, tk=1024,
                 out_dtype=jnp.float32):
    M, K = x.shape
    N = w.shape[1]
    tm = _pick_tile(M, tm)
    tk = K if in_ln is not None else _pick_tile(K, tk)       # LN needs full K
    tn = N if out_ln is not None else _pick_tile(N, tn)      # LN needs full N
    nm, nn, nk = M // tm, N // tn, K // tk
    single_k = nk == 1
    cache_ln = (in_ln is not None) and single_k and (nn > 1)

    if single_k:
        in_specs = [
            pl.BlockSpec((tm, tk), lambda i, j: (i, 0)),
            pl.BlockSpec((tk, tn), lambda i, j: (0, j)),
        ]
        bias_spec = pl.BlockSpec((1, tn), lambda i, j: (0, j))
        inln_spec = pl.BlockSpec((1, tk), lambda i, j: (0, 0))
        outln_spec = pl.BlockSpec((1, tn), lambda i, j: (0, j))
        res_spec = pl.BlockSpec((tm, tn), lambda i, j: (i, j))
        out_spec = pl.BlockSpec((tm, tn), lambda i, j: (i, j))
        grid = (nm, nn)
        # The N axis must stay on one core when the LN cache is reused across j.
        dims = ("parallel", "arbitrary") if cache_ln else ("parallel", "parallel")
    else:
        in_specs = [
            pl.BlockSpec((tm, tk), lambda i, j, k: (i, k)),
            pl.BlockSpec((tk, tn), lambda i, j, k: (k, j)),
        ]
        bias_spec = pl.BlockSpec((1, tn), lambda i, j, k: (0, j))
        inln_spec = pl.BlockSpec((1, tk), lambda i, j, k: (0, k))
        outln_spec = pl.BlockSpec((1, tn), lambda i, j, k: (0, j))
        res_spec = pl.BlockSpec((tm, tn), lambda i, j, k: (i, j))
        out_spec = pl.BlockSpec((tm, tn), lambda i, j, k: (i, j))
        grid = (nm, nn, nk)
        dims = ("parallel", "parallel", "arbitrary")

    args = [x, w.astype(jnp.bfloat16)]
    if b is not None:
        in_specs.append(bias_spec)
        args.append(b.reshape(1, N).astype(jnp.float32))
    if in_ln is not None:
        g, be = in_ln
        in_specs += [inln_spec, inln_spec]
        args += [g.reshape(1, K).astype(jnp.float32),
                 be.reshape(1, K).astype(jnp.float32)]
    if out_ln is not None:
        g, be = out_ln
        in_specs += [outln_spec, outln_spec]
        args += [g.reshape(1, N).astype(jnp.float32),
                 be.reshape(1, N).astype(jnp.float32)]
    if residual is not None:
        in_specs.append(res_spec)
        args.append(residual)

    scratch_shapes = []
    if single_k:
        if cache_ln:
            scratch_shapes.append(pltpu.VMEM((tm, tk), jnp.bfloat16))
        kernel = functools.partial(
            _fused_matmul_nk1_kernel,
            has_bias=b is not None, has_in_ln=in_ln is not None,
            has_out_ln=out_ln is not None, has_residual=residual is not None,
            activation=activation, eps=eps, cache_ln=cache_ln)
    else:
        scratch_shapes.append(pltpu.VMEM((tm, tn), jnp.float32))
        kernel = functools.partial(
            _fused_matmul_acc_kernel,
            has_bias=b is not None,
            has_out_ln=out_ln is not None, has_residual=residual is not None,
            activation=activation, eps=eps)

    return pl.pallas_call(
        kernel,
        out_shape=jax.ShapeDtypeStruct((M, N), out_dtype),
        grid=grid,
        in_specs=in_specs,
        out_specs=out_spec,
        scratch_shapes=scratch_shapes,
        compiler_params=pltpu.CompilerParams(
            dimension_semantics=dims,
            vmem_limit_bytes=_VMEM_LIMIT),
    )(*args)


# ---------------- attention kernel (lane-dense, heads in one call) -----------
def _attn_kernel(qkv_ref, o_ref, *, num_heads, head_dim, scale):
    D = num_heads * head_dim
    qkv = qkv_ref[0]                                          # (T, 3D) bf16
    for h in range(num_heads):                                # static unroll
        s0 = h * head_dim
        qh = qkv[:, s0:s0 + head_dim]                         # bf16 (T, hd)
        kh = qkv[:, D + s0:D + s0 + head_dim]
        vh = qkv[:, 2 * D + s0:2 * D + s0 + head_dim]
        s = jax.lax.dot_general(qh, kh, (((1,), (1,)), ((), ())),
                                preferred_element_type=jnp.float32) * scale
        s = s - jnp.max(s, axis=-1, keepdims=True)
        p = jnp.exp(s)
        inv = pl.reciprocal(jnp.sum(p, axis=-1, keepdims=True), approx=True)
        pv = jnp.dot(p.astype(jnp.bfloat16), vh,
                     preferred_element_type=jnp.float32) * inv        # (T, hd)
        o_ref[0, :, s0:s0 + head_dim] = pv.astype(o_ref.dtype)


def attention(qkv, num_heads):
    B, T, threeD = qkv.shape
    D = threeD // 3
    head_dim = D // num_heads
    return pl.pallas_call(
        functools.partial(_attn_kernel, num_heads=num_heads,
                          head_dim=head_dim, scale=head_dim ** -0.5),
        out_shape=jax.ShapeDtypeStruct((B, T, D), jnp.bfloat16),
        grid=(B,),
        in_specs=[pl.BlockSpec((1, T, threeD), lambda b: (b, 0, 0))],
        out_specs=pl.BlockSpec((1, T, D), lambda b: (b, 0, 0)),
        compiler_params=pltpu.CompilerParams(
            dimension_semantics=("parallel",),
            vmem_limit_bytes=_VMEM_LIMIT),
    )(qkv)


# ---------------- neck 3x3 conv + LayerNorm2d kernel --------------------------
def _conv3x3_ln_kernel(x_ref, w_ref, g_ref, b_ref, o_ref, *, Hp, Wp, C, eps):
    xv = x_ref[0].astype(jnp.bfloat16)                        # (Hp+2, Wp+2, C)
    acc = jnp.zeros((Hp * Wp, C), jnp.float32)
    for di in range(3):
        for dj in range(3):
            patch = xv[di:di + Hp, dj:dj + Wp, :].reshape(Hp * Wp, C)
            acc = acc + jnp.dot(patch, w_ref[di * 3 + dj],
                                preferred_element_type=jnp.float32)
    y = _ln_f32(acc, g_ref[...], b_ref[...], eps)             # LayerNorm2d
    o_ref[0] = y.reshape(Hp, Wp, C).astype(o_ref.dtype)
    # TODO(synk): at real SAM scale (Hp=Wp=64, C=256) tile the spatial dim and
    # accumulate in a VMEM scratch instead of a register accumulator.


def conv3x3_ln(y, w9, gamma, beta, eps=LN_EPS):
    B, Hp, Wp, C = y.shape
    yp = jnp.pad(y, ((0, 0), (1, 1), (1, 1), (0, 0)))         # pad=1 (glue)
    return pl.pallas_call(
        functools.partial(_conv3x3_ln_kernel, Hp=Hp, Wp=Wp, C=C, eps=eps),
        out_shape=jax.ShapeDtypeStruct((B, Hp, Wp, C), jnp.float32),
        grid=(B,),
        in_specs=[
            pl.BlockSpec((1, Hp + 2, Wp + 2, C), lambda b: (b, 0, 0, 0)),
            pl.BlockSpec((9, C, C), lambda b: (0, 0, 0)),
            pl.BlockSpec((1, C), lambda b: (0, 0)),
            pl.BlockSpec((1, C), lambda b: (0, 0)),
        ],
        out_specs=pl.BlockSpec((1, Hp, Wp, C), lambda b: (b, 0, 0, 0)),
        compiler_params=pltpu.CompilerParams(
            dimension_semantics=("parallel",),
            vmem_limit_bytes=_VMEM_LIMIT),
    )(yp, w9.astype(jnp.bfloat16),
      gamma.reshape(1, C).astype(jnp.float32),
      beta.reshape(1, C).astype(jnp.float32))


# ---------------- model (thin glue around the kernels) ------------------------
def vit_block(x2, p, B, T, D):
    # LN1 fused into the QKV matmul; qkv shipped bf16 to the attention kernel.
    qkv = fused_matmul(x2, p["qkv_w"], p["qkv_b"],
                       in_ln=(p["ln1_g"], p["ln1_b"]),
                       out_dtype=jnp.bfloat16)                 # (B*T, 3D)
    attn_out = attention(qkv.reshape(B, T, 3 * D), NUM_HEADS)  # (B, T, D) bf16
    # Residual add fused into the output-projection matmul (f32 stream).
    x2 = fused_matmul(attn_out.reshape(B * T, D), p["proj_w"], p["proj_b"],
                      residual=x2)
    # LN2 + GELU fused into FC1 (bf16 hidden); residual fused into FC2.
    h = fused_matmul(x2, p["fc1_w"], p["fc1_b"],
                     in_ln=(p["ln2_g"], p["ln2_b"]), activation="gelu",
                     out_dtype=jnp.bfloat16)
    x2 = fused_matmul(h, p["fc2_w"], p["fc2_b"], residual=x2)
    return x2


def neck(x2, p, B, Hp, Wp):
    # 1x1 conv (no bias) with LayerNorm2d fused as an output LN; bf16 out.
    y = fused_matmul(x2, p["neck_w1"],
                     out_ln=(p["neck_ln1_g"], p["neck_ln1_b"]),
                     out_dtype=jnp.bfloat16)
    y = y.reshape(B, Hp, Wp, OUT_CHANS)
    # 3x3 conv (pad=1, no bias) + LayerNorm2d in one kernel (f32 final out).
    y = conv3x3_ln(y, p["neck_w2"], p["neck_ln2_g"], p["neck_ln2_b"])
    return y


def sam_image_encoder(x_nchw, params):
    B, C, H, W = x_nchw.shape
    Hp, Wp = H // PATCH, W // PATCH
    T = Hp * Wp
    # patch-embed conv (kernel=stride=patch) == patch-wise linear projection
    # TODO(synk): at real SAM scale move this permute into the kernel DMA via a
    # BlockSpec index_map over the (b, i, j) patch grid.
    patches = (x_nchw.reshape(B, C, Hp, PATCH, Wp, PATCH)
               .transpose(0, 2, 4, 1, 3, 5)
               .reshape(B * T, C * PATCH * PATCH))
    # pos_embed added as a fused "residual" in the patch-embed matmul.
    pos = jnp.broadcast_to(params["pos_embed"],
                           (B, Hp, Wp, EMBED_DIM)).reshape(B * T, EMBED_DIM)
    x2 = fused_matmul(patches, params["patch_w"], params["patch_b"],
                      residual=pos)
    for blk in params["blocks"]:
        x2 = vit_block(x2, blk, B, T, EMBED_DIM)
    y = neck(x2, params, B, Hp, Wp)                 # (B, Hp, Wp, OUT_CHANS)
    return y.transpose(0, 3, 1, 2)                  # back to NCHW like PyTorch


# ---------------- deterministic synthetic parameters -------------------------
def init_params(key):
    D, hid, C = EMBED_DIM, EMBED_DIM * MLP_RATIO, OUT_CHANS
    Hp = IMG // PATCH
    kit = iter(jax.random.split(key, 8 + 8 * DEPTH))

    def w(shape, scale=0.02, dtype=jnp.bfloat16):
        return (scale * jax.random.normal(next(kit), shape,
                                          jnp.float32)).astype(dtype)

    params = {
        "patch_w": w((IN_CHANS * PATCH * PATCH, D)),
        "patch_b": jnp.zeros((D,), jnp.float32),
        "pos_embed": w((1, Hp, Hp, D), dtype=jnp.float32),
        "neck_w1": w((D, C)),
        "neck_ln1_g": jnp.ones((C,), jnp.float32),
        "neck_ln1_b": jnp.zeros((C,), jnp.float32),
        "neck_w2": w((9, C, C)),                      # (tap, C_in, C_out)
        "neck_ln2_g": jnp.ones((C,), jnp.float32),
        "neck_ln2_b": jnp.zeros((C,), jnp.float32),
        "blocks": [],
    }
    for _ in range(DEPTH):
        params["blocks"].append({
            "ln1_g": jnp.ones((D,), jnp.float32),
            "ln1_b": jnp.zeros((D,), jnp.float32),
            "qkv_w": w((D, 3 * D)),
            "qkv_b": jnp.zeros((3 * D,), jnp.float32),
            "proj_w": w((D, D)),
            "proj_b": jnp.zeros((D,), jnp.float32),
            "ln2_g": jnp.ones((D,), jnp.float32),
            "ln2_b": jnp.zeros((D,), jnp.float32),
            "fc1_w": w((D, hid)),
            "fc1_b": jnp.zeros((hid,), jnp.float32),
            "fc2_w": w((hid, D)),
            "fc2_b": jnp.zeros((D,), jnp.float32),
        })
    return params


if __name__ == "__main__":
    key = jax.random.PRNGKey(0)
    kx, kp = jax.random.split(key)
    x = jax.random.normal(kx, (2, IN_CHANS, IMG, IMG), jnp.float32)
    params = init_params(kp)

    fwd = jax.jit(lambda inp: sam_image_encoder(inp, params))
    y = fwd(x)
    jax.block_until_ready(y)

    assert y.shape == (2, OUT_CHANS, IMG // PATCH, IMG // PATCH), y.shape
    assert y.dtype == jnp.float32
    assert bool(jnp.isfinite(y).all())
    print("KERNEL_OK")
</pallas_src>

<mosaic_0001>
module attributes {stable_mosaic.version = 11 : i64} {
  func.func @_fused_matmul_nk1_kernel(%arg0: i32, %arg1: i32, %arg2: memref<128x768xf32, #tpu.memory_space<vmem>>, %arg3: memref<768x128xbf16, #tpu.memory_space<vmem>>, %arg4: memref<1x128xf32, #tpu.memory_space<vmem>>, %arg5: memref<128x128xf32, #tpu.memory_space<vmem>>, %arg6: memref<128x128xf32, #tpu.memory_space<vmem>>) attributes {dimension_semantics = [#tpu.dimension_semantics<parallel>, #tpu.dimension_semantics<parallel>], iteration_bounds = array<i64: 1, 1>, scalar_prefetch = 0 : i64, scratch_operands = 0 : i64, tpu.core_type = #tpu.core_type<tc>, window_params = [{transform_indices = @transform_0, window_bounds = array<i64: 128, 768>}, {transform_indices = @transform_1, window_bounds = array<i64: 768, 128>}, {transform_indices = @transform_2, window_bounds = array<i64: 1, 128>}, {transform_indices = @transform_3, window_bounds = array<i64: 128, 128>}, {transform_indices = @transform_4, window_bounds = array<i64: 128, 128>}]} {
    %c0 = arith.constant 0 : index
    %c0_0 = arith.constant 0 : index
    %0 = vector.load %arg2[%c0, %c0_0] : memref<128x768xf32, #tpu.memory_space<vmem>>, vector<128x768xf32>
    %1 = arith.truncf %0 : vector<128x768xf32> to vector<128x768xbf16>
    %c0_1 = arith.constant 0 : index
    %c0_2 = arith.constant 0 : index
    %2 = vector.load %arg3[%c0_1, %c0_2] : memref<768x128xbf16, #tpu.memory_space<vmem>>, vector<768x128xbf16>
    %cst = arith.constant dense<0.000000e+00> : vector<128x128xf32>
    %3 = tpu.matmul %1, %2, %cst {dimension_numbers = #tpu.dot_dimension_numbers<[1], [0], [0], [1], [0, 0, 1, 1], [], []>} : vector<128x768xbf16>, vector<768x128xbf16>, vector<128x128xf32> -> vector<128x128xf32>
    %c0_3 = arith.constant 0 : index
    %c0_4 = arith.constant 0 : index
    %4 = vector.load %arg4[%c0_3, %c0_4] : memref<1x128xf32, #tpu.memory_space<vmem>>, vector<1x128xf32>
    %5 = vector.broadcast %4 : vector<1x128xf32> to vector<128x128xf32>
    %6 = arith.addf %3, %5 : vector<128x128xf32>
    %c0_5 = arith.constant 0 : index
    %c0_6 = arith.constant 0 : index
    %7 = vector.load %arg5[%c0_5, %c0_6] : memref<128x128xf32, #tpu.memory_space<vmem>>, vector<128x128xf32>
    %8 = arith.addf %6, %7 : vector<128x128xf32>
    %c0_7 = arith.constant 0 : index
    %c0_8 = arith.constant 0 : index
    %9 = vector.load %arg6[%c0_7, %c0_8] : memref<128x128xf32, #tpu.memory_space<vmem>>, vector<128x128xf32>
    tpu.vector_store %arg6[%c0_7, %c0_8], %8 {strides = array<i32>} : memref<128x128xf32, #tpu.memory_space<vmem>>, vector<128x128xf32>,
    return
  }
  func.func @transform_0(%arg0: i32, %arg1: i32) -> (i32, i32) {
    %c0_i32 = arith.constant 0 : i32
    %c0_i32_0 = arith.constant 0 : i32
    return %arg0, %c0_i32 : i32, i32
  }
  func.func @transform_1(%arg0: i32, %arg1: i32) -> (i32, i32) {
    %c0_i32 = arith.constant 0 : i32
    %c0_i32_0 = arith.constant 0 : i32
    return %c0_i32, %arg1 : i32, i32
  }
  func.func @transform_2(%arg0: i32, %arg1: i32) -> (i32, i32) {
    %c0_i32 = arith.constant 0 : i32
    %c0_i32_0 = arith.constant 0 : i32
    return %c0_i32, %arg1 : i32, i32
  }
  func.func @transform_3(%arg0: i32, %arg1: i32) -> (i32, i32) {
    %c0_i32 = arith.constant 0 : i32
    return %arg0, %arg1 : i32, i32
  }
  func.func @transform_4(%arg0: i32, %arg1: i32) -> (i32, i32) {
    %c0_i32 = arith.constant 0 : i32
    return %arg0, %arg1 : i32, i32
  }
}

module attributes {stable_mosaic.version = 11 : i64} {
  func.func @_attn_kernel(%arg0: i32, %arg1: memref<1x64x384xbf16, #tpu.memory_space<vmem>>, %arg2: memref<1x64x128xbf16, #tpu.memory_space<vmem>>) attributes {dimension_semantics = [#tpu.dimension_semantics<parallel>], iteration_bounds = array<i64: 2>, scalar_prefetch = 0 : i64, scratch_operands = 0 : i64, tpu.core_type = #tpu.core_type<tc>, window_params = [{transform_indices = @transform_0, window_bounds = array<i64: 1, 64, 384>}, {transform_indices = @transform_1, window_bounds = array<i64: 1, 64, 128>}]} {
    %c0 = arith.constant 0 : index
    %c0_0 = arith.constant 0 : index
    %c0_1 = arith.constant 0 : index
    %0 = vector.load %arg1[%c0, %c0_0, %c0_1] : memref<1x64x384xbf16, #tpu.memory_space<vmem>>, vector<1x64x384xbf16>
    %1 = vector.shape_cast %0 : vector<1x64x384xbf16> to vector<64x384xbf16>
    %2 = vector.extract_strided_slice %1 {offsets = [0, 0], sizes = [64, 32], strides = [1, 1]} : vector<64x384xbf16> to vector<64x32xbf16>
    %3 = vector.extract_strided_slice %1 {offsets = [0, 128], sizes = [64, 32], strides = [1, 1]} : vector<64x384xbf16> to vector<64x32xbf16>
    %4 = vector.extract_strided_slice %1 {offsets = [0, 256], sizes = [64, 32], strides = [1, 1]} : vector<64x384xbf16> to vector<64x32xbf16>
    %cst = arith.constant dense<0.000000e+00> : vector<64x64xf32>
    %5 = tpu.matmul %2, %3, %cst {dimension_numbers = #tpu.dot_dimension_numbers<[1], [1], [0], [0], [0, 0, 1, 0], [], []>} : vector<64x32xbf16>, vector<64x32xbf16>, vector<64x64xf32> -> vector<64x64xf32>
    %cst_2 = arith.constant 0.176776692 : f32
    %6 = vector.broadcast %cst_2 : f32 to vector<64x64xf32>
    %7 = arith.mulf %5, %6 : vector<64x64xf32>
    %cst_3 = arith.constant dense<0xFF800000> : vector<64xf32>
    %8 = vector.multi_reduction <maximumf>, %7, %cst_3 [1] : vector<64x64xf32> to vector<64xf32>
    %9 = vector.shape_cast %8 : vector<64xf32> to vector<64x1xf32>
    %10 = vector.broadcast %9 : vector<64x1xf32> to vector<64x64xf32>
    %11 = arith.subf %7, %10 : vector<64x64xf32>
    %12 = math.exp %11 : vector<64x64xf32>
    %cst_4 = arith.constant dense<0.000000e+00> : vector<64xf32>
    %13 = vector.multi_reduction <add>, %12, %cst_4 [1] : vector<64x64xf32> to vector<64xf32>
    %14 = vector.shape_cast %13 : vector<64xf32> to vector<64x1xf32>
    %15 = tpu.reciprocal %14 {approx = true} : vector<64x1xf32> -> vector<64x1xf32>
    %16 = arith.truncf %12 : vector<64x64xf32> to vector<64x64xbf16>
    %cst_5 = arith.constant dense<0.000000e+00> : vector<64x32xf32>
    %17 = tpu.matmul %16, %4, %cst_5 {dimension_numbers = #tpu.dot_dimension_numbers<[1], [0], [0], [1], [0, 0, 1, 1], [], []>} : vector<64x64xbf16>, vector<64x32xbf16>, vector<64x32xf32> -> vector<64x32xf32>
    %18 = vector.broadcast %15 : vector<64x1xf32> to vector<64x32xf32>
    %19 = arith.mulf %17, %18 : vector<64x32xf32>
    %20 = arith.truncf %19 : vector<64x32xf32> to vector<64x32xbf16>
    %c0_6 = arith.constant 0 : index
    %c0_7 = arith.constant 0 : index
    %c0_8 = arith.constant 0 : index
    %21 = vector.load %arg2[%c0_6, %c0_7, %c0_8] : memref<1x64x128xbf16, #tpu.memory_space<vmem>>, vector<1x64x32xbf16>
    %22 = vector.shape_cast %21 : vector<1x64x32xbf16> to vector<64x32xbf16>
    %23 = vector.shape_cast %20 : vector<64x32xbf16> to vector<1x64x32xbf16>
    tpu.vector_store %arg2[%c0_6, %c0_7, %c0_8], %23 {strides = array<i32>} : memref<1x64x128xbf16, #tpu.memory_space<vmem>>, vector<1x64x32xbf16>,
    %24 = vector.extract_strided_slice %1 {offsets = [0, 32], sizes = [64, 32], strides = [1, 1]} : vector<64x384xbf16> to vector<64x32xbf16>
    %25 = vector.extract_strided_slice %1 {offsets = [0, 160], sizes = [64, 32], strides = [1, 1]} : vector<64x384xbf16> to vector<64x32xbf16>
    %26 = vector.extract_strided_slice %1 {offsets = [0, 288], sizes = [64, 32], strides = [1, 1]} : vector<64x384xbf16> to vector<64x32xbf16>
    %cst_9 = arith.constant dense<0.000000e+00> : vector<64x64xf32>
    %27 = tpu.matmul %24, %25, %cst_9 {dimension_numbers = #tpu.dot_dimension_numbers<[1], [1], [0], [0], [0, 0, 1, 0], [], []>} : vector<64x32xbf16>, vector<64x32xbf16>, vector<64x64xf32> -> vector<64x64xf32>
    %cst_10 = arith.constant 0.176776692 : f32
    %28 = vector.broadcast %cst_10 : f32 to vector<64x64xf32>
    %29 = arith.mulf %27, %28 : vector<64x64xf32>
    %cst_11 = arith.constant dense<0xFF800000> : vector<64xf32>
    %30 = vector.multi_reduction <maximumf>, %29, %cst_11 [1] : vector<64x64xf32> to vector<64xf32>
    %31 = vector.shape_cast %30 : vector<64xf32> to vector<64x1xf32>
    %32 = vector.broadcast %31 : vector<64x1xf32> to vector<64x64xf32>
    %33 = arith.subf %29, %32 : vector<64x64xf32>
    %34 = math.exp %33 : vector<64x64xf32>
    %cst_12 = arith.constant dense<0.000000e+00> : vector<64xf32>
    %35 = vector.multi_reduction <add>, %34, %cst_12 [1] : vector<64x64xf32> to vector<64xf32>
    %36 = vector.shape_cast %35 : vector<64xf32> to vector<64x1xf32>
    %37 = tpu.reciprocal %36 {approx = true} : vector<64x1xf32> -> vector<64x1xf32>
    %38 = arith.truncf %34 : vector<64x64xf32> to vector<64x64xbf16>
    %cst_13 = arith.constant dense<0.000000e+00> : vector<64x32xf32>
    %39 = tpu.matmul %38, %26, %cst_13 {dimension_numbers = #tpu.dot_dimension_numbers<[1], [0], [0], [1], [0, 0, 1, 1], [], []>} : vector<64x64xbf16>, vector<64x32xbf16>, vector<64x32xf32> -> vector<64x32xf32>
    %40 = vector.broadcast %37 : vector<64x1xf32> to vector<64x32xf32>
    %41 = arith.mulf %39, %40 : vector<64x32xf32>
    %42 = arith.truncf %41 : vector<64x32xf32> to vector<64x32xbf16>
    %c0_14 = arith.constant 0 : index
    %c0_15 = arith.constant 0 : index
    %c32 = arith.constant 32 : index
    %43 = vector.load %arg2[%c0_14, %c0_15, %c32] : memref<1x64x128xbf16, #tpu.memory_space<vmem>>, vector<1x64x32xbf16>
    %44 = vector.shape_cast %43 : vector<1x64x32xbf16> to vector<64x32xbf16>
    %45 = vector.shape_cast %42 : vector<64x32xbf16> to vector<1x64x32xbf16>
    tpu.vector_store %arg2[%c0_14, %c0_15, %c32], %45 {strides = array<i32>} : memref<1x64x128xbf16, #tpu.memory_space<vmem>>, vector<1x64x32xbf16>,
    %46 = vector.extract_strided_slice %1 {offsets = [0, 64], sizes = [64, 32], strides = [1, 1]} : vector<64x384xbf16> to vector<64x32xbf16>
    %47 = vector.extract_strided_slice %1 {offsets = [0, 192], sizes = [64, 32], strides = [1, 1]} : vector<64x384xbf16> to vector<64x32xbf16>
    %48 = vector.extract_strided_slice %1 {offsets = [0, 320], sizes = [64, 32], strides = [1, 1]} : vector<64x384xbf16> to vector<64x32xbf16>
    %cst_16 = arith.constant dense<0.000000e+00> : vector<64x64xf32>
    %49 = tpu.matmul %46, %47, %cst_16 {dimension_numbers = #tpu.dot_dimension_numbers<[1], [1], [0], [0], [0, 0, 1, 0], [], []>} : vector<64x32xbf16>, vector<64x32xbf16>, vector<64x64xf32> -> vector<64x64xf32>
    %cst_17 = arith.constant 0.176776692 : f32
    %50 = vector.broadcast %cst_17 : f32 to vector<64x64xf32>
    %51 = arith.mulf %49, %50 : vector<64x64xf32>
    %cst_18 = arith.constant dense<0xFF800000> : vector<64xf32>
    %52 = vector.multi_reduction <maximumf>, %51, %cst_18 [1] : vector<64x64xf32> to vector<64xf32>
    %53 = vector.shape_cast %52 : vector<64xf32> to vector<64x1xf32>
    %54 = vector.broadcast %53 : vector<64x1xf32> to vector<64x64xf32>
    %55 = arith.subf %51, %54 : vector<64x64xf32>
    %56 = math.exp %55 : vector<64x64xf32>
    %cst_19 = arith.constant dense<0.000000e+00> : vector<64xf32>
    %57 = vector.multi_reduction <add>, %56, %cst_19 [1] : vector<64x64xf32> to vector<64xf32>
    %58 = vector.shape_cast %57 : vector<64xf32> to vector<64x1xf32>
    %59 = tpu.reciprocal %58 {approx = true} : vector<64x1xf32> -> vector<64x1xf32>
    %60 = arith.truncf %56 : vector<64x64xf32> to vector<64x64xbf16>
    %cst_20 = arith.constant dense<0.000000e+00> : vector<64x32xf32>
    %61 = tpu.matmul %60, %48, %cst_20 {dimension_numbers = #tpu.dot_dimension_numbers<[1], [0], [0], [1], [0, 0, 1, 1], [], []>} : vector<64x64xbf16>, vector<64x32xbf16>, vector<64x32xf32> -> vector<64x32xf32>
    %62 = vector.broadcast %59 : vector<64x1xf32> to vector<64x32xf32>
    %63 = arith.mulf %61, %62 : vector<64x32xf32>
    %64 = arith.truncf %63 : vector<64x32xf32> to vector<64x32xbf16>
    %c0_21 = arith.constant 0 : index
    %c0_22 = arith.constant 0 : index
    %c64 = arith.constant 64 : index
    %65 = vector.load %arg2[%c0_21, %c0_22, %c64] : memref<1x64x128xbf16, #tpu.memory_space<vmem>>, vector<1x64x32xbf16>
    %66 = vector.shape_cast %65 : vector<1x64x32xbf16> to vector<64x32xbf16>
    %67 = vector.shape_cast %64 : vector<64x32xbf16> to vector<1x64x32xbf16>
    tpu.vector_store %arg2[%c0_21, %c0_22, %c64], %67 {strides = array<i32>} : memref<1x64x128xbf16, #tpu.memory_space<vmem>>, vector<1x64x32xbf16>,
    %68 = vector.extract_strided_slice %1 {offsets = [0, 96], sizes = [64, 32], strides = [1, 1]} : vector<64x384xbf16> to vector<64x32xbf16>
    %69 = vector.extract_strided_slice %1 {offsets = [0, 224], sizes = [64, 32], strides = [1, 1]} : vector<64x384xbf16> to vector<64x32xbf16>
    %70 = vector.extract_strided_slice %1 {offsets = [0, 352], sizes = [64, 32], strides = [1, 1]} : vector<64x384xbf16> to vector<64x32xbf16>
    %cst_23 = arith.constant dense<0.000000e+00> : vector<64x64xf32>
    %71 = tpu.matmul %68, %69, %cst_23 {dimension_numbers = #tpu.dot_dimension_numbers<[1], [1], [0], [0], [0, 0, 1, 0], [], []>} : vector<64x32xbf16>, vector<64x32xbf16>, vector<64x64xf32> -> vector<64x64xf32>
    %cst_24 = arith.constant 0.176776692 : f32
    %72 = vector.broadcast %cst_24 : f32 to vector<64x64xf32>
    %73 = arith.mulf %71, %72 : vector<64x64xf32>
    %cst_25 = arith.constant dense<0xFF800000> : vector<64xf32>
    %74 = vector.multi_reduction <maximumf>, %73, %cst_25 [1] : vector<64x64xf32> to vector<64xf32>
    %75 = vector.shape_cast %74 : vector<64xf32> to vector<64x1xf32>
    %76 = vector.broadcast %75 : vector<64x1xf32> to vector<64x64xf32>
    %77 = arith.subf %73, %76 : vector<64x64xf32>
    %78 = math.exp %77 : vector<64x64xf32>
    %cst_26 = arith.constant dense<0.000000e+00> : vector<64xf32>
    %79 = vector.multi_reduction <add>, %78, %cst_26 [1] : vector<64x64xf32> to vector<64xf32>
    %80 = vector.shape_cast %79 : vector<64xf32> to vector<64x1xf32>
    %81 = tpu.reciprocal %80 {approx = true} : vector<64x1xf32> -> vector<64x1xf32>
    %82 = arith.truncf %78 : vector<64x64xf32> to vector<64x64xbf16>
    %cst_27 = arith.constant dense<0.000000e+00> : vector<64x32xf32>
    %83 = tpu.matmul %82, %70, %cst_27 {dimension_numbers = #tpu.dot_dimension_numbers<[1], [0], [0], [1], [0, 0, 1, 1], [], []>} : vector<64x64xbf16>, vector<64x32xbf16>, vector<64x32xf32> -> vector<64x32xf32>
    %84 = vector.broadcast %81 : vector<64x1xf32> to vector<64x32xf32>
    %85 = arith.mulf %83, %84 : vector<64x32xf32>
    %86 = arith.truncf %85 : vector<64x32xf32> to vector<64x32xbf16>
    %c0_28 = arith.constant 0 : index
    %c0_29 = arith.constant 0 : index
    %c96 = arith.constant 96 : index
    %87 = vector.load %arg2[%c0_28, %c0_29, %c96] : memref<1x64x128xbf16, #tpu.memory_space<vmem>>, vector<1x64x32xbf16>
    %88 = vector.shape_cast %87 : vector<1x64x32xbf16> to vector<64x32xbf16>
    %89 = vector.shape_cast %86 : vector<64x32xbf16> to vector<1x64x32xbf16>
    tpu.vector_store %arg2[%c0_28, %c0_29, %c96], %89 {strides = array<i32>} : memref<1x64x128xbf16, #tpu.memory_space<vmem>>, vector<1x64x32xbf16>,
    return
  }
  func.func @transform_0(%arg0: i32) -> (i32, i32, i32) {
    %c0_i32 = arith.constant 0 : i32
    %c0_i32_0 = arith.constant 0 : i32
    %c0_i32_1 = arith.constant 0 : i32
    return %arg0, %c0_i32, %c0_i32_0 : i32, i32, i32
  }
  func.func @transform_1(%arg0: i32) -> (i32, i32, i32) {
    %c0_i32 = arith.constant 0 : i32
    %c0_i32_0 = arith.constant 0 : i32
    %c0_i32_1 = arith.constant 0 : i32
    return %arg0, %c0_i32, %c0_i32_0 : i32, i32, i32
  }
}

module attributes {stable_mosaic.version = 11 : i64} {
  func.func @_fused_matmul_nk1_kernel(%arg0: i32, %arg1: i32, %arg2: memref<128x128xf32, #tpu.memory_space<vmem>>, %arg3: memref<128x128xbf16, #tpu.memory_space<vmem>>, %arg4: memref<1x128xf32, #tpu.memory_space<vmem>>, %arg5: memref<1x128xf32, #tpu.memory_space<vmem>>, %arg6: memref<1x128xf32, #tpu.memory_space<vmem>>, %arg7: memref<128x128xbf16, #tpu.memory_space<vmem>>, %arg8: memref<128x128xbf16, #tpu.memory_space<vmem>>) attributes {dimension_semantics = [#tpu.dimension_semantics<parallel>, #tpu.dimension_semantics<arbitrary>], iteration_bounds = array<i64: 1, 3>, scalar_prefetch = 0 : i64, scratch_operands = 1 : i64, tpu.core_type = #tpu.core_type<tc>, window_params = [{transform_indices = @transform_0, window_bounds = array<i64: 128, 128>}, {transform_indices = @transform_1, window_bounds = array<i64: 128, 128>}, {transform_indices = @transform_2, window_bounds = array<i64: 1, 128>}, {pipeline_mode = #tpu.pipeline_mode<synchronous>, transform_indices = @transform_3, window_bounds = array<i64: 1, 128>}, {pipeline_mode = #tpu.pipeline_mode<synchronous>, transform_indices = @transform_4, window_bounds = array<i64: 1, 128>}, {transform_indices = @transform_5, window_bounds = array<i64: 128, 128>}]} {
    %c0_i32 = arith.constant 0 : i32
    %0 = arith.cmpi eq, %arg1, %c0_i32 : i32
    %1 = arith.extui %0 : i1 to i32
    %c0_i32_0 = arith.constant 0 : i32
    %2 = arith.cmpi ne, %1, %c0_i32_0 : i32
    scf.if %2 {
      %c0_8 = arith.constant 0 : index
      %c0_9 = arith.constant 0 : index
      %11 = vector.load %arg2[%c0_8, %c0_9] : memref<128x128xf32, #tpu.memory_space<vmem>>, vector<128x128xf32>
      %c0_10 = arith.constant 0 : index
      %c0_11 = arith.constant 0 : index
      %12 = vector.load %arg5[%c0_10, %c0_11] : memref<1x128xf32, #tpu.memory_space<vmem>>, vector<1x128xf32>
      %c0_12 = arith.constant 0 : index
      %c0_13 = arith.constant 0 : index
      %13 = vector.load %arg6[%c0_12, %c0_13] : memref<1x128xf32, #tpu.memory_space<vmem>>, vector<1x128xf32>
      %cst_14 = arith.constant dense<0.000000e+00> : vector<128xf32>
      %14 = vector.multi_reduction <add>, %11, %cst_14 [1] : vector<128x128xf32> to vector<128xf32>
      %15 = vector.shape_cast %14 : vector<128xf32> to vector<128x1xf32>
      %cst_15 = arith.constant 1.280000e+02 : f32
      %16 = vector.broadcast %cst_15 : f32 to vector<128x1xf32>
      %17 = arith.divf %15, %16 : vector<128x1xf32>
      %18 = vector.broadcast %17 : vector<128x1xf32> to vector<128x128xf32>
      %19 = arith.subf %11, %18 : vector<128x128xf32>
      %20 = arith.mulf %19, %19 : vector<128x128xf32>
      %cst_16 = arith.constant dense<0.000000e+00> : vector<128xf32>
      %21 = vector.multi_reduction <add>, %20, %cst_16 [1] : vector<128x128xf32> to vector<128xf32>
      %22 = vector.shape_cast %21 : vector<128xf32> to vector<128x1xf32>
      %cst_17 = arith.constant 1.280000e+02 : f32
      %23 = vector.broadcast %cst_17 : f32 to vector<128x1xf32>
      %24 = arith.divf %22, %23 : vector<128x1xf32>
      %cst_18 = arith.constant 9.99999997E-7 : f32
      %25 = vector.broadcast %cst_18 : f32 to vector<128x1xf32>
      %26 = arith.addf %24, %25 : vector<128x1xf32>
      %27 = math.rsqrt %26 : vector<128x1xf32>
      %28 = vector.broadcast %27 : vector<128x1xf32> to vector<128x128xf32>
      %29 = arith.mulf %19, %28 : vector<128x128xf32>
      %30 = vector.broadcast %12 : vector<1x128xf32> to vector<128x128xf32>
      %31 = arith.mulf %29, %30 : vector<128x128xf32>
      %32 = vector.broadcast %13 : vector<1x128xf32> to vector<128x128xf32>
      %33 = arith.addf %31, %32 : vector<128x128xf32>
      %34 = arith.truncf %33 : vector<128x128xf32> to vector<128x128xbf16>
      %c0_19 = arith.constant 0 : index
      %c0_20 = arith.constant 0 : index
      %35 = vector.load %arg8[%c0_19, %c0_20] : memref<128x128xbf16, #tpu.memory_space<vmem>>, vector<128x128xbf16>
      tpu.vector_store %arg8[%c0_19, %c0_20], %34 {strides = array<i32>} : memref<128x128xbf16, #tpu.memory_space<vmem>>, vector<128x128xbf16>,
    } else {
    }
    %c0 = arith.constant 0 : index
    %c0_1 = arith.constant 0 : index
    %3 = vector.load %arg8[%c0, %c0_1] : memref<128x128xbf16, #tpu.memory_space<vmem>>, vector<128x128xbf16>
    %c0_2 = arith.constant 0 : index
    %c0_3 = arith.constant 0 : index
    %4 = vector.load %arg3[%c0_2, %c0_3] : memref<128x128xbf16, #tpu.memory_space<vmem>>, vector<128x128xbf16>
    %cst = arith.constant dense<0.000000e+00> : vector<128x128xf32>
    %5 = tpu.matmul %3, %4, %cst {dimension_numbers = #tpu.dot_dimension_numbers<[1], [0], [0], [1], [0, 0, 1, 1], [], []>} : vector<128x128xbf16>, vector<128x128xbf16>, vector<128x128xf32> -> vector<128x128xf32>
    %c0_4 = arith.constant 0 : index
    %c0_5 = arith.constant 0 : index
    %6 = vector.load %arg4[%c0_4, %c0_5] : memref<1x128xf32, #tpu.memory_space<vmem>>, vector<1x128xf32>
    %7 = vector.broadcast %6 : vector<1x128xf32> to vector<128x128xf32>
    %8 = arith.addf %5, %7 : vector<128x128xf32>
    %9 = arith.truncf %8 : vector<128x128xf32> to vector<128x128xbf16>
    %c0_6 = arith.constant 0 : index
    %c0_7 = arith.constant 0 : index
    %10 = vector.load %arg7[%c0_6, %c0_7] : memref<128x128xbf16, #tpu.memory_space<vmem>>, vector<128x128xbf16>
    tpu.vector_store %arg7[%c0_6, %c0_7], %9 {strides = array<i32>} : memref<128x128xbf16, #tpu.memory_space<vmem>>, vector<128x128xbf16>,
    return
  }
  func.func @transform_0(%arg0: i32, %arg1: i32) -> (i32, i32) {
    %c0_i32 = arith.constant 0 : i32
    %c0_i32_0 = arith.constant 0 : i32
    return %arg0, %c0_i32 : i32, i32
  }
  func.func @transform_1(%arg0: i32, %arg1: i32) -> (i32, i32) {
    %c0_i32 = arith.constant 0 : i32
    %c0_i32_0 = arith.constant 0 : i32
    return %c0_i32, %arg1 : i32, i32
  }
  func.func @transform_2(%arg0: i32, %arg1: i32) -> (i32, i32) {
    %c0_i32 = arith.constant 0 : i32
    %c0_i32_0 = arith.constant 0 : i32
    return %c0_i32, %arg1 : i32, i32
  }
  func.func @transform_3(%arg0: i32, %arg1: i32) -> (i32, i32) {
    %c0_i32 = arith.constant 0 : i32
    %c0_i32_0 = arith.constant 0 : i32
    %c0_i32_1 = arith.constant 0 : i32
    return %c0_i32, %c0_i32_0 : i32, i32
  }
  func.func @transform_4(%arg0: i32, %arg1: i32) -> (i32, i32) {
    %c0_i32 = arith.constant 0 : i32
    %c0_i32_0 = arith.constant 0 : i32
    %c0_i32_1 = arith.constant 0 : i32
    return %c0_i32, %c0_i32_0 : i32, i32
  }
  func.func @transform_5(%arg0: i32, %arg1: i32) -> (i32, i32) {
    %c0_i32 = arith.constant 0 : i32
    return %arg0, %arg1 : i32, i32
  }
}

module attributes {stable_mosaic.version = 11 : i64} {
  func.func @_fused_matmul_nk1_kernel(%arg0: i32, %arg1: i32, %arg2: memref<128x128xbf16, #tpu.memory_space<vmem>>, %arg3: memref<128x128xbf16, #tpu.memory_space<vmem>>, %arg4: memref<1x128xf32, #tpu.memory_space<vmem>>, %arg5: memref<128x128xf32, #tpu.memory_space<vmem>>, %arg6: memref<128x128xf32, #tpu.memory_space<vmem>>) attributes {dimension_semantics = [#tpu.dimension_semantics<parallel>, #tpu.dimension_semantics<parallel>], iteration_bounds = array<i64: 1, 1>, scalar_prefetch = 0 : i64, scratch_operands = 0 : i64, tpu.core_type = #tpu.core_type<tc>, window_params = [{transform_indices = @transform_0, window_bounds = array<i64: 128, 128>}, {transform_indices = @transform_1, window_bounds = array<i64: 128, 128>}, {transform_indices = @transform_2, window_bounds = array<i64: 1, 128>}, {transform_indices = @transform_3, window_bounds = array<i64: 128, 128>}, {transform_indices = @transform_4, window_bounds = array<i64: 128, 128>}]} {
    %c0 = arith.constant 0 : index
    %c0_0 = arith.constant 0 : index
    %0 = vector.load %arg2[%c0, %c0_0] : memref<128x128xbf16, #tpu.memory_space<vmem>>, vector<128x128xbf16>
    %c0_1 = arith.constant 0 : index
    %c0_2 = arith.constant 0 : index
    %1 = vector.load %arg3[%c0_1, %c0_2] : memref<128x128xbf16, #tpu.memory_space<vmem>>, vector<128x128xbf16>
    %cst = arith.constant dense<0.000000e+00> : vector<128x128xf32>
    %2 = tpu.matmul %0, %1, %cst {dimension_numbers = #tpu.dot_dimension_numbers<[1], [0], [0], [1], [0, 0, 1, 1], [], []>} : vector<128x128xbf16>, vector<128x128xbf16>, vector<128x128xf32> -> vector<128x128xf32>
    %c0_3 = arith.constant 0 : index
    %c0_4 = arith.constant 0 : index
    %3 = vector.load %arg4[%c0_3, %c0_4] : memref<1x128xf32, #tpu.memory_space<vmem>>, vector<1x128xf32>
    %4 = vector.broadcast %3 : vector<1x128xf32> to vector<128x128xf32>
    %5 = arith.addf %2, %4 : vector<128x128xf32>
    %c0_5 = arith.constant 0 : index
    %c0_6 = arith.constant 0 : index
    %6 = vector.load %arg5[%c0_5, %c0_6] : memref<128x128xf32, #tpu.memory_space<vmem>>, vector<128x128xf32>
    %7 = arith.addf %5, %6 : vector<128x128xf32>
    %c0_7 = arith.constant 0 : index
    %c0_8 = arith.constant 0 : index
    %8 = vector.load %arg6[%c0_7, %c0_8] : memref<128x128xf32, #tpu.memory_space<vmem>>, vector<128x128xf32>
    tpu.vector_store %arg6[%c0_7, %c0_8], %7 {strides = array<i32>} : memref<128x128xf32, #tpu.memory_space<vmem>>, vector<128x128xf32>,
    return
  }
  func.func @transform_0(%arg0: i32, %arg1: i32) -> (i32, i32) {
    %c0_i32 = arith.constant 0 : i32
    %c0_i32_0 = arith.constant 0 : i32
    return %arg0, %c0_i32 : i32, i32
  }
  func.func @transform_1(%arg0: i32, %arg1: i32) -> (i32, i32) {
    %c0_i32 = arith.constant 0 : i32
    %c0_i32_0 = arith.constant 0 : i32
    return %c0_i32, %arg1 : i32, i32
  }
  func.func @transform_2(%arg0: i32, %arg1: i32) -> (i32, i32) {
    %c0_i32 = arith.constant 0 : i32
    %c0_i32_0 = arith.constant 0 : i32
    return %c0_i32, %arg1 : i32, i32
  }
  func.func @transform_3(%arg0: i32, %arg1: i32) -> (i32, i32) {
    %c0_i32 = arith.constant 0 : i32
    return %arg0, %arg1 : i32, i32
  }
  func.func @transform_4(%arg0: i32, %arg1: i32) -> (i32, i32) {
    %c0_i32 = arith.constant 0 : i32
    return %arg0, %arg1 : i32, i32
  }
}

module attributes {stable_mosaic.version = 11 : i64} {
  func.func @_fused_matmul_nk1_kernel(%arg0: i32, %arg1: i32, %arg2: memref<128x512xbf16, #tpu.memory_space<vmem>>, %arg3: memref<512x128xbf16, #tpu.memory_space<vmem>>, %arg4: memref<1x128xf32, #tpu.memory_space<vmem>>, %arg5: memref<128x128xf32, #tpu.memory_space<vmem>>, %arg6: memref<128x128xf32, #tpu.memory_space<vmem>>) attributes {dimension_semantics = [#tpu.dimension_semantics<parallel>, #tpu.dimension_semantics<parallel>], iteration_bounds = array<i64: 1, 1>, scalar_prefetch = 0 : i64, scratch_operands = 0 : i64, tpu.core_type = #tpu.core_type<tc>, window_params = [{transform_indices = @transform_0, window_bounds = array<i64: 128, 512>}, {transform_indices = @transform_1, window_bounds = array<i64: 512, 128>}, {transform_indices = @transform_2, window_bounds = array<i64: 1, 128>}, {transform_indices = @transform_3, window_bounds = array<i64: 128, 128>}, {transform_indices = @transform_4, window_bounds = array<i64: 128, 128>}]} {
    %c0 = arith.constant 0 : index
    %c0_0 = arith.constant 0 : index
    %0 = vector.load %arg2[%c0, %c0_0] : memref<128x512xbf16, #tpu.memory_space<vmem>>, vector<128x512xbf16>
    %c0_1 = arith.constant 0 : index
    %c0_2 = arith.constant 0 : index
    %1 = vector.load %arg3[%c0_1, %c0_2] : memref<512x128xbf16, #tpu.memory_space<vmem>>, vector<512x128xbf16>
    %cst = arith.constant dense<0.000000e+00> : vector<128x128xf32>
    %2 = tpu.matmul %0, %1, %cst {dimension_numbers = #tpu.dot_dimension_numbers<[1], [0], [0], [1], [0, 0, 1, 1], [], []>} : vector<128x512xbf16>, vector<512x128xbf16>, vector<128x128xf32> -> vector<128x128xf32>
    %c0_3 = arith.constant 0 : index
    %c0_4 = arith.constant 0 : index
    %3 = vector.load %arg4[%c0_3, %c0_4] : memref<1x128xf32, #tpu.memory_space<vmem>>, vector<1x128xf32>
    %4 = vector.broadcast %3 : vector<1x128xf32> to vector<128x128xf32>
    %5 = arith.addf %2, %4 : vector<128x128xf32>
    %c0_5 = arith.constant 0 : index
    %c0_6 = arith.constant 0 : index
    %6 = vector.load %arg5[%c0_5, %c0_6] : memref<128x128xf32, #tpu.memory_space<vmem>>, vector<128x128xf32>
    %7 = arith.addf %5, %6 : vector<128x128xf32>
    %c0_7 = arith.constant 0 : index
    %c0_8 = arith.constant 0 : index
    %8 = vector.load %arg6[%c0_7, %c0_8] : memref<128x128xf32, #tpu.memory_space<vmem>>, vector<128x128xf32>
    tpu.vector_store %arg6[%c0_7, %c0_8], %7 {strides = array<i32>} : memref<128x128xf32, #tpu.memory_space<vmem>>, vector<128x128xf32>,
    return
  }
  func.func @transform_0(%arg0: i32, %arg1: i32) -> (i32, i32) {
    %c0_i32 = arith.constant 0 : i32
    %c0_i32_0 = arith.constant 0 : i32
    return %arg0, %c0_i32 : i32, i32
  }
  func.func @transform_1(%arg0: i32, %arg1: i32) -> (i32, i32) {
    %c0_i32 = arith.constant 0 : i32
    %c0_i32_0 = arith.constant 0 : i32
    return %c0_i32, %arg1 : i32, i32
  }
  func.func @transform_2(%arg0: i32, %arg1: i32) -> (i32, i32) {
    %c0_i32 = arith.constant 0 : i32
    %c0_i32_0 = arith.constant 0 : i32
    return %c0_i32, %arg1 : i32, i32
  }
  func.func @transform_3(%arg0: i32, %arg1: i32) -> (i32, i32) {
    %c0_i32 = arith.constant 0 : i32
    return %arg0, %arg1 : i32, i32
  }
  func.func @transform_4(%arg0: i32, %arg1: i32) -> (i32, i32) {
    %c0_i32 = arith.constant 0 : i32
    return %arg0, %arg1 : i32, i32
  }
}

module attributes {stable_mosaic.version = 11 : i64} {
  func.func @_fused_matmul_nk1_kernel(%arg0: i32, %arg1: i32, %arg2: memref<128x128xf32, #tpu.memory_space<vmem>>, %arg3: memref<128x128xbf16, #tpu.memory_space<vmem>>, %arg4: memref<1x128xf32, #tpu.memory_space<vmem>>, %arg5: memref<1x128xf32, #tpu.memory_space<vmem>>, %arg6: memref<128x128xbf16, #tpu.memory_space<vmem>>) attributes {dimension_semantics = [#tpu.dimension_semantics<parallel>, #tpu.dimension_semantics<parallel>], iteration_bounds = array<i64: 1, 1>, scalar_prefetch = 0 : i64, scratch_operands = 0 : i64, tpu.core_type = #tpu.core_type<tc>, window_params = [{transform_indices = @transform_0, window_bounds = array<i64: 128, 128>}, {transform_indices = @transform_1, window_bounds = array<i64: 128, 128>}, {transform_indices = @transform_2, window_bounds = array<i64: 1, 128>}, {transform_indices = @transform_3, window_bounds = array<i64: 1, 128>}, {transform_indices = @transform_4, window_bounds = array<i64: 128, 128>}]} {
    %c0 = arith.constant 0 : index
    %c0_0 = arith.constant 0 : index
    %0 = vector.load %arg2[%c0, %c0_0] : memref<128x128xf32, #tpu.memory_space<vmem>>, vector<128x128xf32>
    %1 = arith.truncf %0 : vector<128x128xf32> to vector<128x128xbf16>
    %c0_1 = arith.constant 0 : index
    %c0_2 = arith.constant 0 : index
    %2 = vector.load %arg3[%c0_1, %c0_2] : memref<128x128xbf16, #tpu.memory_space<vmem>>, vector<128x128xbf16>
    %cst = arith.constant dense<0.000000e+00> : vector<128x128xf32>
    %3 = tpu.matmul %1, %2, %cst {dimension_numbers = #tpu.dot_dimension_numbers<[1], [0], [0], [1], [0, 0, 1, 1], [], []>} : vector<128x128xbf16>, vector<128x128xbf16>, vector<128x128xf32> -> vector<128x128xf32>
    %c0_3 = arith.constant 0 : index
    %c0_4 = arith.constant 0 : index
    %4 = vector.load %arg4[%c0_3, %c0_4] : memref<1x128xf32, #tpu.memory_space<vmem>>, vector<1x128xf32>
    %c0_5 = arith.constant 0 : index
    %c0_6 = arith.constant 0 : index
    %5 = vector.load %arg5[%c0_5, %c0_6] : memref<1x128xf32, #tpu.memory_space<vmem>>, vector<1x128xf32>
    %cst_7 = arith.constant dense<0.000000e+00> : vector<128xf32>
    %6 = vector.multi_reduction <add>, %3, %cst_7 [1] : vector<128x128xf32> to vector<128xf32>
    %7 = vector.shape_cast %6 : vector<128xf32> to vector<128x1xf32>
    %cst_8 = arith.constant 1.280000e+02 : f32
    %8 = vector.broadcast %cst_8 : f32 to vector<128x1xf32>
    %9 = arith.divf %7, %8 : vector<128x1xf32>
    %10 = vector.broadcast %9 : vector<128x1xf32> to vector<128x128xf32>
    %11 = arith.subf %3, %10 : vector<128x128xf32>
    %12 = arith.mulf %11, %11 : vector<128x128xf32>
    %cst_9 = arith.constant dense<0.000000e+00> : vector<128xf32>
    %13 = vector.multi_reduction <add>, %12, %cst_9 [1] : vector<128x128xf32> to vector<128xf32>
    %14 = vector.shape_cast %13 : vector<128xf32> to vector<128x1xf32>
    %cst_10 = arith.constant 1.280000e+02 : f32
    %15 = vector.broadcast %cst_10 : f32 to vector<128x1xf32>
    %16 = arith.divf %14, %15 : vector<128x1xf32>
    %cst_11 = arith.constant 9.99999997E-7 : f32
    %17 = vector.broadcast %cst_11 : f32 to vector<128x1xf32>
    %18 = arith.addf %16, %17 : vector<128x1xf32>
    %19 = math.rsqrt %18 : vector<128x1xf32>
    %20 = vector.broadcast %19 : vector<128x1xf32> to vector<128x128xf32>
    %21 = arith.mulf %11, %20 : vector<128x128xf32>
    %22 = vector.broadcast %4 : vector<1x128xf32> to vector<128x128xf32>
    %23 = arith.mulf %21, %22 : vector<128x128xf32>
    %24 = vector.broadcast %5 : vector<1x128xf32> to vector<128x128xf32>
    %25 = arith.addf %23, %24 : vector<128x128xf32>
    %26 = arith.truncf %25 : vector<128x128xf32> to vector<128x128xbf16>
    %c0_12 = arith.constant 0 : index
    %c0_13 = arith.constant 0 : index
    %27 = vector.load %arg6[%c0_12, %c0_13] : memref<128x128xbf16, #tpu.memory_space<vmem>>, vector<128x128xbf16>
    tpu.vector_store %arg6[%c0_12, %c0_13], %26 {strides = array<i32>} : memref<128x128xbf16, #tpu.memory_space<vmem>>, vector<128x128xbf16>,
    return
  }
  func.func @transform_0(%arg0: i32, %arg1: i32) -> (i32, i32) {
    %c0_i32 = arith.constant 0 : i32
    %c0_i32_0 = arith.constant 0 : i32
    return %arg0, %c0_i32 : i32, i32
  }
  func.func @transform_1(%arg0: i32, %arg1: i32) -> (i32, i32) {
    %c0_i32 = arith.constant 0 : i32
    %c0_i32_0 = arith.constant 0 : i32
    return %c0_i32, %arg1 : i32, i32
  }
  func.func @transform_2(%arg0: i32, %arg1: i32) -> (i32, i32) {
    %c0_i32 = arith.constant 0 : i32
    %c0_i32_0 = arith.constant 0 : i32
    return %c0_i32, %arg1 : i32, i32
  }
  func.func @transform_3(%arg0: i32, %arg1: i32) -> (i32, i32) {
    %c0_i32 = arith.constant 0 : i32
    %c0_i32_0 = arith.constant 0 : i32
    return %c0_i32, %arg1 : i32, i32
  }
  func.func @transform_4(%arg0: i32, %arg1: i32) -> (i32, i32) {
    %c0_i32 = arith.constant 0 : i32
    return %arg0, %arg1 : i32, i32
  }
}

module attributes {stable_mosaic.version = 11 : i64} {
  func.func @_fused_matmul_nk1_kernel(%arg0: i32, %arg1: i32, %arg2: memref<128x128xf32, #tpu.memory_space<vmem>>, %arg3: memref<128x256xbf16, #tpu.memory_space<vmem>>, %arg4: memref<1x256xf32, #tpu.memory_space<vmem>>, %arg5: memref<1x128xf32, #tpu.memory_space<vmem>>, %arg6: memref<1x128xf32, #tpu.memory_space<vmem>>, %arg7: memref<128x256xbf16, #tpu.memory_space<vmem>>, %arg8: memref<128x128xbf16, #tpu.memory_space<vmem>>) attributes {dimension_semantics = [#tpu.dimension_semantics<parallel>, #tpu.dimension_semantics<arbitrary>], iteration_bounds = array<i64: 1, 2>, scalar_prefetch = 0 : i64, scratch_operands = 1 : i64, tpu.core_type = #tpu.core_type<tc>, window_params = [{transform_indices = @transform_0, window_bounds = array<i64: 128, 128>}, {transform_indices = @transform_1, window_bounds = array<i64: 128, 256>}, {transform_indices = @transform_2, window_bounds = array<i64: 1, 256>}, {pipeline_mode = #tpu.pipeline_mode<synchronous>, transform_indices = @transform_3, window_bounds = array<i64: 1, 128>}, {pipeline_mode = #tpu.pipeline_mode<synchronous>, transform_indices = @transform_4, window_bounds = array<i64: 1, 128>}, {transform_indices = @transform_5, window_bounds = array<i64: 128, 256>}]} {
    %c0_i32 = arith.constant 0 : i32
    %0 = arith.cmpi eq, %arg1, %c0_i32 : i32
    %1 = arith.extui %0 : i1 to i32
    %c0_i32_0 = arith.constant 0 : i32
    %2 = arith.cmpi ne, %1, %c0_i32_0 : i32
    scf.if %2 {
      %c0_12 = arith.constant 0 : index
      %c0_13 = arith.constant 0 : index
      %24 = vector.load %arg2[%c0_12, %c0_13] : memref<128x128xf32, #tpu.memory_space<vmem>>, vector<128x128xf32>
      %c0_14 = arith.constant 0 : index
      %c0_15 = arith.constant 0 : index
      %25 = vector.load %arg5[%c0_14, %c0_15] : memref<1x128xf32, #tpu.memory_space<vmem>>, vector<1x128xf32>
      %c0_16 = arith.constant 0 : index
      %c0_17 = arith.constant 0 : index
      %26 = vector.load %arg6[%c0_16, %c0_17] : memref<1x128xf32, #tpu.memory_space<vmem>>, vector<1x128xf32>
      %cst_18 = arith.constant dense<0.000000e+00> : vector<128xf32>
      %27 = vector.multi_reduction <add>, %24, %cst_18 [1] : vector<128x128xf32> to vector<128xf32>
      %28 = vector.shape_cast %27 : vector<128xf32> to vector<128x1xf32>
      %cst_19 = arith.constant 1.280000e+02 : f32
      %29 = vector.broadcast %cst_19 : f32 to vector<128x1xf32>
      %30 = arith.divf %28, %29 : vector<128x1xf32>
      %31 = vector.broadcast %30 : vector<128x1xf32> to vector<128x128xf32>
      %32 = arith.subf %24, %31 : vector<128x128xf32>
      %33 = arith.mulf %32, %32 : vector<128x128xf32>
      %cst_20 = arith.constant dense<0.000000e+00> : vector<128xf32>
      %34 = vector.multi_reduction <add>, %33, %cst_20 [1] : vector<128x128xf32> to vector<128xf32>
      %35 = vector.shape_cast %34 : vector<128xf32> to vector<128x1xf32>
      %cst_21 = arith.constant 1.280000e+02 : f32
      %36 = vector.broadcast %cst_21 : f32 to vector<128x1xf32>
      %37 = arith.divf %35, %36 : vector<128x1xf32>
      %cst_22 = arith.constant 9.99999997E-7 : f32
      %38 = vector.broadcast %cst_22 : f32 to vector<128x1xf32>
      %39 = arith.addf %37, %38 : vector<128x1xf32>
      %40 = math.rsqrt %39 : vector<128x1xf32>
      %41 = vector.broadcast %40 : vector<128x1xf32> to vector<128x128xf32>
      %42 = arith.mulf %32, %41 : vector<128x128xf32>
      %43 = vector.broadcast %25 : vector<1x128xf32> to vector<128x128xf32>
      %44 = arith.mulf %42, %43 : vector<128x128xf32>
      %45 = vector.broadcast %26 : vector<1x128xf32> to vector<128x128xf32>
      %46 = arith.addf %44, %45 : vector<128x128xf32>
      %47 = arith.truncf %46 : vector<128x128xf32> to vector<128x128xbf16>
      %c0_23 = arith.constant 0 : index
      %c0_24 = arith.constant 0 : index
      %48 = vector.load %arg8[%c0_23, %c0_24] : memref<128x128xbf16, #tpu.memory_space<vmem>>, vector<128x128xbf16>
      tpu.vector_store %arg8[%c0_23, %c0_24], %47 {strides = array<i32>} : memref<128x128xbf16, #tpu.memory_space<vmem>>, vector<128x128xbf16>,
    } else {
    }
    %c0 = arith.constant 0 : index
    %c0_1 = arith.constant 0 : index
    %3 = vector.load %arg8[%c0, %c0_1] : memref<128x128xbf16, #tpu.memory_space<vmem>>, vector<128x128xbf16>
    %c0_2 = arith.constant 0 : index
    %c0_3 = arith.constant 0 : index
    %4 = vector.load %arg3[%c0_2, %c0_3] : memref<128x256xbf16, #tpu.memory_space<vmem>>, vector<128x256xbf16>
    %cst = arith.constant dense<0.000000e+00> : vector<128x256xf32>
    %5 = tpu.matmul %3, %4, %cst {dimension_numbers = #tpu.dot_dimension_numbers<[1], [0], [0], [1], [0, 0, 1, 1], [], []>} : vector<128x128xbf16>, vector<128x256xbf16>, vector<128x256xf32> -> vector<128x256xf32>
    %c0_4 = arith.constant 0 : index
    %c0_5 = arith.constant 0 : index
    %6 = vector.load %arg4[%c0_4, %c0_5] : memref<1x256xf32, #tpu.memory_space<vmem>>, vector<1x256xf32>
    %7 = vector.broadcast %6 : vector<1x256xf32> to vector<128x256xf32>
    %8 = arith.addf %5, %7 : vector<128x256xf32>
    %9 = arith.mulf %8, %8 : vector<128x256xf32>
    %10 = arith.mulf %8, %9 : vector<128x256xf32>
    %cst_6 = arith.constant 4.471500e-02 : f32
    %11 = vector.broadcast %cst_6 : f32 to vector<128x256xf32>
    %12 = arith.mulf %11, %10 : vector<128x256xf32>
    %13 = arith.addf %8, %12 : vector<128x256xf32>
    %cst_7 = arith.constant 0.797884583 : f32
    %14 = vector.broadcast %cst_7 : f32 to vector<128x256xf32>
    %15 = arith.mulf %14, %13 : vector<128x256xf32>
    %16 = math.tanh %15 : vector<128x256xf32>
    %cst_8 = arith.constant 1.000000e+00 : f32
    %17 = vector.broadcast %cst_8 : f32 to vector<128x256xf32>
    %18 = arith.addf %17, %16 : vector<128x256xf32>
    %cst_9 = arith.constant 5.000000e-01 : f32
    %19 = vector.broadcast %cst_9 : f32 to vector<128x256xf32>
    %20 = arith.mulf %19, %18 : vector<128x256xf32>
    %21 = arith.mulf %8, %20 : vector<128x256xf32>
    %22 = arith.truncf %21 : vector<128x256xf32> to vector<128x256xbf16>
    %c0_10 = arith.constant 0 : index
    %c0_11 = arith.constant 0 : index
    %23 = vector.load %arg7[%c0_10, %c0_11] : memref<128x256xbf16, #tpu.memory_space<vmem>>, vector<128x256xbf16>
    tpu.vector_store %arg7[%c0_10, %c0_11], %22 {strides = array<i32>} : memref<128x256xbf16, #tpu.memory_space<vmem>>, vector<128x256xbf16>,
    return
  }
  func.func @transform_0(%arg0: i32, %arg1: i32) -> (i32, i32) {
    %c0_i32 = arith.constant 0 : i32
    %c0_i32_0 = arith.constant 0 : i32
    return %arg0, %c0_i32 : i32, i32
  }
  func.func @transform_1(%arg0: i32, %arg1: i32) -> (i32, i32) {
    %c0_i32 = arith.constant 0 : i32
    %c0_i32_0 = arith.constant 0 : i32
    return %c0_i32, %arg1 : i32, i32
  }
  func.func @transform_2(%arg0: i32, %arg1: i32) -> (i32, i32) {
    %c0_i32 = arith.constant 0 : i32
    %c0_i32_0 = arith.constant 0 : i32
    return %c0_i32, %arg1 : i32, i32
  }
  func.func @transform_3(%arg0: i32, %arg1: i32) -> (i32, i32) {
    %c0_i32 = arith.constant 0 : i32
    %c0_i32_0 = arith.constant 0 : i32
    %c0_i32_1 = arith.constant 0 : i32
    return %c0_i32, %c0_i32_0 : i32, i32
  }
  func.func @transform_4(%arg0: i32, %arg1: i32) -> (i32, i32) {
    %c0_i32 = arith.constant 0 : i32
    %c0_i32_0 = arith.constant 0 : i32
    %c0_i32_1 = arith.constant 0 : i32
    return %c0_i32, %c0_i32_0 : i32, i32
  }
  func.func @transform_5(%arg0: i32, %arg1: i32) -> (i32, i32) {
    %c0_i32 = arith.constant 0 : i32
    return %arg0, %arg1 : i32, i32
  }
}

module attributes {stable_mosaic.version = 11 : i64} {
  func.func @_conv3x3_ln_kernel(%arg0: i32, %arg1: memref<1x10x10x128xbf16, #tpu.memory_space<vmem>>, %arg2: memref<9x128x128xbf16, #tpu.memory_space<vmem>>, %arg3: memref<1x128xf32, #tpu.memory_space<vmem>>, %arg4: memref<1x128xf32, #tpu.memory_space<vmem>>, %arg5: memref<1x8x8x128xf32, #tpu.memory_space<vmem>>) attributes {dimension_semantics = [#tpu.dimension_semantics<parallel>], iteration_bounds = array<i64: 2>, scalar_prefetch = 0 : i64, scratch_operands = 0 : i64, tpu.core_type = #tpu.core_type<tc>, window_params = [{transform_indices = @transform_0, window_bounds = array<i64: 1, 10, 10, 128>}, {pipeline_mode = #tpu.pipeline_mode<synchronous>, transform_indices = @transform_1, window_bounds = array<i64: 9, 128, 128>}, {pipeline_mode = #tpu.pipeline_mode<synchronous>, transform_indices = @transform_2, window_bounds = array<i64: 1, 128>}, {pipeline_mode = #tpu.pipeline_mode<synchronous>, transform_indices = @transform_3, window_bounds = array<i64: 1, 128>}, {transform_indices = @transform_4, window_bounds = array<i64: 1, 8, 8, 128>}]} {
    %c0 = arith.constant 0 : index
    %c0_0 = arith.constant 0 : index
    %c0_1 = arith.constant 0 : index
    %c0_2 = arith.constant 0 : index
    %0 = vector.load %arg1[%c0, %c0_0, %c0_1, %c0_2] : memref<1x10x10x128xbf16, #tpu.memory_space<vmem>>, vector<1x10x10x128xbf16>
    %1 = vector.shape_cast %0 : vector<1x10x10x128xbf16> to vector<10x10x128xbf16>
    %cst = arith.constant 0.000000e+00 : f32
    %2 = vector.broadcast %cst : f32 to vector<64x128xf32>
    %3 = vector.extract_strided_slice %1 {offsets = [0, 0, 0], sizes = [8, 8, 128], strides = [1, 1, 1]} : vector<10x10x128xbf16> to vector<8x8x128xbf16>
    %4 = vector.shape_cast %3 : vector<8x8x128xbf16> to vector<64x128xbf16>
    %c0_3 = arith.constant 0 : index
    %c0_4 = arith.constant 0 : index
    %c0_5 = arith.constant 0 : index
    %5 = vector.load %arg2[%c0_3, %c0_4, %c0_5] : memref<9x128x128xbf16, #tpu.memory_space<vmem>>, vector<1x128x128xbf16>
    %6 = vector.shape_cast %5 : vector<1x128x128xbf16> to vector<128x128xbf16>
    %cst_6 = arith.constant dense<0.000000e+00> : vector<64x128xf32>
    %7 = tpu.matmul %4, %6, %cst_6 {dimension_numbers = #tpu.dot_dimension_numbers<[1], [0], [0], [1], [0, 0, 1, 1], [], []>} : vector<64x128xbf16>, vector<128x128xbf16>, vector<64x128xf32> -> vector<64x128xf32>
    %8 = arith.addf %2, %7 : vector<64x128xf32>
    %9 = vector.extract_strided_slice %1 {offsets = [0, 1, 0], sizes = [8, 8, 128], strides = [1, 1, 1]} : vector<10x10x128xbf16> to vector<8x8x128xbf16>
    %10 = vector.shape_cast %9 : vector<8x8x128xbf16> to vector<64x128xbf16>
    %c1 = arith.constant 1 : index
    %c0_7 = arith.constant 0 : index
    %c0_8 = arith.constant 0 : index
    %11 = vector.load %arg2[%c1, %c0_7, %c0_8] : memref<9x128x128xbf16, #tpu.memory_space<vmem>>, vector<1x128x128xbf16>
    %12 = vector.shape_cast %11 : vector<1x128x128xbf16> to vector<128x128xbf16>
    %cst_9 = arith.constant dense<0.000000e+00> : vector<64x128xf32>
    %13 = tpu.matmul %10, %12, %cst_9 {dimension_numbers = #tpu.dot_dimension_numbers<[1], [0], [0], [1], [0, 0, 1, 1], [], []>} : vector<64x128xbf16>, vector<128x128xbf16>, vector<64x128xf32> -> vector<64x128xf32>
    %14 = arith.addf %8, %13 : vector<64x128xf32>
    %15 = vector.extract_strided_slice %1 {offsets = [0, 2, 0], sizes = [8, 8, 128], strides = [1, 1, 1]} : vector<10x10x128xbf16> to vector<8x8x128xbf16>
    %16 = vector.shape_cast %15 : vector<8x8x128xbf16> to vector<64x128xbf16>
    %c2 = arith.constant 2 : index
    %c0_10 = arith.constant 0 : index
    %c0_11 = arith.constant 0 : index
    %17 = vector.load %arg2[%c2, %c0_10, %c0_11] : memref<9x128x128xbf16, #tpu.memory_space<vmem>>, vector<1x128x128xbf16>
    %18 = vector.shape_cast %17 : vector<1x128x128xbf16> to vector<128x128xbf16>
    %cst_12 = arith.constant dense<0.000000e+00> : vector<64x128xf32>
    %19 = tpu.matmul %16, %18, %cst_12 {dimension_numbers = #tpu.dot_dimension_numbers<[1], [0], [0], [1], [0, 0, 1, 1], [], []>} : vector<64x128xbf16>, vector<128x128xbf16>, vector<64x128xf32> -> vector<64x128xf32>
    %20 = arith.addf %14, %19 : vector<64x128xf32>
    %21 = vector.extract_strided_slice %1 {offsets = [1, 0, 0], sizes = [8, 8, 128], strides = [1, 1, 1]} : vector<10x10x128xbf16> to vector<8x8x128xbf16>
    %22 = vector.shape_cast %21 : vector<8x8x128xbf16> to vector<64x128xbf16>
    %c3 = arith.constant 3 : index
    %c0_13 = arith.constant 0 : index
    %c0_14 = arith.constant 0 : index
    %23 = vector.load %arg2[%c3, %c0_13, %c0_14] : memref<9x128x128xbf16, #tpu.memory_space<vmem>>, vector<1x128x128xbf16>
    %24 = vector.shape_cast %23 : vector<1x128x128xbf16> to vector<128x128xbf16>
    %cst_15 = arith.constant dense<0.000000e+00> : vector<64x128xf32>
    %25 = tpu.matmul %22, %24, %cst_15 {dimension_numbers = #tpu.dot_dimension_numbers<[1], [0], [0], [1], [0, 0, 1, 1], [], []>} : vector<64x128xbf16>, vector<128x128xbf16>, vector<64x128xf32> -> vector<64x128xf32>
    %26 = arith.addf %20, %25 : vector<64x128xf32>
    %27 = vector.extract_strided_slice %1 {offsets = [1, 1, 0], sizes = [8, 8, 128], strides = [1, 1, 1]} : vector<10x10x128xbf16> to vector<8x8x128xbf16>
    %28 = vector.shape_cast %27 : vector<8x8x128xbf16> to vector<64x128xbf16>
    %c4 = arith.constant 4 : index
    %c0_16 = arith.constant 0 : index
    %c0_17 = arith.constant 0 : index
    %29 = vector.load %arg2[%c4, %c0_16, %c0_17] : memref<9x128x128xbf16, #tpu.memory_space<vmem>>, vector<1x128x128xbf16>
    %30 = vector.shape_cast %29 : vector<1x128x128xbf16> to vector<128x128xbf16>
    %cst_18 = arith.constant dense<0.000000e+00> : vector<64x128xf32>
    %31 = tpu.matmul %28, %30, %cst_18 {dimension_numbers = #tpu.dot_dimension_numbers<[1], [0], [0], [1], [0, 0, 1, 1], [], []>} : vector<64x128xbf16>, vector<128x128xbf16>, vector<64x128xf32> -> vector<64x128xf32>
    %32 = arith.addf %26, %31 : vector<64x128xf32>
    %33 = vector.extract_strided_slice %1 {offsets = [1, 2, 0], sizes = [8, 8, 128], strides = [1, 1, 1]} : vector<10x10x128xbf16> to vector<8x8x128xbf16>
    %34 = vector.shape_cast %33 : vector<8x8x128xbf16> to vector<64x128xbf16>
    %c5 = arith.constant 5 : index
    %c0_19 = arith.constant 0 : index
    %c0_20 = arith.constant 0 : index
    %35 = vector.load %arg2[%c5, %c0_19, %c0_20] : memref<9x128x128xbf16, #tpu.memory_space<vmem>>, vector<1x128x128xbf16>
    %36 = vector.shape_cast %35 : vector<1x128x128xbf16> to vector<128x128xbf16>
    %cst_21 = arith.constant dense<0.000000e+00> : vector<64x128xf32>
    %37 = tpu.matmul %34, %36, %cst_21 {dimension_numbers = #tpu.dot_dimension_numbers<[1], [0], [0], [1], [0, 0, 1, 1], [], []>} : vector<64x128xbf16>, vector<128x128xbf16>, vector<64x128xf32> -> vector<64x128xf32>
    %38 = arith.addf %32, %37 : vector<64x128xf32>
    %39 = vector.extract_strided_slice %1 {offsets = [2, 0, 0], sizes = [8, 8, 128], strides = [1, 1, 1]} : vector<10x10x128xbf16> to vector<8x8x128xbf16>
    %40 = vector.shape_cast %39 : vector<8x8x128xbf16> to vector<64x128xbf16>
    %c6 = arith.constant 6 : index
    %c0_22 = arith.constant 0 : index
    %c0_23 = arith.constant 0 : index
    %41 = vector.load %arg2[%c6, %c0_22, %c0_23] : memref<9x128x128xbf16, #tpu.memory_space<vmem>>, vector<1x128x128xbf16>
    %42 = vector.shape_cast %41 : vector<1x128x128xbf16> to vector<128x128xbf16>
    %cst_24 = arith.constant dense<0.000000e+00> : vector<64x128xf32>
    %43 = tpu.matmul %40, %42, %cst_24 {dimension_numbers = #tpu.dot_dimension_numbers<[1], [0], [0], [1], [0, 0, 1, 1], [], []>} : vector<64x128xbf16>, vector<128x128xbf16>, vector<64x128xf32> -> vector<64x128xf32>
    %44 = arith.addf %38, %43 : vector<64x128xf32>
    %45 = vector.extract_strided_slice %1 {offsets = [2, 1, 0], sizes = [8, 8, 128], strides = [1, 1, 1]} : vector<10x10x128xbf16> to vector<8x8x128xbf16>
    %46 = vector.shape_cast %45 : vector<8x8x128xbf16> to vector<64x128xbf16>
    %c7 = arith.constant 7 : index
    %c0_25 = arith.constant 0 : index
    %c0_26 = arith.constant 0 : index
    %47 = vector.load %arg2[%c7, %c0_25, %c0_26] : memref<9x128x128xbf16, #tpu.memory_space<vmem>>, vector<1x128x128xbf16>
    %48 = vector.shape_cast %47 : vector<1x128x128xbf16> to vector<128x128xbf16>
    %cst_27 = arith.constant dense<0.000000e+00> : vector<64x128xf32>
    %49 = tpu.matmul %46, %48, %cst_27 {dimension_numbers = #tpu.dot_dimension_numbers<[1], [0], [0], [1], [0, 0, 1, 1], [], []>} : vector<64x128xbf16>, vector<128x128xbf16>, vector<64x128xf32> -> vector<64x128xf32>
    %50 = arith.addf %44, %49 : vector<64x128xf32>
    %51 = vector.extract_strided_slice %1 {offsets = [2, 2, 0], sizes = [8, 8, 128], strides = [1, 1, 1]} : vector<10x10x128xbf16> to vector<8x8x128xbf16>
    %52 = vector.shape_cast %51 : vector<8x8x128xbf16> to vector<64x128xbf16>
    %c8 = arith.constant 8 : index
    %c0_28 = arith.constant 0 : index
    %c0_29 = arith.constant 0 : index
    %53 = vector.load %arg2[%c8, %c0_28, %c0_29] : memref<9x128x128xbf16, #tpu.memory_space<vmem>>, vector<1x128x128xbf16>
    %54 = vector.shape_cast %53 : vector<1x128x128xbf16> to vector<128x128xbf16>
    %cst_30 = arith.constant dense<0.000000e+00> : vector<64x128xf32>
    %55 = tpu.matmul %52, %54, %cst_30 {dimension_numbers = #tpu.dot_dimension_numbers<[1], [0], [0], [1], [0, 0, 1, 1], [], []>} : vector<64x128xbf16>, vector<128x128xbf16>, vector<64x128xf32> -> vector<64x128xf32>
    %56 = arith.addf %50, %55 : vector<64x128xf32>
    %c0_31 = arith.constant 0 : index
    %c0_32 = arith.constant 0 : index
    %57 = vector.load %arg3[%c0_31, %c0_32] : memref<1x128xf32, #tpu.memory_space<vmem>>, vector<1x128xf32>
    %c0_33 = arith.constant 0 : index
    %c0_34 = arith.constant 0 : index
    %58 = vector.load %arg4[%c0_33, %c0_34] : memref<1x128xf32, #tpu.memory_space<vmem>>, vector<1x128xf32>
    %cst_35 = arith.constant dense<0.000000e+00> : vector<64xf32>
    %59 = vector.multi_reduction <add>, %56, %cst_35 [1] : vector<64x128xf32> to vector<64xf32>
    %60 = vector.shape_cast %59 : vector<64xf32> to vector<64x1xf32>
    %cst_36 = arith.constant 1.280000e+02 : f32
    %61 = vector.broadcast %cst_36 : f32 to vector<64x1xf32>
    %62 = arith.divf %60, %61 : vector<64x1xf32>
    %63 = vector.broadcast %62 : vector<64x1xf32> to vector<64x128xf32>
    %64 = arith.subf %56, %63 : vector<64x128xf32>
    %65 = arith.mulf %64, %64 : vector<64x128xf32>
    %cst_37 = arith.constant dense<0.000000e+00> : vector<64xf32>
    %66 = vector.multi_reduction <add>, %65, %cst_37 [1] : vector<64x128xf32> to vector<64xf32>
    %67 = vector.shape_cast %66 : vector<64xf32> to vector<64x1xf32>
    %cst_38 = arith.constant 1.280000e+02 : f32
    %68 = vector.broadcast %cst_38 : f32 to vector<64x1xf32>
    %69 = arith.divf %67, %68 : vector<64x1xf32>
    %cst_39 = arith.constant 9.99999997E-7 : f32
    %70 = vector.broadcast %cst_39 : f32 to vector<64x1xf32>
    %71 = arith.addf %69, %70 : vector<64x1xf32>
    %72 = math.rsqrt %71 : vector<64x1xf32>
    %73 = vector.broadcast %72 : vector<64x1xf32> to vector<64x128xf32>
    %74 = arith.mulf %64, %73 : vector<64x128xf32>
    %75 = vector.broadcast %57 : vector<1x128xf32> to vector<64x128xf32>
    %76 = arith.mulf %74, %75 : vector<64x128xf32>
    %77 = vector.broadcast %58 : vector<1x128xf32> to vector<64x128xf32>
    %78 = arith.addf %76, %77 : vector<64x128xf32>
    %79 = vector.shape_cast %78 : vector<64x128xf32> to vector<8x8x128xf32>
    %c0_40 = arith.constant 0 : index
    %c0_41 = arith.constant 0 : index
    %c0_42 = arith.constant 0 : index
    %c0_43 = arith.constant 0 : index
    %80 = vector.load %arg5[%c0_40, %c0_41, %c0_42, %c0_43] : memref<1x8x8x128xf32, #tpu.memory_space<vmem>>, vector<1x8x8x128xf32>
    %81 = vector.shape_cast %80 : vector<1x8x8x128xf32> to vector<8x8x128xf32>
    %82 = vector.shape_cast %79 : vector<8x8x128xf32> to vector<1x8x8x128xf32>
    tpu.vector_store %arg5[%c0_40, %c0_41, %c0_42, %c0_43], %82 {strides = array<i32>} : memref<1x8x8x128xf32, #tpu.memory_space<vmem>>, vector<1x8x8x128xf32>,
    return
  }
  func.func @transform_0(%arg0: i32) -> (i32, i32, i32, i32) {
    %c0_i32 = arith.constant 0 : i32
    %c0_i32_0 = arith.constant 0 : i32
    %c0_i32_1 = arith.constant 0 : i32
    %c0_i32_2 = arith.constant 0 : i32
    return %arg0, %c0_i32, %c0_i32_0, %c0_i32_1 : i32, i32, i32, i32
  }
  func.func @transform_1(%arg0: i32) -> (i32, i32, i32) {
    %c0_i32 = arith.constant 0 : i32
    %c0_i32_0 = arith.constant 0 : i32
    %c0_i32_1 = arith.constant 0 : i32
    %c0_i32_2 = arith.constant 0 : i32
    return %c0_i32, %c0_i32_0, %c0_i32_1 : i32, i32, i32
  }
  func.func @transform_2(%arg0: i32) -> (i32, i32) {
    %c0_i32 = arith.constant 0 : i32
    %c0_i32_0 = arith.constant 0 : i32
    %c0_i32_1 = arith.constant 0 : i32
    return %c0_i32, %c0_i32_0 : i32, i32
  }
  func.func @transform_3(%arg0: i32) -> (i32, i32) {
    %c0_i32 = arith.constant 0 : i32
    %c0_i32_0 = arith.constant 0 : i32
    %c0_i32_1 = arith.constant 0 : i32
    return %c0_i32, %c0_i32_0 : i32, i32
  }
  func.func @transform_4(%arg0: i32) -> (i32, i32, i32, i32) {
    %c0_i32 = arith.constant 0 : i32
    %c0_i32_0 = arith.constant 0 : i32
    %c0_i32_1 = arith.constant 0 : i32
    %c0_i32_2 = arith.constant 0 : i32
    return %arg0, %c0_i32, %c0_i32_0, %c0_i32_1 : i32, i32, i32, i32
  }
}

</mosaic_0001>

<bundles_post_ra>
// kernel: _lambda_.13
= control target key start
LH: loop header
LB: loop body
LE: loop exit
PB: predicated region body
PF: predicated region fallthrough
CT: control target
= control target key end

     0   :  { %s1814_s1 = inlined_call_operand.vmem [shape: bf16[768,128], index: 1, kind: input, shape index: {}]   ;;  %s1815_s0 = inlined_call_operand.vmem [shape: f32[128,768], index: 0, kind: input, shape index: {}]   ;;  %s1816_s2 = inlined_call_operand.vmem [shape: f32[1,128], index: 2, kind: input, shape index: {}]   ;;  %s1817_s3 = inlined_call_operand.vmem [shape: f32[128,128], index: 3, kind: input, shape index: {}]   ;;  %s1818_s4 = inlined_call_operand.vmem [shape: f32[128,128], index: 4, kind: output, shape index: {}]  }
   0x1   :  { %v1153_v0 = vld [vmem:[%s1814_s1 + $0x40] sm:$0xff]   ;;  %v1155_v2 = vld [vmem:[%s1814_s1 + $0x48] sm:$0xff]   ;;  %v1157_v4 = vld [vmem:[%s1814_s1 + $0x50] sm:$0xff]  }
   0x2   :  { %v1154_v1 = vld [vmem:[%s1814_s1] sm:$0xff]   ;;  %945 = vmatprep.subr.bf16.mxu0 %v1153_v0  ;;  %1137 = vmatprep.subr.bf16.mxu1 %v1153_v0  ;;  %v1156_v3 = vld [vmem:[%s1814_s1 + $0x8] sm:$0xff]   ;;  %v1158_v5 = vld [vmem:[%s1814_s1 + $0x10] sm:$0xff]  }
   0x3   :  { %946 = vmatpush3.bf16.msra.mxu0 %v1154_v1  ;;  %1145 = vmatpush3.bf16.msra.mxu1 %v1154_v1  ;;  %v1159_v6 = vld [vmem:[%s1814_s1 + $0x58] sm:$0xff]   ;;  %v1161_v8 = vld [vmem:[%s1814_s1 + $0x60] sm:$0xff]   ;;  %v1163_v10 = vld [vmem:[%s1814_s1 + $0x68] sm:$0xff]  }
   0x4   :  { %947 = vmatprep.subr.bf16.mxu0 %v1155_v2  ;;  %1138 = vmatprep.subr.bf16.mxu1 %v1155_v2  ;;  %v1160_v7 = vld [vmem:[%s1814_s1 + $0x18] sm:$0xff]   ;;  %v1162_v9 = vld [vmem:[%s1814_s1 + $0x20] sm:$0xff]   ;;  %v19_v11 = vld [vmem:[%s1815_s0 + $0x8] sm:$0xff] }
   0x5   :  { %v25_v12 = vld [vmem:[%s1815_s0 + $0x38] sm:$0xff]  ;;  %v67_v13 = vld [vmem:[%s1815_s0 + $0x188] sm:$0xff]  ;;  %v1165_v18 = vld [vmem:[%s1814_s1 + $0x70] sm:$0xff]  }
   0x6   :  { %v115_v14 = vpack.c.bf16 %v25_v12, %v19_v11  ;;  %v73_v15 = vld [vmem:[%s1815_s0 + $0x1b8] sm:$0xff]  ;;  %v1164_v17 = vld [vmem:[%s1814_s1 + $0x28] sm:$0xff]   ;;  %v1166_v19 = vld [vmem:[%s1814_s1 + $0x30] sm:$0xff]  }
   0x7   :  { %948 = vmatpush3.bf16.msra.mxu0 %v1156_v3  ;;  %1146 = vmatpush3.bf16.msra.mxu1 %v1156_v3  ;;  %v139_v16 = vpack.c.bf16 %v73_v15, %v67_v13  ;;  %v1167_v20 = vld [vmem:[%s1814_s1 + $0x78] sm:$0xff]   ;;  %v18_v22 = vld [vmem:[%s1815_s0] sm:$0xff]  ;;  %v24_v23 = vld [vmem:[%s1815_s0 + $0x30] sm:$0xff] }
   0x8   :  { %949 = vmatprep.subr.bf16.mxu0 %v1157_v4  ;;  %1139 = vmatprep.subr.bf16.mxu1 %v1157_v4  ;;  %v1168_v21 = vld [vmem:[%s1814_s1 + $0x38] sm:$0xff]   ;;  %v66_v24 = vld [vmem:[%s1815_s0 + $0x180] sm:$0xff]  ;;  %v72_v25 = vld [vmem:[%s1815_s0 + $0x1b0] sm:$0xff]  ;;  %v114_v33 = vpack.c.bf16 %v24_v23, %v18_v22 }
   0x9   :  { %585 = vmatprep.mubr.bf16.mxu0 %v115_v14  ;;  %617 = vmatprep.mubr.bf16.mxu1 %v139_v16  ;;  %v1169_v26 = vld [vmem:[%s1814_s1 + $0xc0] sm:$0xff]   ;;  %v31_v28 = vld [vmem:[%s1815_s0 + $0x68] sm:$0xff]  ;;  %v37_v29 = vld [vmem:[%s1815_s0 + $0x98] sm:$0xff]  ;;  %v138_v34 = vpack.c.bf16 %v72_v25, %v66_v24 }
   0xa   :  { %v1170_v27 = vld [vmem:[%s1814_s1 + $0x140] sm:$0xff]   ;;  %v79_v32 = vld [vmem:[%s1815_s0 + $0x1e8] sm:$0xff]  ;;  %v85_v35 = vld [vmem:[%s1815_s0 + $0x218] sm:$0xff]  ;;  %v121_v40 = vpack.c.bf16 %v37_v29, %v31_v28 }
   0xb   :  { %950 = vmatpush3.bf16.msra.mxu0 %v1158_v5  ;;  %1147 = vmatpush3.bf16.msra.mxu1 %v1158_v5  ;;  %v1171_v30 = vld [vmem:[%s1814_s1 + $0x80] sm:$0xff]   ;;  %v1173_v36 = vld [vmem:[%s1814_s1 + $0xc8] sm:$0xff]   ;;  %v145_v41 = vpack.c.bf16 %v85_v35, %v79_v32  ;;  %v36_v43 = vld [vmem:[%s1815_s0 + $0x90] sm:$0xff] }
   0xc   :  { %951 = vmatprep.subr.bf16.mxu0 %v1159_v6  ;;  %1140 = vmatprep.subr.bf16.mxu1 %v1159_v6  ;;  %v1172_v31 = vld [vmem:[%s1814_s1 + $0x100] sm:$0xff]   ;;  %v1174_v37 = vld [vmem:[%s1814_s1 + $0x148] sm:$0xff]   ;;  %v84_v45 = vld [vmem:[%s1815_s0 + $0x210] sm:$0xff] }
   0xd   :  { %v1175_v38 = vld [vmem:[%s1814_s1 + $0x88] sm:$0xff]   ;;  %v30_v42 = vld [vmem:[%s1815_s0 + $0x60] sm:$0xff]  ;;  %v1177_v46 = vld [vmem:[%s1814_s1 + $0xd0] sm:$0xff]  }
   0xe   :  { %v1176_v39 = vld [vmem:[%s1814_s1 + $0x108] sm:$0xff]   ;;  %v78_v44 = vld [vmem:[%s1815_s0 + $0x1e0] sm:$0xff]  ;;  %v1178_v47 = vld [vmem:[%s1814_s1 + $0x150] sm:$0xff]   ;;  %v120_v49 = vpack.c.bf16 %v36_v43, %v30_v42 }
   0xf   :  { %952 = vmatpush3.bf16.msra.mxu0 %v1160_v7  ;;  %1148 = vmatpush3.bf16.msra.mxu1 %v1160_v7  ;;  %v43_v48 = vld [vmem:[%s1815_s0 + $0xc8] sm:$0xff]  ;;  %v144_v50 = vpack.c.bf16 %v84_v45, %v78_v44  ;;  %v49_v51 = vld [vmem:[%s1815_s0 + $0xf8] sm:$0xff]  ;;  %v1179_v54 = vld [vmem:[%s1814_s1 + $0x90] sm:$0xff]  }
  0x10   :  { %953 = vmatprep.subr.bf16.mxu0 %v1161_v8  ;;  %1141 = vmatprep.subr.bf16.mxu1 %v1161_v8  ;;  %v91_v52 = vld [vmem:[%s1815_s0 + $0x248] sm:$0xff]  ;;  %v97_v53 = vld [vmem:[%s1815_s0 + $0x278] sm:$0xff]  ;;  %v1180_v55 = vld [vmem:[%s1814_s1 + $0x110] sm:$0xff]   ;;  %v127_v60 = vpack.c.bf16 %v49_v51, %v43_v48 }
  0x11   :  { %v1181_v56 = vld [vmem:[%s1814_s1 + $0xd8] sm:$0xff]   ;;  %v151_v61 = vpack.c.bf16 %v97_v53, %v91_v52  ;;  %v42_v62 = vld [vmem:[%s1815_s0 + $0xc0] sm:$0xff]  ;;  %v48_v63 = vld [vmem:[%s1815_s0 + $0xf0] sm:$0xff] }
  0x12   :  { %v1182_v57 = vld [vmem:[%s1814_s1 + $0x158] sm:$0xff]   ;;  %v90_v0 = vld [vmem:[%s1815_s0 + $0x240] sm:$0xff]  ;;  %v96_v1 = vld [vmem:[%s1815_s0 + $0x270] sm:$0xff]  ;;  %v126_v6 = vpack.c.bf16 %v48_v63, %v42_v62 }
  0x13   :  { %954 = vmatpush3.bf16.msra.mxu0 %v1162_v9  ;;  %1149 = vmatpush3.bf16.msra.mxu1 %v1162_v9  ;;  %v1183_v58 = vld [vmem:[%s1814_s1 + $0x98] sm:$0xff]   ;;  %v1185_v2 = vld [vmem:[%s1814_s1 + $0xe0] sm:$0xff]   ;;  %v150_v7 = vpack.c.bf16 %v96_v1, %v90_v0  ;;  %v1189_v8 = vld [vmem:[%s1814_s1 + $0xe8] sm:$0xff]  }
  0x14   :  { %955 = vmatprep.subr.bf16.mxu0 %v1163_v10  ;;  %1142 = vmatprep.subr.bf16.mxu1 %v1163_v10  ;;  %v1184_v59 = vld [vmem:[%s1814_s1 + $0x118] sm:$0xff]   ;;  %v1186_v3 = vld [vmem:[%s1814_s1 + $0x160] sm:$0xff]   ;;  %v1190_v9 = vld [vmem:[%s1814_s1 + $0x168] sm:$0xff]  }
  0x15   :  { %v1187_v4 = vld [vmem:[%s1814_s1 + $0xa0] sm:$0xff]   ;;  %v55_v10 = vld [vmem:[%s1815_s0 + $0x128] sm:$0xff]  ;;  %v61_v11 = vld [vmem:[%s1815_s0 + $0x158] sm:$0xff] }
  0x16   :  { %v1188_v5 = vld [vmem:[%s1814_s1 + $0x120] sm:$0xff]   ;;  %v103_v12 = vld [vmem:[%s1815_s0 + $0x2a8] sm:$0xff]  ;;  %v133_v15 = vpack.c.bf16 %v61_v11, %v55_v10  ;;  %v109_v16 = vld [vmem:[%s1815_s0 + $0x2d8] sm:$0xff] }
  0x17   :  { %956 = vmatpush3.bf16.msra.mxu0 %v1164_v17  ;;  %1150 = vmatpush3.bf16.msra.mxu1 %v1164_v17  ;;  %v1191_v13 = vld [vmem:[%s1814_s1 + $0xa8] sm:$0xff]   ;;  %v54_v17 = vld [vmem:[%s1815_s0 + $0x120] sm:$0xff]  ;;  %v1193_v22 = vld [vmem:[%s1814_s1 + $0xf0] sm:$0xff]  }
  0x18   :  { %957 = vmatprep.subr.bf16.mxu0 %v1165_v18  ;;  %1143 = vmatprep.subr.bf16.mxu1 %v1165_v18  ;;  %v1192_v14 = vld [vmem:[%s1814_s1 + $0x128] sm:$0xff]   ;;  %v60_v18 = vld [vmem:[%s1815_s0 + $0x150] sm:$0xff]  ;;  %v1197_v28 = vld [vmem:[%s1814_s1 + $0xf8] sm:$0xff]  }
  0x19   :  { %v1194_v23 = vld [vmem:[%s1814_s1 + $0x170] sm:$0xff]   ;;  %v132_v25 = vpack.c.bf16 %v60_v18, %v54_v17  ;;  %v1198_v29 = vld [vmem:[%s1814_s1 + $0x178] sm:$0xff]   ;;  %v39_v43 = vld [vmem:[%s1815_s0 + $0xa8] sm:$0xff] }
  0x1a   :  { %v1195_v24 = vld [vmem:[%s1814_s1 + $0xb0] sm:$0xff]   ;;  %v21_v32 = vld [vmem:[%s1815_s0 + $0x18] sm:$0xff]  ;;  %v38_v51 = vld [vmem:[%s1815_s0 + $0xa0] sm:$0xff] }
  0x1b   :  { %958 = vmatpush3.bf16.msra.mxu0 %v1166_v19  ;;  %1151 = vmatpush3.bf16.msra.mxu1 %v1166_v19  ;;  %v157_v19 = vpack.c.bf16 %v109_v16, %v103_v12  ;;  %v29_v35 = vld [vmem:[%s1815_s0 + $0x58] sm:$0xff]  ;;  %v34_v52 = vld [vmem:[%s1815_s0 + $0x80] sm:$0xff]  ;;  %v40_v53 = vld [vmem:[%s1815_s0 + $0xb0] sm:$0xff] }
  0x1c   :  { %959 = vmatprep.subr.bf16.mxu0 %v1167_v20  ;;  %1144 = vmatprep.subr.bf16.mxu1 %v1167_v20  ;;  %v102_v20 = vld [vmem:[%s1815_s0 + $0x2a0] sm:$0xff]  ;;  %v33_v42 = vld [vmem:[%s1815_s0 + $0x78] sm:$0xff]  ;;  %v44_v62 = vld [vmem:[%s1815_s0 + $0xd0] sm:$0xff] }
  0x1d   :  { %v123_v48 = vpack.c.bf16 %v39_v43, %v33_v42  ;;  %v50_v63 = vld [vmem:[%s1815_s0 + $0x100] sm:$0xff]  ;;  %v52_v1 = vld [vmem:[%s1815_s0 + $0x110] sm:$0xff]  ;;  %v71_v16 = vld [vmem:[%s1815_s0 + $0x1a8] sm:$0xff] }
  0x1e   :  { %v46_v0 = vld [vmem:[%s1815_s0 + $0xe0] sm:$0xff]  ;;  %v56_v10 = vld [vmem:[%s1815_s0 + $0x130] sm:$0xff]  ;;  %v77_v17 = vld [vmem:[%s1815_s0 + $0x1d8] sm:$0xff] }
  0x1f   :  { %960 = vmatpush3.bf16.msra.mxu0 %v1168_v21  ;;  %1152 = vmatpush3.bf16.msra.mxu1 %v1168_v21  ;;  %v108_v21 = vld [vmem:[%s1815_s0 + $0x2d0] sm:$0xff]  ;;  %v62_v11 = vld [vmem:[%s1815_s0 + $0x160] sm:$0xff] }
  0x20   :  { %1009 = vmatprep.subr.bf16.mxu1 %v1169_v26  ;;  %1073 = vmatprep.subr.bf16.mxu0 %v1170_v27  ;;  %v156_v26 = vpack.c.bf16 %v108_v21, %v102_v20  ;;  %v1196_v27 = vld [vmem:[%s1814_s1 + $0x130] sm:$0xff]   ;;  %v58_v12 = vld [vmem:[%s1815_s0 + $0x140] sm:$0xff]  ;;  %v134_v18 = vpack.c.bf16 %v62_v11, %v56_v10  ;;  %v143_v21 = vpack.c.bf16 %v77_v17, %v71_v16 }
  0x22   :  { %586 = vmatmul.mubr.bf16.vlgmr.msra.gmra.mrb[0].mxu0 %v114_v33  ;;  %618 = vmatmul.mubr.bf16.vlgmr.msra.gmra.mrb[0].mxu1 %v138_v34  ;;  %v27_v33 = vld [vmem:[%s1815_s0 + $0x48] sm:$0xff] }
  0x23   :  { %1010 = vmatpush3.bf16.msra.mxu1 %v1171_v30  ;;  %1074 = vmatpush3.bf16.msra.mxu0 %v1172_v31  ;;  %v1199_v30 = vld [vmem:[%s1814_s1 + $0xb8] sm:$0xff]   ;;  %v23_v34 = vld [vmem:[%s1815_s0 + $0x28] sm:$0xff] }
  0x24   :  { %1011 = vmatprep.subr.bf16.mxu1 %v1173_v36  ;;  %1075 = vmatprep.subr.bf16.mxu0 %v1174_v37  ;;  %v1200_v31 = vld [vmem:[%s1814_s1 + $0x138] sm:$0xff]   ;;  %v117_v36 = vpack.c.bf16 %v27_v33, %v21_v32  ;;  %v119_v37 = vpack.c.bf16 %v29_v35, %v23_v34  ;;  %v80_v34 = vld [vmem:[%s1815_s0 + $0x1f0] sm:$0xff]  ;;  %v86_v35 = vld [vmem:[%s1815_s0 + $0x220] sm:$0xff] }
  0x25   :  { %593 = vmatprep.mubr.bf16.mxu0 %v121_v40  ;;  %625 = vmatprep.mubr.bf16.mxu1 %v145_v41  ;;  %v22_v40 = vld [vmem:[%s1815_s0 + $0x20] sm:$0xff]  ;;  %v28_v41 = vld [vmem:[%s1815_s0 + $0x50] sm:$0xff]  ;;  %v146_v42 = vpack.c.bf16 %v86_v35, %v80_v34 }
  0x26   :  { %v118_v45 = vpack.c.bf16 %v28_v41, %v22_v40  ;;  %v95_v40 = vld [vmem:[%s1815_s0 + $0x268] sm:$0xff]  ;;  %v101_v41 = vld [vmem:[%s1815_s0 + $0x298] sm:$0xff] }
  0x27   :  { %1012 = vmatpush3.bf16.msra.mxu1 %v1175_v38  ;;  %1076 = vmatpush3.bf16.msra.mxu0 %v1176_v39  ;;  %v20_v38 = vld [vmem:[%s1815_s0 + $0x10] sm:$0xff]  ;;  %v26_v39 = vld [vmem:[%s1815_s0 + $0x40] sm:$0xff] }
  0x28   :  { %1013 = vmatprep.subr.bf16.mxu1 %v1177_v46  ;;  %1077 = vmatprep.subr.bf16.mxu0 %v1178_v47  ;;  %v116_v44 = vpack.c.bf16 %v26_v39, %v20_v38  ;;  %v35_v46 = vld [vmem:[%s1815_s0 + $0x88] sm:$0xff]  ;;  %v41_v47 = vld [vmem:[%s1815_s0 + $0xb8] sm:$0xff] }
  0x29   :  { %v93_v38 = vld [vmem:[%s1815_s0 + $0x258] sm:$0xff]  ;;  %v99_v39 = vld [vmem:[%s1815_s0 + $0x288] sm:$0xff] }
  0x2a   :  { %594 = vmatmul.mubr.bf16.gmra.mrb[4].mxu0 %v120_v49  ;;  %626 = vmatmul.mubr.bf16.gmra.mrb[4].mxu1 %v144_v50  ;;  %v125_v49 = vpack.c.bf16 %v41_v47, %v35_v46  ;;  %v32_v50 = vld [vmem:[%s1815_s0 + $0x70] sm:$0xff]  ;;  %v98_v47 = vld [vmem:[%s1815_s0 + $0x280] sm:$0xff] }
  0x2b   :  { %1014 = vmatpush3.bf16.msra.mxu1 %v1179_v54  ;;  %1078 = vmatpush3.bf16.msra.mxu0 %v1180_v55  ;;  %v45_v54 = vld [vmem:[%s1815_s0 + $0xd8] sm:$0xff]  ;;  %v51_v55 = vld [vmem:[%s1815_s0 + $0x108] sm:$0xff]  ;;  %v92_v46 = vld [vmem:[%s1815_s0 + $0x250] sm:$0xff] }
  0x2c   :  { %1015 = vmatprep.subr.bf16.mxu1 %v1181_v56  ;;  %1079 = vmatprep.subr.bf16.mxu0 %v1182_v57  ;;  %v47_v56 = vld [vmem:[%s1815_s0 + $0xe8] sm:$0xff]  ;;  %v53_v57 = vld [vmem:[%s1815_s0 + $0x118] sm:$0xff] }
  0x2d   :  { %601 = vmatprep.mubr.bf16.mxu0 %v127_v60  ;;  %633 = vmatprep.mubr.bf16.mxu1 %v151_v61  ;;  %v129_v60 = vpack.c.bf16 %v51_v55, %v45_v54  ;;  %v131_v61 = vpack.c.bf16 %v53_v57, %v47_v56  ;;  %v152_v54 = vpack.c.bf16 %v98_v47, %v92_v46 }
  0x2f   :  { %1016 = vmatpush3.bf16.msra.mxu1 %v1183_v58  ;;  %1080 = vmatpush3.bf16.msra.mxu0 %v1184_v59  ;;  %v122_v58 = vpack.c.bf16 %v38_v51, %v32_v50  ;;  %v124_v59 = vpack.c.bf16 %v40_v53, %v34_v52  ;;  %v105_v50 = vld [vmem:[%s1815_s0 + $0x2b8] sm:$0xff]  ;;  %v111_v51 = vld [vmem:[%s1815_s0 + $0x2e8] sm:$0xff] }
  0x30   :  { %1017 = vmatprep.subr.bf16.mxu1 %v1185_v2  ;;  %1081 = vmatprep.subr.bf16.mxu0 %v1186_v3  ;;  %v57_v2 = vld [vmem:[%s1815_s0 + $0x138] sm:$0xff]  ;;  %v63_v3 = vld [vmem:[%s1815_s0 + $0x168] sm:$0xff]  ;;  %v159_v56 = vpack.c.bf16 %v111_v51, %v105_v50 }
  0x31   :  { %v107_v52 = vld [vmem:[%s1815_s0 + $0x2c8] sm:$0xff]  ;;  %v113_v53 = vld [vmem:[%s1815_s0 + $0x2f8] sm:$0xff] }
  0x32   :  { %602 = vmatmul.mubr.bf16.gmra.mrb[8].mxu0 %v126_v6  ;;  %634 = vmatmul.mubr.bf16.gmra.mrb[8].mxu1 %v150_v7  ;;  %v128_v6 = vpack.c.bf16 %v50_v63, %v44_v62  ;;  %v130_v7 = vpack.c.bf16 %v52_v1, %v46_v0  ;;  %v161_v57 = vpack.c.bf16 %v113_v53, %v107_v52 }
  0x33   :  { %1018 = vmatpush3.bf16.msra.mxu1 %v1187_v4  ;;  %1082 = vmatpush3.bf16.msra.mxu0 %v1188_v5  ;;  %v59_v4 = vld [vmem:[%s1815_s0 + $0x148] sm:$0xff]  ;;  %v65_v5 = vld [vmem:[%s1815_s0 + $0x178] sm:$0xff] }
  0x34   :  { %1019 = vmatprep.subr.bf16.mxu1 %v1189_v8  ;;  %1083 = vmatprep.subr.bf16.mxu0 %v1190_v9  ;;  %v135_v8 = vpack.c.bf16 %v63_v3, %v57_v2  ;;  %v137_v9 = vpack.c.bf16 %v65_v5, %v59_v4 }
  0x35   :  { %609 = vmatprep.mubr.bf16.mxu0 %v133_v15  ;;  %641 = vmatprep.mubr.bf16.mxu1 %v157_v19  ;;  %v75_v15 = vld [vmem:[%s1815_s0 + $0x1c8] sm:$0xff] }
  0x37   :  { %1020 = vmatpush3.bf16.msra.mxu1 %v1191_v13  ;;  %1084 = vmatpush3.bf16.msra.mxu0 %v1192_v14  ;;  %v64_v13 = vld [vmem:[%s1815_s0 + $0x170] sm:$0xff]  ;;  %v69_v14 = vld [vmem:[%s1815_s0 + $0x198] sm:$0xff] }
  0x38   :  { %1021 = vmatprep.subr.bf16.mxu1 %v1193_v22  ;;  %1085 = vmatprep.subr.bf16.mxu0 %v1194_v23  ;;  %v136_v19 = vpack.c.bf16 %v64_v13, %v58_v12  ;;  %v141_v20 = vpack.c.bf16 %v75_v15, %v69_v14  ;;  %v68_v22 = vld [vmem:[%s1815_s0 + $0x190] sm:$0xff]  ;;  %v74_v23 = vld [vmem:[%s1815_s0 + $0x1c0] sm:$0xff] }
  0x3a   :  { %610 = vmatmul.mubr.bf16.gmra.mrb[12].mxu0 %v132_v25  ;;  %642 = vmatmul.mubr.bf16.gmra.mrb[12].mxu1 %v156_v26  ;;  %v76_v25 = vld [vmem:[%s1815_s0 + $0x1d0] sm:$0xff]  ;;  %v81_v26 = vld [vmem:[%s1815_s0 + $0x1f8] sm:$0xff] }
  0x3b   :  { %1022 = vmatpush3.bf16.msra.mxu1 %v1195_v24  ;;  %1086 = vmatpush3.bf16.msra.mxu0 %v1196_v27  ;;  %v70_v24 = vld [vmem:[%s1815_s0 + $0x1a0] sm:$0xff]  ;;  %v87_v27 = vld [vmem:[%s1815_s0 + $0x228] sm:$0xff] }
  0x3c   :  { %1023 = vmatprep.subr.bf16.mxu1 %v1197_v28  ;;  %1087 = vmatprep.subr.bf16.mxu0 %v1198_v29  ;;  %v83_v28 = vld [vmem:[%s1815_s0 + $0x208] sm:$0xff]  ;;  %v89_v29 = vld [vmem:[%s1815_s0 + $0x238] sm:$0xff]  ;;  %v147_v32 = vpack.c.bf16 %v87_v27, %v81_v26 }
  0x3d   :  { %682 = vmatprep.mubr.bf16.mxu1 %v117_v36  ;;  %779 = vmatprep.mubr.bf16.mxu0 %v119_v37  ;;  %v149_v33 = vpack.c.bf16 %v89_v29, %v83_v28  ;;  %v82_v36 = vld [vmem:[%s1815_s0 + $0x200] sm:$0xff]  ;;  %v88_v37 = vld [vmem:[%s1815_s0 + $0x230] sm:$0xff] }
  0x3e   :  { %v148_v43 = vpack.c.bf16 %v88_v37, %v82_v36 }
  0x3f   :  { %1024 = vmatpush3.bf16.msra.mxu1 %v1199_v30  ;;  %1088 = vmatpush3.bf16.msra.mxu0 %v1200_v31  ;;  %v140_v30 = vpack.c.bf16 %v74_v23, %v68_v22  ;;  %v142_v31 = vpack.c.bf16 %v76_v25, %v70_v24 }
  0x42   :  { %683 = vmatmul.mubr.bf16.vlgmr.msra.gmra.mrb[16].mxu1 %v116_v44  ;;  %780 = vmatmul.mubr.bf16.vlgmr.msra.gmra.mrb[16].mxu0 %v118_v45  ;;  %v153_v44 = vpack.c.bf16 %v99_v39, %v93_v38  ;;  %v155_v45 = vpack.c.bf16 %v101_v41, %v95_v40 }
  0x43   :  { %690 = vmatprep.mubr.bf16.mxu1 %v123_v48  ;;  %787 = vmatprep.mubr.bf16.mxu0 %v125_v49  ;;  %v94_v48 = vld [vmem:[%s1815_s0 + $0x260] sm:$0xff]  ;;  %v100_v49 = vld [vmem:[%s1815_s0 + $0x290] sm:$0xff] }
  0x44   :  { %v154_v55 = vpack.c.bf16 %v100_v49, %v94_v48  ;;  %v1687_v48 = vld [vmem:[%s1816_s2] ss:$0 sm:$0xff] }
  0x4a   :  { %691 = vmatmul.mubr.bf16.gmra.mrb[20].mxu1 %v122_v58  ;;  %788 = vmatmul.mubr.bf16.gmra.mrb[20].mxu0 %v124_v59  ;;  %v104_v58 = vld [vmem:[%s1815_s0 + $0x2b0] sm:$0xff]  ;;  %v110_v59 = vld [vmem:[%s1815_s0 + $0x2e0] sm:$0xff] }
  0x4b   :  { %698 = vmatprep.mubr.bf16.mxu1 %v129_v60  ;;  %795 = vmatprep.mubr.bf16.mxu0 %v131_v61  ;;  %v106_v60 = vld [vmem:[%s1815_s0 + $0x2c0] sm:$0xff]  ;;  %v112_v61 = vld [vmem:[%s1815_s0 + $0x2f0] sm:$0xff]  ;;  %v158_v62 = vpack.c.bf16 %v110_v59, %v104_v58 }
  0x4c   :  { %v160_v63 = vpack.c.bf16 %v112_v61, %v106_v60 }
  0x52   :  { %699 = vmatmul.mubr.bf16.gmra.mrb[24].mxu1 %v128_v6  ;;  %796 = vmatmul.mubr.bf16.gmra.mrb[24].mxu0 %v130_v7 }
  0x53   :  { %706 = vmatprep.mubr.bf16.mxu1 %v135_v8  ;;  %803 = vmatprep.mubr.bf16.mxu0 %v137_v9 }
  0x5a   :  { %707 = vmatmul.mubr.bf16.gmra.mrb[28].mxu1 %v134_v18  ;;  %804 = vmatmul.mubr.bf16.gmra.mrb[28].mxu0 %v136_v19 }
  0x5b   :  { %714 = vmatprep.mubr.bf16.mxu1 %v141_v20  ;;  %811 = vmatprep.mubr.bf16.mxu0 %v143_v21 }
  0x62   :  { %715 = vmatmul.mubr.bf16.gmra.mrb[32].mxu1 %v140_v30  ;;  %812 = vmatmul.mubr.bf16.gmra.mrb[32].mxu0 %v142_v31 }
  0x63   :  { %722 = vmatprep.mubr.bf16.mxu1 %v147_v32  ;;  %819 = vmatprep.mubr.bf16.mxu0 %v149_v33 }
  0x6a   :  { %723 = vmatmul.mubr.bf16.gmra.mrb[36].mxu1 %v146_v42  ;;  %820 = vmatmul.mubr.bf16.gmra.mrb[36].mxu0 %v148_v43 }
  0x6b   :  { %730 = vmatprep.mubr.bf16.mxu1 %v153_v44  ;;  %827 = vmatprep.mubr.bf16.mxu0 %v155_v45 }
  0x72   :  { %731 = vmatmul.mubr.bf16.gmra.mrb[40].mxu1 %v152_v54  ;;  %828 = vmatmul.mubr.bf16.gmra.mrb[40].mxu0 %v154_v55 }
  0x73   :  { %738 = vmatprep.mubr.bf16.mxu1 %v159_v56  ;;  %835 = vmatprep.mubr.bf16.mxu0 %v161_v57 }
  0x7a   :  { %739 = vmatmul.mubr.bf16.gmra.mrb[44].mxu1 %v158_v62  ;;  %836 = vmatmul.mubr.bf16.gmra.mrb[44].mxu0 %v160_v63 }
  0xf5   :  { %v961_v0 = vpop.f32.mrb[0].mxu0  ;;  %v985_v1 = vpop.f32.mrb[0].mxu1 }
  0xf6   :  { %v962_v2 = vpop.f32.mrb[1].mxu0  ;;  %v986_v3 = vpop.f32.mrb[1].mxu1 }
  0xf7   :  { %v963_v4 = vadd.f32 %v962_v2, %v961_v0  ;;  %v1658_v5 = vadd.f32 %v986_v3, %v985_v1  ;;  %v964_v6 = vpop.f32.mrb[2].mxu0  ;;  %v988_v7 = vpop.f32.mrb[2].mxu1  ;;  %v844_v0 = vld [vmem:[%s1817_s3] sm:$0xff]  ;;  %v845_v3 = vld [vmem:[%s1817_s3 + $0x8] sm:$0xff] }
  0xf8   :  { %v965_v8 = vpop.f32.mrb[3].mxu0  ;;  %v989_v9 = vpop.f32.mrb[3].mxu1 }
  0xf9   :  { %v966_v10 = vadd.f32 %v965_v8, %v964_v6  ;;  %v1660_v11 = vadd.f32 %v989_v9, %v988_v7  ;;  %v588_v53 = vadd.f32 %v963_v4, %v1687_v48 }
  0xfb   :  { %v591_v60 = vadd.f32 %v966_v10, %v1687_v48 }
  0xfd   :  { %v967_v12 = vpop.f32.mrb[4].mxu0  ;;  %v991_v13 = vpop.f32.mrb[4].mxu1 }
  0xfe   :  { %v968_v14 = vpop.f32.mrb[5].mxu0  ;;  %v992_v15 = vpop.f32.mrb[5].mxu1 }
  0xff   :  { %v969_v16 = vadd.f32 %v968_v14, %v967_v12  ;;  %v1662_v17 = vadd.f32 %v992_v15, %v991_v13  ;;  %v970_v18 = vpop.f32.mrb[6].mxu0  ;;  %v994_v19 = vpop.f32.mrb[6].mxu1 }
 0x100   :  { %v971_v20 = vpop.f32.mrb[7].mxu0  ;;  %v995_v21 = vpop.f32.mrb[7].mxu1 }
 0x101   :  { %v1664_v22 = vadd.f32 %v971_v20, %v970_v18  ;;  %v1666_v23 = vadd.f32 %v995_v21, %v994_v19  ;;  %v596_v10 = vadd.f32 %v969_v16, %v1687_v48 }
 0x105   :  { %v973_v24 = vpop.f32.mrb[8].mxu0  ;;  %v997_v25 = vpop.f32.mrb[8].mxu1 }
 0x106   :  { %v974_v26 = vpop.f32.mrb[9].mxu0  ;;  %v998_v27 = vpop.f32.mrb[9].mxu1 }
 0x107   :  { %v1668_v28 = vadd.f32 %v974_v26, %v973_v24  ;;  %v1670_v29 = vadd.f32 %v998_v27, %v997_v25  ;;  %v976_v30 = vpop.f32.mrb[10].mxu0  ;;  %v1000_v31 = vpop.f32.mrb[10].mxu1  ;;  %v599_v24 = vadd.f32 %v1664_v22, %v1687_v48  ;;  %v846_v27 = vld [vmem:[%s1817_s3 + $0x10] sm:$0xff] }
 0x108   :  { %v977_v32 = vpop.f32.mrb[11].mxu0  ;;  %v1001_v33 = vpop.f32.mrb[11].mxu1 }
 0x109   :  { %v1672_v34 = vadd.f32 %v977_v32, %v976_v30  ;;  %v1674_v35 = vadd.f32 %v1001_v33, %v1000_v31  ;;  %v847_v32 = vld [vmem:[%s1817_s3 + $0x18] sm:$0xff] }
 0x10d   :  { %v979_v36 = vpop.f32.mrb[12].mxu0  ;;  %v1003_v37 = vpop.f32.mrb[12].mxu1 }
 0x10e   :  { %v980_v38 = vpop.f32.mrb[13].mxu0  ;;  %v1004_v39 = vpop.f32.mrb[13].mxu1 }
 0x10f   :  { %v1676_v40 = vadd.f32 %v980_v38, %v979_v36  ;;  %v1678_v41 = vadd.f32 %v1004_v39, %v1003_v37  ;;  %v982_v42 = vpop.f32.mrb[14].mxu0  ;;  %v1006_v43 = vpop.f32.mrb[14].mxu1 }
 0x110   :  { %v983_v44 = vpop.f32.mrb[15].mxu0  ;;  %v1007_v45 = vpop.f32.mrb[15].mxu1 }
 0x111   :  { %v1680_v46 = vadd.f32 %v983_v44, %v982_v42  ;;  %v1682_v47 = vadd.f32 %v1007_v45, %v1006_v43  ;;  %v604_v42 = vadd.f32 %v1668_v28, %v1687_v48 }
 0x115   :  { %v1025_v49 = vpop.f32.mrb[16].mxu1  ;;  %v1089_v50 = vpop.f32.mrb[16].mxu0 }
 0x116   :  { %v1026_v51 = vpop.f32.mrb[17].mxu1  ;;  %v1090_v52 = vpop.f32.mrb[17].mxu0 }
 0x117   :  { %v1027_v54 = vadd.f32 %v1026_v51, %v1025_v49  ;;  %v1091_v55 = vadd.f32 %v1090_v52, %v1089_v50  ;;  %v1028_v56 = vpop.f32.mrb[18].mxu1  ;;  %v1092_v57 = vpop.f32.mrb[18].mxu0 }
 0x118   :  { %v1029_v58 = vpop.f32.mrb[19].mxu1  ;;  %v1093_v59 = vpop.f32.mrb[19].mxu0 }
 0x119   :  { %v685_v61 = vadd.f32 %v1027_v54, %v588_v53  ;;  %v1030_v62 = vadd.f32 %v1029_v58, %v1028_v56  ;;  %v1094_v63 = vadd.f32 %v1093_v59, %v1092_v57  ;;  %v607_v53 = vadd.f32 %v1672_v34, %v1687_v48  ;;  %v848_v56 = vld [vmem:[%s1817_s3 + $0x20] sm:$0xff]  ;;  %v849_v59 = vld [vmem:[%s1817_s3 + $0x28] sm:$0xff] }
 0x11b   :  { %v782_v1 = vadd.f32 %v1091_v55, %v685_v61  ;;  %v688_v2 = vadd.f32 %v1030_v62, %v591_v60 }
 0x11d   :  { %v860_v4 = vadd.f32 %v844_v0, %v782_v1  ;;  %v785_v6 = vadd.f32 %v1094_v63, %v688_v2  ;;  %v1031_v7 = vpop.f32.mrb[20].mxu1  ;;  %v1095_v8 = vpop.f32.mrb[20].mxu0  ;;  %v612_v1 = vadd.f32 %v1676_v40, %v1687_v48 }
 0x11e   :  { %v1032_v9 = vpop.f32.mrb[21].mxu1  ;;  %v1096_v12 = vpop.f32.mrb[21].mxu0 }
 0x11f   :  { %876 = vst [vmem:[%s1818_s4] sm:$0xff] %v860_v4  ;;  %v861_v13 = vadd.f32 %v845_v3, %v785_v6  ;;  %v1033_v14 = vadd.f32 %v1032_v9, %v1031_v7  ;;  %v1097_v15 = vadd.f32 %v1096_v12, %v1095_v8  ;;  %v1034_v18 = vpop.f32.mrb[22].mxu1  ;;  %v1098_v19 = vpop.f32.mrb[22].mxu0  ;;  %v615_v12 = vadd.f32 %v1680_v46, %v1687_v48 }
 0x120   :  { %v1035_v20 = vpop.f32.mrb[23].mxu1  ;;  %v1099_v21 = vpop.f32.mrb[23].mxu0 }
 0x121   :  { %877 = vst [vmem:[%s1818_s4 + $0x8] sm:$0xff] %v861_v13  ;;  %v693_v25 = vadd.f32 %v1033_v14, %v596_v10  ;;  %v1036_v16 = vadd.f32 %v1035_v20, %v1034_v18  ;;  %v1100_v26 = vadd.f32 %v1099_v21, %v1098_v19  ;;  %v850_v14 = vld [vmem:[%s1817_s3 + $0x30] sm:$0xff]  ;;  %v851_v19 = vld [vmem:[%s1817_s3 + $0x38] sm:$0xff] }
 0x123   :  { %v790_v30 = vadd.f32 %v1097_v15, %v693_v25  ;;  %v696_v31 = vadd.f32 %v1036_v16, %v599_v24 }
 0x125   :  { %v862_v33 = vadd.f32 %v846_v27, %v790_v30  ;;  %v793_v36 = vadd.f32 %v1100_v26, %v696_v31  ;;  %v1037_v22 = vpop.f32.mrb[24].mxu1  ;;  %v1101_v37 = vpop.f32.mrb[24].mxu0  ;;  %v620_v26 = vadd.f32 %v1658_v5, %v1687_v48 }
 0x126   :  { %v1038_v38 = vpop.f32.mrb[25].mxu1  ;;  %v1102_v39 = vpop.f32.mrb[25].mxu0 }
 0x127   :  { %878 = vst [vmem:[%s1818_s4 + $0x10] sm:$0xff] %v862_v33  ;;  %v863_v43 = vadd.f32 %v847_v32, %v793_v36  ;;  %v1039_v44 = vadd.f32 %v1038_v38, %v1037_v22  ;;  %v1103_v45 = vadd.f32 %v1102_v39, %v1101_v37  ;;  %v1040_v49 = vpop.f32.mrb[26].mxu1  ;;  %v1104_v50 = vpop.f32.mrb[26].mxu0  ;;  %v623_v37 = vadd.f32 %v1660_v11, %v1687_v48 }
 0x128   :  { %v1041_v51 = vpop.f32.mrb[27].mxu1  ;;  %v1105_v52 = vpop.f32.mrb[27].mxu0 }
 0x129   :  { %879 = vst [vmem:[%s1818_s4 + $0x18] sm:$0xff] %v863_v43  ;;  %v701_v54 = vadd.f32 %v1039_v44, %v604_v42  ;;  %v1042_v28 = vadd.f32 %v1041_v51, %v1040_v49  ;;  %v1106_v55 = vadd.f32 %v1105_v52, %v1104_v50  ;;  %v852_v42 = vld [vmem:[%s1817_s3 + $0x40] sm:$0xff] }
 0x12b   :  { %v798_v57 = vadd.f32 %v1103_v45, %v701_v54  ;;  %v704_v58 = vadd.f32 %v1042_v28, %v607_v53  ;;  %v853_v45 = vld [vmem:[%s1817_s3 + $0x48] sm:$0xff]  ;;  %v628_v54 = vadd.f32 %v1662_v17, %v1687_v48 }
 0x12d   :  { %v864_v60 = vadd.f32 %v848_v56, %v798_v57  ;;  %v801_v61 = vadd.f32 %v1106_v55, %v704_v58  ;;  %v1043_v34 = vpop.f32.mrb[28].mxu1  ;;  %v1107_v62 = vpop.f32.mrb[28].mxu0 }
 0x12e   :  { %v1044_v63 = vpop.f32.mrb[29].mxu1  ;;  %v1108_v0 = vpop.f32.mrb[29].mxu0 }
 0x12f   :  { %880 = vst [vmem:[%s1818_s4 + $0x20] sm:$0xff] %v864_v60  ;;  %v865_v2 = vadd.f32 %v849_v59, %v801_v61  ;;  %v1045_v3 = vadd.f32 %v1044_v63, %v1043_v34  ;;  %v1109_v4 = vadd.f32 %v1108_v0, %v1107_v62  ;;  %v1046_v6 = vpop.f32.mrb[30].mxu1  ;;  %v1110_v7 = vpop.f32.mrb[30].mxu0  ;;  %v631_v61 = vadd.f32 %v1666_v23, %v1687_v48  ;;  %v854_v63 = vld [vmem:[%s1817_s3 + $0x50] sm:$0xff] }
 0x130   :  { %v1047_v8 = vpop.f32.mrb[31].mxu1  ;;  %v1111_v9 = vpop.f32.mrb[31].mxu0 }
 0x131   :  { %881 = vst [vmem:[%s1818_s4 + $0x28] sm:$0xff] %v865_v2  ;;  %v709_v10 = vadd.f32 %v1045_v3, %v612_v1  ;;  %v1048_v40 = vadd.f32 %v1047_v8, %v1046_v6  ;;  %v1112_v13 = vadd.f32 %v1111_v9, %v1110_v7  ;;  %v855_v2 = vld [vmem:[%s1817_s3 + $0x58] sm:$0xff]  ;;  %v636_v9 = vadd.f32 %v1670_v29, %v1687_v48 }
 0x133   :  { %v806_v15 = vadd.f32 %v1109_v4, %v709_v10  ;;  %v712_v18 = vadd.f32 %v1048_v40, %v615_v12 }
 0x135   :  { %v866_v20 = vadd.f32 %v850_v14, %v806_v15  ;;  %v809_v21 = vadd.f32 %v1112_v13, %v712_v18  ;;  %v1049_v46 = vpop.f32.mrb[32].mxu1  ;;  %v1113_v24 = vpop.f32.mrb[32].mxu0 }
 0x136   :  { %v1050_v25 = vpop.f32.mrb[33].mxu1  ;;  %v1114_v16 = vpop.f32.mrb[33].mxu0 }
 0x137   :  { %882 = vst [vmem:[%s1818_s4 + $0x30] sm:$0xff] %v866_v20  ;;  %v867_v27 = vadd.f32 %v851_v19, %v809_v21  ;;  %v1051_v30 = vadd.f32 %v1050_v25, %v1049_v46  ;;  %v1115_v31 = vadd.f32 %v1114_v16, %v1113_v24  ;;  %v1052_v32 = vpop.f32.mrb[34].mxu1  ;;  %v1116_v33 = vpop.f32.mrb[34].mxu0  ;;  %v639_v19 = vadd.f32 %v1674_v35, %v1687_v48  ;;  %v856_v46 = vld [vmem:[%s1817_s3 + $0x60] sm:$0xff]  ;;  %v857_v16 = vld [vmem:[%s1817_s3 + $0x68] sm:$0xff] }
 0x138   :  { %v1053_v36 = vpop.f32.mrb[35].mxu1  ;;  %v1117_v22 = vpop.f32.mrb[35].mxu0 }
 0x139   :  { %883 = vst [vmem:[%s1818_s4 + $0x38] sm:$0xff] %v867_v27  ;;  %v717_v38 = vadd.f32 %v1051_v30, %v620_v26  ;;  %v1054_v5 = vadd.f32 %v1053_v36, %v1052_v32  ;;  %v1118_v39 = vadd.f32 %v1117_v22, %v1116_v33  ;;  %v644_v33 = vadd.f32 %v1678_v41, %v1687_v48 }
 0x13b   :  { %v814_v43 = vadd.f32 %v1115_v31, %v717_v38  ;;  %v720_v44 = vadd.f32 %v1054_v5, %v623_v37 }
 0x13d   :  { %v868_v49 = vadd.f32 %v852_v42, %v814_v43  ;;  %v817_v50 = vadd.f32 %v1118_v39, %v720_v44  ;;  %v1055_v11 = vpop.f32.mrb[36].mxu1  ;;  %v1119_v51 = vpop.f32.mrb[36].mxu0  ;;  %v647_v43 = vadd.f32 %v1682_v47, %v1687_v48 }
 0x13e   :  { %v1056_v52 = vpop.f32.mrb[37].mxu1  ;;  %v1120_v53 = vpop.f32.mrb[37].mxu0 }
 0x13f   :  { %884 = vst [vmem:[%s1818_s4 + $0x40] sm:$0xff] %v868_v49  ;;  %v869_v28 = vadd.f32 %v853_v45, %v817_v50  ;;  %v1057_v55 = vadd.f32 %v1056_v52, %v1055_v11  ;;  %v1121_v56 = vadd.f32 %v1120_v53, %v1119_v51  ;;  %v1058_v57 = vpop.f32.mrb[38].mxu1  ;;  %v1122_v58 = vpop.f32.mrb[38].mxu0  ;;  %v858_v49 = vld [vmem:[%s1817_s3 + $0x70] sm:$0xff]  ;;  %v859_v51 = vld [vmem:[%s1817_s3 + $0x78] sm:$0xff] }
 0x140   :  { %v1059_v59 = vpop.f32.mrb[39].mxu1  ;;  %v1123_v60 = vpop.f32.mrb[39].mxu0 }
 0x141   :  { %885 = vst [vmem:[%s1818_s4 + $0x48] sm:$0xff] %v869_v28  ;;  %v725_v34 = vadd.f32 %v1057_v55, %v628_v54  ;;  %v1060_v17 = vadd.f32 %v1059_v59, %v1058_v57  ;;  %v1124_v62 = vadd.f32 %v1123_v60, %v1122_v58 }
 0x143   :  { %v822_v0 = vadd.f32 %v1121_v56, %v725_v34  ;;  %v728_v1 = vadd.f32 %v1060_v17, %v631_v61 }
 0x145   :  { %v870_v3 = vadd.f32 %v854_v63, %v822_v0  ;;  %v825_v4 = vadd.f32 %v1124_v62, %v728_v1  ;;  %v1061_v23 = vpop.f32.mrb[40].mxu1  ;;  %v1125_v6 = vpop.f32.mrb[40].mxu0 }
 0x146   :  { %v1062_v7 = vpop.f32.mrb[41].mxu1  ;;  %v1126_v8 = vpop.f32.mrb[41].mxu0 }
 0x147   :  { %886 = vst [vmem:[%s1818_s4 + $0x50] sm:$0xff] %v870_v3  ;;  %v871_v12 = vadd.f32 %v855_v2, %v825_v4  ;;  %v1063_v10 = vadd.f32 %v1062_v7, %v1061_v23  ;;  %v1127_v40 = vadd.f32 %v1126_v8, %v1125_v6  ;;  %v1064_v13 = vpop.f32.mrb[42].mxu1  ;;  %v1128_v14 = vpop.f32.mrb[42].mxu0 }
 0x148   :  { %v1065_v15 = vpop.f32.mrb[43].mxu1  ;;  %v1129_v18 = vpop.f32.mrb[43].mxu0 }
 0x149   :  { %887 = vst [vmem:[%s1818_s4 + $0x58] sm:$0xff] %v871_v12  ;;  %v733_v20 = vadd.f32 %v1063_v10, %v636_v9  ;;  %v1066_v29 = vadd.f32 %v1065_v15, %v1064_v13  ;;  %v1130_v21 = vadd.f32 %v1129_v18, %v1128_v14 }
 0x14b   :  { %v830_v24 = vadd.f32 %v1127_v40, %v733_v20  ;;  %v736_v25 = vadd.f32 %v1066_v29, %v639_v19 }
 0x14d   :  { %v872_v26 = vadd.f32 %v856_v46, %v830_v24  ;;  %v833_v27 = vadd.f32 %v1130_v21, %v736_v25  ;;  %v1067_v35 = vpop.f32.mrb[44].mxu1  ;;  %v1131_v30 = vpop.f32.mrb[44].mxu0 }
 0x14e   :  { %v1068_v31 = vpop.f32.mrb[45].mxu1  ;;  %v1132_v32 = vpop.f32.mrb[45].mxu0 }
 0x14f   :  { %888 = vst [vmem:[%s1818_s4 + $0x60] sm:$0xff] %v872_v26  ;;  %v873_v36 = vadd.f32 %v857_v16, %v833_v27  ;;  %v1069_v22 = vadd.f32 %v1068_v31, %v1067_v35  ;;  %v1133_v37 = vadd.f32 %v1132_v32, %v1131_v30  ;;  %v1070_v38 = vpop.f32.mrb[46].mxu1  ;;  %v1134_v5 = vpop.f32.mrb[46].mxu0 }
 0x150   :  { %v1071_v39 = vpop.f32.mrb[47].mxu1  ;;  %v1135_v42 = vpop.f32.mrb[47].mxu0 }
 0x151   :  { %889 = vst [vmem:[%s1818_s4 + $0x68] sm:$0xff] %v873_v36  ;;  %v741_v44 = vadd.f32 %v1069_v22, %v644_v33  ;;  %v1072_v41 = vadd.f32 %v1071_v39, %v1070_v38  ;;  %v1136_v45 = vadd.f32 %v1135_v42, %v1134_v5 }
 0x153   :  { %v838_v50 = vadd.f32 %v1133_v37, %v741_v44  ;;  %v744_v11 = vadd.f32 %v1072_v41, %v647_v43 }
 0x155   :  { %v874_v52 = vadd.f32 %v858_v49, %v838_v50  ;;  %v841_v53 = vadd.f32 %v1136_v45, %v744_v11 }
 0x157   :  { %890 = vst [vmem:[%s1818_s4 + $0x70] sm:$0xff] %v874_v52  ;;  %v875_v47 = vadd.f32 %v859_v51, %v841_v53 }
 0x159   :  { %891 = vst [vmem:[%s1818_s4 + $0x78] sm:$0xff] %v875_v47 }

// kernel: _lambda_.15
= control target key start
LH: loop header
LB: loop body
LE: loop exit
PB: predicated region body
PF: predicated region fallthrough
CT: control target
= control target key end

     0   :  { %s2111_s6 = smov 0   ;;  %s2730_s0 = inlined_call_operand.vmem [shape: bf16[2,64,384], index: 0, kind: input, shape index: {}]   ;;  %s2731_s1 = inlined_call_operand.vmem [shape: bf16[2,64,128], index: 1, kind: output, shape index: {}]  }
   0x1 LB: > { %s1607_s7 = sadd.s32 4294967295, %s2096_s6   ;;  %p1611_p0 = scmp.ge.s32.totalorder %s2096_s6, 1  ;;  %s2096_s6 = sphi %s2111_s6, %s11_s6  }
   0x2   : > { %p87_p1 = scmp.lt.s32.totalorder %s2096_s6, 3 }
   0x4   : > { %p88_p2 = pnand %p1611_p0, %p87_p1 }
   0x6   : > { %91 = sbr.rel (%p88_p2) target bundleno = 2164 (0x874), region = 24 }
   0xd   : > { %p107_p3 = scmp.lt.s32.totalorder %s1607_s7, 1  ;;  %vm166_vm0 = vcmask 261120   ;;  %vm264_vm1 = vcmask 523264   ;;  %s2098_s12 = smov 96   ;;  %vm490_vm2 = vcmask 257024   ;;  %vm841_vm3 = vcmask 519424  }
   0xe   : > { %s2099_s13 = smov 64   ;;  %s2100_s14 = smov 32   ;;  %vm1192_vm4 = vcmask 781824   ;;  %vm1543_vm5 = vcmask 1044224  }
   0xf   : > { %s2737_s7 = smov (!%p107_p3, %s1607_s7), 1 }
  0x10   : > { %s1934_s8 = smul.u32 96, %s2737_s7  ;;  %s1693_s15 = sshll.u32 %s2737_s7, 5 }
  0x11   : > { %s2640_s18 = scalar_lea.vmem %s2731_s1, %s1693_s15 }
  0x12   : > { %s2125_s11 = scalar_lea.vmem %s2730_s0, %s1934_s8 }
  0x13   : > { %v2128_v0 = vld [vmem:[%s2125_s11 + $0x4] ss:$12 sps:$4 sm:$0xff]   ;;  %v2131_v1 = vld [vmem:[%s2125_s11 + $0x1c] ss:$12 sps:$4 sm:$0xff]   ;;  %v2140_v3 = vld [vmem:[%s2125_s11] ss:$12 sps:$4 sm:$0xff]  }
  0x14   : > { %1918 = vmatprep.subr.msk.bf16.mxu0 %vm166_vm0, %v2128_v0  ;;  %v180_v2 = vsel %vm166_vm0, %v2128_v0, 0  ;;  %v2143_v4 = vld [vmem:[%s2125_s11 + $0x34] ss:$12 sps:$4 sm:$0xff]   ;;  %1798 = vmatprep.mubr.msk.bf16.mxu0 %vm166_vm0, %v2140_v3  ;;  %v183_v5 = vsel %vm166_vm0, %v2131_v1, 0  ;;  %v2154_v7 = vld [vmem:[%s2125_s11 + $0x4c] ss:$12 sps:$4 sm:$0xff]  }
  0x15   : > { %1791 = vmatpush3.bf16.xpose.msra.mxu0 %v180_v2  ;;  %v186_v6 = vsel %vm166_vm0, %v2143_v4, 0  ;;  %v189_v8 = vsel %vm166_vm0, %v2154_v7, 0  ;;  %v2161_v9 = vld [vmem:[%s2125_s11 + $0x18] ss:$12 sps:$4 sm:$0xff]   ;;  %v2164_v10 = vld [vmem:[%s2125_s11 + $0x30] ss:$12 sps:$4 sm:$0xff]  }
  0x16   : > { %1919 = vmatprep.subr.msk.bf16.mxu0 %vm166_vm0, %v2131_v1  ;;  %v2171_v11 = vld [vmem:[%s2125_s11 + $0x48] ss:$12 sps:$4 sm:$0xff]   ;;  %v2196_v33 = vld [vmem:[%s2125_s11 + $0x20] ss:$12 sps:$4 sm:$0xff]   ;;  %v2203_v34 = vld [vmem:[%s2125_s11 + $0x38] ss:$12 sps:$4 sm:$0xff]  }
  0x17   : > { %v2191_v32 = vld [vmem:[%s2125_s11 + $0x8] ss:$12 sps:$4 sm:$0xff]   ;;  %v2210_v35 = vld [vmem:[%s2125_s11 + $0x50] ss:$12 sps:$4 sm:$0xff]  }
  0x18   : > { %1806 = vmatprep.subr.bf16.mxu1 %v2191_v32 }
  0x19   : > { %1807 = vmatpush3.bf16.msra.mxu1 %v2191_v32 }
  0x1a   : > { %1808 = vmatprep.subr.bf16.mxu1 %v2196_v33 }
  0x1d   : > { %1793 = vmatpush3.bf16.xpose.msra.mxu0 %v183_v5  ;;  %1809 = vmatpush3.bf16.msra.mxu1 %v2196_v33 }
  0x1e   : > { %1920 = vmatprep.subr.msk.bf16.mxu0 %vm166_vm0, %v2143_v4  ;;  %1810 = vmatprep.subr.bf16.mxu1 %v2203_v34 }
  0x21   : > { %1811 = vmatpush3.bf16.msra.mxu1 %v2203_v34 }
  0x22   : > { %1812 = vmatprep.subr.bf16.mxu1 %v2210_v35 }
  0x25   : > { %1795 = vmatpush3.bf16.xpose.msra.mxu0 %v186_v6  ;;  %1813 = vmatpush3.bf16.msra.mxu1 %v2210_v35 }
  0x26   : > { %1921 = vmatprep.subr.msk.bf16.mxu0 %vm166_vm0, %v2154_v7 }
  0x2d   : > { %1797 = vmatpush3.bf16.xpose.msra.mxu0 %v189_v8 }
  0x34   : > { %1799 = vmatmul.mubr.msk.bf16.vlgmr.msra.gmra.mrb[0].mxu0 %vm166_vm0, %v2161_v9 }
  0x35   : > { %1802 = vmatprep.mubr.msk.bf16.mxu0 %vm166_vm0, %v2164_v10 }
  0x3c   : > { %1803 = vmatmul.mubr.msk.bf16.gmra.mrb[4].mxu0 %vm166_vm0, %v2171_v11 }
 0x107   : > { %v1800_v12 = vpop.f32.mrb[0].mxu0 }
 0x108   : > { %v2175_v13 = vmul.f32 0.17677669, %v1800_v12  ;;  %v225_v14 = vpop.f32.mrb[1].mxu0 }
 0x109   : > { %v256_v15 = vmul.f32 0.17677669, %v225_v14  ;;  %v1801_v16 = vpop.f32.mrb[2].mxu0 }
 0x10a   : > { %v259_v17 = vmul.f32 0.17677669, %v1801_v16  ;;  %v228_v18 = vpop.f32.mrb[3].mxu0  ;;  %v271_v19 = vsel %vm264_vm1, %v2175_v13, -inf }
 0x10b   : > { %v257_v20 = vmul.f32 0.17677669, %v228_v18  ;;  %272 = vmax.xlane.f32.xlu1 %v271_v19  ;;  %v265_v21 = vsel %vm264_vm1, %v256_v15, -inf }
 0x10c   : > { %266 = vmax.xlane.f32.xlu0 %v265_v21  ;;  %v274_v22 = vsel %vm264_vm1, %v259_v17, -inf }
 0x10d   : > { %v268_v23 = vsel %vm264_vm1, %v257_v20, -inf }
 0x10f   : > { %275 = vmax.xlane.f32.xlu1 %v274_v22  ;;  %v1804_v24 = vpop.f32.mrb[4].mxu0 }
 0x110   : > { %269 = vmax.xlane.f32.xlu0 %v268_v23  ;;  %v2182_v25 = vmul.f32 0.17677669, %v1804_v24  ;;  %v241_v26 = vpop.f32.mrb[5].mxu0 }
 0x111   : > { %v2184_v27 = vmul.f32 0.17677669, %v241_v26  ;;  %v1805_v28 = vpop.f32.mrb[6].mxu0 }
 0x112   : > { %v283_v29 = vsel %vm264_vm1, %v2182_v25, -inf  ;;  %v244_v30 = vpop.f32.mrb[7].mxu0  ;;  %v263_v36 = vmul.f32 0.17677669, %v1805_v28 }
 0x113   : > { %v277_v31 = vsel %vm264_vm1, %v2184_v27, -inf  ;;  %v261_v37 = vmul.f32 0.17677669, %v244_v30 }
 0x114   : > { %284 = vmax.xlane.f32.xlu0 %v283_v29  ;;  %v286_v38 = vsel %vm264_vm1, %v263_v36, -inf }
 0x115   : > { %v280_v39 = vsel %vm264_vm1, %v261_v37, -inf }
 0x118   : > { %278 = vmax.xlane.f32.xlu0 %v277_v31 }
 0x120   : > { %509 = vrot.lane.b32.xlu1 %v2131_v1, %s2098_s12 }
 0x124   : > { %511 = vrot.lane.b32.xlu1 %v2143_v4, %s2098_s12 }
 0x12e   : > { %507 = vrot.lane.b32.xlu0 %v2128_v0, %s2098_s12 }
 0x132   : > { %499 = vrot.lane.b32.xlu0 %v2140_v3, %s2098_s12 }
 0x136   : > { %503 = vrot.lane.b32.xlu0 %v2164_v10, %s2098_s12 }
 0x13a   : > { %696 = vrot.lane.b32.xlu0 %v2191_v32, %s2098_s12 }
 0x148   : > { %287 = vmax.xlane.f32.xlu1 %v286_v38 }
 0x14c   : > { %281 = vmax.xlane.f32.xlu1 %v280_v39 }
 0x15d   : > { %513 = vrot.lane.b32.xlu1 %v2154_v7, %s2098_s12 }
 0x161   : > { %501 = vrot.lane.b32.xlu1 %v2161_v9, %s2098_s12 }
 0x165   : > { %505 = vrot.lane.b32.xlu1 %v2171_v11, %s2098_s12 }
 0x169   : > { %698 = vrot.lane.b32.xlu1 %v2196_v33, %s2098_s12 }
 0x16d   : > { %700 = vrot.lane.b32.xlu1 %v2203_v34, %s2098_s12 }
 0x171   : > { %702 = vrot.lane.b32.xlu1 %v2210_v35, %s2098_s12 }
 0x198   : > { %v273_v40 = vpop.xlane.xlu1 %272 }
 0x199   : > { %v267_v41 = vpop.xlane.xlu0 %266  ;;  %v291_v43 = vsub.f32 %v2175_v13, %v273_v40 }
 0x19a   : > { %v289_v42 = vsub.f32 %v256_v15, %v267_v41 }
 0x19b   : > { %v301_v49 = vmul.f32 1.442695, %v291_v43 }
 0x19c   : > { %v297_v44 = vmul.f32 1.442695, %v289_v42  ;;  %v276_v45 = vpop.xlane.xlu1 %275 }
 0x19d   : > { %v292_v46 = vsub.f32 %v259_v17, %v276_v45  ;;  %v270_v47 = vpop.xlane.xlu0 %269 }
 0x19e   : > { %v290_v48 = vsub.f32 %v257_v20, %v270_v47  ;;  %1962 = vpow2.f32 %v297_v44 }
 0x19f   : > { %v303_v50 = vmul.f32 1.442695, %v292_v46 }
 0x1a0   : > { %v299_v51 = vmul.f32 1.442695, %v290_v48  ;;  %v510_v62 = vpop.permute.xlu1 %509 }
 0x1a1   : > { %1964 = vpow2.f32 %v303_v50  ;;  %v285_v52 = vpop.xlane.xlu0 %284  ;;  %v531_v63 = vsel %vm166_vm0, %v510_v62, 0 }
 0x1a2   : > { %1966 = vpow2.f32 %v299_v51  ;;  %v295_v13 = vsub.f32 %v2182_v25, %v285_v52 }
 0x1a3   : > { %1968 = vpow2.f32 %v301_v49 }
 0x1a4   : > { %v512_v2 = vpop.permute.xlu1 %511  ;;  %v309_v18 = vmul.f32 1.442695, %v295_v13 }
 0x1a5   : > { %v279_v53 = vpop.xlane.xlu0 %278  ;;  %v534_v5 = vsel %vm166_vm0, %v512_v2, 0 }
 0x1a6   : > { %v293_v6 = vsub.f32 %v2184_v27, %v279_v53 }
 0x1a8   : > { %v2237_v55 = vpop.eup %1962  ;;  %v305_v14 = vmul.f32 1.442695, %v293_v6 }
 0x1a9   : > { %v508_v54 = vpop.permute.xlu0 %507 }
 0x1aa   : > { %1922 = vmatprep.subr.msk.bf16.mxu1 %vm166_vm0, %v508_v54  ;;  %v528_v61 = vsel %vm166_vm0, %v508_v54, 0  ;;  %1970 = vpow2.f32 %v305_v14 }
 0x1ab   : > { %v2240_v56 = vpop.eup %1964 }
 0x1ac   : > { %v2242_v57 = vpop.eup %1966 }
 0x1ad   : > { %v2244_v58 = vpop.eup %1968  ;;  %v345_v59 = vpack.c.bf16 %v2242_v57, %v2237_v55  ;;  %v500_v28 = vpop.permute.xlu0 %499 }
 0x1ae   : > { %v346_v60 = vpack.c.bf16 %v2240_v56, %v2244_v58 }
 0x1af   : > { %1814 = vmatprep.mubr.msk.bf16.mxu1 %vm264_vm1, %v345_v59 }
 0x1b0   : > { %1815 = vmatmul.mubr.msk.bf16.vlgmr.msra.gmra.mrb[0].mxu1 %vm264_vm1, %v346_v60 }
 0x1b1   : > { %1823 = vmatpush3.bf16.xpose.msra.mxu1 %v528_v61  ;;  %v504_v30 = vpop.permute.xlu0 %503 }
 0x1b2   : > { %1923 = vmatprep.subr.msk.bf16.mxu1 %vm166_vm0, %v510_v62 }
 0x1b4   : > { %v2261_v22 = vpop.eup %1970 }
 0x1b5   : > { %v697_v40 = vpop.permute.xlu0 %696 }
 0x1b6   : > { %1838 = vmatprep.subr.bf16.mxu0 %v697_v40 }
 0x1b7   : > { %1839 = vmatpush3.bf16.msra.mxu0 %v697_v40 }
 0x1b9   : > { %1825 = vmatpush3.bf16.xpose.msra.mxu1 %v531_v63 }
 0x1ba   : > { %1924 = vmatprep.subr.msk.bf16.mxu1 %vm166_vm0, %v512_v2 }
 0x1c1   : > { %1827 = vmatpush3.bf16.xpose.msra.mxu1 %v534_v5 }
 0x1d5   : > { %v288_v8 = vpop.xlane.xlu1 %287 }
 0x1d6   : > { %v296_v12 = vsub.f32 %v263_v36, %v288_v8 }
 0x1d8   : > { %v311_v15 = vmul.f32 1.442695, %v296_v12 }
 0x1d9   : > { %v282_v16 = vpop.xlane.xlu1 %281 }
 0x1da   : > { %v294_v17 = vsub.f32 %v261_v37, %v282_v16  ;;  %1972 = vpow2.f32 %v311_v15 }
 0x1dc   : > { %v307_v19 = vmul.f32 1.442695, %v294_v17 }
 0x1dd   : > { %v514_v20 = vpop.permute.xlu1 %513 }
 0x1de   : > { %1974 = vpow2.f32 %v307_v19  ;;  %1925 = vmatprep.subr.msk.bf16.mxu1 %vm166_vm0, %v514_v20  ;;  %v537_v21 = vsel %vm166_vm0, %v514_v20, 0 }
 0x1df   : > { %1976 = vpow2.f32 %v309_v18  ;;  %1829 = vmatpush3.bf16.xpose.msra.mxu1 %v537_v21 }
 0x1e1   : > { %v502_v29 = vpop.permute.xlu1 %501 }
 0x1e4   : > { %v2263_v23 = vpop.eup %1972 }
 0x1e5   : > { %v506_v31 = vpop.permute.xlu1 %505 }
 0x1e8   : > { %v2265_v24 = vpop.eup %1974 }
 0x1e9   : > { %v2267_v25 = vpop.eup %1976  ;;  %v347_v26 = vpack.c.bf16 %v2265_v24, %v2261_v22  ;;  %v699_v41 = vpop.permute.xlu1 %698 }
 0x1ea   : > { %v348_v27 = vpack.c.bf16 %v2263_v23, %v2267_v25  ;;  %1840 = vmatprep.subr.bf16.mxu0 %v699_v41 }
 0x1eb   : > { %1818 = vmatprep.mubr.msk.bf16.mxu1 %vm264_vm1, %v347_v26  ;;  %1841 = vmatpush3.bf16.msra.mxu0 %v699_v41 }
 0x1ec   : > { %1819 = vmatmul.mubr.msk.bf16.gmra.mrb[4].mxu1 %vm264_vm1, %v348_v27 }
 0x1ed   : > { %1830 = vmatprep.mubr.msk.bf16.mxu1 %vm166_vm0, %v500_v28  ;;  %v701_v42 = vpop.permute.xlu1 %700 }
 0x1ee   : > { %1842 = vmatprep.subr.bf16.mxu0 %v701_v42 }
 0x1ef   : > { %1843 = vmatpush3.bf16.msra.mxu0 %v701_v42 }
 0x1f1   : > { %v703_v43 = vpop.permute.xlu1 %702 }
 0x1f2   : > { %1844 = vmatprep.subr.bf16.mxu0 %v703_v43 }
 0x1f3   : > { %1845 = vmatpush3.bf16.msra.mxu0 %v703_v43 }
 0x1f4   : > { %1831 = vmatmul.mubr.msk.bf16.vlgmr.msra.gmra.mrb[8].mxu1 %vm166_vm0, %v502_v29 }
 0x1f5   : > { %1834 = vmatprep.mubr.msk.bf16.mxu1 %vm166_vm0, %v504_v30 }
 0x1fc   : > { %1835 = vmatmul.mubr.msk.bf16.gmra.mrb[12].mxu1 %vm166_vm0, %v506_v31 }
 0x283   : > { %v2279_v36 = vpop.f32.mrb[0].mxu1 }
 0x284   : > { %v2281_v37 = vpop.f32.mrb[1].mxu1 }
 0x285   : > { %v2283_v38 = vpop.f32.mrb[2].mxu1 }
 0x286   : > { %v2285_v39 = vpop.f32.mrb[3].mxu1 }
 0x2bf   : > { %v2287_v44 = vpop.f32.mrb[4].mxu1 }
 0x2c0   : > { %2732 = vst [vmem:[#allocation2_spill] sm:$0xff] %v2287_v44  ;;  %v2289_v45 = vpop.f32.mrb[5].mxu1 }
 0x2c1   : > { %v2291_v46 = vpop.f32.mrb[6].mxu1 }
 0x2c2   : > { %2733 = vst [vmem:[#allocation3_spill] sm:$0xff] %v2291_v46  ;;  %v2293_v47 = vpop.f32.mrb[7].mxu1 }
 0x2c7   : > { %v1832_v48 = vpop.f32.mrb[8].mxu1 }
 0x2c8   : > { %v606_v49 = vmul.f32 0.17677669, %v1832_v48  ;;  %v573_v50 = vpop.f32.mrb[9].mxu1 }
 0x2c9   : > { %v1833_v51 = vpop.f32.mrb[10].mxu1  ;;  %v604_v52 = vmul.f32 0.17677669, %v573_v50 }
 0x2ca   : > { %v576_v53 = vpop.f32.mrb[11].mxu1  ;;  %v618_v54 = vsel %vm264_vm1, %v606_v49, -inf  ;;  %v607_v61 = vmul.f32 0.17677669, %v1833_v51 }
 0x2cb   : > { %v605_v59 = vmul.f32 0.17677669, %v576_v53  ;;  %619 = vmax.xlane.f32.xlu0 %v618_v54  ;;  %v612_v62 = vsel %vm264_vm1, %v604_v52, -inf }
 0x2cc   : > { %v621_v8 = vsel %vm264_vm1, %v607_v61, -inf }
 0x2cd   : > { %v615_v60 = vsel %vm264_vm1, %v605_v59, -inf }
 0x2ce   : > { %616 = vmax.xlane.f32.xlu1 %v615_v60 }
 0x2cf   : > { %613 = vmax.xlane.f32.xlu0 %v612_v62  ;;  %v1836_v63 = vpop.f32.mrb[12].mxu1 }
 0x2d0   : > { %v2298_v2 = vmul.f32 0.17677669, %v1836_v63  ;;  %v589_v5 = vpop.f32.mrb[13].mxu1 }
 0x2d1   : > { %v1837_v6 = vpop.f32.mrb[14].mxu1  ;;  %v2303_v14 = vmul.f32 0.17677669, %v589_v5 }
 0x2d2   : > { %v592_v12 = vpop.f32.mrb[15].mxu1  ;;  %v630_v13 = vsel %vm264_vm1, %v2298_v2, -inf  ;;  %v2307_v16 = vmul.f32 0.17677669, %v1837_v6 }
 0x2d3   : > { %622 = vmax.xlane.f32.xlu0 %v621_v8  ;;  %v624_v15 = vsel %vm264_vm1, %v2303_v14, -inf  ;;  %v609_v18 = vmul.f32 0.17677669, %v592_v12 }
 0x2d4   : > { %v633_v17 = vsel %vm264_vm1, %v2307_v16, -inf }
 0x2d5   : > { %v627_v19 = vsel %vm264_vm1, %v609_v18, -inf }
 0x2d7   : > { %631 = vmax.xlane.f32.xlu0 %v630_v13 }
 0x2db   : > { %625 = vmax.xlane.f32.xlu0 %v624_v15 }
 0x2df   : > { %860 = vrot.lane.b32.xlu1 %v2131_v1, %s2099_s13  ;;  %634 = vmax.xlane.f32.xlu0 %v633_v17 }
 0x2e3   : > { %862 = vrot.lane.b32.xlu1 %v2143_v4, %s2099_s13 }
 0x2f5   : > { %858 = vrot.lane.b32.xlu0 %v2128_v0, %s2099_s13 }
 0x2f9   : > { %850 = vrot.lane.b32.xlu0 %v2140_v3, %s2099_s13 }
 0x2fd   : > { %854 = vrot.lane.b32.xlu0 %v2164_v10, %s2099_s13 }
 0x301   : > { %1047 = vrot.lane.b32.xlu0 %v2191_v32, %s2099_s13 }
 0x307   : > { %628 = vmax.xlane.f32.xlu1 %v627_v19 }
 0x318   : > { %864 = vrot.lane.b32.xlu1 %v2154_v7, %s2099_s13 }
 0x31c   : > { %852 = vrot.lane.b32.xlu1 %v2161_v9, %s2099_s13 }
 0x320   : > { %856 = vrot.lane.b32.xlu1 %v2171_v11, %s2099_s13 }
 0x324   : > { %1049 = vrot.lane.b32.xlu1 %v2196_v33, %s2099_s13 }
 0x328   : > { %1051 = vrot.lane.b32.xlu1 %v2203_v34, %s2099_s13 }
 0x32c   : > { %1053 = vrot.lane.b32.xlu1 %v2210_v35, %s2099_s13 }
 0x358   : > { %v620_v20 = vpop.xlane.xlu0 %619 }
 0x359   : > { %v638_v26 = vsub.f32 %v606_v49, %v620_v20 }
 0x35b   : > { %v617_v21 = vpop.xlane.xlu1 %616  ;;  %v648_v40 = vmul.f32 1.442695, %v638_v26 }
 0x35c   : > { %v637_v27 = vsub.f32 %v605_v59, %v617_v21  ;;  %v614_v28 = vpop.xlane.xlu0 %613 }
 0x35d   : > { %v636_v29 = vsub.f32 %v604_v52, %v614_v28 }
 0x35e   : > { %v646_v30 = vmul.f32 1.442695, %v637_v27 }
 0x35f   : > { %v644_v31 = vmul.f32 1.442695, %v636_v29  ;;  %v861_v63 = vpop.permute.xlu1 %860 }
 0x360   : > { %1978 = vpow2.f32 %v646_v30  ;;  %v623_v41 = vpop.xlane.xlu0 %622  ;;  %v882_v5 = vsel %vm166_vm0, %v861_v63, 0 }
 0x361   : > { %1980 = vpow2.f32 %v644_v31  ;;  %v639_v42 = vsub.f32 %v607_v61, %v623_v41 }
 0x362   : > { %1982 = vpow2.f32 %v648_v40 }
 0x363   : > { %v650_v43 = vmul.f32 1.442695, %v639_v42  ;;  %v863_v6 = vpop.permute.xlu1 %862 }
 0x364   : > { %v632_v48 = vpop.xlane.xlu0 %631  ;;  %v885_v8 = vsel %vm166_vm0, %v863_v6, 0 }
 0x365   : > { %1984 = vpow2.f32 %v650_v43  ;;  %v642_v15 = vsub.f32 %v2298_v2, %v632_v48 }
 0x367   : > { %v656_v26 = vmul.f32 1.442695, %v642_v15 }
 0x368   : > { %v626_v50 = vpop.xlane.xlu0 %625 }
 0x369   : > { %v640_v12 = vsub.f32 %v2303_v14, %v626_v50 }
 0x36a   : > { %v2336_v51 = vpop.eup %1978 }
 0x36b   : > { %v2338_v53 = vpop.eup %1980  ;;  %v652_v17 = vmul.f32 1.442695, %v640_v12 }
 0x36c   : > { %v635_v49 = vpop.xlane.xlu0 %634  ;;  %v692_v52 = vpack.c.bf16 %v2336_v51, %v2338_v53  ;;  %v2342_v54 = vpop.eup %1982 }
 0x36d   : > { %v643_v13 = vsub.f32 %v2307_v16, %v635_v49  ;;  %1986 = vpow2.f32 %v652_v17 }
 0x36e   : > { %1846 = vmatprep.mubr.msk.bf16.mxu0 %vm264_vm1, %v692_v52 }
 0x36f   : > { %v2345_v59 = vpop.eup %1984  ;;  %v658_v19 = vmul.f32 1.442695, %v643_v13 }
 0x370   : > { %v693_v60 = vpack.c.bf16 %v2345_v59, %v2342_v54  ;;  %v859_v61 = vpop.permute.xlu0 %858 }
 0x371   : > { %v879_v62 = vsel %vm166_vm0, %v859_v61, 0  ;;  %1926 = vmatprep.subr.msk.bf16.mxu0 %vm166_vm0, %v859_v61  ;;  %1988 = vpow2.f32 %v658_v19 }
 0x372   : > { %1847 = vmatmul.mubr.msk.bf16.vlgmr.msra.gmra.mrb[8].mxu0 %vm264_vm1, %v693_v60 }
 0x373   : > { %1855 = vmatpush3.bf16.xpose.msra.mxu0 %v879_v62 }
 0x374   : > { %1927 = vmatprep.subr.msk.bf16.mxu0 %vm166_vm0, %v861_v63  ;;  %v851_v40 = vpop.permute.xlu0 %850 }
 0x377   : > { %v2361_v14 = vpop.eup %1986 }
 0x378   : > { %v855_v42 = vpop.permute.xlu0 %854 }
 0x37b   : > { %1857 = vmatpush3.bf16.xpose.msra.mxu0 %v882_v5  ;;  %v2363_v16 = vpop.eup %1988 }
 0x37c   : > { %1928 = vmatprep.subr.msk.bf16.mxu0 %vm166_vm0, %v863_v6  ;;  %v1048_v48 = vpop.permute.xlu0 %1047 }
 0x37d   : > { %1870 = vmatprep.subr.bf16.mxu1 %v1048_v48 }
 0x37e   : > { %1871 = vmatpush3.bf16.msra.mxu1 %v1048_v48 }
 0x383   : > { %1859 = vmatpush3.bf16.xpose.msra.mxu0 %v885_v8 }
 0x394   : > { %v629_v20 = vpop.xlane.xlu1 %628 }
 0x395   : > { %v641_v21 = vsub.f32 %v609_v18, %v629_v20 }
 0x397   : > { %v654_v27 = vmul.f32 1.442695, %v641_v21 }
 0x398   : > { %v865_v28 = vpop.permute.xlu1 %864 }
 0x399   : > { %1990 = vpow2.f32 %v654_v27  ;;  %v888_v29 = vsel %vm166_vm0, %v865_v28, 0  ;;  %1929 = vmatprep.subr.msk.bf16.mxu0 %vm166_vm0, %v865_v28 }
 0x39a   : > { %1992 = vpow2.f32 %v656_v26  ;;  %1861 = vmatpush3.bf16.xpose.msra.mxu0 %v888_v29 }
 0x39c   : > { %v853_v41 = vpop.permute.xlu1 %852 }
 0x3a0   : > { %v857_v43 = vpop.permute.xlu1 %856 }
 0x3a3   : > { %v2365_v2 = vpop.eup %1990 }
 0x3a4   : > { %v2367_v30 = vpop.eup %1992  ;;  %v694_v18 = vpack.c.bf16 %v2365_v2, %v2361_v14  ;;  %v1050_v50 = vpop.permute.xlu1 %1049 }
 0x3a5   : > { %v695_v31 = vpack.c.bf16 %v2363_v16, %v2367_v30  ;;  %1872 = vmatprep.subr.bf16.mxu1 %v1050_v50 }
 0x3a6   : > { %1850 = vmatprep.mubr.msk.bf16.mxu0 %vm264_vm1, %v694_v18  ;;  %1873 = vmatpush3.bf16.msra.mxu1 %v1050_v50 }
 0x3a7   : > { %1851 = vmatmul.mubr.msk.bf16.gmra.mrb[12].mxu0 %vm264_vm1, %v695_v31 }
 0x3a8   : > { %1862 = vmatprep.mubr.msk.bf16.mxu0 %vm166_vm0, %v851_v40  ;;  %v1052_v60 = vpop.permute.xlu1 %1051 }
 0x3a9   : > { %1874 = vmatprep.subr.bf16.mxu1 %v1052_v60 }
 0x3aa   : > { %1875 = vmatpush3.bf16.msra.mxu1 %v1052_v60 }
 0x3ac   : > { %v1054_v63 = vpop.permute.xlu1 %1053 }
 0x3ad   : > { %1876 = vmatprep.subr.bf16.mxu1 %v1054_v63 }
 0x3ae   : > { %1877 = vmatpush3.bf16.msra.mxu1 %v1054_v63 }
 0x3af   : > { %1863 = vmatmul.mubr.msk.bf16.vlgmr.msra.gmra.mrb[16].mxu0 %vm166_vm0, %v853_v41 }
 0x3b0   : > { %1866 = vmatprep.mubr.msk.bf16.mxu0 %vm166_vm0, %v855_v42 }
 0x3b7   : > { %1867 = vmatmul.mubr.msk.bf16.gmra.mrb[20].mxu0 %vm166_vm0, %v857_v43 }
 0x445   : > { %v2379_v49 = vpop.f32.mrb[8].mxu0 }
 0x446   : > { %v2381_v52 = vpop.f32.mrb[9].mxu0 }
 0x447   : > { %v2383_v61 = vpop.f32.mrb[10].mxu0 }
 0x448   : > { %v2385_v62 = vpop.f32.mrb[11].mxu0 }
 0x47a   : > { %v2387_v5 = vpop.f32.mrb[12].mxu0 }
 0x47b   : > { %v2389_v6 = vpop.f32.mrb[13].mxu0 }
 0x47c   : > { %v2391_v8 = vpop.f32.mrb[14].mxu0 }
 0x47d   : > { %v2393_v12 = vpop.f32.mrb[15].mxu0 }
 0x482   : > { %v1864_v13 = vpop.f32.mrb[16].mxu0 }
 0x483   : > { %v957_v15 = vmul.f32 0.17677669, %v1864_v13  ;;  %v924_v17 = vpop.f32.mrb[17].mxu0 }
 0x484   : > { %v1865_v19 = vpop.f32.mrb[18].mxu0  ;;  %v955_v20 = vmul.f32 0.17677669, %v924_v17 }
 0x485   : > { %v927_v21 = vpop.f32.mrb[19].mxu0  ;;  %v969_v26 = vsel %vm264_vm1, %v957_v15, -inf  ;;  %v958_v29 = vmul.f32 0.17677669, %v1865_v19 }
 0x486   : > { %v956_v27 = vmul.f32 0.17677669, %v927_v21  ;;  %970 = vmax.xlane.f32.xlu0 %v969_v26  ;;  %v963_v18 = vsel %vm264_vm1, %v955_v20, -inf }
 0x487   : > { %v972_v43 = vsel %vm264_vm1, %v958_v29, -inf }
 0x488   : > { %v966_v28 = vsel %vm264_vm1, %v956_v27, -inf }
 0x489   : > { %967 = vmax.xlane.f32.xlu1 %v966_v28 }
 0x48a   : > { %964 = vmax.xlane.f32.xlu0 %v963_v18  ;;  %v1868_v31 = vpop.f32.mrb[20].mxu0 }
 0x48b   : > { %v2398_v40 = vmul.f32 0.17677669, %v1868_v31  ;;  %v940_v41 = vpop.f32.mrb[21].mxu0 }
 0x48c   : > { %v1869_v42 = vpop.f32.mrb[22].mxu0  ;;  %v959_v60 = vmul.f32 0.17677669, %v940_v41 }
 0x48d   : > { %v943_v48 = vpop.f32.mrb[23].mxu0  ;;  %v981_v50 = vsel %vm264_vm1, %v2398_v40, -inf  ;;  %v962_v13 = vmul.f32 0.17677669, %v1869_v42 }
 0x48e   : > { %973 = vmax.xlane.f32.xlu0 %v972_v43  ;;  %v975_v63 = vsel %vm264_vm1, %v959_v60, -inf  ;;  %v960_v19 = vmul.f32 0.17677669, %v943_v48 }
 0x48f   : > { %v984_v17 = vsel %vm264_vm1, %v962_v13, -inf }
 0x490   : > { %v978_v21 = vsel %vm264_vm1, %v960_v19, -inf }
 0x492   : > { %982 = vmax.xlane.f32.xlu0 %v981_v50 }
 0x496   : > { %976 = vmax.xlane.f32.xlu0 %v975_v63 }
 0x49a   : > { %1211 = vrot.lane.b32.xlu1 %v2131_v1, %s2100_s14  ;;  %985 = vmax.xlane.f32.xlu0 %v984_v17 }
 0x49e   : > { %1213 = vrot.lane.b32.xlu1 %v2143_v4, %s2100_s14 }
 0x4b0   : > { %1209 = vrot.lane.b32.xlu0 %v2128_v0, %s2100_s14 }
 0x4b4   : > { %1201 = vrot.lane.b32.xlu0 %v2140_v3, %s2100_s14 }
 0x4b8   : > { %1205 = vrot.lane.b32.xlu0 %v2164_v10, %s2100_s14 }
 0x4c2   : > { %979 = vmax.xlane.f32.xlu1 %v978_v21 }
 0x4d3   : > { %1215 = vrot.lane.b32.xlu1 %v2154_v7, %s2100_s14 }
 0x4d7   : > { %1203 = vrot.lane.b32.xlu1 %v2161_v9, %s2100_s14 }
 0x4db   : > { %1207 = vrot.lane.b32.xlu1 %v2171_v11, %s2100_s14 }
 0x513   : > { %v971_v0 = vpop.xlane.xlu0 %970 }
 0x514   : > { %v989_v4 = vsub.f32 %v957_v15, %v971_v0 }
 0x516   : > { %v968_v1 = vpop.xlane.xlu1 %967  ;;  %v999_v31 = vmul.f32 1.442695, %v989_v4 }
 0x517   : > { %v988_v3 = vsub.f32 %v956_v27, %v968_v1  ;;  %v965_v26 = vpop.xlane.xlu0 %964 }
 0x518   : > { %v987_v28 = vsub.f32 %v955_v20, %v965_v26 }
 0x519   : > { %v997_v10 = vmul.f32 1.442695, %v988_v3 }
 0x51a   : > { %v995_v18 = vmul.f32 1.442695, %v987_v28  ;;  %v1212_v21 = vpop.permute.xlu1 %1211 }
 0x51b   : > { %1994 = vpow2.f32 %v997_v10  ;;  %v974_v41 = vpop.xlane.xlu0 %973  ;;  %v1233_v0 = vsel %vm166_vm0, %v1212_v21, 0 }
 0x51c   : > { %1996 = vpow2.f32 %v995_v18  ;;  %v990_v42 = vsub.f32 %v958_v29, %v974_v41 }
 0x51d   : > { %1998 = vpow2.f32 %v999_v31 }
 0x51e   : > { %v1001_v7 = vmul.f32 1.442695, %v990_v42  ;;  %v1214_v1 = vpop.permute.xlu1 %1213 }
 0x51f   : > { %v983_v43 = vpop.xlane.xlu0 %982  ;;  %v1236_v4 = vsel %vm166_vm0, %v1214_v1, 0 }
 0x520   : > { %2000 = vpow2.f32 %v1001_v7  ;;  %v993_v28 = vsub.f32 %v2398_v40, %v983_v43 }
 0x522   : > { %v1007_v42 = vmul.f32 1.442695, %v993_v28 }
 0x523   : > { %v977_v9 = vpop.xlane.xlu0 %976 }
 0x524   : > { %v991_v3 = vsub.f32 %v959_v60, %v977_v9 }
 0x525   : > { %v2422_v48 = vpop.eup %1994 }
 0x526   : > { %v2424_v11 = vpop.eup %1996  ;;  %v1003_v10 = vmul.f32 1.442695, %v991_v3 }
 0x527   : > { %v986_v15 = vpop.xlane.xlu0 %985  ;;  %v1043_v20 = vpack.c.bf16 %v2422_v48, %v2424_v11  ;;  %v2428_v27 = vpop.eup %1998 }
 0x528   : > { %v994_v26 = vsub.f32 %v962_v13, %v986_v15  ;;  %2002 = vpow2.f32 %v1003_v10 }
 0x529   : > { %1878 = vmatprep.mubr.msk.bf16.mxu1 %vm264_vm1, %v1043_v20 }
 0x52a   : > { %v2431_v50 = vpop.eup %2000  ;;  %v1009_v18 = vmul.f32 1.442695, %v994_v26 }
 0x52b   : > { %v1044_v29 = vpack.c.bf16 %v2431_v50, %v2428_v27  ;;  %v1210_v63 = vpop.permute.xlu0 %1209 }
 0x52c   : > { %v1230_v17 = vsel %vm166_vm0, %v1210_v63, 0  ;;  %1930 = vmatprep.subr.msk.bf16.mxu1 %vm166_vm0, %v1210_v63  ;;  %2004 = vpow2.f32 %v1009_v18 }
 0x52d   : > { %1879 = vmatmul.mubr.msk.bf16.vlgmr.msra.gmra.mrb[16].mxu1 %vm264_vm1, %v1044_v29 }
 0x52e   : > { %1887 = vmatpush3.bf16.xpose.msra.mxu1 %v1230_v17 }
 0x52f   : > { %1931 = vmatprep.subr.msk.bf16.mxu1 %vm166_vm0, %v1212_v21  ;;  %v1202_v15 = vpop.permute.xlu0 %1201 }
 0x532   : > { %v2445_v60 = vpop.eup %2002 }
 0x533   : > { %v1206_v17 = vpop.permute.xlu0 %1205 }
 0x536   : > { %1889 = vmatpush3.bf16.xpose.msra.mxu1 %v1233_v0  ;;  %v2447_v13 = vpop.eup %2004 }
 0x537   : > { %1932 = vmatprep.subr.msk.bf16.mxu1 %vm166_vm0, %v1214_v1 }
 0x53e   : > { %1891 = vmatpush3.bf16.xpose.msra.mxu1 %v1236_v4 }
 0x54f   : > { %v980_v31 = vpop.xlane.xlu1 %979 }
 0x550   : > { %v992_v41 = vsub.f32 %v960_v19, %v980_v31 }
 0x552   : > { %v1005_v7 = vmul.f32 1.442695, %v992_v41 }
 0x553   : > { %v1216_v20 = vpop.permute.xlu1 %1215 }
 0x554   : > { %2006 = vpow2.f32 %v1005_v7  ;;  %v1239_v29 = vsel %vm166_vm0, %v1216_v20, 0  ;;  %1933 = vmatprep.subr.msk.bf16.mxu1 %vm166_vm0, %v1216_v20 }
 0x555   : > { %2008 = vpow2.f32 %v1007_v42  ;;  %1893 = vmatpush3.bf16.xpose.msra.mxu1 %v1239_v29 }
 0x557   : > { %v1204_v63 = vpop.permute.xlu1 %1203 }
 0x55b   : > { %v1208_v21 = vpop.permute.xlu1 %1207 }
 0x55e   : > { %v2449_v40 = vpop.eup %2006 }
 0x55f   : > { %v2451_v43 = vpop.eup %2008  ;;  %v1045_v19 = vpack.c.bf16 %v2449_v40, %v2445_v60 }
 0x560   : > { %v1046_v9 = vpack.c.bf16 %v2447_v13, %v2451_v43 }
 0x561   : > { %1882 = vmatprep.mubr.msk.bf16.mxu1 %vm264_vm1, %v1045_v19 }
 0x562   : > { %1883 = vmatmul.mubr.msk.bf16.gmra.mrb[20].mxu1 %vm264_vm1, %v1046_v9 }
 0x563   : > { %1894 = vmatprep.mubr.msk.bf16.mxu1 %vm166_vm0, %v1202_v15 }
 0x56a   : > { %1895 = vmatmul.mubr.msk.bf16.vlgmr.msra.gmra.mrb[24].mxu1 %vm166_vm0, %v1204_v63 }
 0x56b   : > { %1898 = vmatprep.mubr.msk.bf16.mxu1 %vm166_vm0, %v1206_v17 }
 0x572   : > { %1899 = vmatmul.mubr.msk.bf16.gmra.mrb[28].mxu1 %vm166_vm0, %v1208_v21 }
 0x600   : > { %v2463_v0 = vpop.f32.mrb[16].mxu1 }
 0x601   : > { %v2465_v1 = vpop.f32.mrb[17].mxu1 }
 0x602   : > { %v2467_v4 = vpop.f32.mrb[18].mxu1 }
 0x603   : > { %v2469_v3 = vpop.f32.mrb[19].mxu1 }
 0x635   : > { %v2471_v26 = vpop.f32.mrb[20].mxu1 }
 0x636   : > { %v2473_v28 = vpop.f32.mrb[21].mxu1 }
 0x637   : > { %v2475_v10 = vpop.f32.mrb[22].mxu1 }
 0x638   : > { %v2477_v18 = vpop.f32.mrb[23].mxu1 }
 0x63d   : > { %v1896_v31 = vpop.f32.mrb[24].mxu1 }
 0x63e   : > { %v2479_v41 = vmul.f32 0.17677669, %v1896_v31  ;;  %v1275_v42 = vpop.f32.mrb[25].mxu1 }
 0x63f   : > { %v1897_v7 = vpop.f32.mrb[26].mxu1  ;;  %v2481_v20 = vmul.f32 0.17677669, %v1275_v42 }
 0x640   : > { %v1278_v29 = vpop.f32.mrb[27].mxu1  ;;  %v1320_v19 = vsel %vm264_vm1, %v2479_v41, -inf  ;;  %v2489_v63 = vmul.f32 0.17677669, %v1897_v7 }
 0x641   : > { %v2485_v9 = vmul.f32 0.17677669, %v1278_v29  ;;  %1321 = vmax.xlane.f32.xlu0 %v1320_v19  ;;  %v1314_v17 = vsel %vm264_vm1, %v2481_v20, -inf }
 0x642   : > { %v1323_v29 = vsel %vm264_vm1, %v2489_v63, -inf }
 0x643   : > { %v1317_v15 = vsel %vm264_vm1, %v2485_v9, -inf }
 0x644   : > { %1318 = vmax.xlane.f32.xlu1 %v1317_v15 }
 0x645   : > { %1315 = vmax.xlane.f32.xlu0 %v1314_v17  ;;  %v1900_v21 = vpop.f32.mrb[28].mxu1 }
 0x646   : > { %v2493_v31 = vmul.f32 0.17677669, %v1900_v21  ;;  %v1291_v42 = vpop.f32.mrb[29].mxu1 }
 0x647   : > { %v1901_v46 = vpop.f32.mrb[30].mxu1  ;;  %v2499_v7 = vmul.f32 0.17677669, %v1291_v42 }
 0x648   : > { %v1294_v44 = vpop.f32.mrb[31].mxu1  ;;  %v1332_v19 = vsel %vm264_vm1, %v2493_v31, -inf  ;;  %v2509_v17 = vmul.f32 0.17677669, %v1901_v46  ;;  %v678_v46 = vsel %vm264_vm1, %v2367_v30, 0.0  ;;  %v675_v30 = vsel %vm264_vm1, %v2365_v2, 0.0 }
 0x649   : > { %1324 = vmax.xlane.f32.xlu0 %v1323_v29  ;;  %v1326_v15 = vsel %vm264_vm1, %v2499_v7, -inf  ;;  %v2511_v21 = vmul.f32 0.17677669, %v1294_v44  ;;  %v672_v44 = vsel %vm264_vm1, %v2361_v14, 0.0  ;;  %v1029_v14 = vsel %vm264_vm1, %v2451_v43, 0.0 }
 0x64a   : > { %v1335_v42 = vsel %vm264_vm1, %v2509_v17, -inf  ;;  %v1032_v2 = vsel %vm264_vm1, %v2447_v13, 0.0 }
 0x64b   : > { %v1329_v29 = vsel %vm264_vm1, %v2511_v21, -inf }
 0x64d   : > { %1333 = vmax.xlane.f32.xlu0 %v1332_v19 }
 0x651   : > { %1327 = vmax.xlane.f32.xlu0 %v1326_v15 }
 0x655   : > { %1400 = vrot.lane.b32.xlu1 %v2196_v33, %s2100_s14  ;;  %v660_v33 = vsel %vm264_vm1, %v2338_v53, 0.0  ;;  %v1011_v53 = vsel %vm264_vm1, %v2424_v11, 0.0  ;;  %v681_v11 = vsel %vm264_vm1, %v2363_v16, 0.0 }
 0x659   : > { %1402 = vrot.lane.b32.xlu1 %v2203_v34, %s2100_s14  ;;  %v666_v34 = vsel %vm264_vm1, %v2342_v54, 0.0  ;;  %v1017_v54 = vsel %vm264_vm1, %v2428_v27, 0.0  ;;  %v1014_v27 = vsel %vm264_vm1, %v2422_v48, 0.0 }
 0x667   : > { %1398 = vrot.lane.b32.xlu0 %v2191_v32, %s2100_s14  ;;  %v669_v32 = vsel %vm264_vm1, %v2345_v59, 0.0  ;;  %v1023_v59 = vsel %vm264_vm1, %v2445_v60, 0.0  ;;  %v1020_v60 = vsel %vm264_vm1, %v2431_v50, 0.0 }
 0x67d   : > { %1336 = vmax.xlane.f32.xlu1 %v1335_v42 }
 0x681   : > { %1330 = vmax.xlane.f32.xlu1 %v1329_v29 }
 0x686   : > { %661 = vadd.xlane.f32.xlu0 %v660_v33 }
 0x68a   : > { %667 = vadd.xlane.f32.xlu0 %v666_v34 }
 0x68e   : > { %670 = vadd.xlane.f32.xlu0 %v669_v32 }
 0x692   : > { %673 = vadd.xlane.f32.xlu0 %v672_v44  ;;  %1404 = vrot.lane.b32.xlu1 %v2210_v35, %s2100_s14  ;;  %v663_v35 = vsel %vm264_vm1, %v2336_v51, 0.0  ;;  %v1026_v51 = vsel %vm264_vm1, %v2449_v40, 0.0 }
 0x696   : > { %679 = vadd.xlane.f32.xlu0 %v678_v46 }
 0x69a   : > { %1012 = vadd.xlane.f32.xlu0 %v1011_v53 }
 0x69e   : > { %1018 = vadd.xlane.f32.xlu0 %v1017_v54 }
 0x6a2   : > { %1024 = vadd.xlane.f32.xlu0 %v1023_v59 }
 0x6a6   : > { %1030 = vadd.xlane.f32.xlu0 %v1029_v14 }
 0x6b6   : > { %664 = vadd.xlane.f32.xlu1 %v663_v35 }
 0x6ba   : > { %676 = vadd.xlane.f32.xlu1 %v675_v30 }
 0x6be   : > { %682 = vadd.xlane.f32.xlu1 %v681_v11 }
 0x6c2   : > { %1015 = vadd.xlane.f32.xlu1 %v1014_v27 }
 0x6c6   : > { %1021 = vadd.xlane.f32.xlu1 %v1020_v60 }
 0x6ca   : > { %1027 = vadd.xlane.f32.xlu1 %v1026_v51 }
 0x6ce   : > { %v1322_v43 = vpop.xlane.xlu0 %1321  ;;  %1033 = vadd.xlane.f32.xlu1 %v1032_v2 }
 0x6cf   : > { %v1340_v16 = vsub.f32 %v2479_v41, %v1322_v43 }
 0x6d1   : > { %v1350_v19 = vmul.f32 1.442695, %v1340_v16  ;;  %v1319_v15 = vpop.xlane.xlu1 %1318 }
 0x6d2   : > { %v1339_v48 = vsub.f32 %v2485_v9, %v1319_v15  ;;  %v1316_v42 = vpop.xlane.xlu0 %1315  ;;  %v313_v15 = vsel %vm264_vm1, %v2237_v55, 0.0  ;;  %v331_v55 = vsel %vm264_vm1, %v2267_v25, 0.0 }
 0x6d3   : > { %2010 = vpow2.f32 %v1350_v19  ;;  %v1338_v50 = vsub.f32 %v2481_v20, %v1316_v42  ;;  %v316_v19 = vsel %vm264_vm1, %v2242_v57, 0.0  ;;  %v319_v42 = vsel %vm264_vm1, %v2244_v58, 0.0 }
 0x6d4   : > { %v1348_v29 = vmul.f32 1.442695, %v1339_v48  ;;  %v322_v48 = vsel %vm264_vm1, %v2240_v56, 0.0  ;;  %v325_v57 = vsel %vm264_vm1, %v2261_v22, 0.0 }
 0x6d5   : > { %v1346_v33 = vmul.f32 1.442695, %v1338_v50  ;;  %v328_v50 = vsel %vm264_vm1, %v2265_v24, 0.0 }
 0x6d6   : > { %2012 = vpow2.f32 %v1348_v29  ;;  %v1325_v40 = vpop.xlane.xlu0 %1324 }
 0x6d7   : > { %2014 = vpow2.f32 %v1346_v33  ;;  %v1341_v34 = vsub.f32 %v2489_v63, %v1325_v40  ;;  %v1401_v63 = vpop.permute.xlu1 %1400 }
 0x6d9   : > { %v1352_v13 = vmul.f32 1.442695, %v1341_v34 }
 0x6da   : > { %v1334_v32 = vpop.xlane.xlu0 %1333 }
 0x6db   : > { %2016 = vpow2.f32 %v1352_v13  ;;  %v1344_v41 = vsub.f32 %v2493_v31, %v1334_v32 }
 0x6dd   : > { %v2556_v44 = vpop.eup %2010  ;;  %v1358_v46 = vmul.f32 1.442695, %v1344_v41 }
 0x6de   : > { %v1328_v9 = vpop.xlane.xlu0 %1327  ;;  %v1368_v53 = vsel %vm264_vm1, %v2556_v44, 0.0 }
 0x6df   : > { %2018 = vpow2.f32 %v1358_v46  ;;  %v1342_v20 = vsub.f32 %v2499_v7, %v1328_v9  ;;  %1369 = vadd.xlane.f32.xlu0 %v1368_v53  ;;  %v1403_v7 = vpop.permute.xlu1 %1402 }
 0x6e0   : > { %v2013_v54 = vpop.eup %2012 }
 0x6e1   : > { %v2015_v59 = vpop.eup %2014  ;;  %v1354_v14 = vmul.f32 1.442695, %v1342_v20  ;;  %v1365_v2 = vsel %vm264_vm1, %v2013_v54, 0.0 }
 0x6e2   : > { %v1399_v35 = vpop.permute.xlu0 %1398  ;;  %v1362_v30 = vsel %vm264_vm1, %v2015_v59, 0.0  ;;  %v1394_v11 = vpack.c.bf16 %v2013_v54, %v2015_v59 }
 0x6e3   : > { %2020 = vpow2.f32 %v1354_v14  ;;  %1363 = vadd.xlane.f32.xlu0 %v1362_v30  ;;  %1902 = vmatprep.subr.bf16.mxu0 %v1399_v35  ;;  %v334_v14 = vsel %vm264_vm1, %v2263_v23, 0.0 }
 0x6e4   : > { %1903 = vmatpush3.bf16.msra.mxu0 %v1399_v35  ;;  %1910 = vmatprep.mubr.msk.bf16.mxu0 %vm264_vm1, %v1394_v11 }
 0x6e5   : > { %v2017_v31 = vpop.eup %2016  ;;  %1904 = vmatprep.subr.bf16.mxu0 %v1401_v63 }
 0x6e6   : > { %v1371_v27 = vsel %vm264_vm1, %v2017_v31, 0.0  ;;  %v1395_v22 = vpack.c.bf16 %v2017_v31, %v2556_v44 }
 0x6e7   : > { %1372 = vadd.xlane.f32.xlu1 %v1371_v27 }
 0x6e8   : > { %1905 = vmatpush3.bf16.msra.mxu0 %v1401_v63 }
 0x6e9   : > { %v2019_v60 = vpop.eup %2018  ;;  %1906 = vmatprep.subr.bf16.mxu0 %v1403_v7 }
 0x6ea   : > { %v1380_v51 = vsel %vm264_vm1, %v2019_v60, 0.0 }
 0x6eb   : > { %1381 = vadd.xlane.f32.xlu0 %v1380_v51  ;;  %1366 = vadd.xlane.f32.xlu1 %v1365_v2 }
 0x6ec   : > { %1907 = vmatpush3.bf16.msra.mxu0 %v1403_v7 }
 0x6ed   : > { %v2021_v43 = vpop.eup %2020 }
 0x6ee   : > { %v1374_v16 = vsel %vm264_vm1, %v2021_v43, 0.0 }
 0x6ef   : > { %1375 = vadd.xlane.f32.xlu0 %v1374_v16  ;;  %317 = vadd.xlane.f32.xlu1 %v316_v19 }
 0x6f3   : > { %314 = vadd.xlane.f32.xlu0 %v313_v15  ;;  %323 = vadd.xlane.f32.xlu1 %v322_v48 }
 0x6f7   : > { %320 = vadd.xlane.f32.xlu0 %v319_v42  ;;  %329 = vadd.xlane.f32.xlu1 %v328_v50 }
 0x6fb   : > { %326 = vadd.xlane.f32.xlu0 %v325_v57 }
 0x6ff   : > { %332 = vadd.xlane.f32.xlu0 %v331_v55 }
 0x70a   : > { %v1337_v29 = vpop.xlane.xlu1 %1336 }
 0x70b   : > { %v1345_v56 = vsub.f32 %v2509_v17, %v1337_v29 }
 0x70d   : > { %v1360_v33 = vmul.f32 1.442695, %v1345_v56 }
 0x70e   : > { %v1331_v40 = vpop.xlane.xlu1 %1330 }
 0x70f   : > { %2022 = vpow2.f32 %v1360_v33  ;;  %v1343_v58 = vsub.f32 %v2511_v21, %v1331_v40 }
 0x711   : > { %v1356_v34 = vmul.f32 1.442695, %v1343_v58 }
 0x712   : > { %v1405_v24 = vpop.permute.xlu1 %1404 }
 0x713   : > { %2024 = vpow2.f32 %v1356_v34  ;;  %v662_v13 = vpop.xlane.xlu0 %661  ;;  %1908 = vmatprep.subr.bf16.mxu0 %v1405_v24 }
 0x714   : > { %2026 = vrcp.f32 %v662_v13  ;;  %1909 = vmatpush3.bf16.msra.mxu0 %v1405_v24 }
 0x717   : > { %v668_v32 = vpop.xlane.xlu0 %667  ;;  %1911 = vmatmul.mubr.msk.bf16.vlgmr.msra.gmra.mrb[24].mxu0 %vm264_vm1, %v1395_v22 }
 0x719   : > { %v2023_v25 = vpop.eup %2022 }
 0x71a   : > { %v1383_v17 = vsel %vm264_vm1, %v2023_v25, 0.0  ;;  %v1397_v54 = vpack.c.bf16 %v2023_v25, %v2019_v60 }
 0x71b   : > { %v671_v41 = vpop.xlane.xlu0 %670  ;;  %1384 = vadd.xlane.f32.xlu1 %v1383_v17 }
 0x71d   : > { %v2025_v46 = vpop.eup %2024 }
 0x71e   : > { %v2027_v9 = vpop.eup %2026  ;;  %v1377_v21 = vsel %vm264_vm1, %v2025_v46, 0.0  ;;  %v1396_v53 = vpack.c.bf16 %v2025_v46, %v2021_v43 }
 0x71f   : > { %v674_v20 = vpop.xlane.xlu0 %673  ;;  %1378 = vadd.xlane.f32.xlu1 %v1377_v21  ;;  %v785_v59 = vmul.f32 %v2027_v9, %v2381_v52 }
 0x720   : > { %2028 = vrcp.f32 %v674_v20  ;;  %1914 = vmatprep.mubr.msk.bf16.mxu0 %vm264_vm1, %v1396_v53 }
 0x721   : > { %1915 = vmatmul.mubr.msk.bf16.gmra.mrb[28].mxu0 %vm264_vm1, %v1397_v54  ;;  %v1702_v44 = vpack.c.bf16 %v785_v59, %v785_v59 }
 0x723   : > { %817 = vrot.lane.b32.xlu0 %v1702_v44, %s2100_s14  ;;  %v680_v63 = vpop.xlane.xlu0 %679  ;;  %335 = vadd.xlane.f32.xlu1 %v334_v14 }
 0x724   : > { %2030 = vrcp.f32 %v680_v63 }
 0x727   : > { %v1013_v35 = vpop.xlane.xlu0 %1012 }
 0x728   : > { %2032 = vrcp.f32 %v1013_v35 }
 0x72a   : > { %v2029_v30 = vpop.eup %2028 }
 0x72b   : > { %v1019_v11 = vpop.xlane.xlu0 %1018  ;;  %v789_v52 = vmul.f32 %v2029_v30, %v2389_v6 }
 0x72c   : > { %2034 = vrcp.f32 %v1019_v11 }
 0x72d   : > { %v1706_v31 = vpack.c.bf16 %v789_v52, %v789_v52 }
 0x72e   : > { %v2031_v27 = vpop.eup %2030 }
 0x72f   : > { %825 = vrot.lane.b32.xlu0 %v1706_v31, %s2100_s14  ;;  %v1025_v7 = vpop.xlane.xlu0 %1024  ;;  %v791_v60 = vmul.f32 %v2031_v27, %v2387_v5 }
 0x730   : > { %2036 = vrcp.f32 %v1025_v7 }
 0x731   : > { %v1708_v23 = vpack.c.bf16 %v791_v60, %v791_v60 }
 0x732   : > { %v2033_v51 = vpop.eup %2032 }
 0x733   : > { %829 = vrot.lane.b32.xlu0 %v1708_v23, %s2100_s14  ;;  %v1031_v2 = vpop.xlane.xlu0 %1030  ;;  %v1136_v43 = vmul.f32 %v2033_v51, %v2465_v1 }
 0x734   : > { %2038 = vrcp.f32 %v1031_v2 }
 0x735   : > { %v1710_v16 = vpack.c.bf16 %v1136_v43, %v1136_v43  ;;  %2040 = vrcp.f32 %v668_v32 }
 0x736   : > { %v2035_v19 = vpop.eup %2034 }
 0x737   : > { %1168 = vrot.lane.b32.xlu0 %v1710_v16, %s2099_s13  ;;  %v1138_v6 = vmul.f32 %v2035_v19, %v2463_v0 }
 0x739   : > { %v1712_v15 = vpack.c.bf16 %v1138_v6, %v1138_v6 }
 0x73a   : > { %v2037_v48 = vpop.eup %2036 }
 0x73b   : > { %1172 = vrot.lane.b32.xlu0 %v1712_v15, %s2099_s13  ;;  %v1140_v5 = vmul.f32 %v2037_v48, %v2473_v28 }
 0x73d   : > { %v1714_v42 = vpack.c.bf16 %v1140_v5, %v1140_v5 }
 0x73e   : > { %v2039_v50 = vpop.eup %2038 }
 0x73f   : > { %1176 = vrot.lane.b32.xlu0 %v1714_v42, %s2099_s13  ;;  %v1142_v57 = vmul.f32 %v2039_v50, %v2471_v26  ;;  %v2041_v56 = vpop.eup %2040 }
 0x740   : > { %v787_v34 = vmul.f32 %v2041_v56, %v2379_v49 }
 0x741   : > { %v1716_v1 = vpack.c.bf16 %v1142_v57, %v1142_v57 }
 0x742   : > { %v1704_v13 = vpack.c.bf16 %v787_v34, %v787_v34 }
 0x743   : > { %1180 = vrot.lane.b32.xlu0 %v1716_v1, %s2099_s13  ;;  %v665_v55 = vpop.xlane.xlu1 %664 }
 0x744   : > { %2042 = vrcp.f32 %v665_v55 }
 0x745   : > { %2044 = vrcp.f32 %v671_v41 }
 0x747   : > { %v677_v29 = vpop.xlane.xlu1 %676 }
 0x748   : > { %2046 = vrcp.f32 %v677_v29 }
 0x74b   : > { %v683_v0 = vpop.xlane.xlu1 %682 }
 0x74c   : > { %2048 = vrcp.f32 %v683_v0 }
 0x74e   : > { %v2043_v33 = vpop.eup %2042 }
 0x74f   : > { %v1016_v40 = vpop.xlane.xlu1 %1015  ;;  %v786_v28 = vmul.f32 %v2043_v33, %v2385_v62  ;;  %v2045_v26 = vpop.eup %2044  ;;  %v2734_v33 = vld [vmem:[#allocation2_spill] sm:$0xff] }
 0x750   : > { %2050 = vrcp.f32 %v1016_v40  ;;  %v788_v22 = vmul.f32 %v2045_v26, %v2383_v61 }
 0x751   : > { %v1703_v58 = vpack.c.bf16 %v786_v28, %v786_v28 }
 0x752   : > { %v2047_v32 = vpop.eup %2046  ;;  %v1705_v17 = vpack.c.bf16 %v788_v22, %v788_v22 }
 0x753   : > { %819 = vrot.lane.b32.xlu1 %v1703_v58, %s2100_s14  ;;  %v1022_v24 = vpop.xlane.xlu1 %1021  ;;  %v790_v62 = vmul.f32 %v2047_v32, %v2393_v12 }
 0x754   : > { %2052 = vrcp.f32 %v1022_v24 }
 0x755   : > { %v1707_v46 = vpack.c.bf16 %v790_v62, %v790_v62  ;;  %v2735_v62 = vld [vmem:[#allocation3_spill] sm:$0xff] }
 0x756   : > { %v2049_v41 = vpop.eup %2048 }
 0x757   : > { %821 = vrot.lane.b32.xlu1 %v1704_v13, %s2100_s14  ;;  %v1028_v25 = vpop.xlane.xlu1 %1027  ;;  %v792_v9 = vmul.f32 %v2049_v41, %v2391_v8 }
 0x758   : > { %2054 = vrcp.f32 %v1028_v25 }
 0x759   : > { %v1709_v61 = vpack.c.bf16 %v792_v9, %v792_v9 }
 0x75a   : > { %v2051_v21 = vpop.eup %2050 }
 0x75b   : > { %823 = vrot.lane.b32.xlu1 %v1705_v17, %s2100_s14  ;;  %v1034_v49 = vpop.xlane.xlu1 %1033  ;;  %v1137_v53 = vmul.f32 %v2051_v21, %v2469_v3 }
 0x75c   : > { %2056 = vrcp.f32 %v1034_v49 }
 0x75d   : > { %v1711_v54 = vpack.c.bf16 %v1137_v53, %v1137_v53 }
 0x75e   : > { %v2053_v20 = vpop.eup %2052 }
 0x75f   : > { %827 = vrot.lane.b32.xlu1 %v1707_v46, %s2100_s14  ;;  %v1139_v12 = vmul.f32 %v2053_v20, %v2467_v4 }
 0x761   : > { %v1713_v44 = vpack.c.bf16 %v1139_v12, %v1139_v12 }
 0x762   : > { %v2055_v59 = vpop.eup %2054 }
 0x763   : > { %831 = vrot.lane.b32.xlu1 %v1709_v61, %s2100_s14  ;;  %v1141_v14 = vmul.f32 %v2055_v59, %v2477_v18 }
 0x765   : > { %v1715_v63 = vpack.c.bf16 %v1141_v14, %v1141_v14 }
 0x766   : > { %v2057_v8 = vpop.eup %2056 }
 0x767   : > { %1170 = vrot.lane.b32.xlu1 %v1711_v54, %s2099_s13  ;;  %v1143_v35 = vmul.f32 %v2057_v8, %v2475_v10 }
 0x769   : > { %v1717_v3 = vpack.c.bf16 %v1143_v35, %v1143_v35 }
 0x76b   : > { %1174 = vrot.lane.b32.xlu1 %v1713_v44, %s2099_s13 }
 0x76c   : > { %v2621_v30 = vpop.xlane.xlu0 %1369 }
 0x76f   : > { %1178 = vrot.lane.b32.xlu1 %v1715_v63, %s2099_s13 }
 0x770   : > { %v2625_v4 = vpop.xlane.xlu0 %1363 }
 0x773   : > { %1182 = vrot.lane.b32.xlu1 %v1717_v3, %s2099_s13 }
 0x774   : > { %v2627_v11 = vpop.xlane.xlu1 %1372 }
 0x778   : > { %v2629_v52 = vpop.xlane.xlu0 %1381  ;;  %v2631_v18 = vpop.xlane.xlu1 %1366 }
 0x77c   : > { %v2633_v31 = vpop.xlane.xlu0 %1375  ;;  %v318_v27 = vpop.xlane.xlu1 %317 }
 0x77d   : > { %2058 = vrcp.f32 %v318_v27 }
 0x780   : > { %v315_v10 = vpop.xlane.xlu0 %314  ;;  %v324_v7 = vpop.xlane.xlu1 %323 }
 0x781   : > { %2060 = vrcp.f32 %v315_v10 }
 0x782   : > { %2062 = vrcp.f32 %v324_v7 }
 0x784   : > { %v321_v60 = vpop.xlane.xlu0 %320  ;;  %v330_v23 = vpop.xlane.xlu1 %329 }
 0x785   : > { %2064 = vrcp.f32 %v321_v60 }
 0x786   : > { %2066 = vrcp.f32 %v330_v23 }
 0x787   : > { %v2059_v51 = vpop.eup %2058 }
 0x788   : > { %v327_v2 = vpop.xlane.xlu0 %326  ;;  %v451_v43 = vmul.f32 %v2059_v51, %v2285_v39 }
 0x789   : > { %2068 = vrcp.f32 %v327_v2 }
 0x78a   : > { %v1695_v19 = vpack.c.bf16 %v451_v43, %v451_v43 }
 0x78b   : > { %v2061_v16 = vpop.eup %2060 }
 0x78c   : > { %v2063_v6 = vpop.eup %2062  ;;  %v450_v15 = vmul.f32 %v2061_v16, %v2281_v37  ;;  %v333_v48 = vpop.xlane.xlu0 %332  ;;  %492 = vst.msk [vmem:[%s2640_s18 + $0x4] sm:$0xf] %vm490_vm2, %v1695_v19 }
 0x78d   : > { %v453_v5 = vmul.f32 %v2063_v6, %v2283_v38  ;;  %2070 = vrcp.f32 %v333_v48 }
 0x78e   : > { %v1694_v39 = vpack.c.bf16 %v450_v15, %v450_v15 }
 0x78f   : > { %v2065_v42 = vpop.eup %2064  ;;  %v1697_v50 = vpack.c.bf16 %v453_v5, %v453_v5 }
 0x790   : > { %v2067_v57 = vpop.eup %2066  ;;  %v452_v1 = vmul.f32 %v2065_v42, %v2279_v36  ;;  %491 = vst.msk [vmem:[%s2640_s18] sm:$0xf] %vm490_vm2, %v1694_v39 }
 0x791   : > { %v455_v37 = vmul.f32 %v2067_v57, %v2293_v47  ;;  %494 = vst.msk [vmem:[%s2640_s18 + $0xc] sm:$0xf] %vm490_vm2, %v1697_v50 }
 0x792   : > { %v1696_v38 = vpack.c.bf16 %v452_v1, %v452_v1 }
 0x793   : > { %v2069_v55 = vpop.eup %2068  ;;  %v1699_v29 = vpack.c.bf16 %v455_v37, %v455_v37 }
 0x794   : > { %v454_v0 = vmul.f32 %v2069_v55, %v2289_v45  ;;  %493 = vst.msk [vmem:[%s2640_s18 + $0x8] sm:$0xf] %vm490_vm2, %v1696_v38 }
 0x795   : > { %v818_v56 = vpop.permute.xlu0 %817  ;;  %496 = vst.msk [vmem:[%s2640_s18 + $0x14] sm:$0xf] %vm490_vm2, %v1699_v29 }
 0x796   : > { %842 = vst.msk [vmem:[%s2640_s18] sm:$0xf] %vm841_vm3, %v818_v56  ;;  %v1698_v36 = vpack.c.bf16 %v454_v0, %v454_v0 }
 0x797   : > { %v2071_v47 = vpop.eup %2070 }
 0x798   : > { %v456_v40 = vmul.f32 %v2071_v47, %v2734_v33  ;;  %495 = vst.msk [vmem:[%s2640_s18 + $0x10] sm:$0xf] %vm490_vm2, %v1698_v36 }
 0x79a   : > { %v1700_v28 = vpack.c.bf16 %v456_v40, %v456_v40 }
 0x79c   : > { %497 = vst.msk [vmem:[%s2640_s18 + $0x18] sm:$0xf] %vm490_vm2, %v1700_v28 }
 0x7a1   : > { %v826_v45 = vpop.permute.xlu0 %825 }
 0x7a2   : > { %846 = vst.msk [vmem:[%s2640_s18 + $0x10] sm:$0xf] %vm841_vm3, %v826_v45 }
 0x7a5   : > { %v830_v58 = vpop.permute.xlu0 %829 }
 0x7a6   : > { %848 = vst.msk [vmem:[%s2640_s18 + $0x18] sm:$0xf] %vm841_vm3, %v830_v58 }
 0x7a8   : > { %v1385_v34 = vpop.xlane.xlu1 %1384 }
 0x7a9   : > { %v1169_v26 = vpop.permute.xlu0 %1168 }
 0x7aa   : > { %1193 = vst.msk [vmem:[%s2640_s18] sm:$0xf] %vm1192_vm4, %v1169_v26 }
 0x7ac   : > { %v1379_v24 = vpop.xlane.xlu1 %1378 }
 0x7ad   : > { %v1173_v13 = vpop.permute.xlu0 %1172 }
 0x7b0   : > { %v336_v22 = vpop.xlane.xlu1 %335 }
 0x7b1   : > { %2072 = vrcp.f32 %v336_v22  ;;  %v1177_v32 = vpop.permute.xlu0 %1176 }
 0x7b2   : > { %1197 = vst.msk [vmem:[%s2640_s18 + $0x10] sm:$0xf] %vm1192_vm4, %v1177_v32  ;;  %2074 = vrcp.f32 %v2621_v30 }
 0x7b3   : > { %2076 = vrcp.f32 %v2625_v4 }
 0x7b4   : > { %2078 = vrcp.f32 %v2627_v11 }
 0x7b5   : > { %v1181_v25 = vpop.permute.xlu0 %1180  ;;  %2080 = vrcp.f32 %v2631_v18 }
 0x7b6   : > { %1199 = vst.msk [vmem:[%s2640_s18 + $0x18] sm:$0xf] %vm1192_vm4, %v1181_v25  ;;  %2082 = vrcp.f32 %v2629_v52 }
 0x7b7   : > { %2084 = vrcp.f32 %v2633_v31 }
 0x7b8   : > { %2086 = vrcp.f32 %v1385_v34 }
 0x7b9   : > { %2088 = vrcp.f32 %v1379_v24 }
 0x7bb   : > { %v2073_v17 = vpop.eup %2072 }
 0x7bc   : > { %v457_v41 = vmul.f32 %v2073_v17, %v2735_v62  ;;  %v2075_v44 = vpop.eup %2074 }
 0x7bd   : > { %v2077_v8 = vpop.eup %2076 }
 0x7be   : > { %v1701_v49 = vpack.c.bf16 %v457_v41, %v457_v41  ;;  %v2079_v30 = vpop.eup %2078 }
 0x7bf   : > { %v2081_v11 = vpop.eup %2080 }
 0x7c0   : > { %498 = vst.msk [vmem:[%s2640_s18 + $0x1c] sm:$0xf] %vm490_vm2, %v1701_v49  ;;  %v2083_v31 = vpop.eup %2082 }
 0x7c1   : > { %v2085_v2 = vpop.eup %2084 }
 0x7c2   : > { %v2087_v19 = vpop.eup %2086 }
 0x7c3   : > { %v2089_v48 = vpop.eup %2088 }
 0x7c5   : > { %v820_v46 = vpop.permute.xlu1 %819 }
 0x7c6   : > { %843 = vst.msk [vmem:[%s2640_s18 + $0x4] sm:$0xf] %vm841_vm3, %v820_v46 }
 0x7c9   : > { %v822_v9 = vpop.permute.xlu1 %821 }
 0x7ca   : > { %844 = vst.msk [vmem:[%s2640_s18 + $0x8] sm:$0xf] %vm841_vm3, %v822_v9 }
 0x7cb   : > { %1195 = vst.msk [vmem:[%s2640_s18 + $0x8] sm:$0xf] %vm1192_vm4, %v1173_v13 }
 0x7cd   : > { %v824_v21 = vpop.permute.xlu1 %823 }
 0x7ce   : > { %845 = vst.msk [vmem:[%s2640_s18 + $0xc] sm:$0xf] %vm841_vm3, %v824_v21 }
 0x7d1   : > { %v828_v61 = vpop.permute.xlu1 %827 }
 0x7d2   : > { %847 = vst.msk [vmem:[%s2640_s18 + $0x14] sm:$0xf] %vm841_vm3, %v828_v61 }
 0x7d5   : > { %v832_v53 = vpop.permute.xlu1 %831 }
 0x7d6   : > { %849 = vst.msk [vmem:[%s2640_s18 + $0x1c] sm:$0xf] %vm841_vm3, %v832_v53 }
 0x7d9   : > { %v1171_v20 = vpop.permute.xlu1 %1170 }
 0x7da   : > { %1194 = vst.msk [vmem:[%s2640_s18 + $0x4] sm:$0xf] %vm1192_vm4, %v1171_v20 }
 0x7dd   : > { %v1175_v54 = vpop.permute.xlu1 %1174 }
 0x7de   : > { %1196 = vst.msk [vmem:[%s2640_s18 + $0xc] sm:$0xf] %vm1192_vm4, %v1175_v54 }
 0x7e1   : > { %v1179_v12 = vpop.permute.xlu1 %1178 }
 0x7e2   : > { %1198 = vst.msk [vmem:[%s2640_s18 + $0x14] sm:$0xf] %vm1192_vm4, %v1179_v12 }
 0x7e5   : > { %v1183_v59 = vpop.permute.xlu1 %1182 }
 0x7e6   : > { %1200 = vst.msk [vmem:[%s2640_s18 + $0x1c] sm:$0xf] %vm1192_vm4, %v1183_v59 }
 0x7ea   : > { %v1912_v14 = vpop.f32.mrb[24].mxu0 }
 0x7eb   : > { %v1489_v63 = vmul.f32 %v2075_v44, %v1912_v14  ;;  %v1456_v35 = vpop.f32.mrb[25].mxu0 }
 0x7ec   : > { %v1487_v3 = vmul.f32 %v2077_v8, %v1456_v35  ;;  %v1913_v4 = vpop.f32.mrb[26].mxu0 }
 0x7ed   : > { %v1720_v27 = vpack.c.bf16 %v1489_v63, %v1489_v63  ;;  %v1490_v18 = vmul.f32 %v2079_v30, %v1913_v4  ;;  %v1459_v10 = vpop.f32.mrb[27].mxu0 }
 0x7ee   : > { %v1488_v7 = vmul.f32 %v2081_v11, %v1459_v10  ;;  %v1718_v52 = vpack.c.bf16 %v1487_v3, %v1487_v3 }
 0x7ef   : > { %v1721_v60 = vpack.c.bf16 %v1490_v18, %v1490_v18  ;;  %1523 = vrot.lane.b32.xlu0 %v1720_v27, %s2098_s12 }
 0x7f0   : > { %v1719_v23 = vpack.c.bf16 %v1488_v7, %v1488_v7 }
 0x7f1   : > { %1525 = vrot.lane.b32.xlu1 %v1721_v60, %s2098_s12 }
 0x7f3   : > { %1519 = vrot.lane.b32.xlu0 %v1718_v52, %s2098_s12 }
 0x7f4   : > { %v1916_v51 = vpop.f32.mrb[28].mxu0 }
 0x7f5   : > { %v1493_v43 = vmul.f32 %v2083_v31, %v1916_v51  ;;  %v1472_v16 = vpop.f32.mrb[29].mxu0  ;;  %1521 = vrot.lane.b32.xlu1 %v1719_v23, %s2098_s12 }
 0x7f6   : > { %v1491_v6 = vmul.f32 %v2085_v2, %v1472_v16  ;;  %v1917_v15 = vpop.f32.mrb[30].mxu0 }
 0x7f7   : > { %v1494_v5 = vmul.f32 %v2087_v19, %v1917_v15  ;;  %v1475_v39 = vpop.f32.mrb[31].mxu0  ;;  %v1724_v1 = vpack.c.bf16 %v1493_v43, %v1493_v43 }
 0x7f8   : > { %v1722_v42 = vpack.c.bf16 %v1491_v6, %v1491_v6  ;;  %v1492_v50 = vmul.f32 %v2089_v48, %v1475_v39 }
 0x7f9   : > { %v1725_v37 = vpack.c.bf16 %v1494_v5, %v1494_v5 }
 0x7fa   : > { %v1723_v57 = vpack.c.bf16 %v1492_v50, %v1492_v50  ;;  %1527 = vrot.lane.b32.xlu0 %v1722_v42, %s2098_s12 }
 0x7fc   : > { %1529 = vrot.lane.b32.xlu1 %v1723_v57, %s2098_s12 }
 0x7fe   : > { %1531 = vrot.lane.b32.xlu0 %v1724_v1, %s2098_s12 }
 0x800   : > { %1533 = vrot.lane.b32.xlu1 %v1725_v37, %s2098_s12 }
 0x861   : > { %v1524_v38 = vpop.permute.xlu0 %1523 }
 0x862   : > { %1546 = vst.msk [vmem:[%s2640_s18 + $0x8] sm:$0xf] %vm1543_vm5, %v1524_v38 }
 0x863   : > { %v1526_v55 = vpop.permute.xlu1 %1525 }
 0x864   : > { %1547 = vst.msk [vmem:[%s2640_s18 + $0xc] sm:$0xf] %vm1543_vm5, %v1526_v55 }
 0x865   : > { %v1520_v29 = vpop.permute.xlu0 %1519 }
 0x866   : > { %1544 = vst.msk [vmem:[%s2640_s18] sm:$0xf] %vm1543_vm5, %v1520_v29 }
 0x867   : > { %v1522_v0 = vpop.permute.xlu1 %1521 }
 0x868   : > { %1545 = vst.msk [vmem:[%s2640_s18 + $0x4] sm:$0xf] %vm1543_vm5, %v1522_v0 }
 0x86c   : > { %v1528_v56 = vpop.permute.xlu0 %1527 }
 0x86d   : > { %1548 = vst.msk [vmem:[%s2640_s18 + $0x10] sm:$0xf] %vm1543_vm5, %v1528_v56 }
 0x86e   : > { %v1530_v36 = vpop.permute.xlu1 %1529 }
 0x86f   : > { %1549 = vst.msk [vmem:[%s2640_s18 + $0x14] sm:$0xf] %vm1543_vm5, %v1530_v36 }
 0x870   : > { %v1532_v47 = vpop.permute.xlu0 %1531 }
 0x871   : > { %1550 = vst.msk [vmem:[%s2640_s18 + $0x18] sm:$0xf] %vm1543_vm5, %v1532_v47 }
 0x872   : > { %v1534_v33 = vpop.permute.xlu1 %1533 }
 0x873   : > { %1551 = vst.msk [vmem:[%s2640_s18 + $0x1c] sm:$0xf] %vm1543_vm5, %v1534_v33 }
 0x874 PF: > { %s11_s6 = sadd.s32 1, %s2096_s6  }
 0x875   : > { %p8_p4 = scmp.ge.s32.totalorder %s11_s6, 4  }
 0x877   :  { %10 = sbr.rel (!%p8_p4) target bundleno = 1 (0x1), region = 54 }

// kernel: _lambda_.14
= control target key start
LH: loop header
LB: loop body
LE: loop exit
PB: predicated region body
PF: predicated region fallthrough
CT: control target
= control target key end

     0   :  { %s1408_s18 = smov 0   ;;  %s1410_s19 = smov 0   ;;  %s1738_s0 = inlined_call_operand.vmem [shape: f32[128,128], index: 0, kind: input, shape index: {}]   ;;  %s1739_s1 = inlined_call_operand.vmem [shape: bf16[128,384], index: 1, kind: input, shape index: {}]   ;;  %s1740_s2 = inlined_call_operand.vmem [shape: f32[1,384], index: 2, kind: input, shape index: {}]   ;;  %s1741_s3 = inlined_call_operand.vmem [shape: f32[1,128], index: 3, kind: input, shape index: {}]   ;;  %s1742_s4 = inlined_call_operand.vmem [shape: f32[1,128], index: 4, kind: input, shape index: {}]   ;;  %s1743_s5 = inlined_call_operand.vmem [shape: bf16[128,384], index: 5, kind: output, shape index: {}]  }
   0x1   :  { %s1412_s20 = smov 0   ;;  %s1414_s21 = smov 0  }
   0x2   :  { %s1416_s22 = smov 0  }
   0x3 LB: > { %s24_s23 = sadd.s32 1, %s1372_s21  ;;  %s1089_s24 = sadd.s32 4294967295, %s1376_s22   ;;  %s1376_s22 = sphi %s1416_s22, %s15_s22   ;;  %s1372_s21 = sphi %s1414_s21, %s1748_s21   ;;  %s1368_s20 = sphi %s1412_s20, %s1747_s20   ;;  %s1364_s19 = sphi %s1410_s19, %s1746_s19   ;;  %s1360_s18 = sphi %s1408_s18, %s1745_s18  }
   0x4   : > { %p25_p0 = scmp.ge.s32.totalorder %s24_s23, 3  ;;  %p67_p1 = scmp.ne.s32.totalorder %s1364_s19, %s1360_s18 }
   0x5   : > { %p68_p2 = scmp.eq.s32.totalorder %s1376_s22, 0  ;;  %p167_p4 = scmp.eq.s32.totalorder %s1089_s24, 2 }
   0x6   : > { %s1750_s23 = smov (%p25_p0, %s24_s23), 0  ;;  %s60_s26 = sadd.s32 1, %s1364_s19 }
   0x7   : > { %p69_p3 = por %p68_p2, %p67_p1  ;;  %s57_s25 = ssub.s32 %s1372_s21, %s1750_s23 }
   0x8   : > { %p58_p5 = scmp.eq.s32.totalorder %s57_s25, 0  ;;  %p1443_p6 = por %p167_p4, %p67_p1 }
   0x9   : > { %p1093_p7 = scmp.ge.s32.totalorder %s1376_s22, 3 }
   0xa   : > { %s1448_s28 = scalar_select %p58_p5, %s1364_s19, %s60_s26  }
   0xb   : > { %204 = sbr.rel (%p1093_p7) target bundleno = 32 (0x20), region = 28 }
  0x12   : > { %207 = sbr.rel (!%p69_p3) target bundleno = 32 (0x20), region = 32  ;;  %s209_s29 = sand.u32 (%p69_p3), 1, %s1364_s19  }
  0x13   : > { %s1095_s30 = sshll.u32 (%p69_p3), %s1372_s21, 2  ;;  %s1094_s6 = sshll.u32 (%p69_p3), %s209_s29, 6 }
  0x14   : > { %s1456_s9 = scalar_lea.vmem (%p69_p3), %s1739_s1, %s1095_s30  ;;  %s211_s10 = scalar_lea.vmem (%p69_p3), [#allocation3], %s1094_s6 }
  0x15   : > { %v229_v0 = vld [vmem:[%s1456_s9] sm:$0xf] (%p69_p3)  ;;  %v231_v1 = vld [vmem:[%s1456_s9 + $0xc] sm:$0xf] (%p69_p3)  ;;  %v233_v2 = vld [vmem:[%s1456_s9 + $0x18] sm:$0xf] (%p69_p3) }
  0x16   : > { %230 = vst [vmem:[%s211_s10] sm:$0xf] (%p69_p3), %v229_v0  ;;  %232 = vst [vmem:[%s211_s10 + $0x4] sm:$0xf] (%p69_p3), %v231_v1  ;;  %v235_v3 = vld [vmem:[%s1456_s9 + $0x24] sm:$0xf] (%p69_p3) }
  0x17   : > { %v237_v4 = vld [vmem:[%s1456_s9 + $0x30] sm:$0xf] (%p69_p3)  ;;  %234 = vst [vmem:[%s211_s10 + $0x8] sm:$0xf] (%p69_p3), %v233_v2  ;;  %236 = vst [vmem:[%s211_s10 + $0xc] sm:$0xf] (%p69_p3), %v235_v3 }
  0x18   : > { %238 = vst [vmem:[%s211_s10 + $0x10] sm:$0xf] (%p69_p3), %v237_v4  ;;  %v239_v5 = vld [vmem:[%s1456_s9 + $0x3c] sm:$0xf] (%p69_p3)  ;;  %v241_v6 = vld [vmem:[%s1456_s9 + $0x48] sm:$0xf] (%p69_p3) }
  0x19   : > { %v243_v7 = vld [vmem:[%s1456_s9 + $0x54] sm:$0xf]  ;;  %240 = vst [vmem:[%s211_s10 + $0x14] sm:$0xf] %v239_v5  ;;  %242 = vst [vmem:[%s211_s10 + $0x18] sm:$0xf] %v241_v6 }
  0x1a   : > { %244 = vst [vmem:[%s211_s10 + $0x1c] sm:$0xf] %v243_v7  ;;  %v245_v8 = vld [vmem:[%s1456_s9 + $0x60] sm:$0xf]  ;;  %v247_v9 = vld [vmem:[%s1456_s9 + $0x6c] sm:$0xf] }
  0x1b   : > { %v249_v10 = vld [vmem:[%s1456_s9 + $0x78] sm:$0xf]  ;;  %246 = vst [vmem:[%s211_s10 + $0x20] sm:$0xf] %v245_v8  ;;  %248 = vst [vmem:[%s211_s10 + $0x24] sm:$0xf] %v247_v9 }
  0x1c   : > { %250 = vst [vmem:[%s211_s10 + $0x28] sm:$0xf] %v249_v10  ;;  %v251_v11 = vld [vmem:[%s1456_s9 + $0x84] sm:$0xf]  ;;  %v253_v12 = vld [vmem:[%s1456_s9 + $0x90] sm:$0xf] }
  0x1d   : > { %v255_v13 = vld [vmem:[%s1456_s9 + $0x9c] sm:$0xf]  ;;  %252 = vst [vmem:[%s211_s10 + $0x2c] sm:$0xf] %v251_v11  ;;  %254 = vst [vmem:[%s211_s10 + $0x30] sm:$0xf] %v253_v12 }
  0x1e   : > { %256 = vst [vmem:[%s211_s10 + $0x34] sm:$0xf] %v255_v13  ;;  %v257_v14 = vld [vmem:[%s1456_s9 + $0xa8] sm:$0xf]  ;;  %v259_v15 = vld [vmem:[%s1456_s9 + $0xb4] sm:$0xf] }
  0x1f   : > { %258 = vst [vmem:[%s211_s10 + $0x38] sm:$0xf] %v257_v14  ;;  %260 = vst [vmem:[%s211_s10 + $0x3c] sm:$0xf] %v259_v15 }
  0x20 PF: > { %p1096_p8 = scmp.ge.s32.totalorder %s1376_s22, 1  ;;  %p320_p9 = scmp.lt.s32.totalorder %s1376_s22, 4 }
  0x22   : > { %p321_p10 = pnand %p1096_p8, %p320_p9 }
  0x23   : > { %s327_s11 = sand.u32 (!%p321_p10), 1, %s1360_s18   ;;  %p367_p11 = scmp.lt.s32.totalorder (!%p321_p10), %s1368_s20, 2 }
  0x24   : > { %324 = sbr.rel (%p321_p10) target bundleno = 663 (0x297), region = 77  ;;  %s1097_s12 = sshll.u32 (!%p321_p10), %s327_s11, 6 }
  0x25   : > { %s1485_s17 = scalar_lea.vmem (!%p321_p10), [#allocation3], %s1097_s12  ;;  %s1487_s24 = scalar_lea.vmem (!%p321_p10), [#allocation4], %s1097_s12 }
  0x26   : > { %p1099_p12 = scmp.ne.s32.totalorder (!%p321_p10), %s1368_s20, 0 }
  0x2b   : > { %s1479_s13 = scalar_select %p367_p11, %s1368_s20, 2 }
  0x2c   : > { %375 = sbr.rel (%p1099_p12) target bundleno = 391 (0x187), region = 85  ;;  %v376_v16 = vld [vmem:[%s1738_s0] sm:$0xff] (!%p1099_p12)  ;;  %v378_v17 = vld [vmem:[%s1738_s0 + $0x10] sm:$0xff] (!%p1099_p12)  ;;  %v377_v18 = vld [vmem:[%s1738_s0 + $0x8] sm:$0xff] (!%p1099_p12) }
  0x2d   : > { %s369_s16 = scalar_lea.vmem %s1740_s2, %s1479_s13  ;;  %394 = vadd.xlane.f32.xlu0 (!%p1099_p12), %v376_v16  ;;  %398 = vadd.xlane.f32.xlu1 (!%p1099_p12), %v378_v17  ;;  %v379_v19 = vld [vmem:[%s1738_s0 + $0x18] sm:$0xff] (!%p1099_p12)  ;;  %v380_v20 = vld [vmem:[%s1738_s0 + $0x20] sm:$0xff] (!%p1099_p12)  ;;  %v381_v21 = vld [vmem:[%s1738_s0 + $0x28] sm:$0xff] (!%p1099_p12) }
  0x2e   : > { %v382_v22 = vld [vmem:[%s1738_s0 + $0x30] sm:$0xff] (!%p1099_p12)  ;;  %v383_v23 = vld [vmem:[%s1738_s0 + $0x38] sm:$0xff] (!%p1099_p12)  ;;  %v384_v24 = vld [vmem:[%s1738_s0 + $0x40] sm:$0xff] (!%p1099_p12) }
  0x2f   : > { %v385_v25 = vld [vmem:[%s1738_s0 + $0x48] sm:$0xff] (!%p1099_p12)  ;;  %v386_v26 = vld [vmem:[%s1738_s0 + $0x50] sm:$0xff] (!%p1099_p12)  ;;  %v1526_v27 = vld [vmem:[%s1738_s0 + $0x58] sm:$0xff] (!%p1099_p12) }
  0x30   : > { %v1532_v28 = vld [vmem:[%s1738_s0 + $0x60] sm:$0xff] (!%p1099_p12)  ;;  %v1537_v29 = vld [vmem:[%s1738_s0 + $0x68] sm:$0xff] (!%p1099_p12)  ;;  %v1544_v30 = vld [vmem:[%s1738_s0 + $0x70] sm:$0xff] (!%p1099_p12) }
  0x31   : > { %396 = vadd.xlane.f32.xlu0 (!%p1099_p12), %v377_v18  ;;  %400 = vadd.xlane.f32.xlu1 (!%p1099_p12), %v379_v19  ;;  %v1549_v31 = vld [vmem:[%s1738_s0 + $0x78] sm:$0xff] (!%p1099_p12) }
  0x35   : > { %402 = vadd.xlane.f32.xlu0 %v380_v20  ;;  %404 = vadd.xlane.f32.xlu1 %v381_v21 }
  0x39   : > { %406 = vadd.xlane.f32.xlu0 %v382_v22  ;;  %408 = vadd.xlane.f32.xlu1 %v383_v23 }
  0x3d   : > { %410 = vadd.xlane.f32.xlu0 %v384_v24  ;;  %412 = vadd.xlane.f32.xlu1 %v385_v25 }
  0x41   : > { %414 = vadd.xlane.f32.xlu0 %v386_v26  ;;  %416 = vadd.xlane.f32.xlu1 %v1526_v27 }
  0x45   : > { %418 = vadd.xlane.f32.xlu0 %v1532_v28  ;;  %420 = vadd.xlane.f32.xlu1 %v1537_v29 }
  0x49   : > { %422 = vadd.xlane.f32.xlu0 %v1544_v30  ;;  %424 = vadd.xlane.f32.xlu1 %v1549_v31 }
  0xba   : > { %v395_v32 = vpop.xlane.xlu0 %394  ;;  %v399_v33 = vpop.xlane.xlu1 %398 }
  0xbb   : > { %v427_v34 = vmul.f32 0.0078125, %v395_v32  ;;  %v429_v35 = vmul.f32 0.0078125, %v399_v33 }
  0xbd   : > { %v1553_v36 = vsub.f32 %v376_v16, %v427_v34  ;;  %v1555_v37 = vsub.f32 %v378_v17, %v429_v35 }
  0xbe   : > { %v397_v38 = vpop.xlane.xlu0 %396  ;;  %v401_v39 = vpop.xlane.xlu1 %400 }
  0xbf   : > { %v428_v40 = vmul.f32 0.0078125, %v397_v38  ;;  %v459_v41 = vmul.f32 %v1553_v36, %v1553_v36  ;;  %v430_v42 = vmul.f32 0.0078125, %v401_v39  ;;  %v461_v45 = vmul.f32 %v1555_v37, %v1555_v37 }
  0xc1   : > { %v1559_v43 = vsub.f32 %v377_v18, %v428_v40  ;;  %475 = vadd.xlane.f32.xlu0 %v459_v41  ;;  %v1561_v44 = vsub.f32 %v379_v19, %v430_v42 }
  0xc2   : > { %v403_v46 = vpop.xlane.xlu0 %402  ;;  %v405_v47 = vpop.xlane.xlu1 %404 }
  0xc3   : > { %v431_v48 = vmul.f32 0.0078125, %v403_v46  ;;  %v460_v49 = vmul.f32 %v1559_v43, %v1559_v43  ;;  %v432_v50 = vmul.f32 0.0078125, %v405_v47  ;;  %v462_v53 = vmul.f32 %v1561_v44, %v1561_v44 }
  0xc5   : > { %v1567_v51 = vsub.f32 %v380_v20, %v431_v48  ;;  %479 = vadd.xlane.f32.xlu0 %v461_v45  ;;  %477 = vadd.xlane.f32.xlu1 %v460_v49  ;;  %v1569_v52 = vsub.f32 %v381_v21, %v432_v50 }
  0xc6   : > { %v407_v54 = vpop.xlane.xlu0 %406  ;;  %v409_v55 = vpop.xlane.xlu1 %408 }
  0xc7   : > { %v433_v56 = vmul.f32 0.0078125, %v407_v54  ;;  %v463_v57 = vmul.f32 %v1567_v51, %v1567_v51  ;;  %v434_v58 = vmul.f32 0.0078125, %v409_v55  ;;  %v464_v61 = vmul.f32 %v1569_v52, %v1569_v52 }
  0xc9   : > { %v1575_v59 = vsub.f32 %v382_v22, %v433_v56  ;;  %481 = vadd.xlane.f32.xlu1 %v462_v53  ;;  %483 = vadd.xlane.f32.xlu0 %v463_v57  ;;  %v1577_v60 = vsub.f32 %v383_v23, %v434_v58 }
  0xca   : > { %v411_v62 = vpop.xlane.xlu0 %410  ;;  %v413_v63 = vpop.xlane.xlu1 %412 }
  0xcb   : > { %v435_v0 = vmul.f32 0.0078125, %v411_v62  ;;  %v465_v1 = vmul.f32 %v1575_v59, %v1575_v59  ;;  %v436_v2 = vmul.f32 0.0078125, %v413_v63  ;;  %v466_v5 = vmul.f32 %v1577_v60, %v1577_v60 }
  0xcd   : > { %v1583_v3 = vsub.f32 %v384_v24, %v435_v0  ;;  %485 = vadd.xlane.f32.xlu1 %v464_v61  ;;  %487 = vadd.xlane.f32.xlu0 %v465_v1  ;;  %v1585_v4 = vsub.f32 %v385_v25, %v436_v2  ;;  %v1626_v1 = vld [vmem:[%s1741_s3] ss:$0 sm:$0xff] }
  0xce   : > { %v415_v6 = vpop.xlane.xlu0 %414  ;;  %v417_v7 = vpop.xlane.xlu1 %416 }
  0xcf   : > { %v437_v8 = vmul.f32 0.0078125, %v415_v6  ;;  %v467_v9 = vmul.f32 %v1583_v3, %v1583_v3  ;;  %v438_v10 = vmul.f32 0.0078125, %v417_v7  ;;  %v468_v13 = vmul.f32 %v1585_v4, %v1585_v4 }
  0xd1   : > { %v1591_v11 = vsub.f32 %v386_v26, %v437_v8  ;;  %489 = vadd.xlane.f32.xlu1 %v466_v5  ;;  %491 = vadd.xlane.f32.xlu0 %v467_v9  ;;  %v1594_v12 = vsub.f32 %v1526_v27, %v438_v10 }
  0xd2   : > { %v419_v14 = vpop.xlane.xlu0 %418  ;;  %v421_v15 = vpop.xlane.xlu1 %420 }
  0xd3   : > { %v439_v16 = vmul.f32 0.0078125, %v419_v14  ;;  %v469_v17 = vmul.f32 %v1591_v11, %v1591_v11  ;;  %v440_v18 = vmul.f32 0.0078125, %v421_v15  ;;  %v470_v21 = vmul.f32 %v1594_v12, %v1594_v12  ;;  %v1633_v15 = vld [vmem:[%s1742_s4] ss:$0 sm:$0xff] }
  0xd5   : > { %v1601_v19 = vsub.f32 %v1532_v28, %v439_v16  ;;  %493 = vadd.xlane.f32.xlu1 %v468_v13  ;;  %495 = vadd.xlane.f32.xlu0 %v469_v17  ;;  %v1604_v20 = vsub.f32 %v1537_v29, %v440_v18 }
  0xd6   : > { %v423_v22 = vpop.xlane.xlu0 %422  ;;  %v425_v23 = vpop.xlane.xlu1 %424 }
  0xd7   : > { %v441_v24 = vmul.f32 0.0078125, %v423_v22  ;;  %v471_v25 = vmul.f32 %v1601_v19, %v1601_v19  ;;  %v442_v26 = vmul.f32 0.0078125, %v425_v23  ;;  %v472_v29 = vmul.f32 %v1604_v20, %v1604_v20 }
  0xd9   : > { %v1611_v27 = vsub.f32 %v1544_v30, %v441_v24  ;;  %497 = vadd.xlane.f32.xlu1 %v470_v21  ;;  %499 = vadd.xlane.f32.xlu0 %v471_v25  ;;  %v1614_v28 = vsub.f32 %v1549_v31, %v442_v26 }
  0xdb   : > { %v473_v32 = vmul.f32 %v1611_v27, %v1611_v27  ;;  %v474_v33 = vmul.f32 %v1614_v28, %v1614_v28 }
  0xdd   : > { %501 = vadd.xlane.f32.xlu1 %v472_v29  ;;  %503 = vadd.xlane.f32.xlu0 %v473_v32 }
  0xe1   : > { %505 = vadd.xlane.f32.xlu1 %v474_v33 }
 0x14e   : > { %v476_v34 = vpop.xlane.xlu0 %475 }
 0x14f   : > { %v507_v30 = vmul.f32 0.0078125, %v476_v34 }
 0x151   : > { %v523_v35 = vadd.f32 1e-06, %v507_v30 }
 0x152   : > { %v478_v38 = vpop.xlane.xlu1 %477  ;;  %v480_v39 = vpop.xlane.xlu0 %479 }
 0x153   : > { %1298 = vrsqrt.f32 %v523_v35  ;;  %v508_v31 = vmul.f32 0.0078125, %v478_v38  ;;  %v509_v40 = vmul.f32 0.0078125, %v480_v39 }
 0x155   : > { %v524_v41 = vadd.f32 1e-06, %v508_v31  ;;  %v525_v42 = vadd.f32 1e-06, %v509_v40 }
 0x156   : > { %v482_v45 = vpop.xlane.xlu1 %481  ;;  %v484_v46 = vpop.xlane.xlu0 %483 }
 0x157   : > { %1300 = vrsqrt.f32 %v524_v41  ;;  %v510_v47 = vmul.f32 0.0078125, %v482_v45  ;;  %v511_v48 = vmul.f32 0.0078125, %v484_v46 }
 0x158   : > { %1302 = vrsqrt.f32 %v525_v42 }
 0x159   : > { %v526_v49 = vadd.f32 1e-06, %v510_v47  ;;  %v527_v50 = vadd.f32 1e-06, %v511_v48 }
 0x15a   : > { %v486_v53 = vpop.xlane.xlu1 %485  ;;  %v488_v54 = vpop.xlane.xlu0 %487 }
 0x15b   : > { %1304 = vrsqrt.f32 %v526_v49  ;;  %v512_v55 = vmul.f32 0.0078125, %v486_v53  ;;  %v513_v56 = vmul.f32 0.0078125, %v488_v54 }
 0x15c   : > { %1306 = vrsqrt.f32 %v527_v50 }
 0x15d   : > { %v1299_v57 = vpop.eup %1298  ;;  %v528_v58 = vadd.f32 1e-06, %v512_v55  ;;  %v529_v61 = vadd.f32 1e-06, %v513_v56 }
 0x15e   : > { %v555_v62 = vmul.f32 %v1299_v57, %v1553_v36  ;;  %v490_v63 = vpop.xlane.xlu1 %489  ;;  %v492_v0 = vpop.xlane.xlu0 %491 }
 0x15f   : > { %1308 = vrsqrt.f32 %v528_v58  ;;  %v514_v2 = vmul.f32 0.0078125, %v490_v63  ;;  %v515_v5 = vmul.f32 0.0078125, %v492_v0 }
 0x160   : > { %1310 = vrsqrt.f32 %v529_v61  ;;  %v577_v10 = vmul.f32 %v1626_v1, %v555_v62 }
 0x161   : > { %v1301_v6 = vpop.eup %1300  ;;  %v530_v7 = vadd.f32 1e-06, %v514_v2  ;;  %v531_v8 = vadd.f32 1e-06, %v515_v5 }
 0x162   : > { %v1303_v9 = vpop.eup %1302  ;;  %v556_v13 = vmul.f32 %v1301_v6, %v1559_v43  ;;  %v494_v36 = vpop.xlane.xlu1 %493  ;;  %v599_v43 = vadd.f32 %v1633_v15, %v577_v10 }
 0x163   : > { %v496_v14 = vpop.xlane.xlu0 %495  ;;  %v557_v16 = vmul.f32 %v1303_v9, %v1555_v37  ;;  %1312 = vrsqrt.f32 %v530_v7  ;;  %v516_v17 = vmul.f32 0.0078125, %v494_v36 }
 0x164   : > { %v517_v18 = vmul.f32 0.0078125, %v496_v14  ;;  %v578_v21 = vmul.f32 %v1626_v1, %v556_v13  ;;  %1314 = vrsqrt.f32 %v531_v8 }
 0x165   : > { %v1305_v22 = vpop.eup %1304  ;;  %v532_v23 = vadd.f32 1e-06, %v516_v17  ;;  %v579_v29 = vmul.f32 %v1626_v1, %v557_v16 }
 0x166   : > { %v533_v24 = vadd.f32 1e-06, %v517_v18  ;;  %v1307_v25 = vpop.eup %1306  ;;  %v600_v26 = vadd.f32 %v1633_v15, %v578_v21  ;;  %v558_v32 = vmul.f32 %v1305_v22, %v1561_v44  ;;  %v498_v33 = vpop.xlane.xlu1 %497 }
 0x167   : > { %v500_v37 = vpop.xlane.xlu0 %499  ;;  %v559_v34 = vmul.f32 %v1307_v25, %v1567_v51  ;;  %1316 = vrsqrt.f32 %v532_v23  ;;  %v518_v30 = vmul.f32 0.0078125, %v498_v33  ;;  %v601_v45 = vadd.f32 %v1633_v15, %v579_v29 }
 0x168   : > { %v615_v35 = vpack.c.bf16 %v600_v26, %v599_v43  ;;  %v580_v38 = vmul.f32 %v1626_v1, %v558_v32  ;;  %1318 = vrsqrt.f32 %v533_v24  ;;  %v519_v39 = vmul.f32 0.0078125, %v500_v37 }
 0x169   : > { %v1309_v31 = vpop.eup %1308  ;;  %v581_v40 = vmul.f32 %v1626_v1, %v559_v34  ;;  %v534_v41 = vadd.f32 1e-06, %v518_v30 }
 0x16a   : > { %v1311_v42 = vpop.eup %1310  ;;  %623 = vst [vmem:[#allocation2] sm:$0xff] %v615_v35  ;;  %v602_v44 = vadd.f32 %v1633_v15, %v580_v38  ;;  %v560_v46 = vmul.f32 %v1309_v31, %v1569_v52  ;;  %v535_v51 = vadd.f32 1e-06, %v519_v39  ;;  %v502_v47 = vpop.xlane.xlu1 %501 }
 0x16b   : > { %v504_v48 = vpop.xlane.xlu0 %503  ;;  %v561_v49 = vmul.f32 %v1311_v42, %v1575_v59  ;;  %1320 = vrsqrt.f32 %v534_v41  ;;  %v520_v50 = vmul.f32 0.0078125, %v502_v47  ;;  %v603_v57 = vadd.f32 %v1633_v15, %v581_v40 }
 0x16c   : > { %v616_v53 = vpack.c.bf16 %v602_v44, %v601_v45  ;;  %v582_v54 = vmul.f32 %v1626_v1, %v560_v46  ;;  %1322 = vrsqrt.f32 %v535_v51  ;;  %v521_v55 = vmul.f32 0.0078125, %v504_v48 }
 0x16d   : > { %v1313_v56 = vpop.eup %1312  ;;  %v536_v58 = vadd.f32 1e-06, %v520_v50  ;;  %v583_v62 = vmul.f32 %v1626_v1, %v561_v49 }
 0x16e   : > { %v1315_v61 = vpop.eup %1314  ;;  %624 = vst [vmem:[#allocation2 + $0x8] sm:$0xff] %v616_v53  ;;  %v604_v52 = vadd.f32 %v1633_v15, %v582_v54  ;;  %v562_v63 = vmul.f32 %v1313_v56, %v1577_v60  ;;  %v537_v59 = vadd.f32 1e-06, %v521_v55  ;;  %v506_v0 = vpop.xlane.xlu1 %505 }
 0x16f   : > { %v563_v2 = vmul.f32 %v1315_v61, %v1583_v3  ;;  %1324 = vrsqrt.f32 %v536_v58  ;;  %v522_v5 = vmul.f32 0.0078125, %v506_v0  ;;  %v605_v13 = vadd.f32 %v1633_v15, %v583_v62 }
 0x170   : > { %v617_v6 = vpack.c.bf16 %v604_v52, %v603_v57  ;;  %v584_v7 = vmul.f32 %v1626_v1, %v562_v63  ;;  %1326 = vrsqrt.f32 %v537_v59 }
 0x171   : > { %v1317_v8 = vpop.eup %1316  ;;  %v538_v9 = vadd.f32 1e-06, %v522_v5  ;;  %v585_v60 = vmul.f32 %v1626_v1, %v563_v2 }
 0x172   : > { %v1319_v10 = vpop.eup %1318  ;;  %625 = vst [vmem:[#allocation2 + $0x10] sm:$0xff] %v617_v6  ;;  %v606_v36 = vadd.f32 %v1633_v15, %v584_v7  ;;  %v564_v14 = vmul.f32 %v1317_v8, %v1585_v4 }
 0x173   : > { %v565_v3 = vmul.f32 %v1319_v10, %v1591_v11  ;;  %1328 = vrsqrt.f32 %v538_v9  ;;  %v607_v22 = vadd.f32 %v1633_v15, %v585_v60 }
 0x174   : > { %v618_v16 = vpack.c.bf16 %v606_v36, %v605_v13  ;;  %v586_v17 = vmul.f32 %v1626_v1, %v564_v14 }
 0x175   : > { %v1321_v18 = vpop.eup %1320  ;;  %v587_v24 = vmul.f32 %v1626_v1, %v565_v3 }
 0x176   : > { %v1323_v21 = vpop.eup %1322  ;;  %626 = vst [vmem:[#allocation2 + $0x18] sm:$0xff] %v618_v16  ;;  %v608_v23 = vadd.f32 %v1633_v15, %v586_v17  ;;  %v566_v25 = vmul.f32 %v1321_v18, %v1594_v12 }
 0x177   : > { %v567_v43 = vmul.f32 %v1323_v21, %v1601_v19  ;;  %v609_v32 = vadd.f32 %v1633_v15, %v587_v24 }
 0x178   : > { %v619_v4 = vpack.c.bf16 %v608_v23, %v607_v22  ;;  %v588_v11 = vmul.f32 %v1626_v1, %v566_v25 }
 0x179   : > { %v1325_v26 = vpop.eup %1324  ;;  %v589_v37 = vmul.f32 %v1626_v1, %v567_v43 }
 0x17a   : > { %v1327_v29 = vpop.eup %1326  ;;  %627 = vst [vmem:[#allocation2 + $0x20] sm:$0xff] %v619_v4  ;;  %v610_v33 = vadd.f32 %v1633_v15, %v588_v11  ;;  %v568_v34 = vmul.f32 %v1325_v26, %v1604_v20 }
 0x17b   : > { %v569_v30 = vmul.f32 %v1327_v29, %v1611_v27  ;;  %v611_v38 = vadd.f32 %v1633_v15, %v589_v37 }
 0x17c   : > { %v620_v35 = vpack.c.bf16 %v610_v33, %v609_v32  ;;  %v590_v12 = vmul.f32 %v1626_v1, %v568_v34 }
 0x17d   : > { %v1329_v19 = vpop.eup %1328  ;;  %v591_v31 = vmul.f32 %v1626_v1, %v569_v30 }
 0x17e   : > { %628 = vst [vmem:[#allocation2 + $0x28] sm:$0xff] %v620_v35  ;;  %v612_v39 = vadd.f32 %v1633_v15, %v590_v12  ;;  %v570_v40 = vmul.f32 %v1329_v19, %v1614_v28 }
 0x17f   : > { %v613_v20 = vadd.f32 %v1633_v15, %v591_v31 }
 0x180   : > { %v621_v41 = vpack.c.bf16 %v612_v39, %v611_v38  ;;  %v592_v42 = vmul.f32 %v1626_v1, %v570_v40 }
 0x182   : > { %629 = vst [vmem:[#allocation2 + $0x30] sm:$0xff] %v621_v41  ;;  %v614_v27 = vadd.f32 %v1633_v15, %v592_v42 }
 0x184   : > { %v622_v45 = vpack.c.bf16 %v614_v27, %v613_v20 }
 0x186   : > { %630 = vst [vmem:[#allocation2 + $0x38] sm:$0xff] %v622_v45 }
 0x187 PF: > { %v1330_v44 = vld [vmem:[%s1485_s17] sm:$0xff]   ;;  %v1331_v46 = vld [vmem:[%s1485_s17 + $0x8] sm:$0xff]   ;;  %v1332_v28 = vld [vmem:[%s1485_s17 + $0x10] sm:$0xff]   ;;  %s1128_s13 = sshll.u32 (%p1443_p6), %s1368_s20, 2 }
 0x188   : > { %1210 = vmatprep.subr.bf16.mxu0 %v1330_v44  ;;  %1242 = vmatprep.subr.bf16.mxu1 %v1330_v44  ;;  %v1333_v1 = vld [vmem:[%s1485_s17 + $0x18] sm:$0xff]   ;;  %v631_v15 = vld [vmem:[#allocation2] sm:$0xff]  ;;  %v1335_v48 = vld [vmem:[%s1485_s17 + $0x28] sm:$0xff]   ;;  %s898_s11 = scalar_lea.vmem (%p1443_p6), %s1743_s5, %s1128_s13 }
 0x189   : > { %1211 = vmatpush3.bf16.msra.mxu0 %v1330_v44  ;;  %1250 = vmatpush3.bf16.msra.mxu1 %v1330_v44  ;;  %v635_v51 = vld [vmem:[#allocation2 + $0x20] sm:$0xff]  ;;  %v1336_v49 = vld [vmem:[%s1485_s17 + $0x30] sm:$0xff]   ;;  %v1337_v50 = vld [vmem:[%s1485_s17 + $0x38] sm:$0xff]  }
 0x18a   : > { %1212 = vmatprep.subr.bf16.mxu0 %v1331_v46  ;;  %1243 = vmatprep.subr.bf16.mxu1 %v1331_v46  ;;  %v1334_v47 = vld [vmem:[%s1485_s17 + $0x20] sm:$0xff]   ;;  %v632_v53 = vld [vmem:[#allocation2 + $0x8] sm:$0xff]  ;;  %v633_v55 = vld [vmem:[#allocation2 + $0x10] sm:$0xff] }
 0x18b   : > { %1226 = vmatprep.mubr.bf16.mxu0 %v631_v15  ;;  %1234 = vmatprep.mubr.bf16.mxu1 %v635_v51  ;;  %v636_v54 = vld [vmem:[#allocation2 + $0x28] sm:$0xff]  ;;  %v637_v56 = vld [vmem:[#allocation2 + $0x30] sm:$0xff]  ;;  %v634_v57 = vld [vmem:[#allocation2 + $0x18] sm:$0xff] }
 0x18c   : > { %v1102_v52 = vld [vmem:[%s369_s16] ss:$0 sm:$0xff] }
 0x18d   : > { %1213 = vmatpush3.bf16.msra.mxu0 %v1331_v46  ;;  %1251 = vmatpush3.bf16.msra.mxu1 %v1331_v46  ;;  %v638_v58 = vld [vmem:[#allocation2 + $0x38] sm:$0xff] }
 0x18e   : > { %1214 = vmatprep.subr.bf16.mxu0 %v1332_v28  ;;  %1244 = vmatprep.subr.bf16.mxu1 %v1332_v28 }
 0x191   : > { %1215 = vmatpush3.bf16.msra.mxu0 %v1332_v28  ;;  %1252 = vmatpush3.bf16.msra.mxu1 %v1332_v28 }
 0x192   : > { %1216 = vmatprep.subr.bf16.mxu0 %v1333_v1  ;;  %1245 = vmatprep.subr.bf16.mxu1 %v1333_v1 }
 0x195   : > { %1217 = vmatpush3.bf16.msra.mxu0 %v1333_v1  ;;  %1253 = vmatpush3.bf16.msra.mxu1 %v1333_v1 }
 0x196   : > { %1218 = vmatprep.subr.bf16.mxu0 %v1334_v47  ;;  %1246 = vmatprep.subr.bf16.mxu1 %v1334_v47 }
 0x199   : > { %1219 = vmatpush3.bf16.msra.mxu0 %v1334_v47  ;;  %1254 = vmatpush3.bf16.msra.mxu1 %v1334_v47 }
 0x19a   : > { %1220 = vmatprep.subr.bf16.mxu0 %v1335_v48  ;;  %1247 = vmatprep.subr.bf16.mxu1 %v1335_v48 }
 0x19d   : > { %1221 = vmatpush3.bf16.msra.mxu0 %v1335_v48  ;;  %1255 = vmatpush3.bf16.msra.mxu1 %v1335_v48 }
 0x19e   : > { %1222 = vmatprep.subr.bf16.mxu0 %v1336_v49  ;;  %1248 = vmatprep.subr.bf16.mxu1 %v1336_v49 }
 0x1a1   : > { %1223 = vmatpush3.bf16.msra.mxu0 %v1336_v49  ;;  %1256 = vmatpush3.bf16.msra.mxu1 %v1336_v49 }
 0x1a2   : > { %1224 = vmatprep.subr.bf16.mxu0 %v1337_v50  ;;  %1249 = vmatprep.subr.bf16.mxu1 %v1337_v50 }
 0x1a5   : > { %1225 = vmatpush3.bf16.msra.mxu0 %v1337_v50  ;;  %1257 = vmatpush3.bf16.msra.mxu1 %v1337_v50 }
 0x1a8   : > { %1227 = vmatmul.mubr.bf16.vlgmr.msra.gmra.mrb[0].mxu0 %v632_v53  ;;  %1235 = vmatmul.mubr.bf16.vlgmr.msra.gmra.mrb[0].mxu1 %v636_v54 }
 0x1a9   : > { %1230 = vmatprep.mubr.bf16.mxu0 %v633_v55  ;;  %1238 = vmatprep.mubr.bf16.mxu1 %v637_v56 }
 0x1b0   : > { %1231 = vmatmul.mubr.bf16.gmra.mrb[4].mxu0 %v634_v57  ;;  %1239 = vmatmul.mubr.bf16.gmra.mrb[4].mxu1 %v638_v58 }
 0x27b   : > { %v1228_v61 = vpop.f32.mrb[0].mxu0  ;;  %v1236_v62 = vpop.f32.mrb[0].mxu1 }
 0x27c   : > { %v744_v63 = vpop.f32.mrb[1].mxu0  ;;  %v776_v59 = vpop.f32.mrb[1].mxu1  ;;  %v753_v5 = vadd.f32 %v1228_v61, %v1102_v52  ;;  %v785_v6 = vadd.f32 %v1236_v62, %v1102_v52 }
 0x27d   : > { %v1229_v0 = vpop.f32.mrb[2].mxu0  ;;  %v1237_v2 = vpop.f32.mrb[2].mxu1  ;;  %v745_v13 = vadd.f32 %v1102_v52, %v744_v63  ;;  %v777_v36 = vadd.f32 %v1102_v52, %v776_v59 }
 0x27e   : > { %v756_v7 = vadd.f32 %v1229_v0, %v1102_v52  ;;  %v788_v8 = vadd.f32 %v1237_v2, %v1102_v52  ;;  %v747_v9 = vpop.f32.mrb[3].mxu0  ;;  %v779_v10 = vpop.f32.mrb[3].mxu1 }
 0x27f   : > { %v748_v60 = vadd.f32 %v1102_v52, %v747_v9  ;;  %v780_v14 = vadd.f32 %v1102_v52, %v779_v10 }
 0x280   : > { %v1155_v3 = vpack.c.bf16 %v756_v7, %v753_v5  ;;  %v1175_v16 = vpack.c.bf16 %v788_v8, %v785_v6 }
 0x281   : > { %v1150_v17 = vpack.c.bf16 %v748_v60, %v745_v13  ;;  %v1170_v18 = vpack.c.bf16 %v780_v14, %v777_v36 }
 0x282   : > { %1187 = vst [vmem:[%s1487_s24 + $0x8] sm:$0xff] %v1155_v3   ;;  %1191 = vst [vmem:[%s1487_s24 + $0x28] sm:$0xff] %v1175_v16  }
 0x283   : > { %1151 = vst [vmem:[%s1487_s24] sm:$0xff] %v1150_v17   ;;  %1190 = vst [vmem:[%s1487_s24 + $0x20] sm:$0xff] %v1170_v18   ;;  %v1232_v21 = vpop.f32.mrb[4].mxu0  ;;  %v1240_v22 = vpop.f32.mrb[4].mxu1 }
 0x284   : > { %v760_v23 = vpop.f32.mrb[5].mxu0  ;;  %v792_v24 = vpop.f32.mrb[5].mxu1  ;;  %v769_v4 = vadd.f32 %v1232_v21, %v1102_v52  ;;  %v801_v11 = vadd.f32 %v1240_v22, %v1102_v52 }
 0x285   : > { %v1233_v25 = vpop.f32.mrb[6].mxu0  ;;  %v1241_v43 = vpop.f32.mrb[6].mxu1  ;;  %v761_v37 = vadd.f32 %v1102_v52, %v760_v23  ;;  %v793_v34 = vadd.f32 %v1102_v52, %v792_v24  ;;  %893 = sbr.rel (!%p1443_p6) target bundleno = 663 (0x297), region = 89 }
 0x286   : > { %v772_v26 = vadd.f32 %v1233_v25, %v1102_v52  ;;  %v804_v29 = vadd.f32 %v1241_v43, %v1102_v52  ;;  %v763_v32 = vpop.f32.mrb[7].mxu0  ;;  %v795_v33 = vpop.f32.mrb[7].mxu1 }
 0x287   : > { %v764_v30 = vadd.f32 %v1102_v52, %v763_v32  ;;  %v796_v35 = vadd.f32 %v1102_v52, %v795_v33 }
 0x288   : > { %v1165_v12 = vpack.c.bf16 %v772_v26, %v769_v4  ;;  %v1185_v19 = vpack.c.bf16 %v804_v29, %v801_v11 }
 0x289   : > { %v1160_v38 = vpack.c.bf16 %v764_v30, %v761_v37  ;;  %v1180_v39 = vpack.c.bf16 %v796_v35, %v793_v34  ;;  %v918_v41 = vld [vmem:[%s1487_s24 + $0x8] sm:$0xf] (%p1443_p6)  ;;  %v920_v42 = vld [vmem:[%s1487_s24 + $0xc] sm:$0xf] (%p1443_p6) }
 0x28a   : > { %1189 = vst [vmem:[%s1487_s24 + $0x18] sm:$0xff] %v1165_v12   ;;  %1193 = vst [vmem:[%s1487_s24 + $0x38] sm:$0xff] %v1185_v19   ;;  %v914_v31 = vld [vmem:[%s1487_s24] sm:$0xf] (%p1443_p6)  ;;  %v916_v40 = vld [vmem:[%s1487_s24 + $0x4] sm:$0xf] (%p1443_p6) }
 0x28b   : > { %1188 = vst [vmem:[%s1487_s24 + $0x10] sm:$0xff] %v1160_v38   ;;  %1192 = vst [vmem:[%s1487_s24 + $0x30] sm:$0xff] %v1180_v39   ;;  %v930_v46 = vld [vmem:[%s1487_s24 + $0x20] sm:$0xf] (%p1443_p6)  ;;  %v932_v28 = vld [vmem:[%s1487_s24 + $0x24] sm:$0xf] (%p1443_p6) }
 0x28c   : > { %915 = vst [vmem:[%s898_s11] sm:$0xf] %v914_v31  ;;  %917 = vst [vmem:[%s898_s11 + $0xc] sm:$0xf] %v916_v40  ;;  %v934_v1 = vld [vmem:[%s1487_s24 + $0x28] sm:$0xf] }
 0x28d   : > { %919 = vst [vmem:[%s898_s11 + $0x18] sm:$0xf] %v918_v41  ;;  %921 = vst [vmem:[%s898_s11 + $0x24] sm:$0xf] %v920_v42  ;;  %v936_v15 = vld [vmem:[%s1487_s24 + $0x2c] sm:$0xf] }
 0x28e   : > { %931 = vst [vmem:[%s898_s11 + $0x60] sm:$0xf] %v930_v46  ;;  %933 = vst [vmem:[%s898_s11 + $0x6c] sm:$0xf] %v932_v28 }
 0x28f   : > { %935 = vst [vmem:[%s898_s11 + $0x78] sm:$0xf] %v934_v1  ;;  %937 = vst [vmem:[%s898_s11 + $0x84] sm:$0xf] %v936_v15 }
 0x291   : > { %v926_v45 = vld [vmem:[%s1487_s24 + $0x18] sm:$0xf]  ;;  %v928_v44 = vld [vmem:[%s1487_s24 + $0x1c] sm:$0xf] }
 0x292   : > { %v922_v20 = vld [vmem:[%s1487_s24 + $0x10] sm:$0xf]  ;;  %v924_v27 = vld [vmem:[%s1487_s24 + $0x14] sm:$0xf]  ;;  %927 = vst [vmem:[%s898_s11 + $0x48] sm:$0xf] %v926_v45 }
 0x293   : > { %923 = vst [vmem:[%s898_s11 + $0x30] sm:$0xf] %v922_v20  ;;  %925 = vst [vmem:[%s898_s11 + $0x3c] sm:$0xf] %v924_v27  ;;  %v938_v51 = vld [vmem:[%s1487_s24 + $0x30] sm:$0xf] }
 0x294   : > { %929 = vst [vmem:[%s898_s11 + $0x54] sm:$0xf] %v928_v44  ;;  %v940_v47 = vld [vmem:[%s1487_s24 + $0x34] sm:$0xf]  ;;  %939 = vst [vmem:[%s898_s11 + $0x90] sm:$0xf] %v938_v51 }
 0x295   : > { %941 = vst [vmem:[%s898_s11 + $0x9c] sm:$0xf] %v940_v47  ;;  %v942_v48 = vld [vmem:[%s1487_s24 + $0x38] sm:$0xf]  ;;  %v944_v49 = vld [vmem:[%s1487_s24 + $0x3c] sm:$0xf] }
 0x296   : > { %943 = vst [vmem:[%s898_s11 + $0xa8] sm:$0xf] %v942_v48  ;;  %945 = vst [vmem:[%s898_s11 + $0xb4] sm:$0xf] %v944_v49 }
 0x297 PF: > { %s15_s22 = sadd.s32 1, %s1376_s22   ;;  %s1745_s18 = smov %s1364_s19 }
 0x298   : > { %p12_p13 = scmp.ge.s32.totalorder %s15_s22, 5   ;;  %s1746_s19 = smov %s1448_s28 }
 0x299   : > { %s1747_s20 = smov %s1372_s21  ;;  %s1748_s21 = smov %s1750_s23 }
 0x29a   :  { %14 = sbr.rel (!%p12_p13) target bundleno = 3 (0x3), region = 167 }

// kernel: _lambda_.16
= control target key start
LH: loop header
LB: loop body
LE: loop exit
PB: predicated region body
PF: predicated region fallthrough
CT: control target
= control target key end

     0   :  { %s589_s1 = inlined_call_operand.vmem [shape: bf16[128,128], index: 1, kind: input, shape index: {}]   ;;  %s590_s0 = inlined_call_operand.vmem [shape: bf16[128,128], index: 0, kind: input, shape index: {}]   ;;  %s591_s2 = inlined_call_operand.vmem [shape: f32[1,128], index: 2, kind: input, shape index: {}]   ;;  %s592_s3 = inlined_call_operand.vmem [shape: f32[128,128], index: 3, kind: input, shape index: {}]   ;;  %s593_s4 = inlined_call_operand.vmem [shape: f32[128,128], index: 4, kind: output, shape index: {}]  }
   0x1   :  { %v383_v0 = vld [vmem:[%s589_s1] sm:$0xff]   ;;  %v384_v1 = vld [vmem:[%s589_s1 + $0x8] sm:$0xff]   ;;  %v385_v2 = vld [vmem:[%s589_s1 + $0x10] sm:$0xff]  }
   0x2   :  { %335 = vmatprep.subr.bf16.mxu0 %v383_v0  ;;  %367 = vmatprep.subr.bf16.mxu1 %v383_v0  ;;  %v386_v3 = vld [vmem:[%s589_s1 + $0x18] sm:$0xff]   ;;  %v391_v4 = vld [vmem:[%s590_s0] sm:$0xff]   ;;  %v388_v7 = vld [vmem:[%s589_s1 + $0x28] sm:$0xff]  }
   0x3   :  { %336 = vmatpush3.bf16.msra.mxu0 %v383_v0  ;;  %375 = vmatpush3.bf16.msra.mxu1 %v383_v0  ;;  %v392_v5 = vld [vmem:[%s590_s0 + $0x20] sm:$0xff]   ;;  %v389_v8 = vld [vmem:[%s589_s1 + $0x30] sm:$0xff]   ;;  %v390_v9 = vld [vmem:[%s589_s1 + $0x38] sm:$0xff]  }
   0x4   :  { %337 = vmatprep.subr.bf16.mxu0 %v384_v1  ;;  %368 = vmatprep.subr.bf16.mxu1 %v384_v1  ;;  %v387_v6 = vld [vmem:[%s589_s1 + $0x20] sm:$0xff]   ;;  %v393_v10 = vld [vmem:[%s590_s0 + $0x8] sm:$0xff]   ;;  %v395_v12 = vld [vmem:[%s590_s0 + $0x10] sm:$0xff]  }
   0x5   :  { %351 = vmatprep.mubr.bf16.mxu0 %v391_v4  ;;  %359 = vmatprep.mubr.bf16.mxu1 %v392_v5  ;;  %v394_v11 = vld [vmem:[%s590_s0 + $0x28] sm:$0xff]   ;;  %v396_v13 = vld [vmem:[%s590_s0 + $0x30] sm:$0xff]   ;;  %v397_v14 = vld [vmem:[%s590_s0 + $0x18] sm:$0xff]  }
   0x6   :  { %v398_v15 = vld [vmem:[%s590_s0 + $0x38] sm:$0xff]   ;;  %v475_v16 = vld [vmem:[%s591_s2] ss:$0 sm:$0xff]  ;;  %v252_v18 = vld [vmem:[%s592_s3 + $0x10] sm:$0xff] }
   0x7   :  { %338 = vmatpush3.bf16.msra.mxu0 %v384_v1  ;;  %376 = vmatpush3.bf16.msra.mxu1 %v384_v1  ;;  %v260_v20 = vld [vmem:[%s592_s3 + $0x50] sm:$0xff]  ;;  %v250_v24 = vld [vmem:[%s592_s3] sm:$0xff]  ;;  %v253_v30 = vld [vmem:[%s592_s3 + $0x18] sm:$0xff] }
   0x8   :  { %339 = vmatprep.subr.bf16.mxu0 %v385_v2  ;;  %369 = vmatprep.subr.bf16.mxu1 %v385_v2  ;;  %v258_v26 = vld [vmem:[%s592_s3 + $0x40] sm:$0xff]  ;;  %v261_v32 = vld [vmem:[%s592_s3 + $0x58] sm:$0xff]  ;;  %v251_v38 = vld [vmem:[%s592_s3 + $0x8] sm:$0xff] }
   0x9   :  { %v259_v40 = vld [vmem:[%s592_s3 + $0x48] sm:$0xff]  ;;  %v256_v50 = vld [vmem:[%s592_s3 + $0x30] sm:$0xff]  ;;  %v254_v56 = vld [vmem:[%s592_s3 + $0x20] sm:$0xff] }
   0xa   :  { %v264_v52 = vld [vmem:[%s592_s3 + $0x70] sm:$0xff]  ;;  %v262_v58 = vld [vmem:[%s592_s3 + $0x60] sm:$0xff]  ;;  %v257_v62 = vld [vmem:[%s592_s3 + $0x38] sm:$0xff] }
   0xb   :  { %340 = vmatpush3.bf16.msra.mxu0 %v385_v2  ;;  %377 = vmatpush3.bf16.msra.mxu1 %v385_v2  ;;  %v265_v0 = vld [vmem:[%s592_s3 + $0x78] sm:$0xff] }
   0xc   :  { %341 = vmatprep.subr.bf16.mxu0 %v386_v3  ;;  %370 = vmatprep.subr.bf16.mxu1 %v386_v3 }
   0xf   :  { %342 = vmatpush3.bf16.msra.mxu0 %v386_v3  ;;  %378 = vmatpush3.bf16.msra.mxu1 %v386_v3 }
  0x10   :  { %343 = vmatprep.subr.bf16.mxu0 %v387_v6  ;;  %371 = vmatprep.subr.bf16.mxu1 %v387_v6 }
  0x13   :  { %344 = vmatpush3.bf16.msra.mxu0 %v387_v6  ;;  %379 = vmatpush3.bf16.msra.mxu1 %v387_v6  ;;  %v255_v6 = vld [vmem:[%s592_s3 + $0x28] sm:$0xff] }
  0x14   :  { %345 = vmatprep.subr.bf16.mxu0 %v388_v7  ;;  %372 = vmatprep.subr.bf16.mxu1 %v388_v7 }
  0x17   :  { %346 = vmatpush3.bf16.msra.mxu0 %v388_v7  ;;  %380 = vmatpush3.bf16.msra.mxu1 %v388_v7 }
  0x18   :  { %347 = vmatprep.subr.bf16.mxu0 %v389_v8  ;;  %373 = vmatprep.subr.bf16.mxu1 %v389_v8 }
  0x1b   :  { %348 = vmatpush3.bf16.msra.mxu0 %v389_v8  ;;  %381 = vmatpush3.bf16.msra.mxu1 %v389_v8  ;;  %v263_v8 = vld [vmem:[%s592_s3 + $0x68] sm:$0xff] }
  0x1c   :  { %349 = vmatprep.subr.bf16.mxu0 %v390_v9  ;;  %374 = vmatprep.subr.bf16.mxu1 %v390_v9 }
  0x1f   :  { %350 = vmatpush3.bf16.msra.mxu0 %v390_v9  ;;  %382 = vmatpush3.bf16.msra.mxu1 %v390_v9 }
  0x22   :  { %352 = vmatmul.mubr.bf16.vlgmr.msra.gmra.mrb[0].mxu0 %v393_v10  ;;  %360 = vmatmul.mubr.bf16.vlgmr.msra.gmra.mrb[0].mxu1 %v394_v11 }
  0x23   :  { %355 = vmatprep.mubr.bf16.mxu0 %v395_v12  ;;  %363 = vmatprep.mubr.bf16.mxu1 %v396_v13 }
  0x2a   :  { %356 = vmatmul.mubr.bf16.gmra.mrb[4].mxu0 %v397_v14  ;;  %364 = vmatmul.mubr.bf16.gmra.mrb[4].mxu1 %v398_v15 }
  0xf5   :  { %v353_v17 = vpop.f32.mrb[0].mxu0  ;;  %v361_v19 = vpop.f32.mrb[0].mxu1 }
  0xf6   :  { %v196_v21 = vadd.f32 %v353_v17, %v475_v16  ;;  %v228_v22 = vadd.f32 %v361_v19, %v475_v16  ;;  %v187_v23 = vpop.f32.mrb[1].mxu0  ;;  %v219_v25 = vpop.f32.mrb[1].mxu1 }
  0xf7   :  { %v188_v27 = vadd.f32 %v475_v16, %v187_v23  ;;  %v220_v28 = vadd.f32 %v475_v16, %v219_v25  ;;  %v354_v29 = vpop.f32.mrb[2].mxu0  ;;  %v362_v31 = vpop.f32.mrb[2].mxu1 }
  0xf8   :  { %v268_v33 = vadd.f32 %v252_v18, %v196_v21  ;;  %v276_v34 = vadd.f32 %v260_v20, %v228_v22  ;;  %v199_v35 = vadd.f32 %v354_v29, %v475_v16  ;;  %v231_v36 = vadd.f32 %v362_v31, %v475_v16  ;;  %v190_v37 = vpop.f32.mrb[3].mxu0  ;;  %v222_v39 = vpop.f32.mrb[3].mxu1 }
  0xf9   :  { %v266_v41 = vadd.f32 %v250_v24, %v188_v27  ;;  %v274_v42 = vadd.f32 %v258_v26, %v220_v28  ;;  %v191_v43 = vadd.f32 %v475_v16, %v190_v37  ;;  %v223_v44 = vadd.f32 %v475_v16, %v222_v39 }
  0xfa   :  { %284 = vst [vmem:[%s593_s4 + $0x10] sm:$0xff] %v268_v33  ;;  %292 = vst [vmem:[%s593_s4 + $0x50] sm:$0xff] %v276_v34  ;;  %v269_v45 = vadd.f32 %v253_v30, %v199_v35  ;;  %v277_v46 = vadd.f32 %v261_v32, %v231_v36 }
  0xfb   :  { %282 = vst [vmem:[%s593_s4] sm:$0xff] %v266_v41  ;;  %290 = vst [vmem:[%s593_s4 + $0x40] sm:$0xff] %v274_v42  ;;  %v267_v47 = vadd.f32 %v251_v38, %v191_v43  ;;  %v275_v48 = vadd.f32 %v259_v40, %v223_v44 }
  0xfc   :  { %285 = vst [vmem:[%s593_s4 + $0x18] sm:$0xff] %v269_v45  ;;  %293 = vst [vmem:[%s593_s4 + $0x58] sm:$0xff] %v277_v46 }
  0xfd   :  { %283 = vst [vmem:[%s593_s4 + $0x8] sm:$0xff] %v267_v47  ;;  %291 = vst [vmem:[%s593_s4 + $0x48] sm:$0xff] %v275_v48  ;;  %v357_v49 = vpop.f32.mrb[4].mxu0  ;;  %v365_v51 = vpop.f32.mrb[4].mxu1 }
  0xfe   :  { %v212_v53 = vadd.f32 %v357_v49, %v475_v16  ;;  %v244_v54 = vadd.f32 %v365_v51, %v475_v16  ;;  %v203_v55 = vpop.f32.mrb[5].mxu0  ;;  %v235_v57 = vpop.f32.mrb[5].mxu1 }
  0xff   :  { %v204_v59 = vadd.f32 %v475_v16, %v203_v55  ;;  %v236_v60 = vadd.f32 %v475_v16, %v235_v57  ;;  %v358_v61 = vpop.f32.mrb[6].mxu0  ;;  %v366_v63 = vpop.f32.mrb[6].mxu1 }
 0x100   :  { %v272_v1 = vadd.f32 %v256_v50, %v212_v53  ;;  %v280_v2 = vadd.f32 %v264_v52, %v244_v54  ;;  %v215_v3 = vadd.f32 %v358_v61, %v475_v16  ;;  %v247_v4 = vadd.f32 %v366_v63, %v475_v16  ;;  %v206_v5 = vpop.f32.mrb[7].mxu0  ;;  %v238_v7 = vpop.f32.mrb[7].mxu1 }
 0x101   :  { %v270_v9 = vadd.f32 %v254_v56, %v204_v59  ;;  %v278_v10 = vadd.f32 %v262_v58, %v236_v60  ;;  %v207_v11 = vadd.f32 %v475_v16, %v206_v5  ;;  %v239_v12 = vadd.f32 %v475_v16, %v238_v7 }
 0x102   :  { %288 = vst [vmem:[%s593_s4 + $0x30] sm:$0xff] %v272_v1  ;;  %296 = vst [vmem:[%s593_s4 + $0x70] sm:$0xff] %v280_v2  ;;  %v273_v13 = vadd.f32 %v257_v62, %v215_v3  ;;  %v281_v14 = vadd.f32 %v265_v0, %v247_v4 }
 0x103   :  { %286 = vst [vmem:[%s593_s4 + $0x20] sm:$0xff] %v270_v9  ;;  %294 = vst [vmem:[%s593_s4 + $0x60] sm:$0xff] %v278_v10  ;;  %v271_v15 = vadd.f32 %v255_v6, %v207_v11  ;;  %v279_v16 = vadd.f32 %v263_v8, %v239_v12 }
 0x104   :  { %289 = vst [vmem:[%s593_s4 + $0x38] sm:$0xff] %v273_v13  ;;  %297 = vst [vmem:[%s593_s4 + $0x78] sm:$0xff] %v281_v14 }
 0x105   :  { %287 = vst [vmem:[%s593_s4 + $0x28] sm:$0xff] %v271_v15  ;;  %295 = vst [vmem:[%s593_s4 + $0x68] sm:$0xff] %v279_v16 }

// kernel: _lambda_.18
= control target key start
LH: loop header
LB: loop body
LE: loop exit
PB: predicated region body
PF: predicated region fallthrough
CT: control target
= control target key end

     0   :  { %s1326_s1 = inlined_call_operand.vmem [shape: bf16[512,128], index: 1, kind: input, shape index: {}]   ;;  %s1327_s0 = inlined_call_operand.vmem [shape: bf16[128,512], index: 0, kind: input, shape index: {}]   ;;  %s1328_s2 = inlined_call_operand.vmem [shape: f32[1,128], index: 2, kind: input, shape index: {}]   ;;  %s1329_s3 = inlined_call_operand.vmem [shape: f32[128,128], index: 3, kind: input, shape index: {}]   ;;  %s1330_s4 = inlined_call_operand.vmem [shape: f32[128,128], index: 4, kind: output, shape index: {}]  }
   0x1   :  { %v912_v0 = vld [vmem:[%s1326_s1 + $0x40] sm:$0xff]   ;;  %v916_v4 = vld [vmem:[%s1326_s1 + $0x48] sm:$0xff]   ;;  %v920_v8 = vld [vmem:[%s1326_s1 + $0x50] sm:$0xff]  }
   0x2   :  { %v913_v1 = vld [vmem:[%s1326_s1 + $0xc0] sm:$0xff]   ;;  %784 = vmatprep.subr.bf16.mxu0 %v912_v0  ;;  %v917_v5 = vld [vmem:[%s1326_s1 + $0xc8] sm:$0xff]   ;;  %v921_v9 = vld [vmem:[%s1326_s1 + $0xd0] sm:$0xff]  }
   0x3   :  { %v914_v2 = vld [vmem:[%s1326_s1] sm:$0xff]   ;;  %848 = vmatprep.subr.bf16.mxu1 %v913_v1  ;;  %v918_v6 = vld [vmem:[%s1326_s1 + $0x8] sm:$0xff]   ;;  %v922_v10 = vld [vmem:[%s1326_s1 + $0x10] sm:$0xff]  }
   0x4   :  { %v915_v3 = vld [vmem:[%s1326_s1 + $0x80] sm:$0xff]   ;;  %785 = vmatpush3.bf16.msra.mxu0 %v914_v2  ;;  %v919_v7 = vld [vmem:[%s1326_s1 + $0x88] sm:$0xff]   ;;  %v923_v11 = vld [vmem:[%s1326_s1 + $0x90] sm:$0xff]  }
   0x5   :  { %849 = vmatpush3.bf16.msra.mxu1 %v915_v3  ;;  %786 = vmatprep.subr.bf16.mxu0 %v916_v4  ;;  %v924_v12 = vld [vmem:[%s1326_s1 + $0x58] sm:$0xff]   ;;  %v928_v16 = vld [vmem:[%s1326_s1 + $0x60] sm:$0xff]   ;;  %v932_v20 = vld [vmem:[%s1326_s1 + $0x68] sm:$0xff]  }
   0x6   :  { %850 = vmatprep.subr.bf16.mxu1 %v917_v5  ;;  %v925_v13 = vld [vmem:[%s1326_s1 + $0xd8] sm:$0xff]   ;;  %v929_v17 = vld [vmem:[%s1326_s1 + $0xe0] sm:$0xff]   ;;  %v933_v21 = vld [vmem:[%s1326_s1 + $0xe8] sm:$0xff]  }
   0x7   :  { %v926_v14 = vld [vmem:[%s1326_s1 + $0x18] sm:$0xff]   ;;  %v930_v18 = vld [vmem:[%s1326_s1 + $0x20] sm:$0xff]   ;;  %v934_v22 = vld [vmem:[%s1326_s1 + $0x28] sm:$0xff]  }
   0x8   :  { %787 = vmatpush3.bf16.msra.mxu0 %v918_v6  ;;  %v927_v15 = vld [vmem:[%s1326_s1 + $0x98] sm:$0xff]   ;;  %v931_v19 = vld [vmem:[%s1326_s1 + $0xa0] sm:$0xff]   ;;  %v935_v23 = vld [vmem:[%s1326_s1 + $0xa8] sm:$0xff]  }
   0x9   :  { %851 = vmatpush3.bf16.msra.mxu1 %v919_v7  ;;  %788 = vmatprep.subr.bf16.mxu0 %v920_v8  ;;  %v936_v24 = vld [vmem:[%s1326_s1 + $0x70] sm:$0xff]   ;;  %v940_v28 = vld [vmem:[%s1326_s1 + $0x78] sm:$0xff]   ;;  %v1212_v2 = vld [vmem:[%s1328_s2] ss:$0 sm:$0xff] }
   0xa   :  { %852 = vmatprep.subr.bf16.mxu1 %v921_v9  ;;  %v937_v25 = vld [vmem:[%s1326_s1 + $0xf0] sm:$0xff]   ;;  %v941_v29 = vld [vmem:[%s1326_s1 + $0xf8] sm:$0xff]  }
   0xb   :  { %v938_v26 = vld [vmem:[%s1326_s1 + $0x30] sm:$0xff]   ;;  %v942_v30 = vld [vmem:[%s1326_s1 + $0x38] sm:$0xff]  }
   0xc   :  { %789 = vmatpush3.bf16.msra.mxu0 %v922_v10  ;;  %v939_v27 = vld [vmem:[%s1326_s1 + $0xb0] sm:$0xff]   ;;  %v943_v31 = vld [vmem:[%s1326_s1 + $0xb8] sm:$0xff]  }
   0xd   :  { %853 = vmatpush3.bf16.msra.mxu1 %v923_v11  ;;  %790 = vmatprep.subr.bf16.mxu0 %v924_v12  ;;  %v944_v32 = vld [vmem:[%s1327_s0] ss:$16 sps:$4 sm:$0xff]   ;;  %v946_v33 = vld [vmem:[%s1327_s0 + $0x4] ss:$16 sps:$4 sm:$0xff]   ;;  %v947_v34 = vld [vmem:[%s1327_s0 + $0x8] ss:$16 sps:$4 sm:$0xff]  }
   0xe   :  { %854 = vmatprep.subr.bf16.mxu1 %v925_v13  ;;  %v949_v35 = vld [vmem:[%s1327_s0 + $0xc] ss:$16 sps:$4 sm:$0xff]   ;;  %505 = vmatprep.mubr.bf16.mxu0 %v946_v33  ;;  %v950_v36 = vld [vmem:[%s1327_s0 + $0x24] ss:$16 sps:$4 sm:$0xff]   ;;  %v954_v38 = vld [vmem:[%s1327_s0 + $0x20] ss:$16 sps:$4 sm:$0xff]  }
   0xf   :  { %602 = vmatprep.mubr.bf16.mxu1 %v949_v35  ;;  %v952_v37 = vld [vmem:[%s1327_s0 + $0x2c] ss:$16 sps:$4 sm:$0xff]   ;;  %v955_v39 = vld [vmem:[%s1327_s0 + $0x28] ss:$16 sps:$4 sm:$0xff]   ;;  %v956_v40 = vld [vmem:[%s1327_s0 + $0x44] ss:$16 sps:$4 sm:$0xff]  }
  0x10   :  { %791 = vmatpush3.bf16.msra.mxu0 %v926_v14  ;;  %v958_v41 = vld [vmem:[%s1327_s0 + $0x4c] ss:$16 sps:$4 sm:$0xff]   ;;  %v960_v42 = vld [vmem:[%s1327_s0 + $0x40] ss:$16 sps:$4 sm:$0xff]   ;;  %v961_v43 = vld [vmem:[%s1327_s0 + $0x48] ss:$16 sps:$4 sm:$0xff]  }
  0x11   :  { %855 = vmatpush3.bf16.msra.mxu1 %v927_v15  ;;  %792 = vmatprep.subr.bf16.mxu0 %v928_v16  ;;  %v962_v44 = vld [vmem:[%s1327_s0 + $0x64] ss:$16 sps:$4 sm:$0xff]   ;;  %v964_v45 = vld [vmem:[%s1327_s0 + $0x6c] ss:$16 sps:$4 sm:$0xff]   ;;  %v966_v46 = vld [vmem:[%s1327_s0 + $0x60] ss:$16 sps:$4 sm:$0xff]  }
  0x12   :  { %856 = vmatprep.subr.bf16.mxu1 %v929_v17  ;;  %v967_v47 = vld [vmem:[%s1327_s0 + $0x68] ss:$16 sps:$4 sm:$0xff]   ;;  %v968_v48 = vld [vmem:[%s1327_s0 + $0x84] ss:$16 sps:$4 sm:$0xff]   ;;  %v970_v49 = vld [vmem:[%s1327_s0 + $0x8c] ss:$16 sps:$4 sm:$0xff]  }
  0x13   :  { %v972_v50 = vld [vmem:[%s1327_s0 + $0x80] ss:$16 sps:$4 sm:$0xff]   ;;  %v973_v51 = vld [vmem:[%s1327_s0 + $0x88] ss:$16 sps:$4 sm:$0xff]   ;;  %v974_v52 = vld [vmem:[%s1327_s0 + $0xa4] ss:$16 sps:$4 sm:$0xff]  }
  0x14   :  { %793 = vmatpush3.bf16.msra.mxu0 %v930_v18  ;;  %v976_v53 = vld [vmem:[%s1327_s0 + $0xac] ss:$16 sps:$4 sm:$0xff]   ;;  %v978_v54 = vld [vmem:[%s1327_s0 + $0xa0] ss:$16 sps:$4 sm:$0xff]   ;;  %v979_v55 = vld [vmem:[%s1327_s0 + $0xa8] ss:$16 sps:$4 sm:$0xff]  }
  0x15   :  { %857 = vmatpush3.bf16.msra.mxu1 %v931_v19  ;;  %794 = vmatprep.subr.bf16.mxu0 %v932_v20  ;;  %v980_v56 = vld [vmem:[%s1327_s0 + $0xc4] ss:$16 sps:$4 sm:$0xff]   ;;  %v982_v57 = vld [vmem:[%s1327_s0 + $0xcc] ss:$16 sps:$4 sm:$0xff]   ;;  %v984_v58 = vld [vmem:[%s1327_s0 + $0xc0] ss:$16 sps:$4 sm:$0xff]  }
  0x16   :  { %858 = vmatprep.subr.bf16.mxu1 %v933_v21  ;;  %v985_v59 = vld [vmem:[%s1327_s0 + $0xc8] ss:$16 sps:$4 sm:$0xff]   ;;  %v986_v60 = vld [vmem:[%s1327_s0 + $0xe4] ss:$16 sps:$4 sm:$0xff]   ;;  %v988_v61 = vld [vmem:[%s1327_s0 + $0xec] ss:$16 sps:$4 sm:$0xff]  }
  0x17   :  { %v990_v62 = vld [vmem:[%s1327_s0 + $0xe0] ss:$16 sps:$4 sm:$0xff]   ;;  %v991_v63 = vld [vmem:[%s1327_s0 + $0xe8] ss:$16 sps:$4 sm:$0xff]  }
  0x18   :  { %795 = vmatpush3.bf16.msra.mxu0 %v934_v22  ;;  %v667_v13 = vld [vmem:[%s1329_s3] sm:$0xff]  ;;  %v668_v17 = vld [vmem:[%s1329_s3 + $0x8] sm:$0xff]  ;;  %v669_v33 = vld [vmem:[%s1329_s3 + $0x10] sm:$0xff] }
  0x19   :  { %859 = vmatpush3.bf16.msra.mxu1 %v935_v23  ;;  %796 = vmatprep.subr.bf16.mxu0 %v936_v24 }
  0x1a   :  { %860 = vmatprep.subr.bf16.mxu1 %v937_v25 }
  0x1c   :  { %797 = vmatpush3.bf16.msra.mxu0 %v938_v26 }
  0x1d   :  { %861 = vmatpush3.bf16.msra.mxu1 %v939_v27  ;;  %798 = vmatprep.subr.bf16.mxu0 %v940_v28 }
  0x1e   :  { %862 = vmatprep.subr.bf16.mxu1 %v941_v29 }
  0x20   :  { %799 = vmatpush3.bf16.msra.mxu0 %v942_v30 }
  0x21   :  { %863 = vmatpush3.bf16.msra.mxu1 %v943_v31 }
  0x23   :  { %506 = vmatmul.mubr.bf16.vlgmr.msra.gmra.mrb[0].mxu0 %v944_v32 }
  0x24   :  { %603 = vmatmul.mubr.bf16.vlgmr.msra.gmra.mrb[0].mxu1 %v947_v34  ;;  %513 = vmatprep.mubr.bf16.mxu0 %v950_v36 }
  0x25   :  { %610 = vmatprep.mubr.bf16.mxu1 %v952_v37  ;;  %v670_v37 = vld [vmem:[%s1329_s3 + $0x18] sm:$0xff] }
  0x2b   :  { %514 = vmatmul.mubr.bf16.gmra.mrb[4].mxu0 %v954_v38 }
  0x2c   :  { %611 = vmatmul.mubr.bf16.gmra.mrb[4].mxu1 %v955_v39  ;;  %521 = vmatprep.mubr.bf16.mxu0 %v956_v40 }
  0x2d   :  { %618 = vmatprep.mubr.bf16.mxu1 %v958_v41 }
  0x33   :  { %522 = vmatmul.mubr.bf16.gmra.mrb[8].mxu0 %v960_v42 }
  0x34   :  { %619 = vmatmul.mubr.bf16.gmra.mrb[8].mxu1 %v961_v43  ;;  %529 = vmatprep.mubr.bf16.mxu0 %v962_v44 }
  0x35   :  { %626 = vmatprep.mubr.bf16.mxu1 %v964_v45 }
  0x3b   :  { %530 = vmatmul.mubr.bf16.gmra.mrb[12].mxu0 %v966_v46 }
  0x3c   :  { %627 = vmatmul.mubr.bf16.gmra.mrb[12].mxu1 %v967_v47  ;;  %537 = vmatprep.mubr.bf16.mxu0 %v968_v48 }
  0x3d   :  { %634 = vmatprep.mubr.bf16.mxu1 %v970_v49 }
  0x43   :  { %538 = vmatmul.mubr.bf16.gmra.mrb[16].mxu0 %v972_v50 }
  0x44   :  { %635 = vmatmul.mubr.bf16.gmra.mrb[16].mxu1 %v973_v51  ;;  %545 = vmatprep.mubr.bf16.mxu0 %v974_v52 }
  0x45   :  { %642 = vmatprep.mubr.bf16.mxu1 %v976_v53  ;;  %v671_v53 = vld [vmem:[%s1329_s3 + $0x20] sm:$0xff] }
  0x4b   :  { %546 = vmatmul.mubr.bf16.gmra.mrb[20].mxu0 %v978_v54 }
  0x4c   :  { %643 = vmatmul.mubr.bf16.gmra.mrb[20].mxu1 %v979_v55  ;;  %553 = vmatprep.mubr.bf16.mxu0 %v980_v56 }
  0x4d   :  { %650 = vmatprep.mubr.bf16.mxu1 %v982_v57  ;;  %v672_v57 = vld [vmem:[%s1329_s3 + $0x28] sm:$0xff] }
  0x53   :  { %554 = vmatmul.mubr.bf16.gmra.mrb[24].mxu0 %v984_v58 }
  0x54   :  { %651 = vmatmul.mubr.bf16.gmra.mrb[24].mxu1 %v985_v59  ;;  %561 = vmatprep.mubr.bf16.mxu0 %v986_v60 }
  0x55   :  { %658 = vmatprep.mubr.bf16.mxu1 %v988_v61 }
  0x5b   :  { %562 = vmatmul.mubr.bf16.gmra.mrb[28].mxu0 %v990_v62 }
  0x5c   :  { %659 = vmatmul.mubr.bf16.gmra.mrb[28].mxu1 %v991_v63 }
  0xf6   :  { %v800_v0 = vpop.f32.mrb[0].mxu0 }
  0xf7   :  { %v864_v1 = vpop.f32.mrb[0].mxu1  ;;  %v801_v3 = vpop.f32.mrb[1].mxu0 }
  0xf8   :  { %v802_v4 = vadd.f32 %v801_v3, %v800_v0  ;;  %v865_v5 = vpop.f32.mrb[1].mxu1  ;;  %v803_v6 = vpop.f32.mrb[2].mxu0 }
  0xf9   :  { %v866_v7 = vadd.f32 %v865_v5, %v864_v1  ;;  %v867_v8 = vpop.f32.mrb[2].mxu1  ;;  %v804_v9 = vpop.f32.mrb[3].mxu0 }
  0xfa   :  { %v508_v10 = vadd.f32 %v802_v4, %v1212_v2  ;;  %v805_v11 = vadd.f32 %v804_v9, %v803_v6  ;;  %v868_v12 = vpop.f32.mrb[3].mxu1 }
  0xfb   :  { %v869_v14 = vadd.f32 %v868_v12, %v867_v8 }
  0xfc   :  { %v605_v15 = vadd.f32 %v866_v7, %v508_v10  ;;  %v511_v16 = vadd.f32 %v805_v11, %v1212_v2  ;;  %v673_v10 = vld [vmem:[%s1329_s3 + $0x30] sm:$0xff] }
  0xfe   :  { %v683_v18 = vadd.f32 %v667_v13, %v605_v15  ;;  %v608_v19 = vadd.f32 %v869_v14, %v511_v16  ;;  %v806_v20 = vpop.f32.mrb[4].mxu0  ;;  %v674_v14 = vld [vmem:[%s1329_s3 + $0x38] sm:$0xff] }
  0xff   :  { %v870_v21 = vpop.f32.mrb[4].mxu1  ;;  %v807_v22 = vpop.f32.mrb[5].mxu0 }
 0x100   :  { %699 = vst [vmem:[%s1330_s4] sm:$0xff] %v683_v18  ;;  %v684_v23 = vadd.f32 %v668_v17, %v608_v19  ;;  %v808_v24 = vadd.f32 %v807_v22, %v806_v20  ;;  %v871_v25 = vpop.f32.mrb[5].mxu1  ;;  %v809_v26 = vpop.f32.mrb[6].mxu0 }
 0x101   :  { %v872_v27 = vadd.f32 %v871_v25, %v870_v21  ;;  %v873_v28 = vpop.f32.mrb[6].mxu1  ;;  %v810_v29 = vpop.f32.mrb[7].mxu0 }
 0x102   :  { %700 = vst [vmem:[%s1330_s4 + $0x8] sm:$0xff] %v684_v23  ;;  %v516_v30 = vadd.f32 %v808_v24, %v1212_v2  ;;  %v811_v31 = vadd.f32 %v810_v29, %v809_v26  ;;  %v874_v32 = vpop.f32.mrb[7].mxu1 }
 0x103   :  { %v875_v34 = vadd.f32 %v874_v32, %v873_v28 }
 0x104   :  { %v613_v35 = vadd.f32 %v872_v27, %v516_v30  ;;  %v519_v36 = vadd.f32 %v811_v31, %v1212_v2  ;;  %v675_v30 = vld [vmem:[%s1329_s3 + $0x40] sm:$0xff] }
 0x106   :  { %v685_v38 = vadd.f32 %v669_v33, %v613_v35  ;;  %v616_v39 = vadd.f32 %v875_v34, %v519_v36  ;;  %v812_v40 = vpop.f32.mrb[8].mxu0  ;;  %v676_v34 = vld [vmem:[%s1329_s3 + $0x48] sm:$0xff] }
 0x107   :  { %v876_v41 = vpop.f32.mrb[8].mxu1  ;;  %v813_v42 = vpop.f32.mrb[9].mxu0 }
 0x108   :  { %701 = vst [vmem:[%s1330_s4 + $0x10] sm:$0xff] %v685_v38  ;;  %v686_v43 = vadd.f32 %v670_v37, %v616_v39  ;;  %v814_v44 = vadd.f32 %v813_v42, %v812_v40  ;;  %v877_v45 = vpop.f32.mrb[9].mxu1  ;;  %v815_v46 = vpop.f32.mrb[10].mxu0 }
 0x109   :  { %v878_v47 = vadd.f32 %v877_v45, %v876_v41  ;;  %v879_v48 = vpop.f32.mrb[10].mxu1  ;;  %v816_v49 = vpop.f32.mrb[11].mxu0 }
 0x10a   :  { %702 = vst [vmem:[%s1330_s4 + $0x18] sm:$0xff] %v686_v43  ;;  %v524_v50 = vadd.f32 %v814_v44, %v1212_v2  ;;  %v817_v51 = vadd.f32 %v816_v49, %v815_v46  ;;  %v880_v52 = vpop.f32.mrb[11].mxu1 }
 0x10b   :  { %v881_v54 = vadd.f32 %v880_v52, %v879_v48 }
 0x10c   :  { %v621_v55 = vadd.f32 %v878_v47, %v524_v50  ;;  %v527_v56 = vadd.f32 %v817_v51, %v1212_v2  ;;  %v677_v50 = vld [vmem:[%s1329_s3 + $0x50] sm:$0xff] }
 0x10e   :  { %v687_v58 = vadd.f32 %v671_v53, %v621_v55  ;;  %v624_v59 = vadd.f32 %v881_v54, %v527_v56  ;;  %v818_v60 = vpop.f32.mrb[12].mxu0  ;;  %v678_v54 = vld [vmem:[%s1329_s3 + $0x58] sm:$0xff] }
 0x10f   :  { %v882_v61 = vpop.f32.mrb[12].mxu1  ;;  %v819_v62 = vpop.f32.mrb[13].mxu0 }
 0x110   :  { %703 = vst [vmem:[%s1330_s4 + $0x20] sm:$0xff] %v687_v58  ;;  %v688_v63 = vadd.f32 %v672_v57, %v624_v59  ;;  %v820_v0 = vadd.f32 %v819_v62, %v818_v60  ;;  %v883_v1 = vpop.f32.mrb[13].mxu1  ;;  %v821_v3 = vpop.f32.mrb[14].mxu0 }
 0x111   :  { %v884_v4 = vadd.f32 %v883_v1, %v882_v61  ;;  %v885_v5 = vpop.f32.mrb[14].mxu1  ;;  %v822_v6 = vpop.f32.mrb[15].mxu0 }
 0x112   :  { %704 = vst [vmem:[%s1330_s4 + $0x28] sm:$0xff] %v688_v63  ;;  %v532_v7 = vadd.f32 %v820_v0, %v1212_v2  ;;  %v823_v8 = vadd.f32 %v822_v6, %v821_v3  ;;  %v886_v9 = vpop.f32.mrb[15].mxu1 }
 0x113   :  { %v887_v11 = vadd.f32 %v886_v9, %v885_v5 }
 0x114   :  { %v629_v12 = vadd.f32 %v884_v4, %v532_v7  ;;  %v535_v13 = vadd.f32 %v823_v8, %v1212_v2  ;;  %v679_v7 = vld [vmem:[%s1329_s3 + $0x60] sm:$0xff] }
 0x116   :  { %v689_v15 = vadd.f32 %v673_v10, %v629_v12  ;;  %v632_v16 = vadd.f32 %v887_v11, %v535_v13  ;;  %v824_v17 = vpop.f32.mrb[16].mxu0  ;;  %v680_v11 = vld [vmem:[%s1329_s3 + $0x68] sm:$0xff] }
 0x117   :  { %v888_v18 = vpop.f32.mrb[16].mxu1  ;;  %v825_v19 = vpop.f32.mrb[17].mxu0 }
 0x118   :  { %705 = vst [vmem:[%s1330_s4 + $0x30] sm:$0xff] %v689_v15  ;;  %v690_v20 = vadd.f32 %v674_v14, %v632_v16  ;;  %v826_v21 = vadd.f32 %v825_v19, %v824_v17  ;;  %v889_v22 = vpop.f32.mrb[17].mxu1  ;;  %v827_v23 = vpop.f32.mrb[18].mxu0 }
 0x119   :  { %v890_v24 = vadd.f32 %v889_v22, %v888_v18  ;;  %v891_v25 = vpop.f32.mrb[18].mxu1  ;;  %v828_v26 = vpop.f32.mrb[19].mxu0 }
 0x11a   :  { %706 = vst [vmem:[%s1330_s4 + $0x38] sm:$0xff] %v690_v20  ;;  %v540_v27 = vadd.f32 %v826_v21, %v1212_v2  ;;  %v829_v28 = vadd.f32 %v828_v26, %v827_v23  ;;  %v892_v29 = vpop.f32.mrb[19].mxu1 }
 0x11b   :  { %v893_v31 = vadd.f32 %v892_v29, %v891_v25 }
 0x11c   :  { %v637_v32 = vadd.f32 %v890_v24, %v540_v27  ;;  %v543_v33 = vadd.f32 %v829_v28, %v1212_v2  ;;  %v681_v27 = vld [vmem:[%s1329_s3 + $0x70] sm:$0xff] }
 0x11e   :  { %v691_v35 = vadd.f32 %v675_v30, %v637_v32  ;;  %v640_v36 = vadd.f32 %v893_v31, %v543_v33  ;;  %v830_v37 = vpop.f32.mrb[20].mxu0  ;;  %v682_v31 = vld [vmem:[%s1329_s3 + $0x78] sm:$0xff] }
 0x11f   :  { %v894_v38 = vpop.f32.mrb[20].mxu1  ;;  %v831_v39 = vpop.f32.mrb[21].mxu0 }
 0x120   :  { %707 = vst [vmem:[%s1330_s4 + $0x40] sm:$0xff] %v691_v35  ;;  %v692_v40 = vadd.f32 %v676_v34, %v640_v36  ;;  %v832_v41 = vadd.f32 %v831_v39, %v830_v37  ;;  %v895_v42 = vpop.f32.mrb[21].mxu1  ;;  %v833_v43 = vpop.f32.mrb[22].mxu0 }
 0x121   :  { %v896_v44 = vadd.f32 %v895_v42, %v894_v38  ;;  %v897_v45 = vpop.f32.mrb[22].mxu1  ;;  %v834_v46 = vpop.f32.mrb[23].mxu0 }
 0x122   :  { %708 = vst [vmem:[%s1330_s4 + $0x48] sm:$0xff] %v692_v40  ;;  %v548_v47 = vadd.f32 %v832_v41, %v1212_v2  ;;  %v835_v48 = vadd.f32 %v834_v46, %v833_v43  ;;  %v898_v49 = vpop.f32.mrb[23].mxu1 }
 0x123   :  { %v899_v51 = vadd.f32 %v898_v49, %v897_v45 }
 0x124   :  { %v645_v52 = vadd.f32 %v896_v44, %v548_v47  ;;  %v551_v53 = vadd.f32 %v835_v48, %v1212_v2 }
 0x126   :  { %v693_v55 = vadd.f32 %v677_v50, %v645_v52  ;;  %v648_v56 = vadd.f32 %v899_v51, %v551_v53  ;;  %v836_v57 = vpop.f32.mrb[24].mxu0 }
 0x127   :  { %v900_v58 = vpop.f32.mrb[24].mxu1  ;;  %v837_v59 = vpop.f32.mrb[25].mxu0 }
 0x128   :  { %709 = vst [vmem:[%s1330_s4 + $0x50] sm:$0xff] %v693_v55  ;;  %v694_v60 = vadd.f32 %v678_v54, %v648_v56  ;;  %v838_v61 = vadd.f32 %v837_v59, %v836_v57  ;;  %v901_v62 = vpop.f32.mrb[25].mxu1  ;;  %v839_v63 = vpop.f32.mrb[26].mxu0 }
 0x129   :  { %v902_v0 = vadd.f32 %v901_v62, %v900_v58  ;;  %v903_v1 = vpop.f32.mrb[26].mxu1  ;;  %v840_v3 = vpop.f32.mrb[27].mxu0 }
 0x12a   :  { %710 = vst [vmem:[%s1330_s4 + $0x58] sm:$0xff] %v694_v60  ;;  %v556_v4 = vadd.f32 %v838_v61, %v1212_v2  ;;  %v841_v5 = vadd.f32 %v840_v3, %v839_v63  ;;  %v904_v6 = vpop.f32.mrb[27].mxu1 }
 0x12b   :  { %v905_v8 = vadd.f32 %v904_v6, %v903_v1 }
 0x12c   :  { %v653_v9 = vadd.f32 %v902_v0, %v556_v4  ;;  %v559_v10 = vadd.f32 %v841_v5, %v1212_v2 }
 0x12e   :  { %v695_v12 = vadd.f32 %v679_v7, %v653_v9  ;;  %v656_v13 = vadd.f32 %v905_v8, %v559_v10  ;;  %v842_v14 = vpop.f32.mrb[28].mxu0 }
 0x12f   :  { %v906_v15 = vpop.f32.mrb[28].mxu1  ;;  %v843_v16 = vpop.f32.mrb[29].mxu0 }
 0x130   :  { %711 = vst [vmem:[%s1330_s4 + $0x60] sm:$0xff] %v695_v12  ;;  %v696_v17 = vadd.f32 %v680_v11, %v656_v13  ;;  %v844_v18 = vadd.f32 %v843_v16, %v842_v14  ;;  %v907_v19 = vpop.f32.mrb[29].mxu1  ;;  %v845_v20 = vpop.f32.mrb[30].mxu0 }
 0x131   :  { %v908_v21 = vadd.f32 %v907_v19, %v906_v15  ;;  %v909_v22 = vpop.f32.mrb[30].mxu1  ;;  %v846_v23 = vpop.f32.mrb[31].mxu0 }
 0x132   :  { %712 = vst [vmem:[%s1330_s4 + $0x68] sm:$0xff] %v696_v17  ;;  %v564_v24 = vadd.f32 %v844_v18, %v1212_v2  ;;  %v847_v25 = vadd.f32 %v846_v23, %v845_v20  ;;  %v910_v26 = vpop.f32.mrb[31].mxu1 }
 0x133   :  { %v911_v28 = vadd.f32 %v910_v26, %v909_v22 }
 0x134   :  { %v661_v29 = vadd.f32 %v908_v21, %v564_v24  ;;  %v567_v30 = vadd.f32 %v847_v25, %v1212_v2 }
 0x136   :  { %v697_v32 = vadd.f32 %v681_v27, %v661_v29  ;;  %v664_v33 = vadd.f32 %v911_v28, %v567_v30 }
 0x138   :  { %713 = vst [vmem:[%s1330_s4 + $0x70] sm:$0xff] %v697_v32  ;;  %v698_v34 = vadd.f32 %v682_v31, %v664_v33 }
 0x13a   :  { %714 = vst [vmem:[%s1330_s4 + $0x78] sm:$0xff] %v698_v34 }

// kernel: _lambda_.24
= control target key start
LH: loop header
LB: loop body
LE: loop exit
PB: predicated region body
PF: predicated region fallthrough
CT: control target
= control target key end

     0   :  { %s970_s1 = inlined_call_operand.vmem [shape: bf16[128,128], index: 1, kind: input, shape index: {}]   ;;  %s971_s0 = inlined_call_operand.vmem [shape: f32[128,128], index: 0, kind: input, shape index: {}]   ;;  %s972_s2 = inlined_call_operand.vmem [shape: f32[1,128], index: 2, kind: input, shape index: {}]   ;;  %s973_s3 = inlined_call_operand.vmem [shape: f32[1,128], index: 3, kind: input, shape index: {}]   ;;  %s974_s4 = inlined_call_operand.vmem [shape: bf16[128,128], index: 4, kind: output, shape index: {}]  }
   0x1   :  { %v663_v0 = vld [vmem:[%s970_s1] sm:$0xff]   ;;  %v664_v1 = vld [vmem:[%s970_s1 + $0x8] sm:$0xff]   ;;  %v665_v2 = vld [vmem:[%s970_s1 + $0x10] sm:$0xff]  }
   0x2   :  { %615 = vmatprep.subr.bf16.mxu0 %v663_v0  ;;  %647 = vmatprep.subr.bf16.mxu1 %v663_v0  ;;  %v666_v3 = vld [vmem:[%s970_s1 + $0x18] sm:$0xff]   ;;  %v18_v4 = vld [vmem:[%s971_s0] sm:$0xff]  ;;  %v19_v5 = vld [vmem:[%s971_s0 + $0x8] sm:$0xff] }
   0x3   :  { %616 = vmatpush3.bf16.msra.mxu0 %v663_v0  ;;  %655 = vmatpush3.bf16.msra.mxu1 %v663_v0  ;;  %v26_v6 = vld [vmem:[%s971_s0 + $0x40] sm:$0xff]  ;;  %v34_v7 = vpack.c.bf16 %v19_v5, %v18_v4  ;;  %v27_v8 = vld [vmem:[%s971_s0 + $0x48] sm:$0xff]  ;;  %v669_v12 = vld [vmem:[%s970_s1 + $0x30] sm:$0xff]  }
   0x4   :  { %617 = vmatprep.subr.bf16.mxu0 %v664_v1  ;;  %648 = vmatprep.subr.bf16.mxu1 %v664_v1  ;;  %v38_v9 = vpack.c.bf16 %v27_v8, %v26_v6  ;;  %v667_v10 = vld [vmem:[%s970_s1 + $0x20] sm:$0xff]   ;;  %v668_v11 = vld [vmem:[%s970_s1 + $0x28] sm:$0xff]   ;;  %v670_v13 = vld [vmem:[%s970_s1 + $0x38] sm:$0xff]  }
   0x5   :  { %631 = vmatprep.mubr.bf16.mxu0 %v34_v7  ;;  %v20_v14 = vld [vmem:[%s971_s0 + $0x10] sm:$0xff]  ;;  %v21_v15 = vld [vmem:[%s971_s0 + $0x18] sm:$0xff]  ;;  %v22_v18 = vld [vmem:[%s971_s0 + $0x20] sm:$0xff] }
   0x6   :  { %639 = vmatprep.mubr.bf16.mxu1 %v38_v9  ;;  %v28_v16 = vld [vmem:[%s971_s0 + $0x50] sm:$0xff]  ;;  %v29_v17 = vld [vmem:[%s971_s0 + $0x58] sm:$0xff]  ;;  %v23_v19 = vld [vmem:[%s971_s0 + $0x28] sm:$0xff]  ;;  %v35_v22 = vpack.c.bf16 %v21_v15, %v20_v14 }
   0x7   :  { %618 = vmatpush3.bf16.msra.mxu0 %v664_v1  ;;  %656 = vmatpush3.bf16.msra.mxu1 %v664_v1  ;;  %v30_v20 = vld [vmem:[%s971_s0 + $0x60] sm:$0xff]  ;;  %v31_v21 = vld [vmem:[%s971_s0 + $0x68] sm:$0xff]  ;;  %v39_v23 = vpack.c.bf16 %v29_v17, %v28_v16  ;;  %v36_v24 = vpack.c.bf16 %v23_v19, %v22_v18  ;;  %v24_v26 = vld [vmem:[%s971_s0 + $0x30] sm:$0xff] }
   0x8   :  { %619 = vmatprep.subr.bf16.mxu0 %v665_v2  ;;  %649 = vmatprep.subr.bf16.mxu1 %v665_v2  ;;  %v40_v25 = vpack.c.bf16 %v31_v21, %v30_v20  ;;  %v25_v27 = vld [vmem:[%s971_s0 + $0x38] sm:$0xff]  ;;  %v32_v28 = vld [vmem:[%s971_s0 + $0x70] sm:$0xff] }
   0x9   :  { %v33_v29 = vld [vmem:[%s971_s0 + $0x78] sm:$0xff]  ;;  %v37_v30 = vpack.c.bf16 %v25_v27, %v24_v26 }
   0xa   :  { %v41_v31 = vpack.c.bf16 %v33_v29, %v32_v28 }
   0xb   :  { %620 = vmatpush3.bf16.msra.mxu0 %v665_v2  ;;  %657 = vmatpush3.bf16.msra.mxu1 %v665_v2 }
   0xc   :  { %621 = vmatprep.subr.bf16.mxu0 %v666_v3  ;;  %650 = vmatprep.subr.bf16.mxu1 %v666_v3 }
   0xf   :  { %622 = vmatpush3.bf16.msra.mxu0 %v666_v3  ;;  %658 = vmatpush3.bf16.msra.mxu1 %v666_v3 }
  0x10   :  { %623 = vmatprep.subr.bf16.mxu0 %v667_v10  ;;  %651 = vmatprep.subr.bf16.mxu1 %v667_v10 }
  0x13   :  { %624 = vmatpush3.bf16.msra.mxu0 %v667_v10  ;;  %659 = vmatpush3.bf16.msra.mxu1 %v667_v10 }
  0x14   :  { %625 = vmatprep.subr.bf16.mxu0 %v668_v11  ;;  %652 = vmatprep.subr.bf16.mxu1 %v668_v11 }
  0x17   :  { %626 = vmatpush3.bf16.msra.mxu0 %v668_v11  ;;  %660 = vmatpush3.bf16.msra.mxu1 %v668_v11 }
  0x18   :  { %627 = vmatprep.subr.bf16.mxu0 %v669_v12  ;;  %653 = vmatprep.subr.bf16.mxu1 %v669_v12 }
  0x1b   :  { %628 = vmatpush3.bf16.msra.mxu0 %v669_v12  ;;  %661 = vmatpush3.bf16.msra.mxu1 %v669_v12 }
  0x1c   :  { %629 = vmatprep.subr.bf16.mxu0 %v670_v13  ;;  %654 = vmatprep.subr.bf16.mxu1 %v670_v13 }
  0x1f   :  { %630 = vmatpush3.bf16.msra.mxu0 %v670_v13  ;;  %662 = vmatpush3.bf16.msra.mxu1 %v670_v13 }
  0x22   :  { %632 = vmatmul.mubr.bf16.vlgmr.msra.gmra.mrb[0].mxu0 %v35_v22  ;;  %640 = vmatmul.mubr.bf16.vlgmr.msra.gmra.mrb[0].mxu1 %v39_v23 }
  0x23   :  { %635 = vmatprep.mubr.bf16.mxu0 %v36_v24  ;;  %643 = vmatprep.mubr.bf16.mxu1 %v40_v25 }
  0x2a   :  { %636 = vmatmul.mubr.bf16.gmra.mrb[4].mxu0 %v37_v30  ;;  %644 = vmatmul.mubr.bf16.gmra.mrb[4].mxu1 %v41_v31 }
  0xf5   :  { %v633_v32 = vpop.f32.mrb[0].mxu0  ;;  %v641_v33 = vpop.f32.mrb[0].mxu1 }
  0xf6   :  { %225 = vadd.xlane.f32.xlu0 %v641_v33  ;;  %v172_v34 = vpop.f32.mrb[1].mxu1  ;;  %209 = vadd.xlane.f32.xlu1 %v633_v32  ;;  %v140_v35 = vpop.f32.mrb[1].mxu0 }
  0xf7   :  { %v634_v36 = vpop.f32.mrb[2].mxu0  ;;  %v642_v37 = vpop.f32.mrb[2].mxu1 }
  0xf8   :  { %v143_v38 = vpop.f32.mrb[3].mxu0  ;;  %v175_v39 = vpop.f32.mrb[3].mxu1 }
  0xfa   :  { %205 = vadd.xlane.f32.xlu0 %v140_v35  ;;  %211 = vadd.xlane.f32.xlu1 %v634_v36 }
  0xfd   :  { %v637_v40 = vpop.f32.mrb[4].mxu0  ;;  %v800_v41 = vpop.f32.mrb[4].mxu1 }
  0xfe   :  { %221 = vadd.xlane.f32.xlu0 %v172_v34  ;;  %227 = vadd.xlane.f32.xlu1 %v642_v37  ;;  %v802_v42 = vpop.f32.mrb[5].mxu0  ;;  %v804_v43 = vpop.f32.mrb[5].mxu1 }
  0xff   :  { %v638_v44 = vpop.f32.mrb[6].mxu0  ;;  %v806_v45 = vpop.f32.mrb[6].mxu1 }
 0x100   :  { %v808_v46 = vpop.f32.mrb[7].mxu0  ;;  %v810_v47 = vpop.f32.mrb[7].mxu1 }
 0x102   :  { %223 = vadd.xlane.f32.xlu1 %v175_v39  ;;  %207 = vadd.xlane.f32.xlu0 %v143_v38 }
 0x106   :  { %217 = vadd.xlane.f32.xlu0 %v637_v40  ;;  %219 = vadd.xlane.f32.xlu1 %v638_v44 }
 0x10a   :  { %213 = vadd.xlane.f32.xlu0 %v802_v42  ;;  %215 = vadd.xlane.f32.xlu1 %v808_v46 }
 0x10e   :  { %229 = vadd.xlane.f32.xlu0 %v804_v43  ;;  %231 = vadd.xlane.f32.xlu1 %v810_v47 }
 0x112   :  { %233 = vadd.xlane.f32.xlu0 %v800_v41  ;;  %235 = vadd.xlane.f32.xlu1 %v806_v45 }
 0x183   :  { %v226_v48 = vpop.xlane.xlu0 %225  ;;  %v210_v49 = vpop.xlane.xlu1 %209 }
 0x184   :  { %v248_v50 = vmul.f32 0.0078125, %v226_v48  ;;  %v240_v51 = vmul.f32 0.0078125, %v210_v49 }
 0x186   :  { %v818_v52 = vsub.f32 %v633_v32, %v240_v51  ;;  %v820_v55 = vsub.f32 %v641_v33, %v248_v50 }
 0x187   :  { %v206_v53 = vpop.xlane.xlu0 %205  ;;  %v212_v54 = vpop.xlane.xlu1 %211 }
 0x188   :  { %v238_v56 = vmul.f32 0.0078125, %v206_v53  ;;  %v241_v57 = vmul.f32 0.0078125, %v212_v54  ;;  %v272_v58 = vmul.f32 %v818_v52, %v818_v52  ;;  %v280_v1 = vmul.f32 %v820_v55, %v820_v55 }
 0x18a   :  { %v824_v59 = vsub.f32 %v634_v36, %v241_v57  ;;  %290 = vadd.xlane.f32.xlu0 %v272_v58  ;;  %v826_v60 = vsub.f32 %v140_v35, %v238_v56 }
 0x18b   :  { %v222_v61 = vpop.xlane.xlu0 %221  ;;  %v228_v62 = vpop.xlane.xlu1 %227 }
 0x18c   :  { %v246_v63 = vmul.f32 0.0078125, %v222_v61  ;;  %v249_v0 = vmul.f32 0.0078125, %v228_v62  ;;  %v273_v2 = vmul.f32 %v824_v59, %v824_v59  ;;  %v270_v6 = vmul.f32 %v826_v60, %v826_v60 }
 0x18e   :  { %v832_v3 = vsub.f32 %v642_v37, %v249_v0  ;;  %306 = vadd.xlane.f32.xlu0 %v280_v1  ;;  %292 = vadd.xlane.f32.xlu1 %v273_v2  ;;  %v836_v7 = vsub.f32 %v172_v34, %v246_v63 }
 0x18f   :  { %v224_v4 = vpop.xlane.xlu1 %223  ;;  %v208_v5 = vpop.xlane.xlu0 %207 }
 0x190   :  { %v247_v8 = vmul.f32 0.0078125, %v224_v4  ;;  %v239_v9 = vmul.f32 0.0078125, %v208_v5  ;;  %v281_v10 = vmul.f32 %v832_v3, %v832_v3  ;;  %v278_v17 = vmul.f32 %v836_v7, %v836_v7 }
 0x192   :  { %v840_v11 = vsub.f32 %v143_v38, %v239_v9  ;;  %286 = vadd.xlane.f32.xlu0 %v270_v6  ;;  %308 = vadd.xlane.f32.xlu1 %v281_v10  ;;  %v842_v12 = vsub.f32 %v175_v39, %v247_v8 }
 0x193   :  { %v218_v13 = vpop.xlane.xlu0 %217  ;;  %v220_v14 = vpop.xlane.xlu1 %219 }
 0x194   :  { %v244_v15 = vmul.f32 0.0078125, %v218_v13  ;;  %v245_v16 = vmul.f32 0.0078125, %v220_v14  ;;  %v271_v18 = vmul.f32 %v840_v11, %v840_v11  ;;  %v279_v22 = vmul.f32 %v842_v12, %v842_v12 }
 0x196   :  { %v848_v19 = vsub.f32 %v637_v40, %v244_v15  ;;  %302 = vadd.xlane.f32.xlu0 %v278_v17  ;;  %288 = vadd.xlane.f32.xlu1 %v271_v18  ;;  %v852_v23 = vsub.f32 %v638_v44, %v245_v16  ;;  %v892_v17 = vld [vmem:[%s972_s2] ss:$0 sm:$0xff] }
 0x197   :  { %v214_v20 = vpop.xlane.xlu0 %213  ;;  %v216_v21 = vpop.xlane.xlu1 %215 }
 0x198   :  { %v242_v24 = vmul.f32 0.0078125, %v214_v20  ;;  %v243_v25 = vmul.f32 0.0078125, %v216_v21  ;;  %v276_v26 = vmul.f32 %v848_v19, %v848_v19  ;;  %v277_v34 = vmul.f32 %v852_v23, %v852_v23 }
 0x19a   :  { %v857_v27 = vsub.f32 %v802_v42, %v242_v24  ;;  %298 = vadd.xlane.f32.xlu0 %v276_v26  ;;  %304 = vadd.xlane.f32.xlu1 %v279_v22  ;;  %v860_v28 = vsub.f32 %v808_v46, %v243_v25 }
 0x19b   :  { %v230_v29 = vpop.xlane.xlu0 %229  ;;  %v232_v30 = vpop.xlane.xlu1 %231 }
 0x19c   :  { %v250_v31 = vmul.f32 0.0078125, %v230_v29  ;;  %v251_v32 = vmul.f32 0.0078125, %v232_v30  ;;  %v274_v33 = vmul.f32 %v857_v27, %v857_v27  ;;  %v275_v38 = vmul.f32 %v860_v28, %v860_v28 }
 0x19e   :  { %v867_v35 = vsub.f32 %v804_v43, %v250_v31  ;;  %294 = vadd.xlane.f32.xlu0 %v274_v33  ;;  %300 = vadd.xlane.f32.xlu1 %v277_v34  ;;  %v872_v39 = vsub.f32 %v810_v47, %v251_v32  ;;  %v899_v31 = vld [vmem:[%s973_s3] ss:$0 sm:$0xff] }
 0x19f   :  { %v234_v36 = vpop.xlane.xlu0 %233  ;;  %v236_v37 = vpop.xlane.xlu1 %235 }
 0x1a0   :  { %v252_v40 = vmul.f32 0.0078125, %v234_v36  ;;  %v253_v42 = vmul.f32 0.0078125, %v236_v37  ;;  %v282_v44 = vmul.f32 %v867_v35, %v867_v35  ;;  %v283_v47 = vmul.f32 %v872_v39, %v872_v39 }
 0x1a2   :  { %v877_v46 = vsub.f32 %v800_v41, %v252_v40  ;;  %310 = vadd.xlane.f32.xlu0 %v282_v44  ;;  %296 = vadd.xlane.f32.xlu1 %v275_v38  ;;  %v880_v43 = vsub.f32 %v806_v45, %v253_v42 }
 0x1a4   :  { %v284_v48 = vmul.f32 %v877_v46, %v877_v46  ;;  %v285_v49 = vmul.f32 %v880_v43, %v880_v43 }
 0x1a6   :  { %314 = vadd.xlane.f32.xlu0 %v284_v48  ;;  %312 = vadd.xlane.f32.xlu1 %v283_v47 }
 0x1aa   :  { %316 = vadd.xlane.f32.xlu1 %v285_v49 }
 0x217   :  { %v291_v50 = vpop.xlane.xlu0 %290 }
 0x218   :  { %v320_v41 = vmul.f32 0.0078125, %v291_v50 }
 0x21a   :  { %v336_v51 = vadd.f32 1e-06, %v320_v41 }
 0x21b   :  { %v307_v53 = vpop.xlane.xlu0 %306  ;;  %v293_v54 = vpop.xlane.xlu1 %292 }
 0x21c   :  { %671 = vrsqrt.f32 %v336_v51  ;;  %v328_v45 = vmul.f32 0.0078125, %v307_v53  ;;  %v321_v56 = vmul.f32 0.0078125, %v293_v54 }
 0x21e   :  { %v344_v57 = vadd.f32 1e-06, %v328_v45  ;;  %v337_v58 = vadd.f32 1e-06, %v321_v56 }
 0x21f   :  { %v287_v61 = vpop.xlane.xlu0 %286  ;;  %v309_v62 = vpop.xlane.xlu1 %308 }
 0x220   :  { %673 = vrsqrt.f32 %v344_v57  ;;  %v318_v63 = vmul.f32 0.0078125, %v287_v61  ;;  %v329_v0 = vmul.f32 0.0078125, %v309_v62 }
 0x221   :  { %675 = vrsqrt.f32 %v337_v58 }
 0x222   :  { %v334_v1 = vadd.f32 1e-06, %v318_v63  ;;  %v345_v2 = vadd.f32 1e-06, %v329_v0 }
 0x223   :  { %v303_v4 = vpop.xlane.xlu0 %302  ;;  %v289_v5 = vpop.xlane.xlu1 %288 }
 0x224   :  { %677 = vrsqrt.f32 %v334_v1  ;;  %v326_v6 = vmul.f32 0.0078125, %v303_v4  ;;  %v319_v8 = vmul.f32 0.0078125, %v289_v5 }
 0x225   :  { %679 = vrsqrt.f32 %v345_v2 }
 0x226   :  { %v672_v9 = vpop.eup %671  ;;  %v342_v10 = vadd.f32 1e-06, %v326_v6  ;;  %v335_v13 = vadd.f32 1e-06, %v319_v8 }
 0x227   :  { %v368_v14 = vmul.f32 %v672_v9, %v818_v52  ;;  %v299_v15 = vpop.xlane.xlu0 %298  ;;  %v305_v16 = vpop.xlane.xlu1 %304 }
 0x228   :  { %681 = vrsqrt.f32 %v342_v10  ;;  %v324_v18 = vmul.f32 0.0078125, %v299_v15  ;;  %v327_v20 = vmul.f32 0.0078125, %v305_v16 }
 0x229   :  { %683 = vrsqrt.f32 %v335_v13  ;;  %v390_v26 = vmul.f32 %v892_v17, %v368_v14 }
 0x22a   :  { %v674_v21 = vpop.eup %673  ;;  %v340_v22 = vadd.f32 1e-06, %v324_v18  ;;  %v343_v24 = vadd.f32 1e-06, %v327_v20 }
 0x22b   :  { %v676_v25 = vpop.eup %675  ;;  %v376_v29 = vmul.f32 %v674_v21, %v820_v55  ;;  %v295_v52 = vpop.xlane.xlu0 %294  ;;  %v412_v55 = vadd.f32 %v899_v31, %v390_v26 }
 0x22c   :  { %v301_v30 = vpop.xlane.xlu1 %300  ;;  %v369_v32 = vmul.f32 %v676_v25, %v824_v59  ;;  %685 = vrsqrt.f32 %v340_v22  ;;  %v322_v33 = vmul.f32 0.0078125, %v295_v52 }
 0x22d   :  { %v325_v34 = vmul.f32 0.0078125, %v301_v30  ;;  %687 = vrsqrt.f32 %v343_v24  ;;  %v398_v44 = vmul.f32 %v892_v17, %v376_v29 }
 0x22e   :  { %v678_v36 = vpop.eup %677  ;;  %v391_v37 = vmul.f32 %v892_v17, %v369_v32  ;;  %v338_v38 = vadd.f32 1e-06, %v322_v33 }
 0x22f   :  { %v341_v40 = vadd.f32 1e-06, %v325_v34  ;;  %v680_v42 = vpop.eup %679  ;;  %v366_v48 = vmul.f32 %v678_v36, %v826_v60  ;;  %v311_v47 = vpop.xlane.xlu0 %310  ;;  %v420_v58 = vadd.f32 %v899_v31, %v398_v44 }
 0x230   :  { %v297_v49 = vpop.xlane.xlu1 %296  ;;  %v413_v59 = vadd.f32 %v899_v31, %v391_v37  ;;  %v377_v50 = vmul.f32 %v680_v42, %v832_v3  ;;  %689 = vrsqrt.f32 %v338_v38  ;;  %v330_v41 = vmul.f32 0.0078125, %v311_v47 }
 0x231   :  { %691 = vrsqrt.f32 %v341_v40  ;;  %v323_v51 = vmul.f32 0.0078125, %v297_v49  ;;  %v388_v60 = vmul.f32 %v892_v17, %v366_v48 }
 0x232   :  { %v682_v53 = vpop.eup %681  ;;  %v560_v54 = vpack.c.bf16 %v413_v59, %v412_v55  ;;  %v399_v45 = vmul.f32 %v892_v17, %v377_v50  ;;  %v346_v56 = vadd.f32 1e-06, %v330_v41 }
 0x233   :  { %v684_v57 = vpop.eup %683  ;;  %v374_v61 = vmul.f32 %v682_v53, %v836_v7  ;;  %v339_v62 = vadd.f32 1e-06, %v323_v51  ;;  %v315_v63 = vpop.xlane.xlu0 %314  ;;  %v410_v10 = vadd.f32 %v899_v31, %v388_v60 }
 0x234   :  { %v313_v0 = vpop.xlane.xlu1 %312  ;;  %592 = vst [vmem:[%s974_s4 + $0x8] sm:$0xff] %v560_v54   ;;  %v421_v3 = vadd.f32 %v899_v31, %v399_v45  ;;  %v367_v1 = vmul.f32 %v684_v57, %v840_v11  ;;  %693 = vrsqrt.f32 %v346_v56  ;;  %v332_v2 = vmul.f32 0.0078125, %v315_v63 }
 0x235   :  { %695 = vrsqrt.f32 %v339_v62  ;;  %v331_v4 = vmul.f32 0.0078125, %v313_v0  ;;  %v396_v13 = vmul.f32 %v892_v17, %v374_v61 }
 0x236   :  { %v686_v5 = vpop.eup %685  ;;  %v580_v6 = vpack.c.bf16 %v421_v3, %v420_v58  ;;  %v389_v8 = vmul.f32 %v892_v17, %v367_v1  ;;  %v348_v7 = vadd.f32 1e-06, %v332_v2 }
 0x237   :  { %v688_v9 = vpop.eup %687  ;;  %v372_v14 = vmul.f32 %v686_v5, %v848_v19  ;;  %v347_v15 = vadd.f32 1e-06, %v331_v4  ;;  %v418_v19 = vadd.f32 %v899_v31, %v396_v13 }
 0x238   :  { %v317_v16 = vpop.xlane.xlu1 %316  ;;  %596 = vst [vmem:[%s974_s4 + $0x28] sm:$0xff] %v580_v6   ;;  %v411_v11 = vadd.f32 %v899_v31, %v389_v8  ;;  %v375_v18 = vmul.f32 %v688_v9, %v842_v12  ;;  %697 = vrsqrt.f32 %v348_v7 }
 0x239   :  { %v333_v20 = vmul.f32 0.0078125, %v317_v16  ;;  %699 = vrsqrt.f32 %v347_v15  ;;  %v394_v29 = vmul.f32 %v892_v17, %v372_v14 }
 0x23a   :  { %v690_v21 = vpop.eup %689  ;;  %v555_v22 = vpack.c.bf16 %v411_v11, %v410_v10  ;;  %v397_v24 = vmul.f32 %v892_v17, %v375_v18 }
 0x23b   :  { %v349_v25 = vadd.f32 1e-06, %v333_v20  ;;  %v692_v26 = vpop.eup %691  ;;  %v370_v12 = vmul.f32 %v690_v21, %v857_v27  ;;  %v416_v37 = vadd.f32 %v899_v31, %v394_v29 }
 0x23c   :  { %556 = vst [vmem:[%s974_s4] sm:$0xff] %v555_v22   ;;  %v419_v52 = vadd.f32 %v899_v31, %v397_v24  ;;  %v373_v30 = vmul.f32 %v692_v26, %v852_v23 }
 0x23d   :  { %701 = vrsqrt.f32 %v349_v25  ;;  %v392_v38 = vmul.f32 %v892_v17, %v370_v12 }
 0x23e   :  { %v694_v32 = vpop.eup %693  ;;  %v575_v33 = vpack.c.bf16 %v419_v52, %v418_v19  ;;  %v395_v34 = vmul.f32 %v892_v17, %v373_v30 }
 0x23f   :  { %v696_v36 = vpop.eup %695  ;;  %v378_v27 = vmul.f32 %v694_v32, %v867_v35  ;;  %v414_v49 = vadd.f32 %v899_v31, %v392_v38 }
 0x240   :  { %595 = vst [vmem:[%s974_s4 + $0x20] sm:$0xff] %v575_v33   ;;  %v417_v40 = vadd.f32 %v899_v31, %v395_v34  ;;  %v371_v23 = vmul.f32 %v696_v36, %v860_v28 }
 0x241   :  { %v400_v59 = vmul.f32 %v892_v17, %v378_v27 }
 0x242   :  { %v698_v42 = vpop.eup %697  ;;  %v570_v55 = vpack.c.bf16 %v417_v40, %v416_v37  ;;  %v393_v44 = vmul.f32 %v892_v17, %v371_v23 }
 0x243   :  { %v700_v48 = vpop.eup %699  ;;  %v380_v47 = vmul.f32 %v698_v42, %v877_v46  ;;  %v422_v54 = vadd.f32 %v899_v31, %v400_v59 }
 0x244   :  { %594 = vst [vmem:[%s974_s4 + $0x18] sm:$0xff] %v570_v55   ;;  %v415_v50 = vadd.f32 %v899_v31, %v393_v44  ;;  %v379_v35 = vmul.f32 %v700_v48, %v872_v39 }
 0x245   :  { %v402_v53 = vmul.f32 %v892_v17, %v380_v47 }
 0x246   :  { %v565_v41 = vpack.c.bf16 %v415_v50, %v414_v49  ;;  %v401_v51 = vmul.f32 %v892_v17, %v379_v35 }
 0x247   :  { %v702_v28 = vpop.eup %701  ;;  %v424_v39 = vadd.f32 %v899_v31, %v402_v53 }
 0x248   :  { %v381_v46 = vmul.f32 %v702_v28, %v880_v43  ;;  %593 = vst [vmem:[%s974_s4 + $0x10] sm:$0xff] %v565_v41   ;;  %v423_v45 = vadd.f32 %v899_v31, %v401_v51 }
 0x24a   :  { %v403_v56 = vmul.f32 %v892_v17, %v381_v46  ;;  %v585_v57 = vpack.c.bf16 %v423_v45, %v422_v54 }
 0x24c   :  { %v425_v58 = vadd.f32 %v899_v31, %v403_v56  ;;  %597 = vst [vmem:[%s974_s4 + $0x30] sm:$0xff] %v585_v57  }
 0x24e   :  { %v590_v43 = vpack.c.bf16 %v425_v58, %v424_v39 }
 0x250   :  { %598 = vst [vmem:[%s974_s4 + $0x38] sm:$0xff] %v590_v43  }

// kernel: _lambda_.17
= control target key start
LH: loop header
LB: loop body
LE: loop exit
PB: predicated region body
PF: predicated region fallthrough
CT: control target
= control target key end

     0   :  { %s1776_s18 = smov 0   ;;  %s1778_s19 = smov 0   ;;  %s2440_s0 = inlined_call_operand.vmem [shape: f32[128,128], index: 0, kind: input, shape index: {}]   ;;  %s2441_s1 = inlined_call_operand.vmem [shape: bf16[128,512], index: 1, kind: input, shape index: {}]   ;;  %s2442_s2 = inlined_call_operand.vmem [shape: f32[1,512], index: 2, kind: input, shape index: {}]   ;;  %s2443_s3 = inlined_call_operand.vmem [shape: f32[1,128], index: 3, kind: input, shape index: {}]   ;;  %s2444_s4 = inlined_call_operand.vmem [shape: f32[1,128], index: 4, kind: input, shape index: {}]   ;;  %s2445_s5 = inlined_call_operand.vmem [shape: bf16[128,512], index: 5, kind: output, shape index: {}]  }
   0x1   :  { %s1780_s20 = smov 0   ;;  %s1782_s21 = smov 0  }
   0x2   :  { %s1784_s22 = smov 0  }
   0x3 LB: > { %s24_s23 = sadd.s32 1, %s1739_s21  ;;  %s1458_s24 = sadd.s32 4294967295, %s1743_s22   ;;  %s1743_s22 = sphi %s1784_s22, %s15_s22   ;;  %s1739_s21 = sphi %s1782_s21, %s2450_s21   ;;  %s1735_s20 = sphi %s1780_s20, %s2449_s20   ;;  %s1731_s19 = sphi %s1778_s19, %s2448_s19   ;;  %s1727_s18 = sphi %s1776_s18, %s2447_s18  }
   0x4   : > { %p25_p0 = scmp.ge.s32.totalorder %s24_s23, 2  ;;  %p67_p1 = scmp.ne.s32.totalorder %s1731_s19, %s1727_s18 }
   0x5   : > { %p68_p2 = scmp.eq.s32.totalorder %s1743_s22, 0  ;;  %p167_p4 = scmp.eq.s32.totalorder %s1458_s24, 1 }
   0x6   : > { %s2452_s23 = smov (%p25_p0, %s24_s23), 0  ;;  %s60_s26 = sadd.s32 1, %s1731_s19 }
   0x7   : > { %p69_p3 = por %p68_p2, %p67_p1  ;;  %s57_s25 = ssub.s32 %s1739_s21, %s2452_s23 }
   0x8   : > { %p58_p5 = scmp.eq.s32.totalorder %s57_s25, 0  ;;  %p1811_p6 = por %p167_p4, %p67_p1 }
   0x9   : > { %p1462_p7 = scmp.ge.s32.totalorder %s1743_s22, 2 }
   0xa   : > { %s1816_s28 = scalar_select %p58_p5, %s1731_s19, %s60_s26  }
   0xb   : > { %204 = sbr.rel (%p1462_p7) target bundleno = 30 (0x1e), region = 28 }
  0x12   : > { %207 = sbr.rel (!%p69_p3) target bundleno = 30 (0x1e), region = 32  ;;  %s209_s29 = sand.u32 (%p69_p3), 1, %s1731_s19  }
  0x13   : > { %s1510_s30 = sshll.u32 (%p69_p3), %s1739_s21, 3  ;;  %s1463_s6 = sshll.u32 (%p69_p3), %s209_s29, 7 }
  0x14   : > { %s1824_s9 = scalar_lea.vmem (%p69_p3), %s2441_s1, %s1510_s30  ;;  %s211_s10 = scalar_lea.vmem (%p69_p3), [#allocation3], %s1463_s6 }
  0x15   : > { %v272_v0 = vld [vmem:[%s1824_s9] sm:$0xff] (%p69_p3)  ;;  %v274_v1 = vld [vmem:[%s1824_s9 + $0x10] sm:$0xff] (%p69_p3) }
  0x16   : > { %v276_v2 = vld [vmem:[%s1824_s9 + $0x20] sm:$0xff] (%p69_p3)  ;;  %273 = vst [vmem:[%s211_s10] sm:$0xff] (%p69_p3), %v272_v0  ;;  %275 = vst [vmem:[%s211_s10 + $0x8] sm:$0xff] (%p69_p3), %v274_v1  ;;  %v278_v3 = vld [vmem:[%s1824_s9 + $0x30] sm:$0xff] (%p69_p3) }
  0x17   : > { %277 = vst [vmem:[%s211_s10 + $0x10] sm:$0xff] (%p69_p3), %v276_v2  ;;  %v280_v4 = vld [vmem:[%s1824_s9 + $0x40] sm:$0xff] (%p69_p3)  ;;  %v282_v5 = vld [vmem:[%s1824_s9 + $0x50] sm:$0xff] (%p69_p3)  ;;  %279 = vst [vmem:[%s211_s10 + $0x18] sm:$0xff] (%p69_p3), %v278_v3 }
  0x18   : > { %281 = vst [vmem:[%s211_s10 + $0x20] sm:$0xff] (%p69_p3), %v280_v4  ;;  %283 = vst [vmem:[%s211_s10 + $0x28] sm:$0xff] (%p69_p3), %v282_v5  ;;  %v284_v6 = vld [vmem:[%s1824_s9 + $0x60] sm:$0xff] (%p69_p3)  ;;  %v286_v7 = vld [vmem:[%s1824_s9 + $0x70] sm:$0xff] (%p69_p3) }
  0x19   : > { %v288_v8 = vld [vmem:[%s1824_s9 + $0x80] sm:$0xff]  ;;  %285 = vst [vmem:[%s211_s10 + $0x30] sm:$0xff] %v284_v6  ;;  %287 = vst [vmem:[%s211_s10 + $0x38] sm:$0xff] %v286_v7  ;;  %v290_v9 = vld [vmem:[%s1824_s9 + $0x90] sm:$0xff] }
  0x1a   : > { %289 = vst [vmem:[%s211_s10 + $0x40] sm:$0xff] %v288_v8  ;;  %v292_v10 = vld [vmem:[%s1824_s9 + $0xa0] sm:$0xff]  ;;  %v294_v11 = vld [vmem:[%s1824_s9 + $0xb0] sm:$0xff]  ;;  %291 = vst [vmem:[%s211_s10 + $0x48] sm:$0xff] %v290_v9 }
  0x1b   : > { %293 = vst [vmem:[%s211_s10 + $0x50] sm:$0xff] %v292_v10  ;;  %295 = vst [vmem:[%s211_s10 + $0x58] sm:$0xff] %v294_v11  ;;  %v296_v12 = vld [vmem:[%s1824_s9 + $0xc0] sm:$0xff]  ;;  %v298_v13 = vld [vmem:[%s1824_s9 + $0xd0] sm:$0xff] }
  0x1c   : > { %v300_v14 = vld [vmem:[%s1824_s9 + $0xe0] sm:$0xff]  ;;  %297 = vst [vmem:[%s211_s10 + $0x60] sm:$0xff] %v296_v12  ;;  %299 = vst [vmem:[%s211_s10 + $0x68] sm:$0xff] %v298_v13  ;;  %v302_v15 = vld [vmem:[%s1824_s9 + $0xf0] sm:$0xff] }
  0x1d   : > { %301 = vst [vmem:[%s211_s10 + $0x70] sm:$0xff] %v300_v14  ;;  %303 = vst [vmem:[%s211_s10 + $0x78] sm:$0xff] %v302_v15 }
  0x1e PF: > { %p1466_p8 = scmp.ge.s32.totalorder %s1743_s22, 1  ;;  %p316_p9 = scmp.lt.s32.totalorder %s1743_s22, 3 }
  0x20   : > { %p317_p10 = pnand %p1466_p8, %p316_p9 }
  0x21   : > { %s323_s11 = sand.u32 (!%p317_p10), 1, %s1727_s18   ;;  %s1469_s12 = sshll.u32 (!%p317_p10), %s1735_s20, 1 }
  0x22   : > { %320 = sbr.rel (%p317_p10) target bundleno = 747 (0x2eb), region = 74  ;;  %s1467_s13 = sshll.u32 (!%p317_p10), %s323_s11, 7 }
  0x23   : > { %p366_p11 = scmp.lt.s32.totalorder (!%p317_p10), %s1469_s12, 3  ;;  %s1852_s17 = scalar_lea.vmem (!%p317_p10), [#allocation3], %s1467_s13 }
  0x24   : > { %s1854_s24 = scalar_lea.vmem (!%p317_p10), [#allocation4], %s1467_s13  ;;  %p1470_p12 = scmp.ne.s32.totalorder (!%p317_p10), %s1735_s20, 0 }
  0x29   : > { %s2454_s12 = smov (!%p366_p11, %s1469_s12), 3  ;;  %376 = sbr.rel (%p1470_p12) target bundleno = 389 (0x185), region = 82 }
  0x2a   : > { %s368_s16 = scalar_lea.vmem %s2442_s2, %s2454_s12  ;;  %v377_v16 = vld [vmem:[%s2440_s0] sm:$0xff] (!%p1470_p12)  ;;  %v379_v17 = vld [vmem:[%s2440_s0 + $0x10] sm:$0xff] (!%p1470_p12)  ;;  %v378_v18 = vld [vmem:[%s2440_s0 + $0x8] sm:$0xff] (!%p1470_p12) }
  0x2b   : > { %395 = vadd.xlane.f32.xlu0 (!%p1470_p12), %v377_v16  ;;  %399 = vadd.xlane.f32.xlu1 (!%p1470_p12), %v379_v17  ;;  %v380_v19 = vld [vmem:[%s2440_s0 + $0x18] sm:$0xff] (!%p1470_p12)  ;;  %v381_v20 = vld [vmem:[%s2440_s0 + $0x20] sm:$0xff] (!%p1470_p12)  ;;  %v382_v21 = vld [vmem:[%s2440_s0 + $0x28] sm:$0xff] (!%p1470_p12) }
  0x2c   : > { %v383_v22 = vld [vmem:[%s2440_s0 + $0x30] sm:$0xff] (!%p1470_p12)  ;;  %v384_v23 = vld [vmem:[%s2440_s0 + $0x38] sm:$0xff] (!%p1470_p12)  ;;  %v385_v24 = vld [vmem:[%s2440_s0 + $0x40] sm:$0xff] (!%p1470_p12) }
  0x2d   : > { %v386_v25 = vld [vmem:[%s2440_s0 + $0x48] sm:$0xff] (!%p1470_p12)  ;;  %v387_v26 = vld [vmem:[%s2440_s0 + $0x50] sm:$0xff] (!%p1470_p12)  ;;  %v1893_v27 = vld [vmem:[%s2440_s0 + $0x58] sm:$0xff] (!%p1470_p12) }
  0x2e   : > { %v1899_v28 = vld [vmem:[%s2440_s0 + $0x60] sm:$0xff] (!%p1470_p12)  ;;  %v1904_v29 = vld [vmem:[%s2440_s0 + $0x68] sm:$0xff] (!%p1470_p12)  ;;  %v1911_v30 = vld [vmem:[%s2440_s0 + $0x70] sm:$0xff] (!%p1470_p12) }
  0x2f   : > { %397 = vadd.xlane.f32.xlu0 (!%p1470_p12), %v378_v18  ;;  %401 = vadd.xlane.f32.xlu1 (!%p1470_p12), %v380_v19  ;;  %v1916_v31 = vld [vmem:[%s2440_s0 + $0x78] sm:$0xff] (!%p1470_p12) }
  0x33   : > { %403 = vadd.xlane.f32.xlu0 %v381_v20  ;;  %405 = vadd.xlane.f32.xlu1 %v382_v21 }
  0x37   : > { %407 = vadd.xlane.f32.xlu0 %v383_v22  ;;  %409 = vadd.xlane.f32.xlu1 %v384_v23 }
  0x3b   : > { %411 = vadd.xlane.f32.xlu0 %v385_v24  ;;  %413 = vadd.xlane.f32.xlu1 %v386_v25 }
  0x3f   : > { %415 = vadd.xlane.f32.xlu0 %v387_v26  ;;  %417 = vadd.xlane.f32.xlu1 %v1893_v27 }
  0x43   : > { %419 = vadd.xlane.f32.xlu0 %v1899_v28  ;;  %421 = vadd.xlane.f32.xlu1 %v1904_v29 }
  0x47   : > { %423 = vadd.xlane.f32.xlu0 %v1911_v30  ;;  %425 = vadd.xlane.f32.xlu1 %v1916_v31 }
  0xb8   : > { %v396_v32 = vpop.xlane.xlu0 %395  ;;  %v400_v33 = vpop.xlane.xlu1 %399 }
  0xb9   : > { %v428_v34 = vmul.f32 0.0078125, %v396_v32  ;;  %v430_v35 = vmul.f32 0.0078125, %v400_v33 }
  0xbb   : > { %v1920_v36 = vsub.f32 %v377_v16, %v428_v34  ;;  %v1922_v37 = vsub.f32 %v379_v17, %v430_v35 }
  0xbc   : > { %v398_v38 = vpop.xlane.xlu0 %397  ;;  %v402_v39 = vpop.xlane.xlu1 %401 }
  0xbd   : > { %v429_v40 = vmul.f32 0.0078125, %v398_v38  ;;  %v460_v41 = vmul.f32 %v1920_v36, %v1920_v36  ;;  %v431_v42 = vmul.f32 0.0078125, %v402_v39  ;;  %v462_v45 = vmul.f32 %v1922_v37, %v1922_v37 }
  0xbf   : > { %v1926_v43 = vsub.f32 %v378_v18, %v429_v40  ;;  %476 = vadd.xlane.f32.xlu0 %v460_v41  ;;  %v1928_v44 = vsub.f32 %v380_v19, %v431_v42 }
  0xc0   : > { %v404_v46 = vpop.xlane.xlu0 %403  ;;  %v406_v47 = vpop.xlane.xlu1 %405 }
  0xc1   : > { %v432_v48 = vmul.f32 0.0078125, %v404_v46  ;;  %v461_v49 = vmul.f32 %v1926_v43, %v1926_v43  ;;  %v433_v50 = vmul.f32 0.0078125, %v406_v47  ;;  %v463_v53 = vmul.f32 %v1928_v44, %v1928_v44 }
  0xc3   : > { %v1934_v51 = vsub.f32 %v381_v20, %v432_v48  ;;  %480 = vadd.xlane.f32.xlu0 %v462_v45  ;;  %478 = vadd.xlane.f32.xlu1 %v461_v49  ;;  %v1936_v52 = vsub.f32 %v382_v21, %v433_v50 }
  0xc4   : > { %v408_v54 = vpop.xlane.xlu0 %407  ;;  %v410_v55 = vpop.xlane.xlu1 %409 }
  0xc5   : > { %v434_v56 = vmul.f32 0.0078125, %v408_v54  ;;  %v464_v57 = vmul.f32 %v1934_v51, %v1934_v51  ;;  %v435_v58 = vmul.f32 0.0078125, %v410_v55  ;;  %v465_v61 = vmul.f32 %v1936_v52, %v1936_v52 }
  0xc7   : > { %v1942_v59 = vsub.f32 %v383_v22, %v434_v56  ;;  %482 = vadd.xlane.f32.xlu1 %v463_v53  ;;  %484 = vadd.xlane.f32.xlu0 %v464_v57  ;;  %v1944_v60 = vsub.f32 %v384_v23, %v435_v58 }
  0xc8   : > { %v412_v62 = vpop.xlane.xlu0 %411  ;;  %v414_v63 = vpop.xlane.xlu1 %413 }
  0xc9   : > { %v436_v0 = vmul.f32 0.0078125, %v412_v62  ;;  %v466_v1 = vmul.f32 %v1942_v59, %v1942_v59  ;;  %v437_v2 = vmul.f32 0.0078125, %v414_v63  ;;  %v467_v5 = vmul.f32 %v1944_v60, %v1944_v60 }
  0xcb   : > { %v1950_v3 = vsub.f32 %v385_v24, %v436_v0  ;;  %486 = vadd.xlane.f32.xlu1 %v465_v61  ;;  %488 = vadd.xlane.f32.xlu0 %v466_v1  ;;  %v1952_v4 = vsub.f32 %v386_v25, %v437_v2  ;;  %v1993_v1 = vld [vmem:[%s2443_s3] ss:$0 sm:$0xff] }
  0xcc   : > { %v416_v6 = vpop.xlane.xlu0 %415  ;;  %v418_v7 = vpop.xlane.xlu1 %417 }
  0xcd   : > { %v438_v8 = vmul.f32 0.0078125, %v416_v6  ;;  %v468_v9 = vmul.f32 %v1950_v3, %v1950_v3  ;;  %v439_v10 = vmul.f32 0.0078125, %v418_v7  ;;  %v469_v13 = vmul.f32 %v1952_v4, %v1952_v4 }
  0xcf   : > { %v1958_v11 = vsub.f32 %v387_v26, %v438_v8  ;;  %490 = vadd.xlane.f32.xlu1 %v467_v5  ;;  %492 = vadd.xlane.f32.xlu0 %v468_v9  ;;  %v1961_v12 = vsub.f32 %v1893_v27, %v439_v10 }
  0xd0   : > { %v420_v14 = vpop.xlane.xlu0 %419  ;;  %v422_v15 = vpop.xlane.xlu1 %421 }
  0xd1   : > { %v440_v16 = vmul.f32 0.0078125, %v420_v14  ;;  %v470_v17 = vmul.f32 %v1958_v11, %v1958_v11  ;;  %v441_v18 = vmul.f32 0.0078125, %v422_v15  ;;  %v471_v21 = vmul.f32 %v1961_v12, %v1961_v12  ;;  %v2000_v15 = vld [vmem:[%s2444_s4] ss:$0 sm:$0xff] }
  0xd3   : > { %v1968_v19 = vsub.f32 %v1899_v28, %v440_v16  ;;  %494 = vadd.xlane.f32.xlu1 %v469_v13  ;;  %496 = vadd.xlane.f32.xlu0 %v470_v17  ;;  %v1971_v20 = vsub.f32 %v1904_v29, %v441_v18 }
  0xd4   : > { %v424_v22 = vpop.xlane.xlu0 %423  ;;  %v426_v23 = vpop.xlane.xlu1 %425 }
  0xd5   : > { %v442_v24 = vmul.f32 0.0078125, %v424_v22  ;;  %v472_v25 = vmul.f32 %v1968_v19, %v1968_v19  ;;  %v443_v26 = vmul.f32 0.0078125, %v426_v23  ;;  %v473_v29 = vmul.f32 %v1971_v20, %v1971_v20 }
  0xd7   : > { %v1978_v27 = vsub.f32 %v1911_v30, %v442_v24  ;;  %498 = vadd.xlane.f32.xlu1 %v471_v21  ;;  %500 = vadd.xlane.f32.xlu0 %v472_v25  ;;  %v1981_v28 = vsub.f32 %v1916_v31, %v443_v26 }
  0xd9   : > { %v474_v32 = vmul.f32 %v1978_v27, %v1978_v27  ;;  %v475_v33 = vmul.f32 %v1981_v28, %v1981_v28 }
  0xdb   : > { %502 = vadd.xlane.f32.xlu1 %v473_v29  ;;  %504 = vadd.xlane.f32.xlu0 %v474_v32 }
  0xdf   : > { %506 = vadd.xlane.f32.xlu1 %v475_v33 }
 0x14c   : > { %v477_v34 = vpop.xlane.xlu0 %476 }
 0x14d   : > { %v508_v30 = vmul.f32 0.0078125, %v477_v34 }
 0x14f   : > { %v524_v35 = vadd.f32 1e-06, %v508_v30 }
 0x150   : > { %v479_v38 = vpop.xlane.xlu1 %478  ;;  %v481_v39 = vpop.xlane.xlu0 %480 }
 0x151   : > { %1585 = vrsqrt.f32 %v524_v35  ;;  %v509_v31 = vmul.f32 0.0078125, %v479_v38  ;;  %v510_v40 = vmul.f32 0.0078125, %v481_v39 }
 0x153   : > { %v525_v41 = vadd.f32 1e-06, %v509_v31  ;;  %v526_v42 = vadd.f32 1e-06, %v510_v40 }
 0x154   : > { %v483_v45 = vpop.xlane.xlu1 %482  ;;  %v485_v46 = vpop.xlane.xlu0 %484 }
 0x155   : > { %1587 = vrsqrt.f32 %v525_v41  ;;  %v511_v47 = vmul.f32 0.0078125, %v483_v45  ;;  %v512_v48 = vmul.f32 0.0078125, %v485_v46 }
 0x156   : > { %1589 = vrsqrt.f32 %v526_v42 }
 0x157   : > { %v527_v49 = vadd.f32 1e-06, %v511_v47  ;;  %v528_v50 = vadd.f32 1e-06, %v512_v48 }
 0x158   : > { %v487_v53 = vpop.xlane.xlu1 %486  ;;  %v489_v54 = vpop.xlane.xlu0 %488 }
 0x159   : > { %1591 = vrsqrt.f32 %v527_v49  ;;  %v513_v55 = vmul.f32 0.0078125, %v487_v53  ;;  %v514_v56 = vmul.f32 0.0078125, %v489_v54 }
 0x15a   : > { %1593 = vrsqrt.f32 %v528_v50 }
 0x15b   : > { %v1586_v57 = vpop.eup %1585  ;;  %v529_v58 = vadd.f32 1e-06, %v513_v55  ;;  %v530_v61 = vadd.f32 1e-06, %v514_v56 }
 0x15c   : > { %v556_v62 = vmul.f32 %v1586_v57, %v1920_v36  ;;  %v491_v63 = vpop.xlane.xlu1 %490  ;;  %v493_v0 = vpop.xlane.xlu0 %492 }
 0x15d   : > { %1595 = vrsqrt.f32 %v529_v58  ;;  %v515_v2 = vmul.f32 0.0078125, %v491_v63  ;;  %v516_v5 = vmul.f32 0.0078125, %v493_v0 }
 0x15e   : > { %1597 = vrsqrt.f32 %v530_v61  ;;  %v578_v10 = vmul.f32 %v1993_v1, %v556_v62 }
 0x15f   : > { %v1588_v6 = vpop.eup %1587  ;;  %v531_v7 = vadd.f32 1e-06, %v515_v2  ;;  %v532_v8 = vadd.f32 1e-06, %v516_v5 }
 0x160   : > { %v1590_v9 = vpop.eup %1589  ;;  %v557_v13 = vmul.f32 %v1588_v6, %v1926_v43  ;;  %v495_v36 = vpop.xlane.xlu1 %494  ;;  %v600_v43 = vadd.f32 %v2000_v15, %v578_v10 }
 0x161   : > { %v497_v14 = vpop.xlane.xlu0 %496  ;;  %v558_v16 = vmul.f32 %v1590_v9, %v1922_v37  ;;  %1599 = vrsqrt.f32 %v531_v7  ;;  %v517_v17 = vmul.f32 0.0078125, %v495_v36 }
 0x162   : > { %v518_v18 = vmul.f32 0.0078125, %v497_v14  ;;  %v579_v21 = vmul.f32 %v1993_v1, %v557_v13  ;;  %1601 = vrsqrt.f32 %v532_v8 }
 0x163   : > { %v1592_v22 = vpop.eup %1591  ;;  %v533_v23 = vadd.f32 1e-06, %v517_v17  ;;  %v580_v29 = vmul.f32 %v1993_v1, %v558_v16 }
 0x164   : > { %v534_v24 = vadd.f32 1e-06, %v518_v18  ;;  %v1594_v25 = vpop.eup %1593  ;;  %v601_v26 = vadd.f32 %v2000_v15, %v579_v21  ;;  %v559_v32 = vmul.f32 %v1592_v22, %v1928_v44  ;;  %v499_v33 = vpop.xlane.xlu1 %498 }
 0x165   : > { %v501_v37 = vpop.xlane.xlu0 %500  ;;  %v560_v34 = vmul.f32 %v1594_v25, %v1934_v51  ;;  %1603 = vrsqrt.f32 %v533_v23  ;;  %v519_v30 = vmul.f32 0.0078125, %v499_v33  ;;  %v602_v45 = vadd.f32 %v2000_v15, %v580_v29 }
 0x166   : > { %v616_v35 = vpack.c.bf16 %v601_v26, %v600_v43  ;;  %v581_v38 = vmul.f32 %v1993_v1, %v559_v32  ;;  %1605 = vrsqrt.f32 %v534_v24  ;;  %v520_v39 = vmul.f32 0.0078125, %v501_v37 }
 0x167   : > { %v1596_v31 = vpop.eup %1595  ;;  %v582_v40 = vmul.f32 %v1993_v1, %v560_v34  ;;  %v535_v41 = vadd.f32 1e-06, %v519_v30 }
 0x168   : > { %v1598_v42 = vpop.eup %1597  ;;  %624 = vst [vmem:[#allocation2] sm:$0xff] %v616_v35  ;;  %v603_v44 = vadd.f32 %v2000_v15, %v581_v38  ;;  %v561_v46 = vmul.f32 %v1596_v31, %v1936_v52  ;;  %v536_v51 = vadd.f32 1e-06, %v520_v39  ;;  %v503_v47 = vpop.xlane.xlu1 %502 }
 0x169   : > { %v505_v48 = vpop.xlane.xlu0 %504  ;;  %v562_v49 = vmul.f32 %v1598_v42, %v1942_v59  ;;  %1607 = vrsqrt.f32 %v535_v41  ;;  %v521_v50 = vmul.f32 0.0078125, %v503_v47  ;;  %v604_v57 = vadd.f32 %v2000_v15, %v582_v40 }
 0x16a   : > { %v617_v53 = vpack.c.bf16 %v603_v44, %v602_v45  ;;  %v583_v54 = vmul.f32 %v1993_v1, %v561_v46  ;;  %1609 = vrsqrt.f32 %v536_v51  ;;  %v522_v55 = vmul.f32 0.0078125, %v505_v48 }
 0x16b   : > { %v1600_v56 = vpop.eup %1599  ;;  %v537_v58 = vadd.f32 1e-06, %v521_v50  ;;  %v584_v62 = vmul.f32 %v1993_v1, %v562_v49 }
 0x16c   : > { %v1602_v61 = vpop.eup %1601  ;;  %625 = vst [vmem:[#allocation2 + $0x8] sm:$0xff] %v617_v53  ;;  %v605_v52 = vadd.f32 %v2000_v15, %v583_v54  ;;  %v563_v63 = vmul.f32 %v1600_v56, %v1944_v60  ;;  %v538_v59 = vadd.f32 1e-06, %v522_v55  ;;  %v507_v0 = vpop.xlane.xlu1 %506 }
 0x16d   : > { %v564_v2 = vmul.f32 %v1602_v61, %v1950_v3  ;;  %1611 = vrsqrt.f32 %v537_v58  ;;  %v523_v5 = vmul.f32 0.0078125, %v507_v0  ;;  %v606_v13 = vadd.f32 %v2000_v15, %v584_v62 }
 0x16e   : > { %v618_v6 = vpack.c.bf16 %v605_v52, %v604_v57  ;;  %v585_v7 = vmul.f32 %v1993_v1, %v563_v63  ;;  %1613 = vrsqrt.f32 %v538_v59 }
 0x16f   : > { %v1604_v8 = vpop.eup %1603  ;;  %v539_v9 = vadd.f32 1e-06, %v523_v5  ;;  %v586_v60 = vmul.f32 %v1993_v1, %v564_v2 }
 0x170   : > { %v1606_v10 = vpop.eup %1605  ;;  %626 = vst [vmem:[#allocation2 + $0x10] sm:$0xff] %v618_v6  ;;  %v607_v36 = vadd.f32 %v2000_v15, %v585_v7  ;;  %v565_v14 = vmul.f32 %v1604_v8, %v1952_v4 }
 0x171   : > { %v566_v3 = vmul.f32 %v1606_v10, %v1958_v11  ;;  %1615 = vrsqrt.f32 %v539_v9  ;;  %v608_v22 = vadd.f32 %v2000_v15, %v586_v60 }
 0x172   : > { %v619_v16 = vpack.c.bf16 %v607_v36, %v606_v13  ;;  %v587_v17 = vmul.f32 %v1993_v1, %v565_v14 }
 0x173   : > { %v1608_v18 = vpop.eup %1607  ;;  %v588_v24 = vmul.f32 %v1993_v1, %v566_v3 }
 0x174   : > { %v1610_v21 = vpop.eup %1609  ;;  %627 = vst [vmem:[#allocation2 + $0x18] sm:$0xff] %v619_v16  ;;  %v609_v23 = vadd.f32 %v2000_v15, %v587_v17  ;;  %v567_v25 = vmul.f32 %v1608_v18, %v1961_v12 }
 0x175   : > { %v568_v43 = vmul.f32 %v1610_v21, %v1968_v19  ;;  %v610_v32 = vadd.f32 %v2000_v15, %v588_v24 }
 0x176   : > { %v620_v4 = vpack.c.bf16 %v609_v23, %v608_v22  ;;  %v589_v11 = vmul.f32 %v1993_v1, %v567_v25 }
 0x177   : > { %v1612_v26 = vpop.eup %1611  ;;  %v590_v37 = vmul.f32 %v1993_v1, %v568_v43 }
 0x178   : > { %v1614_v29 = vpop.eup %1613  ;;  %628 = vst [vmem:[#allocation2 + $0x20] sm:$0xff] %v620_v4  ;;  %v611_v33 = vadd.f32 %v2000_v15, %v589_v11  ;;  %v569_v34 = vmul.f32 %v1612_v26, %v1971_v20 }
 0x179   : > { %v570_v30 = vmul.f32 %v1614_v29, %v1978_v27  ;;  %v612_v38 = vadd.f32 %v2000_v15, %v590_v37 }
 0x17a   : > { %v621_v35 = vpack.c.bf16 %v611_v33, %v610_v32  ;;  %v591_v12 = vmul.f32 %v1993_v1, %v569_v34 }
 0x17b   : > { %v1616_v19 = vpop.eup %1615  ;;  %v592_v31 = vmul.f32 %v1993_v1, %v570_v30 }
 0x17c   : > { %629 = vst [vmem:[#allocation2 + $0x28] sm:$0xff] %v621_v35  ;;  %v613_v39 = vadd.f32 %v2000_v15, %v591_v12  ;;  %v571_v40 = vmul.f32 %v1616_v19, %v1981_v28 }
 0x17d   : > { %v614_v20 = vadd.f32 %v2000_v15, %v592_v31 }
 0x17e   : > { %v622_v41 = vpack.c.bf16 %v613_v39, %v612_v38  ;;  %v593_v42 = vmul.f32 %v1993_v1, %v571_v40 }
 0x180   : > { %630 = vst [vmem:[#allocation2 + $0x30] sm:$0xff] %v622_v41  ;;  %v615_v27 = vadd.f32 %v2000_v15, %v593_v42 }
 0x182   : > { %v623_v45 = vpack.c.bf16 %v615_v27, %v614_v20 }
 0x184   : > { %631 = vst [vmem:[#allocation2 + $0x38] sm:$0xff] %v623_v45 }
 0x185 PF: > { %v1617_v44 = vld [vmem:[%s1852_s17 + $0x4] ss:$8 sps:$4 sm:$0xff]   ;;  %v1619_v46 = vld [vmem:[%s1852_s17] ss:$8 sps:$4 sm:$0xff]   ;;  %v1745_v28 = vmov 0   ;;  %v634_v0 = vld [vmem:[#allocation2 + $0x10] sm:$0xff]  ;;  %v658_v7 = vlaneseq }
 0x186   : > { %780 = vmatprep.mubr.bf16.mxu0 %v1745_v28  ;;  %820 = vmatprep.mubr.bf16.mxu1 %v1745_v28  ;;  %v1620_v1 = vld [vmem:[%s1852_s17 + $0x14] ss:$8 sps:$4 sm:$0xff]   ;;  %v1622_v15 = vld [vmem:[%s1852_s17 + $0x10] ss:$8 sps:$4 sm:$0xff]   ;;  %v1623_v51 = vld [vmem:[%s1852_s17 + $0x24] ss:$8 sps:$4 sm:$0xff]  }
 0x187   : > { %748 = vmatprep.subr.bf16.mxu0 %v1617_v44  ;;  %1528 = vmatprep.subr.bf16.mxu1 %v1617_v44  ;;  %v1625_v47 = vld [vmem:[%s1852_s17 + $0x20] ss:$8 sps:$4 sm:$0xff]   ;;  %v1626_v48 = vld [vmem:[%s1852_s17 + $0x34] ss:$8 sps:$4 sm:$0xff]   ;;  %v1628_v49 = vld [vmem:[%s1852_s17 + $0x30] ss:$8 sps:$4 sm:$0xff]  }
 0x188   : > { %749 = vmatpush1.bf16.msra.mxu0 %v1619_v46  ;;  %1536 = vmatpush1.bf16.msra.mxu1 %v1619_v46  ;;  %v1629_v50 = vld [vmem:[%s1852_s17 + $0x44] ss:$8 sps:$4 sm:$0xff]   ;;  %v1631_v53 = vld [vmem:[%s1852_s17 + $0x40] ss:$8 sps:$4 sm:$0xff]   ;;  %v1632_v54 = vld [vmem:[%s1852_s17 + $0x54] ss:$8 sps:$4 sm:$0xff]  }
 0x189   : > { %750 = vmatprep.subr.bf16.mxu0 %v1620_v1  ;;  %1529 = vmatprep.subr.bf16.mxu1 %v1620_v1  ;;  %v1634_v55 = vld [vmem:[%s1852_s17 + $0x50] ss:$8 sps:$4 sm:$0xff]   ;;  %v1635_v56 = vld [vmem:[%s1852_s17 + $0x64] ss:$8 sps:$4 sm:$0xff]   ;;  %v1637_v57 = vld [vmem:[%s1852_s17 + $0x60] ss:$8 sps:$4 sm:$0xff]  }
 0x18a   : > { %v1638_v58 = vld [vmem:[%s1852_s17 + $0x74] ss:$8 sps:$4 sm:$0xff]   ;;  %v1640_v61 = vld [vmem:[%s1852_s17 + $0x70] ss:$8 sps:$4 sm:$0xff]   ;;  %v632_v52 = vld [vmem:[#allocation2] sm:$0xff]  ;;  %v659_v8 = vshrl.u32 %v658_v7, 7 }
 0x18b   : > { %v636_v62 = vld [vmem:[#allocation2 + $0x20] sm:$0xff]  ;;  %v633_v63 = vld [vmem:[#allocation2 + $0x8] sm:$0xff]  ;;  %v638_v2 = vld [vmem:[#allocation2 + $0x30] sm:$0xff]  ;;  %s1527_s12 = sshll.u32 (%p1811_p6), %s1735_s20, 3 }
 0x18c   : > { %751 = vmatpush1.bf16.msra.mxu0 %v1622_v15  ;;  %1537 = vmatpush1.bf16.msra.mxu1 %v1622_v15  ;;  %v637_v59 = vld [vmem:[#allocation2 + $0x28] sm:$0xff]  ;;  %v635_v5 = vld [vmem:[#allocation2 + $0x18] sm:$0xff]  ;;  %v660_v9 = vsub.s32 0, %v659_v8  ;;  %v656_v10 = vld [vmem:[%s368_s16] sm:$0x3]  ;;  %v664_v13 = vsub.s32 1, %v659_v8  ;;  %s1273_s11 = scalar_lea.vmem (%p1811_p6), %s2445_s5, %s1527_s12 }
 0x18d   : > { %752 = vmatprep.subr.bf16.mxu0 %v1623_v51  ;;  %1530 = vmatprep.subr.bf16.mxu1 %v1623_v51  ;;  %v639_v6 = vld [vmem:[#allocation2 + $0x38] sm:$0xff] }
 0x18e   : > { %v2076_v36 = vrot.slane %v656_v10, %v660_v9  ;;  %v2078_v60 = vrot.slane %v656_v10, %v664_v13 }
 0x190   : > { %753 = vmatpush1.bf16.msra.mxu0 %v1625_v47  ;;  %1538 = vmatpush1.bf16.msra.mxu1 %v1625_v47 }
 0x191   : > { %754 = vmatprep.subr.bf16.mxu0 %v1626_v48  ;;  %1531 = vmatprep.subr.bf16.mxu1 %v1626_v48 }
 0x194   : > { %755 = vmatpush1.bf16.msra.mxu0 %v1628_v49  ;;  %1539 = vmatpush1.bf16.msra.mxu1 %v1628_v49 }
 0x195   : > { %756 = vmatprep.subr.bf16.mxu0 %v1629_v50  ;;  %1532 = vmatprep.subr.bf16.mxu1 %v1629_v50 }
 0x198   : > { %757 = vmatpush1.bf16.msra.mxu0 %v1631_v53  ;;  %1540 = vmatpush1.bf16.msra.mxu1 %v1631_v53 }
 0x199   : > { %758 = vmatprep.subr.bf16.mxu0 %v1632_v54  ;;  %1533 = vmatprep.subr.bf16.mxu1 %v1632_v54 }
 0x19c   : > { %759 = vmatpush1.bf16.msra.mxu0 %v1634_v55  ;;  %1541 = vmatpush1.bf16.msra.mxu1 %v1634_v55 }
 0x19d   : > { %760 = vmatprep.subr.bf16.mxu0 %v1635_v56  ;;  %1534 = vmatprep.subr.bf16.mxu1 %v1635_v56 }
 0x1a0   : > { %761 = vmatpush1.bf16.msra.mxu0 %v1637_v57  ;;  %1542 = vmatpush1.bf16.msra.mxu1 %v1637_v57 }
 0x1a1   : > { %762 = vmatprep.subr.bf16.mxu0 %v1638_v58  ;;  %1535 = vmatprep.subr.bf16.mxu1 %v1638_v58 }
 0x1a4   : > { %763 = vmatpush1.bf16.msra.mxu0 %v1640_v61  ;;  %1543 = vmatpush1.bf16.msra.mxu1 %v1640_v61 }
 0x1a7   : > { %781 = vmatmul.mubr.bf16.vlgmr.msra.gmra.mrb[0].mxu0 %v632_v52  ;;  %821 = vmatmul.mubr.bf16.vlgmr.msra.gmra.mrb[0].mxu1 %v636_v62 }
 0x1a8   : > { %790 = vmatprep.mubr.bf16.mxu0 %v1745_v28  ;;  %830 = vmatprep.mubr.bf16.mxu1 %v1745_v28 }
 0x1af   : > { %791 = vmatmul.mubr.bf16.gmra.mrb[4].mxu0 %v633_v63  ;;  %831 = vmatmul.mubr.bf16.gmra.mrb[4].mxu1 %v637_v59 }
 0x1b0   : > { %800 = vmatprep.mubr.bf16.mxu0 %v1745_v28  ;;  %840 = vmatprep.mubr.bf16.mxu1 %v1745_v28 }
 0x1b7   : > { %801 = vmatmul.mubr.bf16.gmra.mrb[8].mxu0 %v634_v0  ;;  %841 = vmatmul.mubr.bf16.gmra.mrb[8].mxu1 %v638_v2 }
 0x1b8   : > { %810 = vmatprep.mubr.bf16.mxu0 %v1745_v28  ;;  %850 = vmatprep.mubr.bf16.mxu1 %v1745_v28 }
 0x1bf   : > { %811 = vmatmul.mubr.bf16.gmra.mrb[12].mxu0 %v635_v5  ;;  %851 = vmatmul.mubr.bf16.gmra.mrb[12].mxu1 %v639_v6 }
 0x27a   : > { %v782_v14 = vpop.f32.mrb[0].mxu0  ;;  %v822_v3 = vpop.f32.mrb[0].mxu1 }
 0x27b   : > { %v2081_v16 = vadd.f32 %v782_v14, %v2076_v36  ;;  %v2084_v17 = vadd.f32 %v822_v3, %v2076_v36  ;;  %v784_v18 = vpop.f32.mrb[1].mxu0  ;;  %v824_v21 = vpop.f32.mrb[1].mxu1 }
 0x27c   : > { %v2087_v22 = vadd.f32 %v784_v18, %v2078_v60  ;;  %v2090_v23 = vadd.f32 %v824_v21, %v2078_v60  ;;  %v786_v24 = vpop.f32.mrb[2].mxu0  ;;  %v826_v25 = vpop.f32.mrb[2].mxu1 }
 0x27d   : > { %v861_v43 = vmul.f32 %v2081_v16, %v2081_v16  ;;  %v877_v4 = vmul.f32 %v2084_v17, %v2084_v17  ;;  %v2097_v11 = vadd.f32 %v786_v24, %v2076_v36  ;;  %v2100_v26 = vadd.f32 %v826_v25, %v2076_v36  ;;  %v788_v29 = vpop.f32.mrb[3].mxu0  ;;  %v828_v32 = vpop.f32.mrb[3].mxu1 }
 0x27e   : > { %v862_v33 = vmul.f32 %v2087_v22, %v2087_v22  ;;  %v878_v37 = vmul.f32 %v2090_v23, %v2090_v23  ;;  %v2107_v34 = vadd.f32 %v788_v29, %v2078_v60  ;;  %v2110_v30 = vadd.f32 %v828_v32, %v2078_v60 }
 0x27f   : > { %v893_v35 = vmul.f32 %v861_v43, %v2081_v16  ;;  %v909_v12 = vmul.f32 %v877_v4, %v2084_v17  ;;  %v863_v19 = vmul.f32 %v2097_v11, %v2097_v11  ;;  %v879_v38 = vmul.f32 %v2100_v26, %v2100_v26 }
 0x280   : > { %v894_v39 = vmul.f32 %v862_v33, %v2087_v22  ;;  %v910_v31 = vmul.f32 %v878_v37, %v2090_v23  ;;  %v864_v40 = vmul.f32 %v2107_v34, %v2107_v34  ;;  %v880_v41 = vmul.f32 %v2110_v30, %v2110_v30 }
 0x281   : > { %v925_v42 = vmul.f32 0.044715, %v893_v35  ;;  %v941_v20 = vmul.f32 0.044715, %v909_v12  ;;  %v895_v27 = vmul.f32 %v863_v19, %v2097_v11  ;;  %v911_v45 = vmul.f32 %v879_v38, %v2100_v26 }
 0x282   : > { %v926_v44 = vmul.f32 0.044715, %v894_v39  ;;  %v942_v46 = vmul.f32 0.044715, %v910_v31  ;;  %v896_v28 = vmul.f32 %v864_v40, %v2107_v34  ;;  %v912_v1 = vmul.f32 %v880_v41, %v2110_v30  ;;  %v792_v15 = vpop.f32.mrb[4].mxu0  ;;  %v832_v51 = vpop.f32.mrb[4].mxu1 }
 0x283   : > { %v957_v47 = vadd.f32 %v925_v42, %v2081_v16  ;;  %v973_v48 = vadd.f32 %v941_v20, %v2084_v17  ;;  %v927_v49 = vmul.f32 0.044715, %v895_v27  ;;  %v943_v50 = vmul.f32 0.044715, %v911_v45  ;;  %v794_v53 = vpop.f32.mrb[5].mxu0  ;;  %v834_v54 = vpop.f32.mrb[5].mxu1 }
 0x284   : > { %v958_v55 = vadd.f32 %v926_v44, %v2087_v22  ;;  %v974_v56 = vadd.f32 %v942_v46, %v2090_v23  ;;  %v928_v57 = vmul.f32 0.044715, %v896_v28  ;;  %v944_v58 = vmul.f32 0.044715, %v912_v1  ;;  %v796_v61 = vpop.f32.mrb[6].mxu0  ;;  %v836_v52 = vpop.f32.mrb[6].mxu1 }
 0x285   : > { %v989_v62 = vmul.f32 0.7978846, %v957_v47  ;;  %v1005_v63 = vmul.f32 0.7978846, %v973_v48  ;;  %v959_v59 = vadd.f32 %v927_v49, %v2097_v11  ;;  %v975_v0 = vadd.f32 %v943_v50, %v2100_v26  ;;  %v798_v2 = vpop.f32.mrb[7].mxu0  ;;  %v838_v5 = vpop.f32.mrb[7].mxu1 }
 0x286   : > { %v990_v6 = vmul.f32 0.7978846, %v958_v55  ;;  %v1006_v7 = vmul.f32 0.7978846, %v974_v56  ;;  %v960_v8 = vadd.f32 %v928_v57, %v2107_v34  ;;  %v976_v9 = vadd.f32 %v944_v58, %v2110_v30 }
 0x287   : > { %1641 = vtanh.f32 %v989_v62  ;;  %v991_v10 = vmul.f32 0.7978846, %v959_v59  ;;  %v1007_v13 = vmul.f32 0.7978846, %v975_v0  ;;  %v2137_v14 = vadd.f32 %v792_v15, %v2076_v36 }
 0x288   : > { %1643 = vtanh.f32 %v1005_v63  ;;  %v992_v3 = vmul.f32 0.7978846, %v960_v8  ;;  %v1008_v18 = vmul.f32 0.7978846, %v976_v9  ;;  %v2140_v21 = vadd.f32 %v832_v51, %v2076_v36 }
 0x289   : > { %1645 = vtanh.f32 %v990_v6  ;;  %v865_v24 = vmul.f32 %v2137_v14, %v2137_v14  ;;  %v2145_v25 = vadd.f32 %v794_v53, %v2078_v60  ;;  %v2148_v43 = vadd.f32 %v834_v54, %v2078_v60 }
 0x28a   : > { %1647 = vtanh.f32 %v1006_v7  ;;  %v881_v4 = vmul.f32 %v2140_v21, %v2140_v21  ;;  %v2153_v29 = vadd.f32 %v796_v61, %v2076_v36  ;;  %v2156_v32 = vadd.f32 %v836_v52, %v2076_v36  ;;  %v2158_v33 = vpop.f32.mrb[8].mxu0  ;;  %v2160_v37 = vpop.f32.mrb[8].mxu1 }
 0x28b   : > { %1649 = vtanh.f32 %v991_v10  ;;  %v897_v35 = vmul.f32 %v865_v24, %v2137_v14  ;;  %v866_v12 = vmul.f32 %v2145_v25, %v2145_v25  ;;  %v882_v19 = vmul.f32 %v2148_v43, %v2148_v43  ;;  %v2167_v38 = vpop.f32.mrb[9].mxu0  ;;  %v2169_v39 = vpop.f32.mrb[9].mxu1 }
 0x28c   : > { %1651 = vtanh.f32 %v1007_v13  ;;  %v913_v31 = vmul.f32 %v881_v4, %v2140_v21  ;;  %v867_v40 = vmul.f32 %v2153_v29, %v2153_v29  ;;  %v883_v41 = vmul.f32 %v2156_v32, %v2156_v32  ;;  %v2176_v42 = vpop.f32.mrb[10].mxu0  ;;  %v2178_v20 = vpop.f32.mrb[10].mxu1 }
 0x28d   : > { %1653 = vtanh.f32 %v992_v3  ;;  %v929_v27 = vmul.f32 0.044715, %v897_v35  ;;  %v898_v45 = vmul.f32 %v866_v12, %v2145_v25  ;;  %v914_v44 = vmul.f32 %v882_v19, %v2148_v43  ;;  %v2182_v46 = vpop.f32.mrb[11].mxu0  ;;  %v2184_v28 = vpop.f32.mrb[11].mxu1 }
 0x28e   : > { %1655 = vtanh.f32 %v1008_v18  ;;  %v945_v1 = vmul.f32 0.044715, %v913_v31  ;;  %v899_v15 = vmul.f32 %v867_v40, %v2153_v29  ;;  %v915_v51 = vmul.f32 %v883_v41, %v2156_v32 }
 0x28f   : > { %v961_v47 = vadd.f32 %v929_v27, %v2137_v14  ;;  %v930_v48 = vmul.f32 0.044715, %v898_v45  ;;  %v946_v49 = vmul.f32 0.044715, %v914_v44  ;;  %v2190_v50 = vadd.f32 %v798_v2, %v2078_v60 }
 0x290   : > { %v977_v53 = vadd.f32 %v945_v1, %v2140_v21  ;;  %v931_v54 = vmul.f32 0.044715, %v899_v15  ;;  %v947_v55 = vmul.f32 0.044715, %v915_v51  ;;  %v2194_v56 = vadd.f32 %v838_v5, %v2078_v60 }
 0x291   : > { %v1642_v57 = vpop.eup %1641  ;;  %v993_v58 = vmul.f32 0.7978846, %v961_v47  ;;  %v962_v61 = vadd.f32 %v930_v48, %v2145_v25  ;;  %v978_v52 = vadd.f32 %v946_v49, %v2148_v43  ;;  %v868_v62 = vmul.f32 %v2190_v50, %v2190_v50 }
 0x292   : > { %v1644_v63 = vpop.eup %1643  ;;  %v1053_v59 = vadd.f32 1.0, %v1642_v57  ;;  %v1009_v0 = vmul.f32 0.7978846, %v977_v53  ;;  %v963_v2 = vadd.f32 %v931_v54, %v2153_v29  ;;  %v979_v6 = vadd.f32 %v947_v55, %v2156_v32  ;;  %v2202_v7 = vpop.f32.mrb[12].mxu0 }
 0x293   : > { %v2204_v5 = vpop.f32.mrb[12].mxu1  ;;  %v1646_v8 = vpop.eup %1645  ;;  %v1069_v9 = vadd.f32 1.0, %v1644_v63  ;;  %1657 = vtanh.f32 %v993_v58  ;;  %v994_v10 = vmul.f32 0.7978846, %v962_v61  ;;  %v1010_v13 = vmul.f32 0.7978846, %v978_v52 }
 0x294   : > { %v2206_v3 = vpop.f32.mrb[13].mxu0  ;;  %v1648_v18 = vpop.eup %1647  ;;  %v1085_v24 = vmul.f32 0.5, %v1053_v59  ;;  %v1054_v4 = vadd.f32 1.0, %v1646_v8  ;;  %1659 = vtanh.f32 %v1009_v0  ;;  %v995_v35 = vmul.f32 0.7978846, %v963_v2 }
 0x295   : > { %v2208_v12 = vpop.f32.mrb[13].mxu1  ;;  %v2210_v19 = vpop.f32.mrb[14].mxu0  ;;  %v1101_v40 = vmul.f32 0.5, %v1069_v9  ;;  %v1070_v41 = vadd.f32 1.0, %v1648_v18  ;;  %1661 = vtanh.f32 %v994_v10  ;;  %v1011_v27 = vmul.f32 0.7978846, %v979_v6 }
 0x296   : > { %v1650_v31 = vpop.eup %1649  ;;  %v2212_v45 = vpop.f32.mrb[14].mxu1  ;;  %v1117_v15 = vmul.f32 %v1085_v24, %v2081_v16  ;;  %v1086_v51 = vmul.f32 0.5, %v1054_v4  ;;  %1663 = vtanh.f32 %v1010_v13  ;;  %v900_v0 = vmul.f32 %v868_v62, %v2190_v50 }
 0x297   : > { %v2214_v44 = vpop.f32.mrb[15].mxu0  ;;  %v1652_v1 = vpop.eup %1651  ;;  %v1055_v47 = vadd.f32 1.0, %v1650_v31  ;;  %v1133_v53 = vmul.f32 %v1101_v40, %v2084_v17  ;;  %v1102_v54 = vmul.f32 0.5, %v1070_v41  ;;  %1665 = vtanh.f32 %v995_v35 }
 0x298   : > { %v2217_v48 = vpop.f32.mrb[15].mxu1  ;;  %v1654_v49 = vpop.eup %1653  ;;  %v1071_v55 = vadd.f32 1.0, %v1652_v1  ;;  %v1118_v58 = vmul.f32 %v1086_v51, %v2087_v22  ;;  %1667 = vtanh.f32 %v1011_v27  ;;  %v884_v8 = vmul.f32 %v2194_v56, %v2194_v56 }
 0x299   : > { %v1656_v57 = vpop.eup %1655  ;;  %v1087_v61 = vmul.f32 0.5, %v1055_v47  ;;  %v1056_v52 = vadd.f32 1.0, %v1654_v49  ;;  %v1134_v16 = vmul.f32 %v1102_v54, %v2090_v23  ;;  %v932_v13 = vmul.f32 0.044715, %v900_v0 }
 0x29a   : > { %v1103_v63 = vmul.f32 0.5, %v1071_v55  ;;  %v1072_v59 = vadd.f32 1.0, %v1656_v57  ;;  %v1511_v2 = vpack.c.bf16 %v1118_v58, %v1117_v15  ;;  %v916_v18 = vmul.f32 %v884_v8, %v2194_v56 }
 0x29b   : > { %v1119_v17 = vmul.f32 %v1087_v61, %v2097_v11  ;;  %v1088_v6 = vmul.f32 0.5, %v1056_v52  ;;  %v1519_v9 = vpack.c.bf16 %v1134_v16, %v1133_v53  ;;  %v2232_v62 = vadd.f32 %v2158_v33, %v2076_v36 }
 0x29c   : > { %v1135_v22 = vmul.f32 %v1103_v63, %v2100_v26  ;;  %v1104_v10 = vmul.f32 0.5, %v1072_v59  ;;  %1245 = vst [vmem:[%s1854_s24] sm:$0xff] %v1511_v2  ;;  %v2236_v11 = vadd.f32 %v2160_v37, %v2076_v36  ;;  %v964_v4 = vadd.f32 %v932_v13, %v2190_v50 }
 0x29d   : > { %v1120_v23 = vmul.f32 %v1088_v6, %v2107_v34  ;;  %v1658_v24 = vpop.eup %1657  ;;  %1253 = vst [vmem:[%s1854_s24 + $0x40] sm:$0xff] %v1519_v9  ;;  %v2243_v34 = vadd.f32 %v2167_v38, %v2078_v60  ;;  %v2247_v35 = vadd.f32 %v2169_v39, %v2078_v60  ;;  %v948_v40 = vmul.f32 0.044715, %v916_v18 }
 0x29e   : > { %v1136_v26 = vmul.f32 %v1104_v10, %v2110_v30  ;;  %v1660_v33 = vpop.eup %1659  ;;  %v1057_v37 = vadd.f32 1.0, %v1658_v24  ;;  %v869_v41 = vmul.f32 %v2232_v62, %v2232_v62  ;;  %v996_v15 = vmul.f32 0.7978846, %v964_v4 }
 0x29f   : > { %v1512_v31 = vpack.c.bf16 %v1120_v23, %v1119_v17  ;;  %v1662_v27 = vpop.eup %1661  ;;  %v1073_v1 = vadd.f32 1.0, %v1660_v33  ;;  %v885_v38 = vmul.f32 %v2236_v11, %v2236_v11  ;;  %v980_v49 = vadd.f32 %v948_v40, %v2194_v56 }
 0x2a0   : > { %v1520_v30 = vpack.c.bf16 %v1136_v26, %v1135_v22  ;;  %v1664_v51 = vpop.eup %1663  ;;  %v1089_v47 = vmul.f32 0.5, %v1057_v37  ;;  %v1058_v39 = vadd.f32 1.0, %v1662_v27  ;;  %v901_v53 = vmul.f32 %v869_v41, %v2232_v62 }
 0x2a1   : > { %1246 = vst [vmem:[%s1854_s24 + $0x8] sm:$0xff] %v1512_v31  ;;  %v1666_v54 = vpop.eup %1665  ;;  %v1105_v55 = vmul.f32 0.5, %v1073_v1  ;;  %v1074_v57 = vadd.f32 1.0, %v1664_v51  ;;  %1669 = vtanh.f32 %v996_v15  ;;  %v917_v58 = vmul.f32 %v885_v38, %v2236_v11 }
 0x2a2   : > { %1254 = vst [vmem:[%s1854_s24 + $0x48] sm:$0xff] %v1520_v30  ;;  %v1668_v61 = vpop.eup %1667  ;;  %v1121_v52 = vmul.f32 %v1089_v47, %v2137_v14  ;;  %v1090_v16 = vmul.f32 0.5, %v1058_v39  ;;  %v1059_v63 = vadd.f32 1.0, %v1666_v54  ;;  %v1012_v59 = vmul.f32 0.7978846, %v980_v49 }
 0x2a3   : > { %v1137_v0 = vmul.f32 %v1105_v55, %v2140_v21  ;;  %v1106_v2 = vmul.f32 0.5, %v1074_v57  ;;  %v1075_v17 = vadd.f32 1.0, %v1668_v61  ;;  %v933_v6 = vmul.f32 0.044715, %v901_v53 }
 0x2a4   : > { %v1122_v8 = vmul.f32 %v1090_v16, %v2145_v25  ;;  %v1091_v9 = vmul.f32 0.5, %v1059_v63  ;;  %1671 = vtanh.f32 %v1012_v59  ;;  %v949_v22 = vmul.f32 0.044715, %v917_v58 }
 0x2a5   : > { %v1138_v10 = vmul.f32 %v1106_v2, %v2148_v43  ;;  %v1107_v13 = vmul.f32 0.5, %v1075_v17  ;;  %v965_v14 = vadd.f32 %v933_v6, %v2232_v62  ;;  %v870_v23 = vmul.f32 %v2243_v34, %v2243_v34 }
 0x2a6   : > { %v1513_v18 = vpack.c.bf16 %v1122_v8, %v1121_v52  ;;  %v1123_v21 = vmul.f32 %v1091_v9, %v2153_v29  ;;  %v981_v24 = vadd.f32 %v949_v22, %v2236_v11  ;;  %v886_v25 = vmul.f32 %v2247_v35, %v2247_v35 }
 0x2a7   : > { %v1521_v26 = vpack.c.bf16 %v1138_v10, %v1137_v0  ;;  %v2270_v4 = vmul.f32 %v1107_v13, %v2156_v32  ;;  %v997_v43 = vmul.f32 0.7978846, %v965_v14  ;;  %v902_v33 = vmul.f32 %v870_v23, %v2243_v34 }
 0x2a8   : > { %1247 = vst [vmem:[%s1854_s24 + $0x10] sm:$0xff] %v1513_v18  ;;  %v1013_v31 = vmul.f32 0.7978846, %v981_v24  ;;  %v918_v37 = vmul.f32 %v886_v25, %v2247_v35  ;;  %v2277_v40 = vadd.f32 %v2176_v42, %v2076_v36  ;;  %v2281_v29 = vadd.f32 %v2178_v20, %v2076_v36 }
 0x2a9   : > { %1255 = vst [vmem:[%s1854_s24 + $0x50] sm:$0xff] %v1521_v26  ;;  %1673 = vtanh.f32 %v997_v43  ;;  %v934_v41 = vmul.f32 0.044715, %v902_v33  ;;  %v2286_v32 = vadd.f32 %v2182_v46, %v2078_v60  ;;  %v2290_v27 = vadd.f32 %v2184_v28, %v2078_v60 }
 0x2aa   : > { %1675 = vtanh.f32 %v1013_v31  ;;  %v950_v30 = vmul.f32 0.044715, %v918_v37  ;;  %v871_v42 = vmul.f32 %v2277_v40, %v2277_v40  ;;  %v887_v20 = vmul.f32 %v2281_v29, %v2281_v29 }
 0x2ab   : > { %v1670_v1 = vpop.eup %1669  ;;  %v966_v15 = vadd.f32 %v934_v41, %v2243_v34  ;;  %v872_v38 = vmul.f32 %v2286_v32, %v2286_v32  ;;  %v888_v46 = vmul.f32 %v2290_v27, %v2290_v27  ;;  %v2303_v28 = vadd.f32 %v2202_v7, %v2076_v36 }
 0x2ac   : > { %v1060_v51 = vadd.f32 1.0, %v1670_v1  ;;  %v982_v47 = vadd.f32 %v950_v30, %v2247_v35  ;;  %v903_v39 = vmul.f32 %v871_v42, %v2277_v40  ;;  %v919_v49 = vmul.f32 %v887_v20, %v2281_v29 }
 0x2ad   : > { %v998_v53 = vmul.f32 0.7978846, %v966_v15  ;;  %v904_v54 = vmul.f32 %v872_v38, %v2286_v32  ;;  %v920_v55 = vmul.f32 %v888_v46, %v2290_v27  ;;  %v873_v57 = vmul.f32 %v2303_v28, %v2303_v28 }
 0x2ae   : > { %v1672_v58 = vpop.eup %1671  ;;  %v1092_v61 = vmul.f32 0.5, %v1060_v51  ;;  %v1014_v52 = vmul.f32 0.7978846, %v982_v47  ;;  %v935_v7 = vmul.f32 0.044715, %v903_v39  ;;  %v2314_v16 = vadd.f32 %v2204_v5, %v2076_v36 }
 0x2af   : > { %v1076_v63 = vadd.f32 1.0, %v1672_v58  ;;  %1677 = vtanh.f32 %v998_v53  ;;  %v951_v59 = vmul.f32 0.044715, %v919_v49  ;;  %v936_v0 = vmul.f32 0.044715, %v904_v54 }
 0x2b0   : > { %v1124_v2 = vmul.f32 %v1092_v61, %v2190_v50  ;;  %1679 = vtanh.f32 %v1014_v52  ;;  %v967_v17 = vadd.f32 %v935_v7, %v2277_v40  ;;  %v952_v6 = vmul.f32 0.044715, %v920_v55 }
 0x2b1   : > { %v1108_v8 = vmul.f32 0.5, %v1076_v63  ;;  %v983_v9 = vadd.f32 %v951_v59, %v2281_v29  ;;  %v968_v22 = vadd.f32 %v936_v0, %v2286_v32  ;;  %v905_v10 = vmul.f32 %v873_v57, %v2303_v28 }
 0x2b2   : > { %v1514_v5 = vpack.c.bf16 %v1124_v2, %v1123_v21  ;;  %v999_v13 = vmul.f32 0.7978846, %v967_v17  ;;  %v984_v14 = vadd.f32 %v952_v6, %v2290_v27  ;;  %v889_v23 = vmul.f32 %v2314_v16, %v2314_v16 }
 0x2b3   : > { %v1674_v50 = vpop.eup %1673  ;;  %v1140_v18 = vmul.f32 %v1108_v8, %v2194_v56  ;;  %v1015_v24 = vmul.f32 0.7978846, %v983_v9  ;;  %v1000_v25 = vmul.f32 0.7978846, %v968_v22  ;;  %v937_v26 = vmul.f32 0.044715, %v905_v10 }
 0x2b4   : > { %v1676_v43 = vpop.eup %1675  ;;  %1248 = vst [vmem:[%s1854_s24 + $0x18] sm:$0xff] %v1514_v5  ;;  %v1061_v33 = vadd.f32 1.0, %v1674_v50  ;;  %1681 = vtanh.f32 %v999_v13  ;;  %v1016_v31 = vmul.f32 0.7978846, %v984_v14  ;;  %v921_v21 = vmul.f32 %v889_v23, %v2314_v16 }
 0x2b5   : > { %v1522_v37 = vpack.c.bf16 %v1140_v18, %v2270_v4  ;;  %v1077_v41 = vadd.f32 1.0, %v1676_v43  ;;  %1683 = vtanh.f32 %v1015_v24  ;;  %v969_v30 = vadd.f32 %v937_v26, %v2303_v28 }
 0x2b6   : > { %v1093_v42 = vmul.f32 0.5, %v1061_v33  ;;  %1685 = vtanh.f32 %v1000_v25  ;;  %v953_v56 = vmul.f32 0.044715, %v921_v21  ;;  %v2331_v20 = vadd.f32 %v2206_v3, %v2078_v60 }
 0x2b7   : > { %1256 = vst [vmem:[%s1854_s24 + $0x58] sm:$0xff] %v1522_v37  ;;  %v1109_v1 = vmul.f32 0.5, %v1077_v41  ;;  %1687 = vtanh.f32 %v1016_v31  ;;  %v1001_v15 = vmul.f32 0.7978846, %v969_v30  ;;  %v2336_v38 = vadd.f32 %v2208_v12, %v2078_v60 }
 0x2b8   : > { %v1125_v4 = vmul.f32 %v1093_v42, %v2232_v62  ;;  %v985_v46 = vadd.f32 %v953_v56, %v2314_v16  ;;  %v874_v51 = vmul.f32 %v2331_v20, %v2331_v20  ;;  %v2344_v47 = vadd.f32 %v2210_v19, %v2076_v36 }
 0x2b9   : > { %v1678_v3 = vpop.eup %1677  ;;  %v1141_v39 = vmul.f32 %v1109_v1, %v2236_v11  ;;  %1689 = vtanh.f32 %v1001_v15  ;;  %v890_v49 = vmul.f32 %v2336_v38, %v2336_v38  ;;  %v2351_v12 = vadd.f32 %v2212_v45, %v2076_v36 }
 0x2ba   : > { %v1680_v62 = vpop.eup %1679  ;;  %v1062_v53 = vadd.f32 1.0, %v1678_v3  ;;  %v1017_v54 = vmul.f32 0.7978846, %v985_v46  ;;  %v906_v55 = vmul.f32 %v874_v51, %v2331_v20  ;;  %v875_v19 = vmul.f32 %v2344_v47, %v2344_v47 }
 0x2bb   : > { %v1078_v57 = vadd.f32 1.0, %v1680_v62  ;;  %v922_v58 = vmul.f32 %v890_v49, %v2336_v38  ;;  %v891_v11 = vmul.f32 %v2351_v12, %v2351_v12  ;;  %v2361_v61 = vadd.f32 %v2214_v44, %v2078_v60 }
 0x2bc   : > { %v1094_v36 = vmul.f32 0.5, %v1062_v53  ;;  %1691 = vtanh.f32 %v1017_v54  ;;  %v938_v45 = vmul.f32 0.044715, %v906_v55  ;;  %v907_v52 = vmul.f32 %v875_v19, %v2344_v47 }
 0x2bd   : > { %v1110_v7 = vmul.f32 0.5, %v1078_v57  ;;  %v954_v63 = vmul.f32 0.044715, %v922_v58  ;;  %v923_v59 = vmul.f32 %v891_v11, %v2351_v12  ;;  %v876_v0 = vmul.f32 %v2361_v61, %v2361_v61 }
 0x2be   : > { %v1682_v2 = vpop.eup %1681  ;;  %v1126_v17 = vmul.f32 %v1094_v36, %v2243_v34  ;;  %v970_v6 = vadd.f32 %v938_v45, %v2331_v20  ;;  %v939_v8 = vmul.f32 0.044715, %v907_v52  ;;  %v2371_v44 = vadd.f32 %v2217_v48, %v2078_v60 }
 0x2bf   : > { %v1684_v9 = vpop.eup %1683  ;;  %v1142_v22 = vmul.f32 %v1110_v7, %v2247_v35  ;;  %v1063_v10 = vadd.f32 1.0, %v1682_v2  ;;  %v986_v5 = vadd.f32 %v954_v63, %v2336_v38  ;;  %v955_v13 = vmul.f32 0.044715, %v923_v59 }
 0x2c0   : > { %v1686_v14 = vpop.eup %1685  ;;  %v1515_v23 = vpack.c.bf16 %v1126_v17, %v1125_v4  ;;  %v1079_v50 = vadd.f32 1.0, %v1684_v9  ;;  %v1002_v34 = vmul.f32 0.7978846, %v970_v6  ;;  %v971_v18 = vadd.f32 %v939_v8, %v2344_v47 }
 0x2c1   : > { %v1688_v24 = vpop.eup %1687  ;;  %v1523_v25 = vpack.c.bf16 %v1142_v22, %v1141_v39  ;;  %v1095_v26 = vmul.f32 0.5, %v1063_v10  ;;  %v1064_v60 = vadd.f32 1.0, %v1686_v14  ;;  %v1018_v48 = vmul.f32 0.7978846, %v986_v5 }
 0x2c2   : > { %1249 = vst [vmem:[%s1854_s24 + $0x20] sm:$0xff] %v1515_v23  ;;  %v1111_v43 = vmul.f32 0.5, %v1079_v50  ;;  %v1080_v33 = vadd.f32 1.0, %v1688_v24  ;;  %1693 = vtanh.f32 %v1002_v34  ;;  %v1003_v35 = vmul.f32 0.7978846, %v971_v18 }
 0x2c3   : > { %v1690_v31 = vpop.eup %1689  ;;  %1257 = vst [vmem:[%s1854_s24 + $0x60] sm:$0xff] %v1523_v25  ;;  %v1127_v21 = vmul.f32 %v1095_v26, %v2277_v40  ;;  %v1096_v37 = vmul.f32 0.5, %v1064_v60  ;;  %1695 = vtanh.f32 %v1018_v48  ;;  %v987_v41 = vadd.f32 %v955_v13, %v2351_v12 }
 0x2c4   : > { %v1143_v30 = vmul.f32 %v1111_v43, %v2281_v29  ;;  %v1112_v42 = vmul.f32 0.5, %v1080_v33  ;;  %1697 = vtanh.f32 %v1003_v35  ;;  %v908_v15 = vmul.f32 %v876_v0, %v2361_v61  ;;  %v1347_v35 = vld [vmem:[%s1854_s24 + $0x40] sm:$0xff] (%p1811_p6) }
 0x2c5   : > { %v1128_v56 = vmul.f32 %v1096_v37, %v2286_v32  ;;  %v1019_v1 = vmul.f32 0.7978846, %v987_v41  ;;  %v892_v4 = vmul.f32 %v2371_v44, %v2371_v44  ;;  %v1065_v3 = vadd.f32 1.0, %v1690_v31  ;;  %1348 = vst [vmem:[%s1273_s11 + $0x80] sm:$0xff] (%p1811_p6), %v1347_v35  ;;  %v1349_v31 = vld [vmem:[%s1854_s24 + $0x48] sm:$0xff] (%p1811_p6)  ;;  %v1353_v37 = vld [vmem:[%s1854_s24 + $0x58] sm:$0xff] (%p1811_p6) }
 0x2c6   : > { %v1692_v46 = vpop.eup %1691  ;;  %v1144_v40 = vmul.f32 %v1112_v42, %v2290_v27  ;;  %v940_v39 = vmul.f32 0.044715, %v908_v15  ;;  %1350 = vst [vmem:[%s1273_s11 + $0x90] sm:$0xff] (%p1811_p6), %v1349_v31  ;;  %1354 = vst [vmem:[%s1273_s11 + $0xb0] sm:$0xff] (%p1811_p6), %v1353_v37 }
 0x2c7   : > { %v1516_v51 = vpack.c.bf16 %v1128_v56, %v1127_v21  ;;  %v1081_v29 = vadd.f32 1.0, %v1692_v46  ;;  %1699 = vtanh.f32 %v1019_v1  ;;  %v924_v62 = vmul.f32 %v892_v4, %v2371_v44  ;;  %v1351_v21 = vld [vmem:[%s1854_s24 + $0x50] sm:$0xff] (%p1811_p6) }
 0x2c8   : > { %v1524_v49 = vpack.c.bf16 %v1144_v40, %v1143_v30  ;;  %v972_v32 = vadd.f32 %v940_v39, %v2361_v61  ;;  %v1097_v54 = vmul.f32 0.5, %v1065_v3  ;;  %1352 = vst [vmem:[%s1273_s11 + $0xa0] sm:$0xff] (%p1811_p6), %v1351_v21 }
 0x2c9   : > { %1250 = vst [vmem:[%s1854_s24 + $0x28] sm:$0xff] %v1516_v51  ;;  %v956_v53 = vmul.f32 0.044715, %v924_v62  ;;  %v1113_v57 = vmul.f32 0.5, %v1081_v29  ;;  %v1339_v60 = vld [vmem:[%s1854_s24 + $0x20] sm:$0xff] (%p1811_p6) }
 0x2ca   : > { %1258 = vst [vmem:[%s1854_s24 + $0x68] sm:$0xff] %v1524_v49  ;;  %v1004_v55 = vmul.f32 0.7978846, %v972_v32  ;;  %v1129_v7 = vmul.f32 %v1097_v54, %v2303_v28  ;;  %1340 = vst [vmem:[%s1273_s11 + $0x40] sm:$0xff] (%p1811_p6), %v1339_v60  ;;  %v1355_v41 = vld [vmem:[%s1854_s24 + $0x60] sm:$0xff] (%p1811_p6) }
 0x2cb   : > { %v988_v58 = vadd.f32 %v956_v53, %v2371_v44  ;;  %v1145_v59 = vmul.f32 %v1113_v57, %v2314_v16  ;;  %1356 = vst [vmem:[%s1273_s11 + $0xc0] sm:$0xff] (%p1811_p6), %v1355_v41 }
 0x2cc   : > { %v1694_v19 = vpop.eup %1693  ;;  %1701 = vtanh.f32 %v1004_v55 }
 0x2cd   : > { %v1696_v27 = vpop.eup %1695  ;;  %v1066_v11 = vadd.f32 1.0, %v1694_v19  ;;  %v1020_v52 = vmul.f32 0.7978846, %v988_v58 }
 0x2ce   : > { %v1698_v36 = vpop.eup %1697  ;;  %v1082_v45 = vadd.f32 1.0, %v1696_v27 }
 0x2cf   : > { %v1098_v63 = vmul.f32 0.5, %v1066_v11  ;;  %1703 = vtanh.f32 %v1020_v52  ;;  %v1067_v8 = vadd.f32 1.0, %v1698_v36 }
 0x2d0   : > { %v1114_v0 = vmul.f32 0.5, %v1082_v45  ;;  %v1341_v48 = vld [vmem:[%s1854_s24 + $0x28] sm:$0xff] (%p1811_p6) }
 0x2d1   : > { %v1130_v2 = vmul.f32 %v1098_v63, %v2331_v20  ;;  %v1700_v17 = vpop.eup %1699  ;;  %v1099_v5 = vmul.f32 0.5, %v1067_v8  ;;  %1342 = vst [vmem:[%s1273_s11 + $0x50] sm:$0xff] (%p1811_p6), %v1341_v48  ;;  %v1357_v30 = vld [vmem:[%s1854_s24 + $0x68] sm:$0xff] (%p1811_p6) }
 0x2d2   : > { %v1146_v6 = vmul.f32 %v1114_v0, %v2336_v38  ;;  %v1083_v10 = vadd.f32 1.0, %v1700_v17  ;;  %1358 = vst [vmem:[%s1273_s11 + $0xd0] sm:$0xff] (%p1811_p6), %v1357_v30 }
 0x2d3   : > { %v1517_v9 = vpack.c.bf16 %v1130_v2, %v1129_v7  ;;  %v1131_v23 = vmul.f32 %v1099_v5, %v2344_v47  ;;  %v1331_v47 = vld [vmem:[%s1854_s24] sm:$0xff] (%p1811_p6) }
 0x2d4   : > { %v1525_v22 = vpack.c.bf16 %v1146_v6, %v1145_v59  ;;  %v1115_v14 = vmul.f32 0.5, %v1083_v10  ;;  %1332 = vst [vmem:[%s1273_s11] sm:$0xff] (%p1811_p6), %v1331_v47 }
 0x2d5   : > { %1251 = vst [vmem:[%s1854_s24 + $0x30] sm:$0xff] %v1517_v9 }
 0x2d6   : > { %1259 = vst [vmem:[%s1854_s24 + $0x70] sm:$0xff] %v1525_v22  ;;  %v1702_v28 = vpop.eup %1701  ;;  %v1147_v38 = vmul.f32 %v1115_v14, %v2351_v12  ;;  %v1333_v12 = vld [vmem:[%s1854_s24 + $0x8] sm:$0xff] (%p1811_p6) }
 0x2d7   : > { %v1068_v13 = vadd.f32 1.0, %v1702_v28  ;;  %1334 = vst [vmem:[%s1273_s11 + $0x10] sm:$0xff] (%p1811_p6), %v1333_v12 }
 0x2d9   : > { %v1704_v16 = vpop.eup %1703  ;;  %v1100_v50 = vmul.f32 0.5, %v1068_v13 }
 0x2da   : > { %v1084_v20 = vadd.f32 1.0, %v1704_v16 }
 0x2db   : > { %v1132_v34 = vmul.f32 %v1100_v50, %v2361_v61  ;;  %v1335_v61 = vld [vmem:[%s1854_s24 + $0x10] sm:$0xff] (%p1811_p6) }
 0x2dc   : > { %v1116_v18 = vmul.f32 0.5, %v1084_v20  ;;  %1267 = sbr.rel (!%p1811_p6) target bundleno = 747 (0x2eb), region = 86  ;;  %1336 = vst [vmem:[%s1273_s11 + $0x20] sm:$0xff] (%p1811_p6), %v1335_v61  ;;  %v1343_v43 = vld [vmem:[%s1854_s24 + $0x30] sm:$0xff] (%p1811_p6) }
 0x2dd   : > { %v1518_v24 = vpack.c.bf16 %v1132_v34, %v1131_v23  ;;  %1344 = vst [vmem:[%s1273_s11 + $0x60] sm:$0xff] (%p1811_p6), %v1343_v43  ;;  %v1359_v42 = vld [vmem:[%s1854_s24 + $0x70] sm:$0xff] (%p1811_p6) }
 0x2de   : > { %v1148_v25 = vmul.f32 %v1116_v18, %v2371_v44  ;;  %v1337_v44 = vld [vmem:[%s1854_s24 + $0x18] sm:$0xff] (%p1811_p6)  ;;  %1360 = vst [vmem:[%s1273_s11 + $0xe0] sm:$0xff] (%p1811_p6), %v1359_v42 }
 0x2df   : > { %1252 = vst [vmem:[%s1854_s24 + $0x38] sm:$0xff] %v1518_v24  ;;  %1338 = vst [vmem:[%s1273_s11 + $0x30] sm:$0xff] (%p1811_p6), %v1337_v44 }
 0x2e0   : > { %v1526_v26 = vpack.c.bf16 %v1148_v25, %v1147_v38 }
 0x2e2   : > { %1260 = vst [vmem:[%s1854_s24 + $0x78] sm:$0xff] %v1526_v26 }
 0x2e6   : > { %v1345_v33 = vld [vmem:[%s1854_s24 + $0x38] sm:$0xff] }
 0x2e7   : > { %1346 = vst [vmem:[%s1273_s11 + $0x70] sm:$0xff] %v1345_v33 }
 0x2e9   : > { %v1361_v56 = vld [vmem:[%s1854_s24 + $0x78] sm:$0xff] }
 0x2ea   : > { %1362 = vst [vmem:[%s1273_s11 + $0xf0] sm:$0xff] %v1361_v56 }
 0x2eb PF: > { %s15_s22 = sadd.s32 1, %s1743_s22   ;;  %s2447_s18 = smov %s1731_s19 }
 0x2ec   : > { %p12_p13 = scmp.ge.s32.totalorder %s15_s22, 4   ;;  %s2448_s19 = smov %s1816_s28 }
 0x2ed   : > { %s2449_s20 = smov %s1739_s21  ;;  %s2450_s21 = smov %s2452_s23 }
 0x2ee   :  { %14 = sbr.rel (!%p12_p13) target bundleno = 3 (0x3), region = 161 }

// kernel: _lambda_.25
= control target key start
LH: loop header
LB: loop body
LE: loop exit
PB: predicated region body
PF: predicated region fallthrough
CT: control target
= control target key end

     0   :  { %9 = vsyncpa [#allocation3], 0  ;;  %s3474_s0 = inlined_call_operand.vmem [shape: bf16[2,10,10,128], index: 0, kind: input, shape index: {}]   ;;  %s3475_s1 = inlined_call_operand.vmem [shape: bf16[9,128,128], index: 1, kind: input, shape index: {}]   ;;  %s3476_s2 = inlined_call_operand.vmem [shape: f32[1,128], index: 2, kind: input, shape index: {}]   ;;  %s3477_s3 = inlined_call_operand.vmem [shape: f32[1,128], index: 3, kind: input, shape index: {}]   ;;  %s3478_s4 = inlined_call_operand.hbm [shape: f32[2,8,8,128], index: 4, kind: output, shape index: {}]  }
   0x1   :  { %11 = vsyncpa [#allocation3 + $0x1], 0  ;;  %s2821_s15 = smov 0   ;;  %s2823_s16 = smov 0  }
   0x2   :  { %s2825_s17 = smov 0   ;;  %s2827_s18 = smov 0  }
   0x3 LB: > { %s2842_s19 = sadd.s32 4294967295, %s2791_s18   ;;  %s1935_s20 = sadd.s32 4294967294, %s2791_s18   ;;  %s2791_s18 = sphi %s2827_s18, %s3488_s18   ;;  %s2787_s17 = sphi %s2825_s17, %s3487_s17   ;;  %s2783_s16 = sphi %s2823_s16, %s3486_s16   ;;  %s2779_s15 = sphi %s2821_s15, %s3485_s15  }
   0x4   : > { %s2846_s21 = sadd.s32 1, %s2791_s18   ;;  %s113_s22 = sadd.s32 1, %s2787_s17 }
   0x5   : > { %s110_s23 = ssub.s32 %s2791_s18, %s2846_s21  ;;  %p123_p0 = scmp.ne.s32.totalorder %s2787_s17, %s2783_s16 }
   0x6   : > { %p111_p1 = scmp.eq.s32.totalorder %s110_s23, 0  ;;  %p124_p2 = scmp.eq.s32.totalorder %s2842_s19, 1 }
   0x7   : > { %p129_p3 = scmp.ne.s32.totalorder %s2783_s16, %s2779_s15  ;;  %p130_p4 = scmp.eq.s32.totalorder %s1935_s20, 1 }
   0x8   : > { %s2857_s24 = scalar_select %p111_p1, %s2787_s17, %s113_s22  }
   0x9   : > { %p2859_p5 = por %p124_p2, %p123_p0  ;;  %p2863_p6 = por %p130_p4, %p129_p3 }
   0xa   : > { %p1938_p7 = scmp.ge.s32.totalorder %s2791_s18, 1  ;;  %p165_p8 = scmp.lt.s32.totalorder %s2791_s18, 3 }
   0xc   : > { %p166_p9 = pnand %p1938_p7, %p165_p8 }
   0xd   : > { %v2632_v0 = vld [vmem:[%s3475_s1 + $0x40] sm:$0xff] (!%p166_p9)   ;;  %p191_p10 = scmp.lt.s32.totalorder (!%p166_p9), %s2842_s19, 1  ;;  %v2634_v2 = vld [vmem:[%s3475_s1 + $0x48] sm:$0xff] (!%p166_p9)   ;;  %v2636_v4 = vld [vmem:[%s3475_s1 + $0x50] sm:$0xff] (!%p166_p9)   ;;  %vm233_vm0 = vsmask.f32 (!%p166_p9), 3328 }
   0xe   : > { %169 = sbr.rel (%p166_p9) target bundleno = 733 (0x2dd), region = 36  ;;  %v2633_v1 = vld [vmem:[%s3475_s1 + $0x100] sm:$0xff] (!%p166_p9)   ;;  %2294 = vmatprep.subr.bf16.mxu1 (!%p166_p9), %v2632_v0  ;;  %v2635_v3 = vld [vmem:[%s3475_s1 + $0x108] sm:$0xff] (!%p166_p9)   ;;  %v2637_v5 = vld [vmem:[%s3475_s1 + $0x110] sm:$0xff] (!%p166_p9)   ;;  %vm234_vm1 = vsmask.f32 (!%p166_p9), 7440 }
   0xf   : > { %2390 = vmatprep.subr.bf16.mxu0 (!%p166_p9), %v2633_v1  ;;  %2295 = vmatpush3.bf16.msra.mxu1 (!%p166_p9), %v2632_v0  ;;  %v2638_v6 = vld [vmem:[%s3475_s1 + $0x58] sm:$0xff] (!%p166_p9)   ;;  %v2640_v8 = vld [vmem:[%s3475_s1 + $0x60] sm:$0xff] (!%p166_p9)   ;;  %v2642_v10 = vld [vmem:[%s3475_s1 + $0x68] sm:$0xff] (!%p166_p9)   ;;  %vm639_vm3 = vcmask (!%p166_p9), 1042432   ;;  %vm640_vm4 = vcmask (!%p166_p9), 1046532   ;;  %s188_s22 = sand.u32 (!%p166_p9), 1, %s2783_s16  }
  0x10   : > { %2391 = vmatpush3.bf16.msra.mxu0 (!%p166_p9), %v2633_v1  ;;  %2296 = vmatprep.subr.bf16.mxu1 (!%p166_p9), %v2634_v2  ;;  %v2639_v7 = vld [vmem:[%s3475_s1 + $0x118] sm:$0xff] (!%p166_p9)   ;;  %v2641_v9 = vld [vmem:[%s3475_s1 + $0x120] sm:$0xff] (!%p166_p9)   ;;  %v2643_v14 = vld [vmem:[%s3475_s1 + $0x128] sm:$0xff] (!%p166_p9)   ;;  %s1939_s28 = sshll.u32 (!%p166_p9), %s188_s22, 6  ;;  %s2185_s6 = sshll.u32 (!%p166_p9), %s2842_s19, 10 }
  0x11   : > { %2392 = vmatprep.subr.bf16.mxu0 (!%p166_p9), %v2635_v3  ;;  %v2644_v22 = vld [vmem:[%s3475_s1 + $0x70] sm:$0xff] (!%p166_p9)   ;;  %v2646_v38 = vld [vmem:[%s3475_s1 + $0x78] sm:$0xff] (!%p166_p9)   ;;  %vm2957_vm2 = vmor (!%p166_p9), %vm233_vm0, %vm234_vm1  ;;  %s3407_s5 = scalar_lea.vmem (!%p166_p9), [#allocation2], %s1939_s28  ;;  %s3426_s10 = scalar_lea.hbm (!%p166_p9), %s3478_s4, %s2185_s6 }
  0x12   : > { %v2645_v23 = vld [vmem:[%s3475_s1 + $0x130] sm:$0xff] (!%p166_p9)   ;;  %v2647_v48 = vld [vmem:[%s3475_s1 + $0x138] sm:$0xff] (!%p166_p9)   ;;  %v2648_v62 = vld [vmem:[%s3475_s1] sm:$0xff] (!%p166_p9)   ;;  %s1873_s7 = sshll.u32 (!%p166_p9), %s3407_s5, 4  ;;  %s3433_s11 = scalar_lea.sflag (!%p166_p9), [#allocation3], %s188_s22  ;;  %s3428_s7 = int_to_ptr.vmem [resolvable:$true] %s1873_s7 }
  0x13   : > { %2297 = vmatpush3.bf16.msra.mxu1 (!%p166_p9), %v2634_v2  ;;  %vm3070_vm5 = vmor (!%p166_p9), %vm639_vm3, %vm640_vm4  ;;  %v2676_v39 = vld [vmem:[%s3475_s1 + $0xa8] sm:$0xff] (!%p166_p9)   ;;  %s2793_s12 = smov (!%p166_p9), [#allocation2]  }
  0x14   : > { %2393 = vmatpush3.bf16.msra.mxu0 (!%p166_p9), %v2635_v3  ;;  %2298 = vmatprep.subr.bf16.mxu1 (!%p166_p9), %v2636_v4  ;;  %v2649_v3 = vld [vmem:[%s3475_s1 + $0x140] sm:$0xff] (!%p166_p9)  }
  0x15   : > { %s192_s13 = scalar_select %p191_p10, %s2842_s19, 1  ;;  %2394 = vmatprep.subr.bf16.mxu0 %v2637_v5 }
  0x16   : > { %s2729_s19 = scalar_lea.vmem %s3428_s7, 1024 }
  0x17   : > { %s2590_s27 = smul.u32 80, %s192_s13  ;;  %2299 = vmatpush3.bf16.msra.mxu1 %v2636_v4  ;;  %p2730_p11 = scmp.ne.s32.totalorder %s3428_s7, %s2729_s19 }
  0x18   : > { %2395 = vmatpush3.bf16.msra.mxu0 %v2637_v5  ;;  %2300 = vmatprep.subr.bf16.mxu1 %v2638_v6  ;;  %s2733_s13 = sshll.u32 %s2793_s12, 4  ;;  %s2734_s13 = int_to_ptr.vmem [resolvable:$false] %s2733_s13 }
  0x19   : > { %2396 = vmatprep.subr.bf16.mxu0 %v2639_v7  ;;  %s2904_s8 = scalar_lea.vmem %s3474_s0, %s2590_s27  ;;  %p2731_p12 = pnand %p2730_p11, %p2859_p5 }
  0x1a   : > { %v2910_v11 = vld [vmem:[%s2904_s8] sm:$0xf]  ;;  %v2913_v12 = vld [vmem:[%s2904_s8 + $0x4] sm:$0x1]  ;;  %v2916_v13 = vld [vmem:[%s2904_s8 + $0x8] sm:$0xf]  ;;  %p2736_p0 = scmp.lt.s32.totalorder %s3428_s7, %s2734_s13 }
  0x1b   : > { %2301 = vmatpush3.bf16.msra.mxu1 %v2638_v6  ;;  %v2922_v15 = vld [vmem:[%s2904_s8 + $0xc] sm:$0x1]  ;;  %v237_v16 = vshrl.u32 %v2910_v11, 16  ;;  %v240_v17 = vshll.u32 %v2910_v11, 16  ;;  %v246_v18 = vshll.u32 %v2913_v12, 16  ;;  %v251_v19 = vshrl.u32 %v2916_v13, 16  ;;  %p2732_p13 = pneg %p2731_p12 }
  0x1c   : > { %2397 = vmatpush3.bf16.msra.mxu0 %v2639_v7  ;;  %2302 = vmatprep.subr.bf16.mxu1 %v2640_v8  ;;  %v254_v20 = vshll.u32 %v2916_v13, 16  ;;  %v260_v21 = vshll.u32 %v2922_v15, 16  ;;  %v2937_v30 = vld [vmem:[%s2904_s8 + $0x10] sm:$0xf]  ;;  %v2940_v31 = vld [vmem:[%s2904_s8 + $0x14] sm:$0x1] }
  0x1d   : > { %2398 = vmatprep.subr.bf16.mxu0 %v2641_v9  ;;  %v239_v24 = vrot.slane %v237_v16, 4  ;;  %v242_v25 = vrot.slane %v240_v17, 5  ;;  %v248_v26 = vrot.slane %v246_v18, 5  ;;  %v253_v27 = vrot.slane %v251_v19, 4  ;;  %v2943_v33 = vld [vmem:[%s2904_s8 + $0x18] sm:$0xf] }
  0x1e   : > { %v256_v28 = vrot.slane %v254_v20, 5  ;;  %v262_v29 = vrot.slane %v260_v21, 5  ;;  %v2946_v34 = vld [vmem:[%s2904_s8 + $0x1c] sm:$0x1]  ;;  %v265_v35 = vshrl.u32 %v2937_v30, 16  ;;  %v268_v36 = vshll.u32 %v2937_v30, 16 }
  0x1f   : > { %2303 = vmatpush3.bf16.msra.mxu1 %v2640_v8  ;;  %v243_v32 = vor.u32 %v242_v25, %v239_v24  ;;  %v2033_v37 = vcombine.low %v2916_v13, %v2937_v30  ;;  %v274_v41 = vshll.u32 %v2940_v31, 16  ;;  %v279_v42 = vshrl.u32 %v2943_v33, 16  ;;  %v2969_v52 = vld [vmem:[%s2904_s8 + $0x20] sm:$0xf]  ;;  %v2974_v56 = vld [vmem:[%s2904_s8 + $0x24] sm:$0x1] }
  0x20   : > { %2399 = vmatpush3.bf16.msra.mxu0 %v2641_v9  ;;  %2304 = vmatprep.subr.bf16.mxu1 %v2642_v10  ;;  %v257_v40 = vor.u32 %v256_v28, %v253_v27  ;;  %v282_v43 = vshll.u32 %v2943_v33, 16  ;;  %v267_v45 = vrot.slane %v265_v35, 4  ;;  %v270_v46 = vrot.slane %v268_v36, 5  ;;  %v2650_v17 = vld [vmem:[%s3475_s1 + $0x8] sm:$0xff]   ;;  %v2654_v35 = vld [vmem:[%s3475_s1 + $0x18] sm:$0xff]   ;;  %s2735_s14 = scalar_lea.vmem %s2734_s13, 2048 }
  0x21   : > { %2400 = vmatprep.subr.bf16.mxu0 %v2643_v14  ;;  %v244_v44 = vrot.slane %v243_v32, 4  ;;  %v288_v47 = vshll.u32 %v2946_v34, 16  ;;  %v281_v50 = vrot.slane %v279_v42, 4  ;;  %v276_v55 = vrot.slane %v274_v41, 5  ;;  %v2651_v24 = vld [vmem:[%s3475_s1 + $0x148] sm:$0xff]   ;;  %v2653_v32 = vld [vmem:[%s3475_s1 + $0x150] sm:$0xff]   ;;  %p2737_p1 = scmp.lt.s32.totalorder %s2735_s14, %s2729_s19 }
  0x22   : > { %v258_v49 = vrot.slane %v257_v40, 4  ;;  %v284_v51 = vrot.slane %v282_v43, 5  ;;  %v271_v54 = vor.u32 %v270_v46, %v267_v45  ;;  %v293_v60 = vshrl.u32 %v2969_v52, 16  ;;  %v3010_v25 = vld [vmem:[%s2904_s8 + $0x28] sm:$0xf] }
  0x23   : > { %2305 = vmatpush3.bf16.msra.mxu1 %v2642_v10  ;;  %v249_v53 = vsel %vm2957_vm2, %v244_v44, %v248_v26  ;;  %v290_v59 = vrot.slane %v288_v47, 5  ;;  %v296_v0 = vshll.u32 %v2969_v52, 16  ;;  %v302_v1 = vshll.u32 %v2974_v56, 16  ;;  %v3014_v27 = vld [vmem:[%s2904_s8 + $0x2c] sm:$0x1]  ;;  %p2738_p2 = por %p2737_p1, %p2736_p0 }
  0x24   : > { %2401 = vmatpush3.bf16.msra.mxu0 %v2643_v14  ;;  %2306 = vmatprep.subr.bf16.mxu1 %v2644_v22  ;;  %v263_v57 = vsel %vm2957_vm2, %v258_v49, %v262_v29  ;;  %v285_v58 = vor.u32 %v284_v51, %v281_v50  ;;  %v272_v63 = vrot.slane %v271_v54, 4  ;;  %v295_v4 = vrot.slane %v293_v60, 4  ;;  %v3029_v42 = vld [vmem:[%s2904_s8 + $0x34] sm:$0x1]  ;;  %v2655_v54 = vld [vmem:[%s3475_s1 + $0x158] sm:$0xff]  }
  0x25   : > { %2402 = vmatprep.subr.bf16.mxu0 %v2645_v23  ;;  %v1957_v61 = vcombine.low %v249_v53, %v263_v57  ;;  %v298_v6 = vrot.slane %v296_v0, 5  ;;  %v2034_v7 = vcombine.low %v2943_v33, %v2969_v52  ;;  %v304_v16 = vrot.slane %v302_v1, 5  ;;  %v3038_v53 = vld [vmem:[%s2904_s8 + $0x38] sm:$0xf]  ;;  %v3053_v0 = vld [vmem:[%s2904_s8 + $0x40] sm:$0xf]  ;;  %p2739_p3 = pnand %p2738_p2, %p2732_p13 }
  0x26   : > { %v286_v2 = vrot.slane %v285_v58, 4  ;;  %v277_v5 = vsel %vm2957_vm2, %v272_v63, %v276_v55  ;;  %v648_v19 = vrot.slane %v2922_v15, 5  ;;  %v652_v20 = vrot.slane %v2940_v31, 5  ;;  %v2656_v55 = vld [vmem:[%s3475_s1 + $0x20] sm:$0xff]   ;;  %v3047_v58 = vld [vmem:[%s2904_s8 + $0x3c] sm:$0x1] }
  0x27   : > { %2307 = vmatpush3.bf16.msra.mxu1 %v2644_v22  ;;  %2310 = vmatprep.mubr.bf16.mxu1 %v1957_v61  ;;  %v2061_v9 = vcombine.low %v263_v57, %v277_v5  ;;  %v299_v14 = vor.u32 %v298_v6, %v295_v4  ;;  %v2652_v22 = vld [vmem:[%s3475_s1 + $0x10] sm:$0xff]   ;;  %v1982_v26 = vrot.slane %v2916_v13, 9  ;;  %v307_v28 = vshrl.u32 %v3010_v25, 16  ;;  %v3056_v1 = vld [vmem:[%s2904_s8 + $0x44] sm:$0x1]  ;;  %v2659_v15 = vld [vmem:[%s3475_s1 + $0x168] sm:$0xff]  }
  0x28   : > { %2403 = vmatpush3.bf16.msra.mxu0 %v2645_v23  ;;  %2308 = vmatprep.subr.bf16.mxu1 %v2646_v38  ;;  %v291_v8 = vsel %vm2957_vm2, %v286_v2, %v290_v59  ;;  %v310_v29 = vshll.u32 %v3010_v25, 16  ;;  %v316_v36 = vshll.u32 %v3014_v27, 16  ;;  %v330_v45 = vshll.u32 %v3029_v42, 16 }
  0x29   : > { %2404 = vmatprep.subr.bf16.mxu0 %v2647_v48  ;;  %v2993_v10 = vcombine.low %v277_v5, %v291_v8  ;;  %2406 = vmatprep.mubr.bf16.mxu0 %v2061_v9  ;;  %v300_v18 = vrot.slane %v299_v14, 4  ;;  %v309_v40 = vrot.slane %v307_v28, 4  ;;  %v1983_v46 = vrot.slane %v2937_v30, 9  ;;  %v2658_v28 = vld [vmem:[%s3475_s1 + $0x28] sm:$0xff]  }
  0x2a   : > { %v312_v41 = vrot.slane %v310_v29, 5  ;;  %v318_v49 = vrot.slane %v316_v36, 5  ;;  %v332_v57 = vrot.slane %v330_v45, 5  ;;  %v335_v59 = vshrl.u32 %v3038_v53, 16 }
  0x2b   : > { %2309 = vmatpush3.bf16.msra.mxu1 %v2646_v38  ;;  %v305_v21 = vsel %vm2957_vm2, %v300_v18, %v304_v16  ;;  %v3026_v38 = vld [vmem:[%s2904_s8 + $0x30] sm:$0xf]  ;;  %v338_v60 = vshll.u32 %v3038_v53, 16  ;;  %v344_v63 = vshll.u32 %v3047_v58, 16  ;;  %v977_v4 = vshrl.u32 %v3053_v0, 16  ;;  %v2657_v16 = vld [vmem:[%s3475_s1 + $0x160] sm:$0xff]  }
  0x2c   : > { %2405 = vmatpush3.bf16.msra.mxu0 %v2647_v48  ;;  %2318 = vmatprep.subr.bf16.mxu1 %v2648_v62  ;;  %v2062_v23 = vcombine.low %v291_v8, %v305_v21  ;;  %v321_v43 = vshrl.u32 %v3026_v38, 16  ;;  %v324_v44 = vshll.u32 %v3026_v38, 16  ;;  %v2035_v47 = vcombine.low %v3010_v25, %v3026_v38 }
  0x2d   : > { %2414 = vmatprep.subr.bf16.mxu0 %v2649_v3  ;;  %v313_v48 = vor.u32 %v312_v41, %v309_v40  ;;  %v337_v2 = vrot.slane %v335_v59, 4  ;;  %v980_v5 = vshll.u32 %v3053_v0, 16  ;;  %v346_v9 = vrot.slane %v344_v63, 5  ;;  %v2665_v59 = vld [vmem:[%s3475_s1 + $0x80] sm:$0xff]   ;;  %v3138_v63 = vld [vmem:[%s2904_s8 + $0x48] sm:$0xf] }
  0x2e   : > { %2311 = vmatmul.mubr.bf16.vlgmr.msra.gmra.mrb[0].mxu1 %v2993_v10  ;;  %v323_v50 = vrot.slane %v321_v43, 4  ;;  %v326_v51 = vrot.slane %v324_v44, 5  ;;  %v986_v14 = vshll.u32 %v3056_v1, 16  ;;  %v3092_v45 = vsel %vm3070_vm5, %v1982_v26, %v648_v19 }
  0x2f   : > { %2319 = vmatpush3.bf16.msra.mxu1 %v2648_v62  ;;  %2407 = vmatmul.mubr.bf16.vlgmr.msra.gmra.mrb[0].mxu0 %v2062_v23  ;;  %v314_v61 = vrot.slane %v313_v48, 4  ;;  %v982_v23 = vrot.slane %v980_v5, 5  ;;  %v3098_v48 = vsel %vm3070_vm5, %v1983_v46, %v652_v20  ;;  %v644_v26 = vrot.slane %v2913_v12, 5  ;;  %v216_v5 = vld [vmem:[%s2904_s8 + $0x4c] sm:$0x1] }
  0x30   : > { %2320 = vmatprep.subr.bf16.mxu1 %v2650_v17  ;;  %2415 = vmatpush3.bf16.msra.mxu0 %v2649_v3  ;;  %v327_v62 = vor.u32 %v326_v51, %v323_v50  ;;  %v340_v3 = vrot.slane %v338_v60, 5  ;;  %v988_v41 = vrot.slane %v986_v14, 5  ;;  %v2090_v20 = vcombine.low %v3092_v45, %v3098_v48  ;;  %v2666_v14 = vld [vmem:[%s3475_s1 + $0x180] sm:$0xff]  }
  0x31   : > { %2416 = vmatprep.subr.bf16.mxu0 %v2651_v24  ;;  %v319_v6 = vsel %vm2957_vm2, %v314_v61, %v318_v49  ;;  %v2660_v49 = vld [vmem:[%s3475_s1 + $0x30] sm:$0xff]   ;;  %v656_v46 = vrot.slane %v2946_v34, 5  ;;  %v660_v51 = vrot.slane %v2974_v56, 5  ;;  %v1984_v12 = vrot.slane %v2943_v33, 9 }
  0x32   : > { %v328_v8 = vrot.slane %v327_v62, 4  ;;  %v341_v18 = vor.u32 %v340_v3, %v337_v2  ;;  %v1985_v34 = vrot.slane %v2969_v52, 9  ;;  %v1981_v56 = vrot.slane %v2910_v11, 9 }
  0x33   : > { %2321 = vmatpush3.bf16.msra.mxu1 %v2650_v17  ;;  %v3066_v17 = vcombine.low %v305_v21, %v319_v6  ;;  %v2036_v21 = vcombine.low %v3038_v53, %v3053_v0  ;;  %v1986_v60 = vrot.slane %v3010_v25, 9  ;;  %v664_v61 = vrot.slane %v3014_v27, 5  ;;  %v2668_v27 = vld [vmem:[%s3475_s1 + $0x88] sm:$0xff]  }
  0x34   : > { %2322 = vmatprep.subr.bf16.mxu1 %v2652_v22  ;;  %2417 = vmatpush3.bf16.msra.mxu0 %v2651_v24  ;;  %v333_v29 = vsel %vm2957_vm2, %v328_v8, %v332_v57  ;;  %v342_v36 = vrot.slane %v341_v18, 4  ;;  %v2663_v57 = vld [vmem:[%s3475_s1 + $0x178] sm:$0xff]   ;;  %v1987_v62 = vrot.slane %v3026_v38, 9  ;;  %v1140_v2 = vrot.slane %v3056_v1, 5  ;;  %v2674_v24 = vld [vmem:[%s3475_s1 + $0xa0] sm:$0xff]  }
  0x35   : > { %2418 = vmatprep.subr.bf16.mxu0 %v2653_v32  ;;  %2314 = vmatprep.mubr.bf16.mxu1 %v3066_v17  ;;  %v3144_v3 = vcombine.low %v2937_v30, %v2943_v33  ;;  %v3154_v8 = vcombine.low %v2969_v52, %v3010_v25  ;;  %v3158_v1 = vsel %vm3070_vm5, %v1984_v12, %v656_v46  ;;  %v2693_v30 = vld [vmem:[%s3475_s1 + $0x1e0] sm:$0xff]   ;;  %v2708_v33 = vld [vmem:[%s3475_s1 + $0x218] sm:$0xff]   ;;  %v2711_v25 = vld [vmem:[%s3475_s1 + $0x230] sm:$0xff]  }
  0x36   : > { %v347_v43 = vsel %vm2957_vm2, %v342_v36, %v346_v9  ;;  %v1589_v9 = vrot.slane %v216_v5, 5  ;;  %v1435_v36 = vshll.u32 %v3138_v63, 16  ;;  %v3205_v46 = vcombine.low %v3026_v38, %v3038_v53  ;;  %v2709_v52 = vld [vmem:[%s3475_s1 + $0x220] sm:$0xff]   ;;  %v2712_v38 = vld [vmem:[%s3475_s1 + $0x238] sm:$0xff]  }
  0x37   : > { %2323 = vmatpush3.bf16.msra.mxu1 %v2652_v22  ;;  %v979_v22 = vrot.slane %v977_v4, 4  ;;  %v3103_v50 = vcombine.low %v333_v29, %v347_v43  ;;  %v668_v4 = vrot.slane %v3029_v42, 5  ;;  %v3162_v42 = vsel %vm3070_vm5, %v1985_v34, %v660_v51  ;;  %v2671_v34 = vld [vmem:[%s3475_s1 + $0x190] sm:$0xff]  }
  0x38   : > { %2324 = vmatprep.subr.bf16.mxu1 %v2654_v35  ;;  %2419 = vmatpush3.bf16.msra.mxu0 %v2653_v32  ;;  %v1969_v32 = vcombine.low %v2910_v11, %v2916_v13  ;;  %v2073_v11 = vrot.slane %v3053_v0, 9  ;;  %v2694_v13 = vld [vmem:[%s3475_s1 + $0xe8] sm:$0xff]  }
  0x39   : > { %2420 = vmatprep.subr.bf16.mxu0 %v2655_v54  ;;  %v983_v40 = vor.u32 %v982_v23, %v979_v22  ;;  %2315 = vmatmul.mubr.bf16.gmra.mrb[4].mxu1 %v3103_v50  ;;  %v1432_v22 = vshrl.u32 %v3138_v63, 16  ;;  %v2670_v23 = vld [vmem:[%s3475_s1 + $0x90] sm:$0xff]  }
  0x3a   : > { %2334 = vmatprep.mubr.bf16.mxu1 %v1969_v32 }
  0x3b   : > { %2325 = vmatpush3.bf16.msra.mxu1 %v2654_v35  ;;  %v2063_v35 = vcombine.low %v319_v6, %v333_v29  ;;  %v984_v44 = vrot.slane %v983_v40, 4  ;;  %v2152_v6 = vrot.slane %v3138_v63, 9  ;;  %v3186_v29 = vsel %vm3070_vm5, %v1987_v62, %v668_v4  ;;  %v2682_v62 = vld [vmem:[%s3475_s1 + $0xb8] sm:$0xff]  }
  0x3c   : > { %2326 = vmatprep.subr.bf16.mxu1 %v2656_v55  ;;  %2421 = vmatpush3.bf16.msra.mxu0 %v2655_v54  ;;  %v2662_v54 = vld [vmem:[%s3475_s1 + $0x38] sm:$0xff]   ;;  %v2091_v40 = vcombine.low %v3158_v1, %v3162_v42  ;;  %v1434_v32 = vrot.slane %v1432_v22, 4  ;;  %v3256_v4 = vcombine.low %v3098_v48, %v3158_v1  ;;  %v2688_v48 = vld [vmem:[%s3475_s1 + $0xd0] sm:$0xff]   ;;  %v2692_v22 = vld [vmem:[%s3475_s1 + $0xe0] sm:$0xff]  }
  0x3d   : > { %2410 = vmatprep.mubr.bf16.mxu0 %v2063_v35  ;;  %2422 = vmatprep.subr.bf16.mxu0 %v2657_v16  ;;  %v3110_v31 = vsel %vm2957_vm2, %v984_v44, %v988_v41  ;;  %v3173_v18 = vsel %vm3070_vm5, %v2152_v6, %v1589_v9  ;;  %v1988_v41 = vrot.slane %v3038_v53, 9  ;;  %v645_v44 = vsel %vm3070_vm5, %v1981_v56, %v644_v26  ;;  %v2686_v6 = vld [vmem:[%s3475_s1 + $0xc8] sm:$0xff]  }
  0x3e   : > { %v2064_v19 = vcombine.low %v347_v43, %v3110_v31  ;;  %v672_v43 = vrot.slane %v3047_v58, 5  ;;  %v2005_v58 = vcombine.low %v645_v44, %v3092_v45  ;;  %v2687_v9 = vld [vmem:[%s3475_s1 + $0x1c8] sm:$0xff]  }
  0x3f   : > { %2327 = vmatpush3.bf16.msra.mxu1 %v2656_v55  ;;  %v2661_v55 = vld [vmem:[%s3475_s1 + $0x170] sm:$0xff]  }
  0x40   : > { %2328 = vmatprep.subr.bf16.mxu1 %v2658_v28  ;;  %2423 = vmatpush3.bf16.msra.mxu0 %v2657_v16  ;;  %v3169_v16 = vsel %vm3070_vm5, %v2073_v11, %v1140_v2  ;;  %v2680_v11 = vld [vmem:[%s3475_s1 + $0x1b0] sm:$0xff]   ;;  %v2684_v2 = vld [vmem:[%s3475_s1 + $0xc0] sm:$0xff]  }
  0x41   : > { %2424 = vmatprep.subr.bf16.mxu0 %v2659_v15  ;;  %2411 = vmatmul.mubr.bf16.gmra.mrb[4].mxu0 %v2064_v19  ;;  %v2169_v35 = vcombine.low %v3169_v16, %v3173_v18 }
  0x42   : > { %2430 = vmatprep.mubr.bf16.mxu0 %v2090_v20  ;;  %v1441_v20 = vshll.u32 %v216_v5, 16 }
  0x43   : > { %2329 = vmatpush3.bf16.msra.mxu1 %v2658_v28  ;;  %v3182_v28 = vsel %vm3070_vm5, %v1986_v60, %v664_v61  ;;  %v2679_v60 = vld [vmem:[%s3475_s1 + $0xb0] sm:$0xff]   ;;  %v2677_v61 = vld [vmem:[%s3475_s1 + $0x1a8] sm:$0xff]  }
  0x44   : > { %2330 = vmatprep.subr.bf16.mxu1 %v2660_v49  ;;  %2425 = vmatpush3.bf16.msra.mxu0 %v2659_v15  ;;  %v2669_v15 = vld [vmem:[%s3475_s1 + $0x188] sm:$0xff]   ;;  %v2092_v19 = vcombine.low %v3182_v28, %v3186_v29  ;;  %v1443_v26 = vrot.slane %v1441_v20, 5  ;;  %v3260_v5 = vcombine.low %v3162_v42, %v3182_v28  ;;  %v2690_v42 = vld [vmem:[%s3475_s1 + $0xd8] sm:$0xff]  }
  0x45   : > { %2426 = vmatprep.subr.bf16.mxu0 %v2661_v55  ;;  %v2699_v28 = vld [vmem:[%s3475_s1 + $0xf8] sm:$0xff]  }
  0x47   : > { %2331 = vmatpush3.bf16.msra.mxu1 %v2660_v49  ;;  %v1437_v49 = vrot.slane %v1435_v36, 5  ;;  %v2700_v36 = vld [vmem:[%s3475_s1 + $0x1f8] sm:$0xff]  }
  0x48   : > { %2332 = vmatprep.subr.bf16.mxu1 %v2662_v54  ;;  %2427 = vmatpush3.bf16.msra.mxu0 %v2661_v55  ;;  %v673_v55 = vsel %vm3070_vm5, %v1988_v41, %v672_v43  ;;  %v2707_v41 = vld [vmem:[%s3475_s1 + $0x210] sm:$0xff]  }
  0x49   : > { %2428 = vmatprep.subr.bf16.mxu0 %v2663_v57  ;;  %v1438_v51 = vor.u32 %v1437_v49, %v1434_v32  ;;  %v2093_v56 = vcombine.low %v673_v55, %v3169_v16  ;;  %v3277_v1 = vcombine.low %v3186_v29, %v673_v55  ;;  %v2703_v29 = vld [vmem:[%s3475_s1 + $0x200] sm:$0xff]  }
  0x4b   : > { %2333 = vmatpush3.bf16.msra.mxu1 %v2662_v54  ;;  %v2672_v54 = vld [vmem:[%s3475_s1 + $0x98] sm:$0xff]   ;;  %v1439_v12 = vrot.slane %v1438_v51, 4 }
  0x4c   : > { %2342 = vmatprep.subr.bf16.mxu1 %v2665_v59  ;;  %2429 = vmatpush3.bf16.msra.mxu0 %v2663_v57 }
  0x4d   : > { %2438 = vmatprep.subr.bf16.mxu0 %v2666_v14  ;;  %v1444_v45 = vsel %vm2957_vm2, %v1439_v12, %v1443_v26 }
  0x4e   : > { %2335 = vmatmul.mubr.bf16.vlgmr.msra.gmra.mrb[0].mxu1 %v3144_v3  ;;  %v3221_v57 = vcombine.low %v3110_v31, %v1444_v45  ;;  %v2675_v31 = vld [vmem:[%s3475_s1 + $0x1a0] sm:$0xff]  }
  0x4f   : > { %2343 = vmatpush3.bf16.msra.mxu1 %v2665_v59  ;;  %2338 = vmatprep.mubr.bf16.mxu1 %v3154_v8  ;;  %v2673_v59 = vld [vmem:[%s3475_s1 + $0x198] sm:$0xff]  }
  0x50   : > { %2344 = vmatprep.subr.bf16.mxu1 %v2668_v27  ;;  %2431 = vmatmul.mubr.bf16.vlgmr.msra.gmra.mrb[0].mxu0 %v2091_v40  ;;  %v2704_v40 = vld [vmem:[%s3475_s1 + $0x208] sm:$0xff]  }
  0x51   : > { %2439 = vmatpush3.bf16.msra.mxu0 %v2666_v14  ;;  %2434 = vmatprep.mubr.bf16.mxu0 %v2092_v19  ;;  %v2689_v14 = vld [vmem:[%s3475_s1 + $0x1d0] sm:$0xff]  }
  0x52   : > { %2440 = vmatprep.subr.bf16.mxu0 %v2669_v15 }
  0x53   : > { %2345 = vmatpush3.bf16.msra.mxu1 %v2668_v27  ;;  %v2685_v27 = vld [vmem:[%s3475_s1 + $0x1c0] sm:$0xff]  }
  0x54   : > { %2346 = vmatprep.subr.bf16.mxu1 %v2670_v23 }
  0x55   : > { %2441 = vmatpush3.bf16.msra.mxu0 %v2669_v15 }
  0x56   : > { %2339 = vmatmul.mubr.bf16.gmra.mrb[4].mxu1 %v3205_v46  ;;  %2442 = vmatprep.subr.bf16.mxu0 %v2671_v34 }
  0x57   : > { %2347 = vmatpush3.bf16.msra.mxu1 %v2670_v23  ;;  %2358 = vmatprep.mubr.bf16.mxu1 %v2005_v58  ;;  %v2691_v23 = vld [vmem:[%s3475_s1 + $0x1d8] sm:$0xff]  }
  0x58   : > { %2348 = vmatprep.subr.bf16.mxu1 %v2672_v54  ;;  %2435 = vmatmul.mubr.bf16.gmra.mrb[4].mxu0 %v2093_v56 }
  0x59   : > { %2443 = vmatpush3.bf16.msra.mxu0 %v2671_v34  ;;  %2454 = vmatprep.mubr.bf16.mxu0 %v3144_v3  ;;  %v2683_v3 = vld [vmem:[%s3475_s1 + $0x1b8] sm:$0xff]  }
  0x5a   : > { %2444 = vmatprep.subr.bf16.mxu0 %v2673_v59 }
  0x5b   : > { %2349 = vmatpush3.bf16.msra.mxu1 %v2672_v54 }
  0x5c   : > { %2350 = vmatprep.subr.bf16.mxu1 %v2674_v24 }
  0x5d   : > { %2445 = vmatpush3.bf16.msra.mxu0 %v2673_v59 }
  0x5e   : > { %2446 = vmatprep.subr.bf16.mxu0 %v2675_v31 }
  0x5f   : > { %2351 = vmatpush3.bf16.msra.mxu1 %v2674_v24 }
  0x60   : > { %2352 = vmatprep.subr.bf16.mxu1 %v2676_v39 }
  0x61   : > { %2447 = vmatpush3.bf16.msra.mxu0 %v2675_v31 }
  0x62   : > { %2448 = vmatprep.subr.bf16.mxu0 %v2677_v61 }
  0x63   : > { %2353 = vmatpush3.bf16.msra.mxu1 %v2676_v39 }
  0x64   : > { %2354 = vmatprep.subr.bf16.mxu1 %v2679_v60 }
  0x65   : > { %2449 = vmatpush3.bf16.msra.mxu0 %v2677_v61 }
  0x66   : > { %2450 = vmatprep.subr.bf16.mxu0 %v2680_v11 }
  0x67   : > { %2355 = vmatpush3.bf16.msra.mxu1 %v2679_v60 }
  0x68   : > { %2356 = vmatprep.subr.bf16.mxu1 %v2682_v62 }
  0x69   : > { %2451 = vmatpush3.bf16.msra.mxu0 %v2680_v11 }
  0x6a   : > { %2452 = vmatprep.subr.bf16.mxu0 %v2683_v3 }
  0x6b   : > { %2357 = vmatpush3.bf16.msra.mxu1 %v2682_v62 }
  0x6c   : > { %2366 = vmatprep.subr.bf16.mxu1 %v2684_v2 }
  0x6d   : > { %2453 = vmatpush3.bf16.msra.mxu0 %v2683_v3 }
  0x6e   : > { %2359 = vmatmul.mubr.bf16.vlgmr.msra.gmra.mrb[0].mxu1 %v3256_v4  ;;  %2462 = vmatprep.subr.bf16.mxu0 %v2685_v27 }
  0x6f   : > { %2367 = vmatpush3.bf16.msra.mxu1 %v2684_v2  ;;  %2362 = vmatprep.mubr.bf16.mxu1 %v3260_v5 }
  0x70   : > { %2368 = vmatprep.subr.bf16.mxu1 %v2686_v6  ;;  %2455 = vmatmul.mubr.bf16.vlgmr.msra.gmra.mrb[0].mxu0 %v3154_v8  ;;  %v2118_v8 = vcombine.low %v3053_v0, %v3138_v63  ;;  %v2695_v63 = vld [vmem:[%s3475_s1 + $0x1e8] sm:$0xff]  }
  0x71   : > { %2463 = vmatpush3.bf16.msra.mxu0 %v2685_v27  ;;  %2458 = vmatprep.mubr.bf16.mxu0 %v3205_v46 }
  0x72   : > { %2464 = vmatprep.subr.bf16.mxu0 %v2687_v9 }
  0x73   : > { %2369 = vmatpush3.bf16.msra.mxu1 %v2686_v6 }
  0x74   : > { %2370 = vmatprep.subr.bf16.mxu1 %v2688_v48 }
  0x75   : > { %2465 = vmatpush3.bf16.msra.mxu0 %v2687_v9 }
  0x76   : > { %2363 = vmatmul.mubr.bf16.gmra.mrb[4].mxu1 %v3277_v1  ;;  %2466 = vmatprep.subr.bf16.mxu0 %v2689_v14 }
  0x77   : > { %2371 = vmatpush3.bf16.msra.mxu1 %v2688_v48  ;;  %2382 = vmatprep.mubr.bf16.mxu1 %v2033_v37  ;;  %v2696_v37 = vld [vmem:[%s3475_s1 + $0xf0] sm:$0xff]  }
  0x78   : > { %2372 = vmatprep.subr.bf16.mxu1 %v2690_v42  ;;  %2459 = vmatmul.mubr.bf16.gmra.mrb[4].mxu0 %v2118_v8 }
  0x79   : > { %2467 = vmatpush3.bf16.msra.mxu0 %v2689_v14  ;;  %2478 = vmatprep.mubr.bf16.mxu0 %v2993_v10  ;;  %v2698_v10 = vld [vmem:[%s3475_s1 + $0x1f0] sm:$0xff]  }
  0x7a   : > { %2468 = vmatprep.subr.bf16.mxu0 %v2691_v23 }
  0x7b   : > { %2373 = vmatpush3.bf16.msra.mxu1 %v2690_v42 }
  0x7c   : > { %2374 = vmatprep.subr.bf16.mxu1 %v2692_v22 }
  0x7d   : > { %2469 = vmatpush3.bf16.msra.mxu0 %v2691_v23 }
  0x7e   : > { %2470 = vmatprep.subr.bf16.mxu0 %v2693_v30 }
  0x7f   : > { %2375 = vmatpush3.bf16.msra.mxu1 %v2692_v22 }
  0x80   : > { %2376 = vmatprep.subr.bf16.mxu1 %v2694_v13 }
  0x81   : > { %2471 = vmatpush3.bf16.msra.mxu0 %v2693_v30 }
  0x82   : > { %2472 = vmatprep.subr.bf16.mxu0 %v2695_v63 }
  0x83   : > { %2377 = vmatpush3.bf16.msra.mxu1 %v2694_v13 }
  0x84   : > { %2378 = vmatprep.subr.bf16.mxu1 %v2696_v37 }
  0x85   : > { %2473 = vmatpush3.bf16.msra.mxu0 %v2695_v63 }
  0x86   : > { %2474 = vmatprep.subr.bf16.mxu0 %v2698_v10 }
  0x87   : > { %2379 = vmatpush3.bf16.msra.mxu1 %v2696_v37 }
  0x88   : > { %2380 = vmatprep.subr.bf16.mxu1 %v2699_v28 }
  0x89   : > { %2475 = vmatpush3.bf16.msra.mxu0 %v2698_v10 }
  0x8a   : > { %2476 = vmatprep.subr.bf16.mxu0 %v2700_v36 }
  0x8b   : > { %2381 = vmatpush3.bf16.msra.mxu1 %v2699_v28 }
  0x8c   : > { %2510 = vmatprep.subr.bf16.mxu1 %v2703_v29 }
  0x8d   : > { %2477 = vmatpush3.bf16.msra.mxu0 %v2700_v36 }
  0x8e   : > { %2383 = vmatmul.mubr.bf16.vlgmr.msra.gmra.mrb[0].mxu1 %v2034_v7  ;;  %2486 = vmatprep.subr.bf16.mxu0 %v2703_v29  ;;  %v2710_v7 = vld [vmem:[%s3475_s1 + $0x228] sm:$0xff]  }
  0x8f   : > { %2518 = vmatpush3.bf16.msra.mxu1 %v2703_v29  ;;  %2386 = vmatprep.mubr.bf16.mxu1 %v2035_v47 }
  0x90   : > { %2511 = vmatprep.subr.bf16.mxu1 %v2704_v40  ;;  %2479 = vmatmul.mubr.bf16.vlgmr.msra.gmra.mrb[0].mxu0 %v3066_v17 }
  0x91   : > { %2487 = vmatpush3.bf16.msra.mxu0 %v2703_v29  ;;  %2482 = vmatprep.mubr.bf16.mxu0 %v3103_v50 }
  0x92   : > { %2488 = vmatprep.subr.bf16.mxu0 %v2704_v40 }
  0x93   : > { %2519 = vmatpush3.bf16.msra.mxu1 %v2704_v40 }
  0x94   : > { %2512 = vmatprep.subr.bf16.mxu1 %v2707_v41 }
  0x95   : > { %2489 = vmatpush3.bf16.msra.mxu0 %v2704_v40 }
  0x96   : > { %2387 = vmatmul.mubr.bf16.gmra.mrb[4].mxu1 %v2036_v21  ;;  %2490 = vmatprep.subr.bf16.mxu0 %v2707_v41 }
  0x97   : > { %2520 = vmatpush3.bf16.msra.mxu1 %v2707_v41  ;;  %2506 = vmatprep.mubr.bf16.mxu1 %v3277_v1 }
  0x98   : > { %2513 = vmatprep.subr.bf16.mxu1 %v2708_v33  ;;  %2483 = vmatmul.mubr.bf16.gmra.mrb[4].mxu0 %v3221_v57 }
  0x99   : > { %2491 = vmatpush3.bf16.msra.mxu0 %v2707_v41  ;;  %2502 = vmatprep.mubr.bf16.mxu0 %v3256_v4 }
  0x9a   : > { %2492 = vmatprep.subr.bf16.mxu0 %v2708_v33 }
  0x9b   : > { %2521 = vmatpush3.bf16.msra.mxu1 %v2708_v33 }
  0x9c   : > { %2514 = vmatprep.subr.bf16.mxu1 %v2709_v52 }
  0x9d   : > { %2493 = vmatpush3.bf16.msra.mxu0 %v2708_v33 }
  0x9e   : > { %2494 = vmatprep.subr.bf16.mxu0 %v2709_v52 }
  0x9f   : > { %2522 = vmatpush3.bf16.msra.mxu1 %v2709_v52 }
  0xa0   : > { %2515 = vmatprep.subr.bf16.mxu1 %v2710_v7 }
  0xa1   : > { %2495 = vmatpush3.bf16.msra.mxu0 %v2709_v52 }
  0xa2   : > { %2496 = vmatprep.subr.bf16.mxu0 %v2710_v7 }
  0xa3   : > { %2523 = vmatpush3.bf16.msra.mxu1 %v2710_v7 }
  0xa4   : > { %2516 = vmatprep.subr.bf16.mxu1 %v2711_v25 }
  0xa5   : > { %2497 = vmatpush3.bf16.msra.mxu0 %v2710_v7 }
  0xa6   : > { %2498 = vmatprep.subr.bf16.mxu0 %v2711_v25 }
  0xa7   : > { %2524 = vmatpush3.bf16.msra.mxu1 %v2711_v25 }
  0xa8   : > { %2517 = vmatprep.subr.bf16.mxu1 %v2712_v38 }
  0xa9   : > { %2499 = vmatpush3.bf16.msra.mxu0 %v2711_v25 }
  0xaa   : > { %2500 = vmatprep.subr.bf16.mxu0 %v2712_v38 }
  0xab   : > { %2525 = vmatpush3.bf16.msra.mxu1 %v2712_v38 }
  0xad   : > { %2501 = vmatpush3.bf16.msra.mxu0 %v2712_v38 }
  0xae   : > { %2507 = vmatmul.mubr.bf16.vlgmr.msra.gmra.mrb[8].mxu1 %v2169_v35 }
  0xb0   : > { %2503 = vmatmul.mubr.bf16.vlgmr.msra.gmra.mrb[0].mxu0 %v3260_v5 }
 0x161   : > { %v2384_v47 = vpop.f32.mrb[0].mxu1 }
 0x162   : > { %v937_v53 = vpop.f32.mrb[1].mxu1 }
 0x163   : > { %v2385_v0 = vpop.f32.mrb[2].mxu1 }
 0x164   : > { %v940_v17 = vpop.f32.mrb[3].mxu1 }
 0x169   : > { %v2388_v21 = vpop.f32.mrb[4].mxu1 }
 0x16a   : > { %v953_v50 = vpop.f32.mrb[5].mxu1 }
 0x16b   : > { %v2389_v32 = vpop.f32.mrb[6].mxu1  ;;  %v2484_v44 = vpop.f32.mrb[4].mxu0 }
 0x16c   : > { %v956_v43 = vpop.f32.mrb[7].mxu1  ;;  %v2530_v49 = vadd.f32 %v2484_v44, %v2388_v21  ;;  %v1563_v15 = vpop.f32.mrb[5].mxu0 }
 0x16d   : > { %v2532_v19 = vadd.f32 %v1563_v15, %v953_v50  ;;  %v2485_v20 = vpop.f32.mrb[6].mxu0 }
 0x16e   : > { %v2534_v46 = vadd.f32 %v2485_v20, %v2389_v32  ;;  %v1566_v51 = vpop.f32.mrb[7].mxu0 }
 0x16f   : > { %v2536_v16 = vadd.f32 %v1566_v51, %v956_v43 }
 0x181   : > { %v2508_v18 = vpop.f32.mrb[8].mxu1 }
 0x182   : > { %v2531_v35 = vadd.f32 %v2530_v49, %v2508_v18  ;;  %v1709_v58 = vpop.f32.mrb[9].mxu1 }
 0x183   : > { %v2533_v26 = vadd.f32 %v2532_v19, %v1709_v58  ;;  %v2509_v54 = vpop.f32.mrb[10].mxu1  ;;  %v2504_v45 = vpop.f32.mrb[0].mxu0 }
 0x184   : > { %v2535_v55 = vadd.f32 %v2534_v46, %v2509_v54  ;;  %v1712_v12 = vpop.f32.mrb[11].mxu1  ;;  %v2526_v56 = vadd.f32 %v2504_v45, %v2384_v47  ;;  %v1693_v57 = vpop.f32.mrb[1].mxu0  ;;  %v2178_v54 = vld [vmem:[%s3476_s2] ss:$0 sm:$0xff] }
 0x185   : > { %v2537_v34 = vadd.f32 %v2536_v16, %v1712_v12  ;;  %v2527_v24 = vadd.f32 %v1693_v57, %v937_v53  ;;  %v2505_v59 = vpop.f32.mrb[2].mxu0  ;;  %v2179_v45 = vld [vmem:[%s3477_s3] ss:$0 sm:$0xff] }
 0x186   : > { %v2528_v39 = vadd.f32 %v2505_v59, %v2385_v0  ;;  %v1696_v31 = vpop.f32.mrb[3].mxu0  ;;  %1738 = vadd.xlane.f32.xlu1 %v2526_v56 }
 0x187   : > { %v2529_v60 = vadd.f32 %v1696_v31, %v940_v17  ;;  %1734 = vadd.xlane.f32.xlu0 %v2527_v24 }
 0x18a   : > { %1740 = vadd.xlane.f32.xlu1 %v2528_v39 }
 0x18b   : > { %1742 = vadd.xlane.f32.xlu0 %v2533_v26 }
 0x18e   : > { %1744 = vadd.xlane.f32.xlu1 %v2537_v34 }
 0x18f   : > { %1736 = vadd.xlane.f32.xlu0 %v2529_v60 }
 0x192   : > { %1748 = vadd.xlane.f32.xlu1 %v2535_v55 }
 0x193   : > { %1746 = vadd.xlane.f32.xlu0 %v2531_v35 }
 0x213   : > { %v1739_v61 = vpop.xlane.xlu1 %1738 }
 0x214   : > { %v1753_v62 = vmul.f32 0.0078125, %v1739_v61  ;;  %v1735_v11 = vpop.xlane.xlu0 %1734 }
 0x215   : > { %v1751_v2 = vmul.f32 0.0078125, %v1735_v11 }
 0x216   : > { %v3363_v3 = vsub.f32 %v2526_v56, %v1753_v62 }
 0x217   : > { %v1741_v4 = vpop.xlane.xlu1 %1740  ;;  %v3365_v5 = vsub.f32 %v2527_v24, %v1751_v2 }
 0x218   : > { %v1754_v6 = vmul.f32 0.0078125, %v1741_v4  ;;  %v1743_v27 = vpop.xlane.xlu0 %1742  ;;  %v1769_v48 = vmul.f32 %v3363_v3, %v3363_v3 }
 0x219   : > { %v1755_v9 = vmul.f32 0.0078125, %v1743_v27  ;;  %v1767_v22 = vmul.f32 %v3365_v5, %v3365_v5 }
 0x21a   : > { %v3369_v1 = vsub.f32 %v2528_v39, %v1754_v6  ;;  %1779 = vadd.xlane.f32.xlu0 %v1769_v48 }
 0x21b   : > { %v1745_v42 = vpop.xlane.xlu1 %1744  ;;  %v3371_v14 = vsub.f32 %v2533_v26, %v1755_v9 }
 0x21c   : > { %v1737_v8 = vpop.xlane.xlu0 %1736  ;;  %v1770_v23 = vmul.f32 %v3369_v1, %v3369_v1  ;;  %v1756_v13 = vmul.f32 0.0078125, %v1745_v42 }
 0x21d   : > { %v1752_v30 = vmul.f32 0.0078125, %v1737_v8  ;;  %v1771_v10 = vmul.f32 %v3371_v14, %v3371_v14 }
 0x21e   : > { %1775 = vadd.xlane.f32.xlu0 %v1767_v22  ;;  %1781 = vadd.xlane.f32.xlu1 %v1770_v23  ;;  %v3381_v29 = vsub.f32 %v2537_v34, %v1756_v13 }
 0x21f   : > { %v3377_v37 = vsub.f32 %v2529_v60, %v1752_v30  ;;  %v1749_v63 = vpop.xlane.xlu1 %1748 }
 0x220   : > { %v1747_v28 = vpop.xlane.xlu0 %1746  ;;  %v1758_v36 = vmul.f32 0.0078125, %v1749_v63  ;;  %v1772_v25 = vmul.f32 %v3381_v29, %v3381_v29 }
 0x221   : > { %v1757_v40 = vmul.f32 0.0078125, %v1747_v28  ;;  %v1768_v41 = vmul.f32 %v3377_v37, %v3377_v37 }
 0x222   : > { %1783 = vadd.xlane.f32.xlu0 %v1771_v10  ;;  %v3387_v52 = vsub.f32 %v2535_v55, %v1758_v36 }
 0x223   : > { %v3385_v33 = vsub.f32 %v2531_v35, %v1757_v40  ;;  %1777 = vadd.xlane.f32.xlu1 %v1768_v41 }
 0x224   : > { %v1774_v38 = vmul.f32 %v3387_v52, %v3387_v52 }
 0x225   : > { %v1773_v7 = vmul.f32 %v3385_v33, %v3385_v33 }
 0x227   : > { %1787 = vadd.xlane.f32.xlu0 %v1773_v7  ;;  %1785 = vadd.xlane.f32.xlu1 %v1772_v25 }
 0x22b   : > { %1789 = vadd.xlane.f32.xlu1 %v1774_v38 }
 0x2a7   : > { %v1780_v47 = vpop.xlane.xlu0 %1779 }
 0x2a8   : > { %v1793_v53 = vmul.f32 0.0078125, %v1780_v47 }
 0x2aa   : > { %v1801_v0 = vadd.f32 1e-06, %v1793_v53 }
 0x2ab   : > { %v1776_v17 = vpop.xlane.xlu0 %1775  ;;  %v1782_v21 = vpop.xlane.xlu1 %1781 }
 0x2ac   : > { %2713 = vrsqrt.f32 %v1801_v0  ;;  %v1791_v50 = vmul.f32 0.0078125, %v1776_v17  ;;  %v1794_v32 = vmul.f32 0.0078125, %v1782_v21 }
 0x2ae   : > { %v1799_v43 = vadd.f32 1e-06, %v1791_v50  ;;  %v1802_v44 = vadd.f32 1e-06, %v1794_v32 }
 0x2af   : > { %v1784_v49 = vpop.xlane.xlu0 %1783 }
 0x2b0   : > { %2715 = vrsqrt.f32 %v1799_v43  ;;  %v1795_v15 = vmul.f32 0.0078125, %v1784_v49  ;;  %v1778_v19 = vpop.xlane.xlu1 %1777 }
 0x2b1   : > { %2717 = vrsqrt.f32 %v1802_v44  ;;  %v1792_v20 = vmul.f32 0.0078125, %v1778_v19 }
 0x2b2   : > { %v1803_v46 = vadd.f32 1e-06, %v1795_v15 }
 0x2b3   : > { %v1800_v51 = vadd.f32 1e-06, %v1792_v20 }
 0x2b4   : > { %2719 = vrsqrt.f32 %v1803_v46  ;;  %v1788_v16 = vpop.xlane.xlu0 %1787  ;;  %v1786_v18 = vpop.xlane.xlu1 %1785 }
 0x2b5   : > { %2721 = vrsqrt.f32 %v1800_v51  ;;  %v1797_v35 = vmul.f32 0.0078125, %v1788_v16  ;;  %v1796_v58 = vmul.f32 0.0078125, %v1786_v18 }
 0x2b6   : > { %v2714_v26 = vpop.eup %2713 }
 0x2b7   : > { %v1817_v55 = vmul.f32 %v2714_v26, %v3363_v3  ;;  %v1805_v12 = vadd.f32 1e-06, %v1797_v35  ;;  %v1804_v34 = vadd.f32 1e-06, %v1796_v58 }
 0x2b8   : > { %v1790_v56 = vpop.xlane.xlu1 %1789 }
 0x2b9   : > { %v1831_v57 = vmul.f32 %v2178_v54, %v1817_v55  ;;  %2723 = vrsqrt.f32 %v1805_v12  ;;  %v1798_v24 = vmul.f32 0.0078125, %v1790_v56 }
 0x2ba   : > { %v2716_v59 = vpop.eup %2715  ;;  %2725 = vrsqrt.f32 %v1804_v34 }
 0x2bb   : > { %v2718_v39 = vpop.eup %2717  ;;  %v1845_v31 = vadd.f32 %v2179_v45, %v1831_v57  ;;  %v1815_v60 = vmul.f32 %v2716_v59, %v3365_v5  ;;  %v1806_v61 = vadd.f32 1e-06, %v1798_v24 }
 0x2bc   : > { %v1818_v62 = vmul.f32 %v2718_v39, %v3369_v1 }
 0x2bd   : > { %1853 = vst [vmem:[%s3407_s5 + $0x10] sm:$0xff] %v1845_v31  ;;  %v1829_v11 = vmul.f32 %v2178_v54, %v1815_v60  ;;  %2727 = vrsqrt.f32 %v1806_v61 }
 0x2be   : > { %v2720_v2 = vpop.eup %2719  ;;  %v1832_v3 = vmul.f32 %v2178_v54, %v1818_v62 }
 0x2bf   : > { %v2722_v4 = vpop.eup %2721  ;;  %v1843_v6 = vadd.f32 %v2179_v45, %v1829_v11  ;;  %v1819_v27 = vmul.f32 %v2720_v2, %v3371_v14 }
 0x2c0   : > { %v1846_v5 = vadd.f32 %v2179_v45, %v1832_v3  ;;  %v1816_v48 = vmul.f32 %v2722_v4, %v3377_v37 }
 0x2c1   : > { %1851 = vst [vmem:[%s3407_s5] sm:$0xff] %v1843_v6  ;;  %v1833_v9 = vmul.f32 %v2178_v54, %v1819_v27 }
 0x2c2   : > { %1854 = vst [vmem:[%s3407_s5 + $0x18] sm:$0xff] %v1846_v5  ;;  %v1830_v1 = vmul.f32 %v2178_v54, %v1816_v48 }
 0x2c3   : > { %v2724_v42 = vpop.eup %2723  ;;  %v1847_v8 = vadd.f32 %v2179_v45, %v1833_v9 }
 0x2c4   : > { %v2726_v22 = vpop.eup %2725  ;;  %v1844_v23 = vadd.f32 %v2179_v45, %v1830_v1  ;;  %v1821_v13 = vmul.f32 %v2724_v42, %v3385_v33 }
 0x2c5   : > { %1855 = vst [vmem:[%s3407_s5 + $0x20] sm:$0xff] %v1847_v8  ;;  %v1820_v14 = vmul.f32 %v2726_v22, %v3381_v29 }
 0x2c6   : > { %1852 = vst [vmem:[%s3407_s5 + $0x8] sm:$0xff] %v1844_v23  ;;  %v1835_v30 = vmul.f32 %v2178_v54, %v1821_v13 }
 0x2c7   : > { %v2728_v37 = vpop.eup %2727  ;;  %v1834_v63 = vmul.f32 %v2178_v54, %v1820_v14 }
 0x2c8   : > { %v1849_v28 = vadd.f32 %v2179_v45, %v1835_v30  ;;  %v1822_v10 = vmul.f32 %v2728_v37, %v3387_v52 }
 0x2c9   : > { %v1848_v36 = vadd.f32 %v2179_v45, %v1834_v63 }
 0x2ca   : > { %1857 = vst [vmem:[%s3407_s5 + $0x30] sm:$0xff] %v1849_v28  ;;  %v1836_v40 = vmul.f32 %v2178_v54, %v1822_v10 }
 0x2cb   : > { %1856 = vst [vmem:[%s3407_s5 + $0x28] sm:$0xff] %v1848_v36 }
 0x2cc   : > { %v1850_v29 = vadd.f32 %v2179_v45, %v1836_v40 }
 0x2ce   : > { %1858 = vst [vmem:[%s3407_s5 + $0x38] sm:$0xff] %v1850_v29 }
 0x2cf   : > { %2742 = shalt.err (!%p2739_p3)
}
 0x2d0   : > { %s2743_s20 = scalar_lea.hbm %s3426_s10, 1024  ;;  %s2747_s27 = scalar_lea.hbm %s3478_s4, 2048 }
 0x2d1   : > { %p2744_p4 = scmp.ne.s32.totalorder %s3426_s10, %s2743_s20  ;;  %p2748_p9 = scmp.lt.u32.totalorder %s3426_s10, %s3478_s4 }
 0x2d2   : > { %p2749_p10 = scmp.lt.u32.totalorder %s2747_s27, %s2743_s20  ;;  %p2751_p12 = scmp.lt.u32.totalorder %s2743_s20, %s3426_s10 }
 0x2d3   : > { %p2745_p7 = pnand %p2744_p4, %p2859_p5 }
 0x2d4   : > { %p2750_p11 = por %p2749_p10, %p2748_p9 }
 0x2d5   : > { %p2746_p8 = pneg %p2745_p7 }
 0x2d6   : > { %p2752_p13 = por %p2751_p12, %p2750_p11 }
 0x2d8   : > { %p2753_p0 = pnand %p2752_p13, %p2746_p8 }
 0x2da   : > { %2756 = shalt.err (!%p2753_p0)
}
 0x2db   : > { %s2794_s30 = smov 128   ;;  %s2795_s5 = smov 8  }
 0x2dc   : > { %2591 = dma.vmem_to_hbm [thread:$0]  (%p2859_p5), %s3428_s7, 1024, %s3426_s10, %s3433_s11, %s2794_s30, %s2794_s30, %s2795_s5  }
 0x2dd PF: > { %p2597_p1 = scmp.ge.s32.totalorder %s2791_s18, 2  ;;  %s1888_s6 = sand.u32 1, %s2779_s15  }
 0x2de   : > { %s1889_s8 = scalar_lea.sflag [#allocation3], %s1888_s6 }
 0x2df   : > { %p2594_p2 = pnand %p2597_p1, %p2863_p6 }
 0x2e1   : > { %2774 = dma.done.wait (!%p2594_p2), %s1889_s8, 1024  }
 0x2e2   : > { %2776 = vsyncadd (!%p2594_p2), %s1889_s8, 4294966272  ;;  %p14_p3 = scmp.ge.s32.totalorder %s2846_s21, 4   ;;  %s3485_s15 = smov %s2783_s16 }
 0x2e3   : > { %s3486_s16 = smov %s2787_s17  ;;  %s3487_s17 = smov %s2857_s24 }
 0x2e4   : > { %s3488_s18 = smov %s2846_s21  ;;  %16 = sbr.rel (!%p14_p3) target bundleno = 3 (0x3), region = 79 }
 0x2eb   :  { %1894 = vsyncpa [#allocation3], 1 }
 0x2ec   :  { %1896 = vsyncpa [#allocation3 + $0x1], 1 }

</bundles_post_ra>
